<compile_context>
chip_gen: v7x
topology: tpu7x:2x2x1
jax: 0.10.0
libtpu: 0.0.40
codegen_flags: <defaults>
</compile_context>

<pallas_src>
import functools
import math

import jax
import jax.numpy as jnp
from jax.experimental import pallas as pl
from jax.experimental.pallas import tpu as pltpu

F32 = jnp.float32
BF16 = jnp.bfloat16


# ---------------------------------------------------------------------------
# Fused decoder-layer kernel (one batch block per grid step)
# ---------------------------------------------------------------------------

def decoder_layer_kernel(
    x_ref, y_ref, tbias_ref, cbias_ref,
    # self-attention (head-major packed)
    wq_s_ref, bq_s_ref, wk_s_ref, bk_s_ref, wv_s_ref, bv_s_ref, wo_s_ref, bo_s_ref,
    # cross-attention (head-major packed)
    wq_c_ref, bq_c_ref, wk_c_ref, bk_c_ref, wv_c_ref, bv_c_ref, wo_c_ref, bo_c_ref,
    # feed-forward
    w1_ref, b1_ref, w2_ref, b2_ref,
    # LayerNorms
    g1_ref, be1_ref, g2_ref, be2_ref, g3_ref, be3_ref,
    o_ref,
    *, d_model,
):
    x = x_ref[...]           # [BB, Sq, Dp] f32 (pad lanes are exactly zero)
    y = y_ref[...]           # [BB, Sk, Dp] f32
    tbias = tbias_ref[...]   # [1, Sq, Sq]  additive mask bias (0 / -1e9)
    cbias = cbias_ref[...]   # [1, Sq, Sk]
    BB, Sq, Dp = x.shape
    H = wq_s_ref.shape[0]
    dkp = wq_s_ref.shape[2]
    inv_d = 1.0 / d_model    # LayerNorm divisor is the REAL feature count

    def mha(q_in, kv_in, bias, wq_ref, bq_ref, wk_ref, bk_ref, wv_ref, bv_ref,
            wo_ref, bo_ref):
        sq, sk = q_in.shape[1], kv_in.shape[1]
        q2 = q_in.reshape(BB * sq, Dp).astype(BF16)
        k2 = kv_in.reshape(BB * sk, Dp).astype(BF16)
        ctx_parts = []
        for h in range(H):  # static unroll; leading-dim weight indexing only
            qh = (jnp.dot(q2, wq_ref[h], preferred_element_type=F32)
                  + bq_ref[h]).reshape(BB, sq, dkp)        # scale folded in
            kh = (jnp.dot(k2, wk_ref[h], preferred_element_type=F32)
                  + bk_ref[h]).reshape(BB, sk, dkp)
            vh = (jnp.dot(k2, wv_ref[h], preferred_element_type=F32)
                  + bv_ref[h]).reshape(BB, sk, dkp)
            s = jnp.einsum('bqd,bkd->bqk', qh.astype(BF16), kh.astype(BF16),
                           preferred_element_type=F32)
            s = s + bias                                    # additive mask bias
            s = s - jnp.max(s, axis=-1, keepdims=True)
            p = jnp.exp(s)
            p = p * pl.reciprocal(jnp.sum(p, axis=-1, keepdims=True), approx=True)
            ctx_parts.append(
                jnp.einsum('bqk,bkd->bqd', p.astype(BF16), vh.astype(BF16),
                           preferred_element_type=F32).astype(BF16))
        # Heads occupy disjoint, 128-aligned lane ranges -> ONE output projection.
        ctx = jnp.concatenate(ctx_parts, axis=-1).reshape(BB * sq, H * dkp)
        out = jnp.dot(ctx, wo_ref[...], preferred_element_type=F32) + bo_ref[...]
        return out.reshape(BB, sq, Dp)

    def add_ln(a, r, g_ref, b_ref):
        # Pad lanes of a and r are exactly zero, so sums over Dp == sums over D.
        z = a + r
        mu = jnp.sum(z, axis=-1, keepdims=True) * inv_d
        ex2 = jnp.sum(z * z, axis=-1, keepdims=True) * inv_d
        var = jnp.maximum(ex2 - mu * mu, 0.0)
        return (z - mu) * jax.lax.rsqrt(var + 1e-5) * g_ref[...] + b_ref[...]

    # 1) self-attention + residual + LayerNorm (dropout = identity in eval mode)
    sa = mha(x, x, tbias, wq_s_ref, bq_s_ref, wk_s_ref, bk_s_ref,
             wv_s_ref, bv_s_ref, wo_s_ref, bo_s_ref)
    x1 = add_ln(x, sa, g1_ref, be1_ref)

    # 2) cross-attention + residual + LayerNorm
    ca = mha(x1, y, cbias, wq_c_ref, bq_c_ref, wk_c_ref, bk_c_ref,
             wv_c_ref, bv_c_ref, wo_c_ref, bo_c_ref)
    x2 = add_ln(x1, ca, g2_ref, be2_ref)

    # 3) feed-forward + residual + LayerNorm
    x2f = x2.reshape(BB * Sq, Dp).astype(BF16)
    hdn = jnp.dot(x2f, w1_ref[...], preferred_element_type=F32) + b1_ref[...]
    hdn = jnp.maximum(hdn, 0.0)
    ff = (jnp.dot(hdn.astype(BF16), w2_ref[...], preferred_element_type=F32)
          + b2_ref[...]).reshape(BB, Sq, Dp)
    o_ref[...] = add_ln(x2, ff, g3_ref, be3_ref)


# ---------------------------------------------------------------------------
# Wrapper: host-side weight packing / padding + one pallas_call
# ---------------------------------------------------------------------------

def decoder_layer(params, x, y, tgt_mask, cross_mask, num_heads):
    B, S_tgt, D = x.shape
    S_src = y.shape[1]
    H = num_heads
    dk = D // H
    d_ff = params["ff_w1"].shape[1]

    def rup(n, m=128):
        return ((n + m - 1) // m) * m

    Dp, dkp, Fp = rup(D), rup(dk), rup(d_ff)
    scale = 1.0 / math.sqrt(dk)          # compile-time constant, folded into Wq/bq

    def pad_last(a, target):
        pad = target - a.shape[-1]
        if pad == 0:
            return a
        return jnp.pad(a, [(0, 0)] * (a.ndim - 1) + [(0, pad)])

    def prep_mha(p, q_scale):
        def proj(w, b, mul):
            w = (w.reshape(D, H, dk).transpose(1, 0, 2) * mul)            # [H, D, dk]
            w = jnp.pad(w, ((0, 0), (0, Dp - D), (0, dkp - dk))).astype(BF16)
            b = jnp.pad(b.reshape(H, 1, dk) * mul,
                        ((0, 0), (0, 0), (0, dkp - dk))).astype(F32)
            return w, b
        wq, bq = proj(p["wq"], p["bq"], q_scale)
        wk, bk = proj(p["wk"], p["bk"], 1.0)
        wv, bv = proj(p["wv"], p["bv"], 1.0)
        # Output projection packed to match concatenated per-head lane layout.
        wo = jnp.pad(p["wo"].reshape(H, dk, D),
                     ((0, 0), (0, dkp - dk), (0, Dp - D))).reshape(H * dkp, Dp)
        wo = wo.astype(BF16)
        bo = pad_last(p["bo"].reshape(1, D), Dp).astype(F32)
        return wq, bq, wk, bk, wv, bv, wo, bo

    sa_w = prep_mha(params["self_attn"], scale)
    ca_w = prep_mha(params["cross_attn"], scale)

    w1 = jnp.pad(params["ff_w1"], ((0, Dp - D), (0, Fp - d_ff))).astype(BF16)
    b1 = pad_last(params["ff_b1"].reshape(1, d_ff), Fp).astype(F32)
    w2 = jnp.pad(params["ff_w2"], ((0, Fp - d_ff), (0, Dp - D))).astype(BF16)
    b2 = pad_last(params["ff_b2"].reshape(1, D), Dp).astype(F32)
    ffn_w = (w1, b1, w2, b2)

    ln_w = tuple(pad_last(params[k].reshape(1, D), Dp).astype(F32)
                 for k in ("ln1_g", "ln1_b", "ln2_g", "ln2_b", "ln3_g", "ln3_b"))

    weight_args = (*sa_w, *ca_w, *ffn_w, *ln_w)

    # Batch-invariant additive mask biases, (1, Sq, Sk) — no batch broadcast in HBM.
    # TODO(synk): per-batch masks would need a (BB, Sq, Sk) block with index (b,0,0).
    tbias = ((tgt_mask.reshape(-1, S_tgt, S_tgt)[:1] - 1.0) * 1e9).astype(F32)
    cbias = ((cross_mask.reshape(-1, S_tgt, S_src)[:1] - 1.0) * 1e9).astype(F32)

    xp = pad_last(x, Dp).astype(F32)
    yp = pad_last(y, Dp).astype(F32)

    # Several batch elements per grid step -> more MXU rows, fewer step overheads.
    bb = min(B, 8)
    while B % bb:
        bb -= 1

    kern = functools.partial(decoder_layer_kernel, d_model=D)

    def run(buffered):
        def const_spec(a):
            nd = a.ndim
            idx = lambda b, _nd=nd: (0,) * _nd
            if buffered:
                # Constant-index blocks: single-buffered halves weight VMEM residency.
                return pl.BlockSpec(a.shape, idx, pipeline_mode=pl.Buffered(1))
            return pl.BlockSpec(a.shape, idx)

        in_specs = [
            pl.BlockSpec((bb, S_tgt, Dp), lambda b: (b, 0, 0)),   # x
            pl.BlockSpec((bb, S_src, Dp), lambda b: (b, 0, 0)),   # y
            const_spec(tbias), const_spec(cbias),
        ] + [const_spec(w) for w in weight_args]

        out = pl.pallas_call(
            kern,
            out_shape=jax.ShapeDtypeStruct((B, S_tgt, Dp), F32),
            grid=(B // bb,),
            in_specs=in_specs,
            out_specs=pl.BlockSpec((bb, S_tgt, Dp), lambda b: (b, 0, 0)),
            compiler_params=pltpu.CompilerParams(
                dimension_semantics=("parallel",),
                vmem_limit_bytes=48 * 1024 * 1024),
        )(xp, yp, tbias, cbias, *weight_args)
        return jax.block_until_ready(out)

    try:
        out = run(True)
    except Exception:
        # Fallback if this JAX build rejects pipeline_mode=pl.Buffered(1).
        out = run(False)

    return out[..., :D]     # drop lane padding back to d_model


# ---------------------------------------------------------------------------
# Deterministic parameter init
# ---------------------------------------------------------------------------

def init_params(key, d_model, d_ff):
    def lin(k, din, dout):
        kw, kb = jax.random.split(k)
        w = jax.random.normal(kw, (din, dout), jnp.float32) * 0.05
        b = jax.random.normal(kb, (dout,), jnp.float32) * 0.01
        return w, b

    keys = jax.random.split(key, 12)

    def mha_params(ks):
        wq, bq = lin(ks[0], d_model, d_model)
        wk, bk = lin(ks[1], d_model, d_model)
        wv, bv = lin(ks[2], d_model, d_model)
        wo, bo = lin(ks[3], d_model, d_model)
        return dict(wq=wq, bq=bq, wk=wk, bk=bk, wv=wv, bv=bv, wo=wo, bo=bo)

    ff_w1, ff_b1 = lin(keys[8], d_model, d_ff)
    ff_w2, ff_b2 = lin(keys[9], d_ff, d_model)

    return dict(
        self_attn=mha_params(keys[0:4]),
        cross_attn=mha_params(keys[4:8]),
        ff_w1=ff_w1, ff_b1=ff_b1, ff_w2=ff_w2, ff_b2=ff_b2,
        ln1_g=jnp.ones((d_model,), jnp.float32), ln1_b=jnp.zeros((d_model,), jnp.float32),
        ln2_g=jnp.ones((d_model,), jnp.float32), ln2_b=jnp.zeros((d_model,), jnp.float32),
        ln3_g=jnp.ones((d_model,), jnp.float32), ln3_b=jnp.zeros((d_model,), jnp.float32),
    )


# ---------------------------------------------------------------------------
# Main
# ---------------------------------------------------------------------------

if __name__ == "__main__":
    B, S_tgt, S_src = 2, 8, 8
    d_model, num_heads, d_ff = 32, 4, 64
    dropout = 0.1  # nn.Dropout is identity in eval mode (deterministic forward)

    key = jax.random.PRNGKey(0)
    kp, kx, ky = jax.random.split(key, 3)
    params = init_params(kp, d_model, d_ff)

    x = jax.random.normal(kx, (B, S_tgt, d_model), jnp.float32)
    y = jax.random.normal(ky, (B, S_src, d_model), jnp.float32)

    # Causal target mask [1, 1, S_tgt, S_tgt]; all-ones cross mask.
    tgt_mask = jnp.tril(jnp.ones((S_tgt, S_tgt), jnp.float32))[None, None]
    cross_mask = jnp.ones((1, 1, S_tgt, S_src), jnp.float32)

    out = decoder_layer(params, x, y, tgt_mask, cross_mask, num_heads)
    out = jax.block_until_ready(out)
    assert out.shape == (B, S_tgt, d_model)
    assert bool(jnp.all(jnp.isfinite(out)))
    print("KERNEL_OK")
</pallas_src>

<mosaic_0001>
module attributes {stable_mosaic.version = 11 : i64} {
  func.func @decoder_layer_kernel(%arg0: i32, %arg1: memref<2x8x128xf32, #tpu.memory_space<vmem>>, %arg2: memref<2x8x128xf32, #tpu.memory_space<vmem>>, %arg3: memref<1x8x8xf32, #tpu.memory_space<vmem>>, %arg4: memref<1x8x8xf32, #tpu.memory_space<vmem>>, %arg5: memref<4x128x128xbf16, #tpu.memory_space<vmem>>, %arg6: memref<4x1x128xf32, #tpu.memory_space<vmem>>, %arg7: memref<4x128x128xbf16, #tpu.memory_space<vmem>>, %arg8: memref<4x1x128xf32, #tpu.memory_space<vmem>>, %arg9: memref<4x128x128xbf16, #tpu.memory_space<vmem>>, %arg10: memref<4x1x128xf32, #tpu.memory_space<vmem>>, %arg11: memref<512x128xbf16, #tpu.memory_space<vmem>>, %arg12: memref<1x128xf32, #tpu.memory_space<vmem>>, %arg13: memref<4x128x128xbf16, #tpu.memory_space<vmem>>, %arg14: memref<4x1x128xf32, #tpu.memory_space<vmem>>, %arg15: memref<4x128x128xbf16, #tpu.memory_space<vmem>>, %arg16: memref<4x1x128xf32, #tpu.memory_space<vmem>>, %arg17: memref<4x128x128xbf16, #tpu.memory_space<vmem>>, %arg18: memref<4x1x128xf32, #tpu.memory_space<vmem>>, %arg19: memref<512x128xbf16, #tpu.memory_space<vmem>>, %arg20: memref<1x128xf32, #tpu.memory_space<vmem>>, %arg21: memref<128x128xbf16, #tpu.memory_space<vmem>>, %arg22: memref<1x128xf32, #tpu.memory_space<vmem>>, %arg23: memref<128x128xbf16, #tpu.memory_space<vmem>>, %arg24: memref<1x128xf32, #tpu.memory_space<vmem>>, %arg25: memref<1x128xf32, #tpu.memory_space<vmem>>, %arg26: memref<1x128xf32, #tpu.memory_space<vmem>>, %arg27: memref<1x128xf32, #tpu.memory_space<vmem>>, %arg28: memref<1x128xf32, #tpu.memory_space<vmem>>, %arg29: memref<1x128xf32, #tpu.memory_space<vmem>>, %arg30: memref<1x128xf32, #tpu.memory_space<vmem>>, %arg31: memref<2x8x128xf32, #tpu.memory_space<vmem>>) attributes {dimension_semantics = [#tpu.dimension_semantics<parallel>], iteration_bounds = array<i64: 1>, scalar_prefetch = 0 : i64, scratch_operands = 0 : i64, tpu.core_type = #tpu.core_type<tc>, window_params = [{transform_indices = @transform_0, window_bounds = array<i64: 2, 8, 128>}, {transform_indices = @transform_1, window_bounds = array<i64: 2, 8, 128>}, {pipeline_mode = #tpu.pipeline_mode<synchronous>, transform_indices = @transform_2, window_bounds = array<i64: 1, 8, 8>}, {pipeline_mode = #tpu.pipeline_mode<synchronous>, transform_indices = @transform_3, window_bounds = array<i64: 1, 8, 8>}, {pipeline_mode = #tpu.pipeline_mode<synchronous>, transform_indices = @transform_4, window_bounds = array<i64: 4, 128, 128>}, {pipeline_mode = #tpu.pipeline_mode<synchronous>, transform_indices = @transform_5, window_bounds = array<i64: 4, 1, 128>}, {pipeline_mode = #tpu.pipeline_mode<synchronous>, transform_indices = @transform_6, window_bounds = array<i64: 4, 128, 128>}, {pipeline_mode = #tpu.pipeline_mode<synchronous>, transform_indices = @transform_7, window_bounds = array<i64: 4, 1, 128>}, {pipeline_mode = #tpu.pipeline_mode<synchronous>, transform_indices = @transform_8, window_bounds = array<i64: 4, 128, 128>}, {pipeline_mode = #tpu.pipeline_mode<synchronous>, transform_indices = @transform_9, window_bounds = array<i64: 4, 1, 128>}, {pipeline_mode = #tpu.pipeline_mode<synchronous>, transform_indices = @transform_10, window_bounds = array<i64: 512, 128>}, {pipeline_mode = #tpu.pipeline_mode<synchronous>, transform_indices = @transform_11, window_bounds = array<i64: 1, 128>}, {pipeline_mode = #tpu.pipeline_mode<synchronous>, transform_indices = @transform_12, window_bounds = array<i64: 4, 128, 128>}, {pipeline_mode = #tpu.pipeline_mode<synchronous>, transform_indices = @transform_13, window_bounds = array<i64: 4, 1, 128>}, {pipeline_mode = #tpu.pipeline_mode<synchronous>, transform_indices = @transform_14, window_bounds = array<i64: 4, 128, 128>}, {pipeline_mode = #tpu.pipeline_mode<synchronous>, transform_indices = @transform_15, window_bounds = array<i64: 4, 1, 128>}, {pipeline_mode = #tpu.pipeline_mode<synchronous>, transform_indices = @transform_16, window_bounds = array<i64: 4, 128, 128>}, {pipeline_mode = #tpu.pipeline_mode<synchronous>, transform_indices = @transform_17, window_bounds = array<i64: 4, 1, 128>}, {pipeline_mode = #tpu.pipeline_mode<synchronous>, transform_indices = @transform_18, window_bounds = array<i64: 512, 128>}, {pipeline_mode = #tpu.pipeline_mode<synchronous>, transform_indices = @transform_19, window_bounds = array<i64: 1, 128>}, {pipeline_mode = #tpu.pipeline_mode<synchronous>, transform_indices = @transform_20, window_bounds = array<i64: 128, 128>}, {pipeline_mode = #tpu.pipeline_mode<synchronous>, transform_indices = @transform_21, window_bounds = array<i64: 1, 128>}, {pipeline_mode = #tpu.pipeline_mode<synchronous>, transform_indices = @transform_22, window_bounds = array<i64: 128, 128>}, {pipeline_mode = #tpu.pipeline_mode<synchronous>, transform_indices = @transform_23, window_bounds = array<i64: 1, 128>}, {pipeline_mode = #tpu.pipeline_mode<synchronous>, transform_indices = @transform_24, window_bounds = array<i64: 1, 128>}, {pipeline_mode = #tpu.pipeline_mode<synchronous>, transform_indices = @transform_25, window_bounds = array<i64: 1, 128>}, {pipeline_mode = #tpu.pipeline_mode<synchronous>, transform_indices = @transform_26, window_bounds = array<i64: 1, 128>}, {pipeline_mode = #tpu.pipeline_mode<synchronous>, transform_indices = @transform_27, window_bounds = array<i64: 1, 128>}, {pipeline_mode = #tpu.pipeline_mode<synchronous>, transform_indices = @transform_28, window_bounds = array<i64: 1, 128>}, {pipeline_mode = #tpu.pipeline_mode<synchronous>, transform_indices = @transform_29, window_bounds = array<i64: 1, 128>}, {transform_indices = @transform_30, window_bounds = array<i64: 2, 8, 128>}]} {
    %c0 = arith.constant 0 : index
    %c0_0 = arith.constant 0 : index
    %c0_1 = arith.constant 0 : index
    %0 = vector.load %arg1[%c0, %c0_0, %c0_1] : memref<2x8x128xf32, #tpu.memory_space<vmem>>, vector<2x8x128xf32>
    %c0_2 = arith.constant 0 : index
    %c0_3 = arith.constant 0 : index
    %c0_4 = arith.constant 0 : index
    %1 = vector.load %arg2[%c0_2, %c0_3, %c0_4] : memref<2x8x128xf32, #tpu.memory_space<vmem>>, vector<2x8x128xf32>
    %c0_5 = arith.constant 0 : index
    %c0_6 = arith.constant 0 : index
    %c0_7 = arith.constant 0 : index
    %2 = vector.load %arg3[%c0_5, %c0_6, %c0_7] : memref<1x8x8xf32, #tpu.memory_space<vmem>>, vector<1x8x8xf32>
    %c0_8 = arith.constant 0 : index
    %c0_9 = arith.constant 0 : index
    %c0_10 = arith.constant 0 : index
    %3 = vector.load %arg4[%c0_8, %c0_9, %c0_10] : memref<1x8x8xf32, #tpu.memory_space<vmem>>, vector<1x8x8xf32>
    %4 = vector.shape_cast %0 : vector<2x8x128xf32> to vector<16x128xf32>
    %5 = arith.truncf %4 : vector<16x128xf32> to vector<16x128xbf16>
    %6 = vector.shape_cast %0 : vector<2x8x128xf32> to vector<16x128xf32>
    %7 = arith.truncf %6 : vector<16x128xf32> to vector<16x128xbf16>
    %c0_11 = arith.constant 0 : index
    %c0_12 = arith.constant 0 : index
    %c0_13 = arith.constant 0 : index
    %8 = vector.load %arg5[%c0_11, %c0_12, %c0_13] : memref<4x128x128xbf16, #tpu.memory_space<vmem>>, vector<1x128x128xbf16>
    %9 = vector.shape_cast %8 : vector<1x128x128xbf16> to vector<128x128xbf16>
    %cst = arith.constant dense<0.000000e+00> : vector<16x128xf32>
    %10 = tpu.matmul %5, %9, %cst {dimension_numbers = #tpu.dot_dimension_numbers<[1], [0], [0], [1], [0, 0, 1, 1], [], []>} : vector<16x128xbf16>, vector<128x128xbf16>, vector<16x128xf32> -> vector<16x128xf32>
    %c0_14 = arith.constant 0 : index
    %c0_15 = arith.constant 0 : index
    %c0_16 = arith.constant 0 : index
    %11 = vector.load %arg6[%c0_14, %c0_15, %c0_16] : memref<4x1x128xf32, #tpu.memory_space<vmem>>, vector<1x1x128xf32>
    %12 = vector.shape_cast %11 : vector<1x1x128xf32> to vector<1x128xf32>
    %13 = vector.broadcast %12 : vector<1x128xf32> to vector<16x128xf32>
    %14 = arith.addf %10, %13 : vector<16x128xf32>
    %15 = vector.shape_cast %14 : vector<16x128xf32> to vector<2x8x128xf32>
    %c0_17 = arith.constant 0 : index
    %c0_18 = arith.constant 0 : index
    %c0_19 = arith.constant 0 : index
    %16 = vector.load %arg7[%c0_17, %c0_18, %c0_19] : memref<4x128x128xbf16, #tpu.memory_space<vmem>>, vector<1x128x128xbf16>
    %17 = vector.shape_cast %16 : vector<1x128x128xbf16> to vector<128x128xbf16>
    %cst_20 = arith.constant dense<0.000000e+00> : vector<16x128xf32>
    %18 = tpu.matmul %7, %17, %cst_20 {dimension_numbers = #tpu.dot_dimension_numbers<[1], [0], [0], [1], [0, 0, 1, 1], [], []>} : vector<16x128xbf16>, vector<128x128xbf16>, vector<16x128xf32> -> vector<16x128xf32>
    %c0_21 = arith.constant 0 : index
    %c0_22 = arith.constant 0 : index
    %c0_23 = arith.constant 0 : index
    %19 = vector.load %arg8[%c0_21, %c0_22, %c0_23] : memref<4x1x128xf32, #tpu.memory_space<vmem>>, vector<1x1x128xf32>
    %20 = vector.shape_cast %19 : vector<1x1x128xf32> to vector<1x128xf32>
    %21 = vector.broadcast %20 : vector<1x128xf32> to vector<16x128xf32>
    %22 = arith.addf %18, %21 : vector<16x128xf32>
    %23 = vector.shape_cast %22 : vector<16x128xf32> to vector<2x8x128xf32>
    %c0_24 = arith.constant 0 : index
    %c0_25 = arith.constant 0 : index
    %c0_26 = arith.constant 0 : index
    %24 = vector.load %arg9[%c0_24, %c0_25, %c0_26] : memref<4x128x128xbf16, #tpu.memory_space<vmem>>, vector<1x128x128xbf16>
    %25 = vector.shape_cast %24 : vector<1x128x128xbf16> to vector<128x128xbf16>
    %cst_27 = arith.constant dense<0.000000e+00> : vector<16x128xf32>
    %26 = tpu.matmul %7, %25, %cst_27 {dimension_numbers = #tpu.dot_dimension_numbers<[1], [0], [0], [1], [0, 0, 1, 1], [], []>} : vector<16x128xbf16>, vector<128x128xbf16>, vector<16x128xf32> -> vector<16x128xf32>
    %c0_28 = arith.constant 0 : index
    %c0_29 = arith.constant 0 : index
    %c0_30 = arith.constant 0 : index
    %27 = vector.load %arg10[%c0_28, %c0_29, %c0_30] : memref<4x1x128xf32, #tpu.memory_space<vmem>>, vector<1x1x128xf32>
    %28 = vector.shape_cast %27 : vector<1x1x128xf32> to vector<1x128xf32>
    %29 = vector.broadcast %28 : vector<1x128xf32> to vector<16x128xf32>
    %30 = arith.addf %26, %29 : vector<16x128xf32>
    %31 = vector.shape_cast %30 : vector<16x128xf32> to vector<2x8x128xf32>
    %32 = arith.truncf %15 : vector<2x8x128xf32> to vector<2x8x128xbf16>
    %33 = arith.truncf %23 : vector<2x8x128xf32> to vector<2x8x128xbf16>
    "tpu.trace_start"() <{level = 10 : i32, message = "bqd,bkd->bqk"}> : () -> ()
    %cst_31 = arith.constant dense<0.000000e+00> : vector<2x8x8xf32>
    %34 = tpu.matmul %32, %33, %cst_31 {dimension_numbers = #tpu.dot_dimension_numbers<[2], [2], [1], [1], [0, 0, 0, 1, 1, 1], [0], [0]>} : vector<2x8x128xbf16>, vector<2x8x128xbf16>, vector<2x8x8xf32> -> vector<2x8x8xf32>
    "tpu.trace_stop"() : () -> ()
    %35 = vector.broadcast %2 : vector<1x8x8xf32> to vector<2x8x8xf32>
    %36 = arith.addf %34, %35 : vector<2x8x8xf32>
    %cst_32 = arith.constant dense<0xFF800000> : vector<2x8xf32>
    %37 = vector.multi_reduction <maximumf>, %36, %cst_32 [2] : vector<2x8x8xf32> to vector<2x8xf32>
    %38 = vector.shape_cast %37 : vector<2x8xf32> to vector<2x8x1xf32>
    %39 = vector.broadcast %38 : vector<2x8x1xf32> to vector<2x8x8xf32>
    %40 = arith.subf %36, %39 : vector<2x8x8xf32>
    %41 = math.exp %40 : vector<2x8x8xf32>
    %cst_33 = arith.constant dense<0.000000e+00> : vector<2x8xf32>
    %42 = vector.multi_reduction <add>, %41, %cst_33 [2] : vector<2x8x8xf32> to vector<2x8xf32>
    %43 = vector.shape_cast %42 : vector<2x8xf32> to vector<2x8x1xf32>
    %44 = tpu.reciprocal %43 {approx = true} : vector<2x8x1xf32> -> vector<2x8x1xf32>
    %45 = vector.broadcast %44 : vector<2x8x1xf32> to vector<2x8x8xf32>
    %46 = arith.mulf %41, %45 : vector<2x8x8xf32>
    %47 = arith.truncf %46 : vector<2x8x8xf32> to vector<2x8x8xbf16>
    %48 = arith.truncf %31 : vector<2x8x128xf32> to vector<2x8x128xbf16>
    "tpu.trace_start"() <{level = 10 : i32, message = "bqk,bkd->bqd"}> : () -> ()
    %cst_34 = arith.constant dense<0.000000e+00> : vector<2x8x128xf32>
    %49 = tpu.matmul %47, %48, %cst_34 {dimension_numbers = #tpu.dot_dimension_numbers<[2], [1], [1], [2], [0, 0, 0, 1, 1, 2], [0], [0]>} : vector<2x8x8xbf16>, vector<2x8x128xbf16>, vector<2x8x128xf32> -> vector<2x8x128xf32>
    "tpu.trace_stop"() : () -> ()
    %50 = arith.truncf %49 : vector<2x8x128xf32> to vector<2x8x128xbf16>
    %c1 = arith.constant 1 : index
    %c0_35 = arith.constant 0 : index
    %c0_36 = arith.constant 0 : index
    %51 = vector.load %arg5[%c1, %c0_35, %c0_36] : memref<4x128x128xbf16, #tpu.memory_space<vmem>>, vector<1x128x128xbf16>
    %52 = vector.shape_cast %51 : vector<1x128x128xbf16> to vector<128x128xbf16>
    %cst_37 = arith.constant dense<0.000000e+00> : vector<16x128xf32>
    %53 = tpu.matmul %5, %52, %cst_37 {dimension_numbers = #tpu.dot_dimension_numbers<[1], [0], [0], [1], [0, 0, 1, 1], [], []>} : vector<16x128xbf16>, vector<128x128xbf16>, vector<16x128xf32> -> vector<16x128xf32>
    %c1_38 = arith.constant 1 : index
    %c0_39 = arith.constant 0 : index
    %c0_40 = arith.constant 0 : index
    %54 = vector.load %arg6[%c1_38, %c0_39, %c0_40] : memref<4x1x128xf32, #tpu.memory_space<vmem>>, vector<1x1x128xf32>
    %55 = vector.shape_cast %54 : vector<1x1x128xf32> to vector<1x128xf32>
    %56 = vector.broadcast %55 : vector<1x128xf32> to vector<16x128xf32>
    %57 = arith.addf %53, %56 : vector<16x128xf32>
    %58 = vector.shape_cast %57 : vector<16x128xf32> to vector<2x8x128xf32>
    %c1_41 = arith.constant 1 : index
    %c0_42 = arith.constant 0 : index
    %c0_43 = arith.constant 0 : index
    %59 = vector.load %arg7[%c1_41, %c0_42, %c0_43] : memref<4x128x128xbf16, #tpu.memory_space<vmem>>, vector<1x128x128xbf16>
    %60 = vector.shape_cast %59 : vector<1x128x128xbf16> to vector<128x128xbf16>
    %cst_44 = arith.constant dense<0.000000e+00> : vector<16x128xf32>
    %61 = tpu.matmul %7, %60, %cst_44 {dimension_numbers = #tpu.dot_dimension_numbers<[1], [0], [0], [1], [0, 0, 1, 1], [], []>} : vector<16x128xbf16>, vector<128x128xbf16>, vector<16x128xf32> -> vector<16x128xf32>
    %c1_45 = arith.constant 1 : index
    %c0_46 = arith.constant 0 : index
    %c0_47 = arith.constant 0 : index
    %62 = vector.load %arg8[%c1_45, %c0_46, %c0_47] : memref<4x1x128xf32, #tpu.memory_space<vmem>>, vector<1x1x128xf32>
    %63 = vector.shape_cast %62 : vector<1x1x128xf32> to vector<1x128xf32>
    %64 = vector.broadcast %63 : vector<1x128xf32> to vector<16x128xf32>
    %65 = arith.addf %61, %64 : vector<16x128xf32>
    %66 = vector.shape_cast %65 : vector<16x128xf32> to vector<2x8x128xf32>
    %c1_48 = arith.constant 1 : index
    %c0_49 = arith.constant 0 : index
    %c0_50 = arith.constant 0 : index
    %67 = vector.load %arg9[%c1_48, %c0_49, %c0_50] : memref<4x128x128xbf16, #tpu.memory_space<vmem>>, vector<1x128x128xbf16>
    %68 = vector.shape_cast %67 : vector<1x128x128xbf16> to vector<128x128xbf16>
    %cst_51 = arith.constant dense<0.000000e+00> : vector<16x128xf32>
    %69 = tpu.matmul %7, %68, %cst_51 {dimension_numbers = #tpu.dot_dimension_numbers<[1], [0], [0], [1], [0, 0, 1, 1], [], []>} : vector<16x128xbf16>, vector<128x128xbf16>, vector<16x128xf32> -> vector<16x128xf32>
    %c1_52 = arith.constant 1 : index
    %c0_53 = arith.constant 0 : index
    %c0_54 = arith.constant 0 : index
    %70 = vector.load %arg10[%c1_52, %c0_53, %c0_54] : memref<4x1x128xf32, #tpu.memory_space<vmem>>, vector<1x1x128xf32>
    %71 = vector.shape_cast %70 : vector<1x1x128xf32> to vector<1x128xf32>
    %72 = vector.broadcast %71 : vector<1x128xf32> to vector<16x128xf32>
    %73 = arith.addf %69, %72 : vector<16x128xf32>
    %74 = vector.shape_cast %73 : vector<16x128xf32> to vector<2x8x128xf32>
    %75 = arith.truncf %58 : vector<2x8x128xf32> to vector<2x8x128xbf16>
    %76 = arith.truncf %66 : vector<2x8x128xf32> to vector<2x8x128xbf16>
    "tpu.trace_start"() <{level = 10 : i32, message = "bqd,bkd->bqk"}> : () -> ()
    %cst_55 = arith.constant dense<0.000000e+00> : vector<2x8x8xf32>
    %77 = tpu.matmul %75, %76, %cst_55 {dimension_numbers = #tpu.dot_dimension_numbers<[2], [2], [1], [1], [0, 0, 0, 1, 1, 1], [0], [0]>} : vector<2x8x128xbf16>, vector<2x8x128xbf16>, vector<2x8x8xf32> -> vector<2x8x8xf32>
    "tpu.trace_stop"() : () -> ()
    %78 = vector.broadcast %2 : vector<1x8x8xf32> to vector<2x8x8xf32>
    %79 = arith.addf %77, %78 : vector<2x8x8xf32>
    %cst_56 = arith.constant dense<0xFF800000> : vector<2x8xf32>
    %80 = vector.multi_reduction <maximumf>, %79, %cst_56 [2] : vector<2x8x8xf32> to vector<2x8xf32>
    %81 = vector.shape_cast %80 : vector<2x8xf32> to vector<2x8x1xf32>
    %82 = vector.broadcast %81 : vector<2x8x1xf32> to vector<2x8x8xf32>
    %83 = arith.subf %79, %82 : vector<2x8x8xf32>
    %84 = math.exp %83 : vector<2x8x8xf32>
    %cst_57 = arith.constant dense<0.000000e+00> : vector<2x8xf32>
    %85 = vector.multi_reduction <add>, %84, %cst_57 [2] : vector<2x8x8xf32> to vector<2x8xf32>
    %86 = vector.shape_cast %85 : vector<2x8xf32> to vector<2x8x1xf32>
    %87 = tpu.reciprocal %86 {approx = true} : vector<2x8x1xf32> -> vector<2x8x1xf32>
    %88 = vector.broadcast %87 : vector<2x8x1xf32> to vector<2x8x8xf32>
    %89 = arith.mulf %84, %88 : vector<2x8x8xf32>
    %90 = arith.truncf %89 : vector<2x8x8xf32> to vector<2x8x8xbf16>
    %91 = arith.truncf %74 : vector<2x8x128xf32> to vector<2x8x128xbf16>
    "tpu.trace_start"() <{level = 10 : i32, message = "bqk,bkd->bqd"}> : () -> ()
    %cst_58 = arith.constant dense<0.000000e+00> : vector<2x8x128xf32>
    %92 = tpu.matmul %90, %91, %cst_58 {dimension_numbers = #tpu.dot_dimension_numbers<[2], [1], [1], [2], [0, 0, 0, 1, 1, 2], [0], [0]>} : vector<2x8x8xbf16>, vector<2x8x128xbf16>, vector<2x8x128xf32> -> vector<2x8x128xf32>
    "tpu.trace_stop"() : () -> ()
    %93 = arith.truncf %92 : vector<2x8x128xf32> to vector<2x8x128xbf16>
    %c2 = arith.constant 2 : index
    %c0_59 = arith.constant 0 : index
    %c0_60 = arith.constant 0 : index
    %94 = vector.load %arg5[%c2, %c0_59, %c0_60] : memref<4x128x128xbf16, #tpu.memory_space<vmem>>, vector<1x128x128xbf16>
    %95 = vector.shape_cast %94 : vector<1x128x128xbf16> to vector<128x128xbf16>
    %cst_61 = arith.constant dense<0.000000e+00> : vector<16x128xf32>
    %96 = tpu.matmul %5, %95, %cst_61 {dimension_numbers = #tpu.dot_dimension_numbers<[1], [0], [0], [1], [0, 0, 1, 1], [], []>} : vector<16x128xbf16>, vector<128x128xbf16>, vector<16x128xf32> -> vector<16x128xf32>
    %c2_62 = arith.constant 2 : index
    %c0_63 = arith.constant 0 : index
    %c0_64 = arith.constant 0 : index
    %97 = vector.load %arg6[%c2_62, %c0_63, %c0_64] : memref<4x1x128xf32, #tpu.memory_space<vmem>>, vector<1x1x128xf32>
    %98 = vector.shape_cast %97 : vector<1x1x128xf32> to vector<1x128xf32>
    %99 = vector.broadcast %98 : vector<1x128xf32> to vector<16x128xf32>
    %100 = arith.addf %96, %99 : vector<16x128xf32>
    %101 = vector.shape_cast %100 : vector<16x128xf32> to vector<2x8x128xf32>
    %c2_65 = arith.constant 2 : index
    %c0_66 = arith.constant 0 : index
    %c0_67 = arith.constant 0 : index
    %102 = vector.load %arg7[%c2_65, %c0_66, %c0_67] : memref<4x128x128xbf16, #tpu.memory_space<vmem>>, vector<1x128x128xbf16>
    %103 = vector.shape_cast %102 : vector<1x128x128xbf16> to vector<128x128xbf16>
    %cst_68 = arith.constant dense<0.000000e+00> : vector<16x128xf32>
    %104 = tpu.matmul %7, %103, %cst_68 {dimension_numbers = #tpu.dot_dimension_numbers<[1], [0], [0], [1], [0, 0, 1, 1], [], []>} : vector<16x128xbf16>, vector<128x128xbf16>, vector<16x128xf32> -> vector<16x128xf32>
    %c2_69 = arith.constant 2 : index
    %c0_70 = arith.constant 0 : index
    %c0_71 = arith.constant 0 : index
    %105 = vector.load %arg8[%c2_69, %c0_70, %c0_71] : memref<4x1x128xf32, #tpu.memory_space<vmem>>, vector<1x1x128xf32>
    %106 = vector.shape_cast %105 : vector<1x1x128xf32> to vector<1x128xf32>
    %107 = vector.broadcast %106 : vector<1x128xf32> to vector<16x128xf32>
    %108 = arith.addf %104, %107 : vector<16x128xf32>
    %109 = vector.shape_cast %108 : vector<16x128xf32> to vector<2x8x128xf32>
    %c2_72 = arith.constant 2 : index
    %c0_73 = arith.constant 0 : index
    %c0_74 = arith.constant 0 : index
    %110 = vector.load %arg9[%c2_72, %c0_73, %c0_74] : memref<4x128x128xbf16, #tpu.memory_space<vmem>>, vector<1x128x128xbf16>
    %111 = vector.shape_cast %110 : vector<1x128x128xbf16> to vector<128x128xbf16>
    %cst_75 = arith.constant dense<0.000000e+00> : vector<16x128xf32>
    %112 = tpu.matmul %7, %111, %cst_75 {dimension_numbers = #tpu.dot_dimension_numbers<[1], [0], [0], [1], [0, 0, 1, 1], [], []>} : vector<16x128xbf16>, vector<128x128xbf16>, vector<16x128xf32> -> vector<16x128xf32>
    %c2_76 = arith.constant 2 : index
    %c0_77 = arith.constant 0 : index
    %c0_78 = arith.constant 0 : index
    %113 = vector.load %arg10[%c2_76, %c0_77, %c0_78] : memref<4x1x128xf32, #tpu.memory_space<vmem>>, vector<1x1x128xf32>
    %114 = vector.shape_cast %113 : vector<1x1x128xf32> to vector<1x128xf32>
    %115 = vector.broadcast %114 : vector<1x128xf32> to vector<16x128xf32>
    %116 = arith.addf %112, %115 : vector<16x128xf32>
    %117 = vector.shape_cast %116 : vector<16x128xf32> to vector<2x8x128xf32>
    %118 = arith.truncf %101 : vector<2x8x128xf32> to vector<2x8x128xbf16>
    %119 = arith.truncf %109 : vector<2x8x128xf32> to vector<2x8x128xbf16>
    "tpu.trace_start"() <{level = 10 : i32, message = "bqd,bkd->bqk"}> : () -> ()
    %cst_79 = arith.constant dense<0.000000e+00> : vector<2x8x8xf32>
    %120 = tpu.matmul %118, %119, %cst_79 {dimension_numbers = #tpu.dot_dimension_numbers<[2], [2], [1], [1], [0, 0, 0, 1, 1, 1], [0], [0]>} : vector<2x8x128xbf16>, vector<2x8x128xbf16>, vector<2x8x8xf32> -> vector<2x8x8xf32>
    "tpu.trace_stop"() : () -> ()
    %121 = vector.broadcast %2 : vector<1x8x8xf32> to vector<2x8x8xf32>
    %122 = arith.addf %120, %121 : vector<2x8x8xf32>
    %cst_80 = arith.constant dense<0xFF800000> : vector<2x8xf32>
    %123 = vector.multi_reduction <maximumf>, %122, %cst_80 [2] : vector<2x8x8xf32> to vector<2x8xf32>
    %124 = vector.shape_cast %123 : vector<2x8xf32> to vector<2x8x1xf32>
    %125 = vector.broadcast %124 : vector<2x8x1xf32> to vector<2x8x8xf32>
    %126 = arith.subf %122, %125 : vector<2x8x8xf32>
    %127 = math.exp %126 : vector<2x8x8xf32>
    %cst_81 = arith.constant dense<0.000000e+00> : vector<2x8xf32>
    %128 = vector.multi_reduction <add>, %127, %cst_81 [2] : vector<2x8x8xf32> to vector<2x8xf32>
    %129 = vector.shape_cast %128 : vector<2x8xf32> to vector<2x8x1xf32>
    %130 = tpu.reciprocal %129 {approx = true} : vector<2x8x1xf32> -> vector<2x8x1xf32>
    %131 = vector.broadcast %130 : vector<2x8x1xf32> to vector<2x8x8xf32>
    %132 = arith.mulf %127, %131 : vector<2x8x8xf32>
    %133 = arith.truncf %132 : vector<2x8x8xf32> to vector<2x8x8xbf16>
    %134 = arith.truncf %117 : vector<2x8x128xf32> to vector<2x8x128xbf16>
    "tpu.trace_start"() <{level = 10 : i32, message = "bqk,bkd->bqd"}> : () -> ()
    %cst_82 = arith.constant dense<0.000000e+00> : vector<2x8x128xf32>
    %135 = tpu.matmul %133, %134, %cst_82 {dimension_numbers = #tpu.dot_dimension_numbers<[2], [1], [1], [2], [0, 0, 0, 1, 1, 2], [0], [0]>} : vector<2x8x8xbf16>, vector<2x8x128xbf16>, vector<2x8x128xf32> -> vector<2x8x128xf32>
    "tpu.trace_stop"() : () -> ()
    %136 = arith.truncf %135 : vector<2x8x128xf32> to vector<2x8x128xbf16>
    %c3 = arith.constant 3 : index
    %c0_83 = arith.constant 0 : index
    %c0_84 = arith.constant 0 : index
    %137 = vector.load %arg5[%c3, %c0_83, %c0_84] : memref<4x128x128xbf16, #tpu.memory_space<vmem>>, vector<1x128x128xbf16>
    %138 = vector.shape_cast %137 : vector<1x128x128xbf16> to vector<128x128xbf16>
    %cst_85 = arith.constant dense<0.000000e+00> : vector<16x128xf32>
    %139 = tpu.matmul %5, %138, %cst_85 {dimension_numbers = #tpu.dot_dimension_numbers<[1], [0], [0], [1], [0, 0, 1, 1], [], []>} : vector<16x128xbf16>, vector<128x128xbf16>, vector<16x128xf32> -> vector<16x128xf32>
    %c3_86 = arith.constant 3 : index
    %c0_87 = arith.constant 0 : index
    %c0_88 = arith.constant 0 : index
    %140 = vector.load %arg6[%c3_86, %c0_87, %c0_88] : memref<4x1x128xf32, #tpu.memory_space<vmem>>, vector<1x1x128xf32>
    %141 = vector.shape_cast %140 : vector<1x1x128xf32> to vector<1x128xf32>
    %142 = vector.broadcast %141 : vector<1x128xf32> to vector<16x128xf32>
    %143 = arith.addf %139, %142 : vector<16x128xf32>
    %144 = vector.shape_cast %143 : vector<16x128xf32> to vector<2x8x128xf32>
    %c3_89 = arith.constant 3 : index
    %c0_90 = arith.constant 0 : index
    %c0_91 = arith.constant 0 : index
    %145 = vector.load %arg7[%c3_89, %c0_90, %c0_91] : memref<4x128x128xbf16, #tpu.memory_space<vmem>>, vector<1x128x128xbf16>
    %146 = vector.shape_cast %145 : vector<1x128x128xbf16> to vector<128x128xbf16>
    %cst_92 = arith.constant dense<0.000000e+00> : vector<16x128xf32>
    %147 = tpu.matmul %7, %146, %cst_92 {dimension_numbers = #tpu.dot_dimension_numbers<[1], [0], [0], [1], [0, 0, 1, 1], [], []>} : vector<16x128xbf16>, vector<128x128xbf16>, vector<16x128xf32> -> vector<16x128xf32>
    %c3_93 = arith.constant 3 : index
    %c0_94 = arith.constant 0 : index
    %c0_95 = arith.constant 0 : index
    %148 = vector.load %arg8[%c3_93, %c0_94, %c0_95] : memref<4x1x128xf32, #tpu.memory_space<vmem>>, vector<1x1x128xf32>
    %149 = vector.shape_cast %148 : vector<1x1x128xf32> to vector<1x128xf32>
    %150 = vector.broadcast %149 : vector<1x128xf32> to vector<16x128xf32>
    %151 = arith.addf %147, %150 : vector<16x128xf32>
    %152 = vector.shape_cast %151 : vector<16x128xf32> to vector<2x8x128xf32>
    %c3_96 = arith.constant 3 : index
    %c0_97 = arith.constant 0 : index
    %c0_98 = arith.constant 0 : index
    %153 = vector.load %arg9[%c3_96, %c0_97, %c0_98] : memref<4x128x128xbf16, #tpu.memory_space<vmem>>, vector<1x128x128xbf16>
    %154 = vector.shape_cast %153 : vector<1x128x128xbf16> to vector<128x128xbf16>
    %cst_99 = arith.constant dense<0.000000e+00> : vector<16x128xf32>
    %155 = tpu.matmul %7, %154, %cst_99 {dimension_numbers = #tpu.dot_dimension_numbers<[1], [0], [0], [1], [0, 0, 1, 1], [], []>} : vector<16x128xbf16>, vector<128x128xbf16>, vector<16x128xf32> -> vector<16x128xf32>
    %c3_100 = arith.constant 3 : index
    %c0_101 = arith.constant 0 : index
    %c0_102 = arith.constant 0 : index
    %156 = vector.load %arg10[%c3_100, %c0_101, %c0_102] : memref<4x1x128xf32, #tpu.memory_space<vmem>>, vector<1x1x128xf32>
    %157 = vector.shape_cast %156 : vector<1x1x128xf32> to vector<1x128xf32>
    %158 = vector.broadcast %157 : vector<1x128xf32> to vector<16x128xf32>
    %159 = arith.addf %155, %158 : vector<16x128xf32>
    %160 = vector.shape_cast %159 : vector<16x128xf32> to vector<2x8x128xf32>
    %161 = arith.truncf %144 : vector<2x8x128xf32> to vector<2x8x128xbf16>
    %162 = arith.truncf %152 : vector<2x8x128xf32> to vector<2x8x128xbf16>
    "tpu.trace_start"() <{level = 10 : i32, message = "bqd,bkd->bqk"}> : () -> ()
    %cst_103 = arith.constant dense<0.000000e+00> : vector<2x8x8xf32>
    %163 = tpu.matmul %161, %162, %cst_103 {dimension_numbers = #tpu.dot_dimension_numbers<[2], [2], [1], [1], [0, 0, 0, 1, 1, 1], [0], [0]>} : vector<2x8x128xbf16>, vector<2x8x128xbf16>, vector<2x8x8xf32> -> vector<2x8x8xf32>
    "tpu.trace_stop"() : () -> ()
    %164 = vector.broadcast %2 : vector<1x8x8xf32> to vector<2x8x8xf32>
    %165 = arith.addf %163, %164 : vector<2x8x8xf32>
    %cst_104 = arith.constant dense<0xFF800000> : vector<2x8xf32>
    %166 = vector.multi_reduction <maximumf>, %165, %cst_104 [2] : vector<2x8x8xf32> to vector<2x8xf32>
    %167 = vector.shape_cast %166 : vector<2x8xf32> to vector<2x8x1xf32>
    %168 = vector.broadcast %167 : vector<2x8x1xf32> to vector<2x8x8xf32>
    %169 = arith.subf %165, %168 : vector<2x8x8xf32>
    %170 = math.exp %169 : vector<2x8x8xf32>
    %cst_105 = arith.constant dense<0.000000e+00> : vector<2x8xf32>
    %171 = vector.multi_reduction <add>, %170, %cst_105 [2] : vector<2x8x8xf32> to vector<2x8xf32>
    %172 = vector.shape_cast %171 : vector<2x8xf32> to vector<2x8x1xf32>
    %173 = tpu.reciprocal %172 {approx = true} : vector<2x8x1xf32> -> vector<2x8x1xf32>
    %174 = vector.broadcast %173 : vector<2x8x1xf32> to vector<2x8x8xf32>
    %175 = arith.mulf %170, %174 : vector<2x8x8xf32>
    %176 = arith.truncf %175 : vector<2x8x8xf32> to vector<2x8x8xbf16>
    %177 = arith.truncf %160 : vector<2x8x128xf32> to vector<2x8x128xbf16>
    "tpu.trace_start"() <{level = 10 : i32, message = "bqk,bkd->bqd"}> : () -> ()
    %cst_106 = arith.constant dense<0.000000e+00> : vector<2x8x128xf32>
    %178 = tpu.matmul %176, %177, %cst_106 {dimension_numbers = #tpu.dot_dimension_numbers<[2], [1], [1], [2], [0, 0, 0, 1, 1, 2], [0], [0]>} : vector<2x8x8xbf16>, vector<2x8x128xbf16>, vector<2x8x128xf32> -> vector<2x8x128xf32>
    "tpu.trace_stop"() : () -> ()
    %179 = arith.truncf %178 : vector<2x8x128xf32> to vector<2x8x128xbf16>
    %180 = tpu.concatenate %50, %93, %136, %179 in 2 : vector<2x8x128xbf16>, vector<2x8x128xbf16>, vector<2x8x128xbf16>, vector<2x8x128xbf16> -> vector<2x8x512xbf16>
    %181 = vector.shape_cast %180 : vector<2x8x512xbf16> to vector<16x512xbf16>
    %c0_107 = arith.constant 0 : index
    %c0_108 = arith.constant 0 : index
    %182 = vector.load %arg11[%c0_107, %c0_108] : memref<512x128xbf16, #tpu.memory_space<vmem>>, vector<512x128xbf16>
    %cst_109 = arith.constant dense<0.000000e+00> : vector<16x128xf32>
    %183 = tpu.matmul %181, %182, %cst_109 {dimension_numbers = #tpu.dot_dimension_numbers<[1], [0], [0], [1], [0, 0, 1, 1], [], []>} : vector<16x512xbf16>, vector<512x128xbf16>, vector<16x128xf32> -> vector<16x128xf32>
    %c0_110 = arith.constant 0 : index
    %c0_111 = arith.constant 0 : index
    %184 = vector.load %arg12[%c0_110, %c0_111] : memref<1x128xf32, #tpu.memory_space<vmem>>, vector<1x128xf32>
    %185 = vector.broadcast %184 : vector<1x128xf32> to vector<16x128xf32>
    %186 = arith.addf %183, %185 : vector<16x128xf32>
    %187 = vector.shape_cast %186 : vector<16x128xf32> to vector<2x8x128xf32>
    %188 = arith.addf %0, %187 : vector<2x8x128xf32>
    %cst_112 = arith.constant dense<0.000000e+00> : vector<2x8xf32>
    %189 = vector.multi_reduction <add>, %188, %cst_112 [2] : vector<2x8x128xf32> to vector<2x8xf32>
    %190 = vector.shape_cast %189 : vector<2x8xf32> to vector<2x8x1xf32>
    %cst_113 = arith.constant 3.125000e-02 : f32
    %191 = vector.broadcast %cst_113 : f32 to vector<2x8x1xf32>
    %192 = arith.mulf %190, %191 : vector<2x8x1xf32>
    %193 = arith.mulf %188, %188 : vector<2x8x128xf32>
    %cst_114 = arith.constant dense<0.000000e+00> : vector<2x8xf32>
    %194 = vector.multi_reduction <add>, %193, %cst_114 [2] : vector<2x8x128xf32> to vector<2x8xf32>
    %195 = vector.shape_cast %194 : vector<2x8xf32> to vector<2x8x1xf32>
    %cst_115 = arith.constant 3.125000e-02 : f32
    %196 = vector.broadcast %cst_115 : f32 to vector<2x8x1xf32>
    %197 = arith.mulf %195, %196 : vector<2x8x1xf32>
    %198 = arith.mulf %192, %192 : vector<2x8x1xf32>
    %199 = arith.subf %197, %198 : vector<2x8x1xf32>
    %cst_116 = arith.constant 0.000000e+00 : f32
    %200 = vector.broadcast %cst_116 : f32 to vector<2x8x1xf32>
    %201 = arith.maximumf %199, %200 : vector<2x8x1xf32>
    %202 = vector.broadcast %192 : vector<2x8x1xf32> to vector<2x8x128xf32>
    %203 = arith.subf %188, %202 : vector<2x8x128xf32>
    %cst_117 = arith.constant 9.99999974E-6 : f32
    %204 = vector.broadcast %cst_117 : f32 to vector<2x8x1xf32>
    %205 = arith.addf %201, %204 : vector<2x8x1xf32>
    %206 = math.rsqrt %205 : vector<2x8x1xf32>
    %207 = vector.broadcast %206 : vector<2x8x1xf32> to vector<2x8x128xf32>
    %208 = arith.mulf %203, %207 : vector<2x8x128xf32>
    %c0_118 = arith.constant 0 : index
    %c0_119 = arith.constant 0 : index
    %209 = vector.load %arg25[%c0_118, %c0_119] : memref<1x128xf32, #tpu.memory_space<vmem>>, vector<1x128xf32>
    %210 = vector.shape_cast %209 : vector<1x128xf32> to vector<1x1x128xf32>
    %211 = vector.broadcast %210 : vector<1x1x128xf32> to vector<2x8x128xf32>
    %212 = arith.mulf %208, %211 : vector<2x8x128xf32>
    %c0_120 = arith.constant 0 : index
    %c0_121 = arith.constant 0 : index
    %213 = vector.load %arg26[%c0_120, %c0_121] : memref<1x128xf32, #tpu.memory_space<vmem>>, vector<1x128xf32>
    %214 = vector.shape_cast %213 : vector<1x128xf32> to vector<1x1x128xf32>
    %215 = vector.broadcast %214 : vector<1x1x128xf32> to vector<2x8x128xf32>
    %216 = arith.addf %212, %215 : vector<2x8x128xf32>
    %217 = vector.shape_cast %216 : vector<2x8x128xf32> to vector<16x128xf32>
    %218 = arith.truncf %217 : vector<16x128xf32> to vector<16x128xbf16>
    %219 = vector.shape_cast %1 : vector<2x8x128xf32> to vector<16x128xf32>
    %220 = arith.truncf %219 : vector<16x128xf32> to vector<16x128xbf16>
    %c0_122 = arith.constant 0 : index
    %c0_123 = arith.constant 0 : index
    %c0_124 = arith.constant 0 : index
    %221 = vector.load %arg13[%c0_122, %c0_123, %c0_124] : memref<4x128x128xbf16, #tpu.memory_space<vmem>>, vector<1x128x128xbf16>
    %222 = vector.shape_cast %221 : vector<1x128x128xbf16> to vector<128x128xbf16>
    %cst_125 = arith.constant dense<0.000000e+00> : vector<16x128xf32>
    %223 = tpu.matmul %218, %222, %cst_125 {dimension_numbers = #tpu.dot_dimension_numbers<[1], [0], [0], [1], [0, 0, 1, 1], [], []>} : vector<16x128xbf16>, vector<128x128xbf16>, vector<16x128xf32> -> vector<16x128xf32>
    %c0_126 = arith.constant 0 : index
    %c0_127 = arith.constant 0 : index
    %c0_128 = arith.constant 0 : index
    %224 = vector.load %arg14[%c0_126, %c0_127, %c0_128] : memref<4x1x128xf32, #tpu.memory_space<vmem>>, vector<1x1x128xf32>
    %225 = vector.shape_cast %224 : vector<1x1x128xf32> to vector<1x128xf32>
    %226 = vector.broadcast %225 : vector<1x128xf32> to vector<16x128xf32>
    %227 = arith.addf %223, %226 : vector<16x128xf32>
    %228 = vector.shape_cast %227 : vector<16x128xf32> to vector<2x8x128xf32>
    %c0_129 = arith.constant 0 : index
    %c0_130 = arith.constant 0 : index
    %c0_131 = arith.constant 0 : index
    %229 = vector.load %arg15[%c0_129, %c0_130, %c0_131] : memref<4x128x128xbf16, #tpu.memory_space<vmem>>, vector<1x128x128xbf16>
    %230 = vector.shape_cast %229 : vector<1x128x128xbf16> to vector<128x128xbf16>
    %cst_132 = arith.constant dense<0.000000e+00> : vector<16x128xf32>
    %231 = tpu.matmul %220, %230, %cst_132 {dimension_numbers = #tpu.dot_dimension_numbers<[1], [0], [0], [1], [0, 0, 1, 1], [], []>} : vector<16x128xbf16>, vector<128x128xbf16>, vector<16x128xf32> -> vector<16x128xf32>
    %c0_133 = arith.constant 0 : index
    %c0_134 = arith.constant 0 : index
    %c0_135 = arith.constant 0 : index
    %232 = vector.load %arg16[%c0_133, %c0_134, %c0_135] : memref<4x1x128xf32, #tpu.memory_space<vmem>>, vector<1x1x128xf32>
    %233 = vector.shape_cast %232 : vector<1x1x128xf32> to vector<1x128xf32>
    %234 = vector.broadcast %233 : vector<1x128xf32> to vector<16x128xf32>
    %235 = arith.addf %231, %234 : vector<16x128xf32>
    %236 = vector.shape_cast %235 : vector<16x128xf32> to vector<2x8x128xf32>
    %c0_136 = arith.constant 0 : index
    %c0_137 = arith.constant 0 : index
    %c0_138 = arith.constant 0 : index
    %237 = vector.load %arg17[%c0_136, %c0_137, %c0_138] : memref<4x128x128xbf16, #tpu.memory_space<vmem>>, vector<1x128x128xbf16>
    %238 = vector.shape_cast %237 : vector<1x128x128xbf16> to vector<128x128xbf16>
    %cst_139 = arith.constant dense<0.000000e+00> : vector<16x128xf32>
    %239 = tpu.matmul %220, %238, %cst_139 {dimension_numbers = #tpu.dot_dimension_numbers<[1], [0], [0], [1], [0, 0, 1, 1], [], []>} : vector<16x128xbf16>, vector<128x128xbf16>, vector<16x128xf32> -> vector<16x128xf32>
    %c0_140 = arith.constant 0 : index
    %c0_141 = arith.constant 0 : index
    %c0_142 = arith.constant 0 : index
    %240 = vector.load %arg18[%c0_140, %c0_141, %c0_142] : memref<4x1x128xf32, #tpu.memory_space<vmem>>, vector<1x1x128xf32>
    %241 = vector.shape_cast %240 : vector<1x1x128xf32> to vector<1x128xf32>
    %242 = vector.broadcast %241 : vector<1x128xf32> to vector<16x128xf32>
    %243 = arith.addf %239, %242 : vector<16x128xf32>
    %244 = vector.shape_cast %243 : vector<16x128xf32> to vector<2x8x128xf32>
    %245 = arith.truncf %228 : vector<2x8x128xf32> to vector<2x8x128xbf16>
    %246 = arith.truncf %236 : vector<2x8x128xf32> to vector<2x8x128xbf16>
    "tpu.trace_start"() <{level = 10 : i32, message = "bqd,bkd->bqk"}> : () -> ()
    %cst_143 = arith.constant dense<0.000000e+00> : vector<2x8x8xf32>
    %247 = tpu.matmul %245, %246, %cst_143 {dimension_numbers = #tpu.dot_dimension_numbers<[2], [2], [1], [1], [0, 0, 0, 1, 1, 1], [0], [0]>} : vector<2x8x128xbf16>, vector<2x8x128xbf16>, vector<2x8x8xf32> -> vector<2x8x8xf32>
    "tpu.trace_stop"() : () -> ()
    %248 = vector.broadcast %3 : vector<1x8x8xf32> to vector<2x8x8xf32>
    %249 = arith.addf %247, %248 : vector<2x8x8xf32>
    %cst_144 = arith.constant dense<0xFF800000> : vector<2x8xf32>
    %250 = vector.multi_reduction <maximumf>, %249, %cst_144 [2] : vector<2x8x8xf32> to vector<2x8xf32>
    %251 = vector.shape_cast %250 : vector<2x8xf32> to vector<2x8x1xf32>
    %252 = vector.broadcast %251 : vector<2x8x1xf32> to vector<2x8x8xf32>
    %253 = arith.subf %249, %252 : vector<2x8x8xf32>
    %254 = math.exp %253 : vector<2x8x8xf32>
    %cst_145 = arith.constant dense<0.000000e+00> : vector<2x8xf32>
    %255 = vector.multi_reduction <add>, %254, %cst_145 [2] : vector<2x8x8xf32> to vector<2x8xf32>
    %256 = vector.shape_cast %255 : vector<2x8xf32> to vector<2x8x1xf32>
    %257 = tpu.reciprocal %256 {approx = true} : vector<2x8x1xf32> -> vector<2x8x1xf32>
    %258 = vector.broadcast %257 : vector<2x8x1xf32> to vector<2x8x8xf32>
    %259 = arith.mulf %254, %258 : vector<2x8x8xf32>
    %260 = arith.truncf %259 : vector<2x8x8xf32> to vector<2x8x8xbf16>
    %261 = arith.truncf %244 : vector<2x8x128xf32> to vector<2x8x128xbf16>
    "tpu.trace_start"() <{level = 10 : i32, message = "bqk,bkd->bqd"}> : () -> ()
    %cst_146 = arith.constant dense<0.000000e+00> : vector<2x8x128xf32>
    %262 = tpu.matmul %260, %261, %cst_146 {dimension_numbers = #tpu.dot_dimension_numbers<[2], [1], [1], [2], [0, 0, 0, 1, 1, 2], [0], [0]>} : vector<2x8x8xbf16>, vector<2x8x128xbf16>, vector<2x8x128xf32> -> vector<2x8x128xf32>
    "tpu.trace_stop"() : () -> ()
    %263 = arith.truncf %262 : vector<2x8x128xf32> to vector<2x8x128xbf16>
    %c1_147 = arith.constant 1 : index
    %c0_148 = arith.constant 0 : index
    %c0_149 = arith.constant 0 : index
    %264 = vector.load %arg13[%c1_147, %c0_148, %c0_149] : memref<4x128x128xbf16, #tpu.memory_space<vmem>>, vector<1x128x128xbf16>
    %265 = vector.shape_cast %264 : vector<1x128x128xbf16> to vector<128x128xbf16>
    %cst_150 = arith.constant dense<0.000000e+00> : vector<16x128xf32>
    %266 = tpu.matmul %218, %265, %cst_150 {dimension_numbers = #tpu.dot_dimension_numbers<[1], [0], [0], [1], [0, 0, 1, 1], [], []>} : vector<16x128xbf16>, vector<128x128xbf16>, vector<16x128xf32> -> vector<16x128xf32>
    %c1_151 = arith.constant 1 : index
    %c0_152 = arith.constant 0 : index
    %c0_153 = arith.constant 0 : index
    %267 = vector.load %arg14[%c1_151, %c0_152, %c0_153] : memref<4x1x128xf32, #tpu.memory_space<vmem>>, vector<1x1x128xf32>
    %268 = vector.shape_cast %267 : vector<1x1x128xf32> to vector<1x128xf32>
    %269 = vector.broadcast %268 : vector<1x128xf32> to vector<16x128xf32>
    %270 = arith.addf %266, %269 : vector<16x128xf32>
    %271 = vector.shape_cast %270 : vector<16x128xf32> to vector<2x8x128xf32>
    %c1_154 = arith.constant 1 : index
    %c0_155 = arith.constant 0 : index
    %c0_156 = arith.constant 0 : index
    %272 = vector.load %arg15[%c1_154, %c0_155, %c0_156] : memref<4x128x128xbf16, #tpu.memory_space<vmem>>, vector<1x128x128xbf16>
    %273 = vector.shape_cast %272 : vector<1x128x128xbf16> to vector<128x128xbf16>
    %cst_157 = arith.constant dense<0.000000e+00> : vector<16x128xf32>
    %274 = tpu.matmul %220, %273, %cst_157 {dimension_numbers = #tpu.dot_dimension_numbers<[1], [0], [0], [1], [0, 0, 1, 1], [], []>} : vector<16x128xbf16>, vector<128x128xbf16>, vector<16x128xf32> -> vector<16x128xf32>
    %c1_158 = arith.constant 1 : index
    %c0_159 = arith.constant 0 : index
    %c0_160 = arith.constant 0 : index
    %275 = vector.load %arg16[%c1_158, %c0_159, %c0_160] : memref<4x1x128xf32, #tpu.memory_space<vmem>>, vector<1x1x128xf32>
    %276 = vector.shape_cast %275 : vector<1x1x128xf32> to vector<1x128xf32>
    %277 = vector.broadcast %276 : vector<1x128xf32> to vector<16x128xf32>
    %278 = arith.addf %274, %277 : vector<16x128xf32>
    %279 = vector.shape_cast %278 : vector<16x128xf32> to vector<2x8x128xf32>
    %c1_161 = arith.constant 1 : index
    %c0_162 = arith.constant 0 : index
    %c0_163 = arith.constant 0 : index
    %280 = vector.load %arg17[%c1_161, %c0_162, %c0_163] : memref<4x128x128xbf16, #tpu.memory_space<vmem>>, vector<1x128x128xbf16>
    %281 = vector.shape_cast %280 : vector<1x128x128xbf16> to vector<128x128xbf16>
    %cst_164 = arith.constant dense<0.000000e+00> : vector<16x128xf32>
    %282 = tpu.matmul %220, %281, %cst_164 {dimension_numbers = #tpu.dot_dimension_numbers<[1], [0], [0], [1], [0, 0, 1, 1], [], []>} : vector<16x128xbf16>, vector<128x128xbf16>, vector<16x128xf32> -> vector<16x128xf32>
    %c1_165 = arith.constant 1 : index
    %c0_166 = arith.constant 0 : index
    %c0_167 = arith.constant 0 : index
    %283 = vector.load %arg18[%c1_165, %c0_166, %c0_167] : memref<4x1x128xf32, #tpu.memory_space<vmem>>, vector<1x1x128xf32>
    %284 = vector.shape_cast %283 : vector<1x1x128xf32> to vector<1x128xf32>
    %285 = vector.broadcast %284 : vector<1x128xf32> to vector<16x128xf32>
    %286 = arith.addf %282, %285 : vector<16x128xf32>
    %287 = vector.shape_cast %286 : vector<16x128xf32> to vector<2x8x128xf32>
    %288 = arith.truncf %271 : vector<2x8x128xf32> to vector<2x8x128xbf16>
    %289 = arith.truncf %279 : vector<2x8x128xf32> to vector<2x8x128xbf16>
    "tpu.trace_start"() <{level = 10 : i32, message = "bqd,bkd->bqk"}> : () -> ()
    %cst_168 = arith.constant dense<0.000000e+00> : vector<2x8x8xf32>
    %290 = tpu.matmul %288, %289, %cst_168 {dimension_numbers = #tpu.dot_dimension_numbers<[2], [2], [1], [1], [0, 0, 0, 1, 1, 1], [0], [0]>} : vector<2x8x128xbf16>, vector<2x8x128xbf16>, vector<2x8x8xf32> -> vector<2x8x8xf32>
    "tpu.trace_stop"() : () -> ()
    %291 = vector.broadcast %3 : vector<1x8x8xf32> to vector<2x8x8xf32>
    %292 = arith.addf %290, %291 : vector<2x8x8xf32>
    %cst_169 = arith.constant dense<0xFF800000> : vector<2x8xf32>
    %293 = vector.multi_reduction <maximumf>, %292, %cst_169 [2] : vector<2x8x8xf32> to vector<2x8xf32>
    %294 = vector.shape_cast %293 : vector<2x8xf32> to vector<2x8x1xf32>
    %295 = vector.broadcast %294 : vector<2x8x1xf32> to vector<2x8x8xf32>
    %296 = arith.subf %292, %295 : vector<2x8x8xf32>
    %297 = math.exp %296 : vector<2x8x8xf32>
    %cst_170 = arith.constant dense<0.000000e+00> : vector<2x8xf32>
    %298 = vector.multi_reduction <add>, %297, %cst_170 [2] : vector<2x8x8xf32> to vector<2x8xf32>
    %299 = vector.shape_cast %298 : vector<2x8xf32> to vector<2x8x1xf32>
    %300 = tpu.reciprocal %299 {approx = true} : vector<2x8x1xf32> -> vector<2x8x1xf32>
    %301 = vector.broadcast %300 : vector<2x8x1xf32> to vector<2x8x8xf32>
    %302 = arith.mulf %297, %301 : vector<2x8x8xf32>
    %303 = arith.truncf %302 : vector<2x8x8xf32> to vector<2x8x8xbf16>
    %304 = arith.truncf %287 : vector<2x8x128xf32> to vector<2x8x128xbf16>
    "tpu.trace_start"() <{level = 10 : i32, message = "bqk,bkd->bqd"}> : () -> ()
    %cst_171 = arith.constant dense<0.000000e+00> : vector<2x8x128xf32>
    %305 = tpu.matmul %303, %304, %cst_171 {dimension_numbers = #tpu.dot_dimension_numbers<[2], [1], [1], [2], [0, 0, 0, 1, 1, 2], [0], [0]>} : vector<2x8x8xbf16>, vector<2x8x128xbf16>, vector<2x8x128xf32> -> vector<2x8x128xf32>
    "tpu.trace_stop"() : () -> ()
    %306 = arith.truncf %305 : vector<2x8x128xf32> to vector<2x8x128xbf16>
    %c2_172 = arith.constant 2 : index
    %c0_173 = arith.constant 0 : index
    %c0_174 = arith.constant 0 : index
    %307 = vector.load %arg13[%c2_172, %c0_173, %c0_174] : memref<4x128x128xbf16, #tpu.memory_space<vmem>>, vector<1x128x128xbf16>
    %308 = vector.shape_cast %307 : vector<1x128x128xbf16> to vector<128x128xbf16>
    %cst_175 = arith.constant dense<0.000000e+00> : vector<16x128xf32>
    %309 = tpu.matmul %218, %308, %cst_175 {dimension_numbers = #tpu.dot_dimension_numbers<[1], [0], [0], [1], [0, 0, 1, 1], [], []>} : vector<16x128xbf16>, vector<128x128xbf16>, vector<16x128xf32> -> vector<16x128xf32>
    %c2_176 = arith.constant 2 : index
    %c0_177 = arith.constant 0 : index
    %c0_178 = arith.constant 0 : index
    %310 = vector.load %arg14[%c2_176, %c0_177, %c0_178] : memref<4x1x128xf32, #tpu.memory_space<vmem>>, vector<1x1x128xf32>
    %311 = vector.shape_cast %310 : vector<1x1x128xf32> to vector<1x128xf32>
    %312 = vector.broadcast %311 : vector<1x128xf32> to vector<16x128xf32>
    %313 = arith.addf %309, %312 : vector<16x128xf32>
    %314 = vector.shape_cast %313 : vector<16x128xf32> to vector<2x8x128xf32>
    %c2_179 = arith.constant 2 : index
    %c0_180 = arith.constant 0 : index
    %c0_181 = arith.constant 0 : index
    %315 = vector.load %arg15[%c2_179, %c0_180, %c0_181] : memref<4x128x128xbf16, #tpu.memory_space<vmem>>, vector<1x128x128xbf16>
    %316 = vector.shape_cast %315 : vector<1x128x128xbf16> to vector<128x128xbf16>
    %cst_182 = arith.constant dense<0.000000e+00> : vector<16x128xf32>
    %317 = tpu.matmul %220, %316, %cst_182 {dimension_numbers = #tpu.dot_dimension_numbers<[1], [0], [0], [1], [0, 0, 1, 1], [], []>} : vector<16x128xbf16>, vector<128x128xbf16>, vector<16x128xf32> -> vector<16x128xf32>
    %c2_183 = arith.constant 2 : index
    %c0_184 = arith.constant 0 : index
    %c0_185 = arith.constant 0 : index
    %318 = vector.load %arg16[%c2_183, %c0_184, %c0_185] : memref<4x1x128xf32, #tpu.memory_space<vmem>>, vector<1x1x128xf32>
    %319 = vector.shape_cast %318 : vector<1x1x128xf32> to vector<1x128xf32>
    %320 = vector.broadcast %319 : vector<1x128xf32> to vector<16x128xf32>
    %321 = arith.addf %317, %320 : vector<16x128xf32>
    %322 = vector.shape_cast %321 : vector<16x128xf32> to vector<2x8x128xf32>
    %c2_186 = arith.constant 2 : index
    %c0_187 = arith.constant 0 : index
    %c0_188 = arith.constant 0 : index
    %323 = vector.load %arg17[%c2_186, %c0_187, %c0_188] : memref<4x128x128xbf16, #tpu.memory_space<vmem>>, vector<1x128x128xbf16>
    %324 = vector.shape_cast %323 : vector<1x128x128xbf16> to vector<128x128xbf16>
    %cst_189 = arith.constant dense<0.000000e+00> : vector<16x128xf32>
    %325 = tpu.matmul %220, %324, %cst_189 {dimension_numbers = #tpu.dot_dimension_numbers<[1], [0], [0], [1], [0, 0, 1, 1], [], []>} : vector<16x128xbf16>, vector<128x128xbf16>, vector<16x128xf32> -> vector<16x128xf32>
    %c2_190 = arith.constant 2 : index
    %c0_191 = arith.constant 0 : index
    %c0_192 = arith.constant 0 : index
    %326 = vector.load %arg18[%c2_190, %c0_191, %c0_192] : memref<4x1x128xf32, #tpu.memory_space<vmem>>, vector<1x1x128xf32>
    %327 = vector.shape_cast %326 : vector<1x1x128xf32> to vector<1x128xf32>
    %328 = vector.broadcast %327 : vector<1x128xf32> to vector<16x128xf32>
    %329 = arith.addf %325, %328 : vector<16x128xf32>
    %330 = vector.shape_cast %329 : vector<16x128xf32> to vector<2x8x128xf32>
    %331 = arith.truncf %314 : vector<2x8x128xf32> to vector<2x8x128xbf16>
    %332 = arith.truncf %322 : vector<2x8x128xf32> to vector<2x8x128xbf16>
    "tpu.trace_start"() <{level = 10 : i32, message = "bqd,bkd->bqk"}> : () -> ()
    %cst_193 = arith.constant dense<0.000000e+00> : vector<2x8x8xf32>
    %333 = tpu.matmul %331, %332, %cst_193 {dimension_numbers = #tpu.dot_dimension_numbers<[2], [2], [1], [1], [0, 0, 0, 1, 1, 1], [0], [0]>} : vector<2x8x128xbf16>, vector<2x8x128xbf16>, vector<2x8x8xf32> -> vector<2x8x8xf32>
    "tpu.trace_stop"() : () -> ()
    %334 = vector.broadcast %3 : vector<1x8x8xf32> to vector<2x8x8xf32>
    %335 = arith.addf %333, %334 : vector<2x8x8xf32>
    %cst_194 = arith.constant dense<0xFF800000> : vector<2x8xf32>
    %336 = vector.multi_reduction <maximumf>, %335, %cst_194 [2] : vector<2x8x8xf32> to vector<2x8xf32>
    %337 = vector.shape_cast %336 : vector<2x8xf32> to vector<2x8x1xf32>
    %338 = vector.broadcast %337 : vector<2x8x1xf32> to vector<2x8x8xf32>
    %339 = arith.subf %335, %338 : vector<2x8x8xf32>
    %340 = math.exp %339 : vector<2x8x8xf32>
    %cst_195 = arith.constant dense<0.000000e+00> : vector<2x8xf32>
    %341 = vector.multi_reduction <add>, %340, %cst_195 [2] : vector<2x8x8xf32> to vector<2x8xf32>
    %342 = vector.shape_cast %341 : vector<2x8xf32> to vector<2x8x1xf32>
    %343 = tpu.reciprocal %342 {approx = true} : vector<2x8x1xf32> -> vector<2x8x1xf32>
    %344 = vector.broadcast %343 : vector<2x8x1xf32> to vector<2x8x8xf32>
    %345 = arith.mulf %340, %344 : vector<2x8x8xf32>
    %346 = arith.truncf %345 : vector<2x8x8xf32> to vector<2x8x8xbf16>
    %347 = arith.truncf %330 : vector<2x8x128xf32> to vector<2x8x128xbf16>
    "tpu.trace_start"() <{level = 10 : i32, message = "bqk,bkd->bqd"}> : () -> ()
    %cst_196 = arith.constant dense<0.000000e+00> : vector<2x8x128xf32>
    %348 = tpu.matmul %346, %347, %cst_196 {dimension_numbers = #tpu.dot_dimension_numbers<[2], [1], [1], [2], [0, 0, 0, 1, 1, 2], [0], [0]>} : vector<2x8x8xbf16>, vector<2x8x128xbf16>, vector<2x8x128xf32> -> vector<2x8x128xf32>
    "tpu.trace_stop"() : () -> ()
    %349 = arith.truncf %348 : vector<2x8x128xf32> to vector<2x8x128xbf16>
    %c3_197 = arith.constant 3 : index
    %c0_198 = arith.constant 0 : index
    %c0_199 = arith.constant 0 : index
    %350 = vector.load %arg13[%c3_197, %c0_198, %c0_199] : memref<4x128x128xbf16, #tpu.memory_space<vmem>>, vector<1x128x128xbf16>
    %351 = vector.shape_cast %350 : vector<1x128x128xbf16> to vector<128x128xbf16>
    %cst_200 = arith.constant dense<0.000000e+00> : vector<16x128xf32>
    %352 = tpu.matmul %218, %351, %cst_200 {dimension_numbers = #tpu.dot_dimension_numbers<[1], [0], [0], [1], [0, 0, 1, 1], [], []>} : vector<16x128xbf16>, vector<128x128xbf16>, vector<16x128xf32> -> vector<16x128xf32>
    %c3_201 = arith.constant 3 : index
    %c0_202 = arith.constant 0 : index
    %c0_203 = arith.constant 0 : index
    %353 = vector.load %arg14[%c3_201, %c0_202, %c0_203] : memref<4x1x128xf32, #tpu.memory_space<vmem>>, vector<1x1x128xf32>
    %354 = vector.shape_cast %353 : vector<1x1x128xf32> to vector<1x128xf32>
    %355 = vector.broadcast %354 : vector<1x128xf32> to vector<16x128xf32>
    %356 = arith.addf %352, %355 : vector<16x128xf32>
    %357 = vector.shape_cast %356 : vector<16x128xf32> to vector<2x8x128xf32>
    %c3_204 = arith.constant 3 : index
    %c0_205 = arith.constant 0 : index
    %c0_206 = arith.constant 0 : index
    %358 = vector.load %arg15[%c3_204, %c0_205, %c0_206] : memref<4x128x128xbf16, #tpu.memory_space<vmem>>, vector<1x128x128xbf16>
    %359 = vector.shape_cast %358 : vector<1x128x128xbf16> to vector<128x128xbf16>
    %cst_207 = arith.constant dense<0.000000e+00> : vector<16x128xf32>
    %360 = tpu.matmul %220, %359, %cst_207 {dimension_numbers = #tpu.dot_dimension_numbers<[1], [0], [0], [1], [0, 0, 1, 1], [], []>} : vector<16x128xbf16>, vector<128x128xbf16>, vector<16x128xf32> -> vector<16x128xf32>
    %c3_208 = arith.constant 3 : index
    %c0_209 = arith.constant 0 : index
    %c0_210 = arith.constant 0 : index
    %361 = vector.load %arg16[%c3_208, %c0_209, %c0_210] : memref<4x1x128xf32, #tpu.memory_space<vmem>>, vector<1x1x128xf32>
    %362 = vector.shape_cast %361 : vector<1x1x128xf32> to vector<1x128xf32>
    %363 = vector.broadcast %362 : vector<1x128xf32> to vector<16x128xf32>
    %364 = arith.addf %360, %363 : vector<16x128xf32>
    %365 = vector.shape_cast %364 : vector<16x128xf32> to vector<2x8x128xf32>
    %c3_211 = arith.constant 3 : index
    %c0_212 = arith.constant 0 : index
    %c0_213 = arith.constant 0 : index
    %366 = vector.load %arg17[%c3_211, %c0_212, %c0_213] : memref<4x128x128xbf16, #tpu.memory_space<vmem>>, vector<1x128x128xbf16>
    %367 = vector.shape_cast %366 : vector<1x128x128xbf16> to vector<128x128xbf16>
    %cst_214 = arith.constant dense<0.000000e+00> : vector<16x128xf32>
    %368 = tpu.matmul %220, %367, %cst_214 {dimension_numbers = #tpu.dot_dimension_numbers<[1], [0], [0], [1], [0, 0, 1, 1], [], []>} : vector<16x128xbf16>, vector<128x128xbf16>, vector<16x128xf32> -> vector<16x128xf32>
    %c3_215 = arith.constant 3 : index
    %c0_216 = arith.constant 0 : index
    %c0_217 = arith.constant 0 : index
    %369 = vector.load %arg18[%c3_215, %c0_216, %c0_217] : memref<4x1x128xf32, #tpu.memory_space<vmem>>, vector<1x1x128xf32>
    %370 = vector.shape_cast %369 : vector<1x1x128xf32> to vector<1x128xf32>
    %371 = vector.broadcast %370 : vector<1x128xf32> to vector<16x128xf32>
    %372 = arith.addf %368, %371 : vector<16x128xf32>
    %373 = vector.shape_cast %372 : vector<16x128xf32> to vector<2x8x128xf32>
    %374 = arith.truncf %357 : vector<2x8x128xf32> to vector<2x8x128xbf16>
    %375 = arith.truncf %365 : vector<2x8x128xf32> to vector<2x8x128xbf16>
    "tpu.trace_start"() <{level = 10 : i32, message = "bqd,bkd->bqk"}> : () -> ()
    %cst_218 = arith.constant dense<0.000000e+00> : vector<2x8x8xf32>
    %376 = tpu.matmul %374, %375, %cst_218 {dimension_numbers = #tpu.dot_dimension_numbers<[2], [2], [1], [1], [0, 0, 0, 1, 1, 1], [0], [0]>} : vector<2x8x128xbf16>, vector<2x8x128xbf16>, vector<2x8x8xf32> -> vector<2x8x8xf32>
    "tpu.trace_stop"() : () -> ()
    %377 = vector.broadcast %3 : vector<1x8x8xf32> to vector<2x8x8xf32>
    %378 = arith.addf %376, %377 : vector<2x8x8xf32>
    %cst_219 = arith.constant dense<0xFF800000> : vector<2x8xf32>
    %379 = vector.multi_reduction <maximumf>, %378, %cst_219 [2] : vector<2x8x8xf32> to vector<2x8xf32>
    %380 = vector.shape_cast %379 : vector<2x8xf32> to vector<2x8x1xf32>
    %381 = vector.broadcast %380 : vector<2x8x1xf32> to vector<2x8x8xf32>
    %382 = arith.subf %378, %381 : vector<2x8x8xf32>
    %383 = math.exp %382 : vector<2x8x8xf32>
    %cst_220 = arith.constant dense<0.000000e+00> : vector<2x8xf32>
    %384 = vector.multi_reduction <add>, %383, %cst_220 [2] : vector<2x8x8xf32> to vector<2x8xf32>
    %385 = vector.shape_cast %384 : vector<2x8xf32> to vector<2x8x1xf32>
    %386 = tpu.reciprocal %385 {approx = true} : vector<2x8x1xf32> -> vector<2x8x1xf32>
    %387 = vector.broadcast %386 : vector<2x8x1xf32> to vector<2x8x8xf32>
    %388 = arith.mulf %383, %387 : vector<2x8x8xf32>
    %389 = arith.truncf %388 : vector<2x8x8xf32> to vector<2x8x8xbf16>
    %390 = arith.truncf %373 : vector<2x8x128xf32> to vector<2x8x128xbf16>
    "tpu.trace_start"() <{level = 10 : i32, message = "bqk,bkd->bqd"}> : () -> ()
    %cst_221 = arith.constant dense<0.000000e+00> : vector<2x8x128xf32>
    %391 = tpu.matmul %389, %390, %cst_221 {dimension_numbers = #tpu.dot_dimension_numbers<[2], [1], [1], [2], [0, 0, 0, 1, 1, 2], [0], [0]>} : vector<2x8x8xbf16>, vector<2x8x128xbf16>, vector<2x8x128xf32> -> vector<2x8x128xf32>
    "tpu.trace_stop"() : () -> ()
    %392 = arith.truncf %391 : vector<2x8x128xf32> to vector<2x8x128xbf16>
    %393 = tpu.concatenate %263, %306, %349, %392 in 2 : vector<2x8x128xbf16>, vector<2x8x128xbf16>, vector<2x8x128xbf16>, vector<2x8x128xbf16> -> vector<2x8x512xbf16>
    %394 = vector.shape_cast %393 : vector<2x8x512xbf16> to vector<16x512xbf16>
    %c0_222 = arith.constant 0 : index
    %c0_223 = arith.constant 0 : index
    %395 = vector.load %arg19[%c0_222, %c0_223] : memref<512x128xbf16, #tpu.memory_space<vmem>>, vector<512x128xbf16>
    %cst_224 = arith.constant dense<0.000000e+00> : vector<16x128xf32>
    %396 = tpu.matmul %394, %395, %cst_224 {dimension_numbers = #tpu.dot_dimension_numbers<[1], [0], [0], [1], [0, 0, 1, 1], [], []>} : vector<16x512xbf16>, vector<512x128xbf16>, vector<16x128xf32> -> vector<16x128xf32>
    %c0_225 = arith.constant 0 : index
    %c0_226 = arith.constant 0 : index
    %397 = vector.load %arg20[%c0_225, %c0_226] : memref<1x128xf32, #tpu.memory_space<vmem>>, vector<1x128xf32>
    %398 = vector.broadcast %397 : vector<1x128xf32> to vector<16x128xf32>
    %399 = arith.addf %396, %398 : vector<16x128xf32>
    %400 = vector.shape_cast %399 : vector<16x128xf32> to vector<2x8x128xf32>
    %401 = arith.addf %216, %400 : vector<2x8x128xf32>
    %cst_227 = arith.constant dense<0.000000e+00> : vector<2x8xf32>
    %402 = vector.multi_reduction <add>, %401, %cst_227 [2] : vector<2x8x128xf32> to vector<2x8xf32>
    %403 = vector.shape_cast %402 : vector<2x8xf32> to vector<2x8x1xf32>
    %cst_228 = arith.constant 3.125000e-02 : f32
    %404 = vector.broadcast %cst_228 : f32 to vector<2x8x1xf32>
    %405 = arith.mulf %403, %404 : vector<2x8x1xf32>
    %406 = arith.mulf %401, %401 : vector<2x8x128xf32>
    %cst_229 = arith.constant dense<0.000000e+00> : vector<2x8xf32>
    %407 = vector.multi_reduction <add>, %406, %cst_229 [2] : vector<2x8x128xf32> to vector<2x8xf32>
    %408 = vector.shape_cast %407 : vector<2x8xf32> to vector<2x8x1xf32>
    %cst_230 = arith.constant 3.125000e-02 : f32
    %409 = vector.broadcast %cst_230 : f32 to vector<2x8x1xf32>
    %410 = arith.mulf %408, %409 : vector<2x8x1xf32>
    %411 = arith.mulf %405, %405 : vector<2x8x1xf32>
    %412 = arith.subf %410, %411 : vector<2x8x1xf32>
    %cst_231 = arith.constant 0.000000e+00 : f32
    %413 = vector.broadcast %cst_231 : f32 to vector<2x8x1xf32>
    %414 = arith.maximumf %412, %413 : vector<2x8x1xf32>
    %415 = vector.broadcast %405 : vector<2x8x1xf32> to vector<2x8x128xf32>
    %416 = arith.subf %401, %415 : vector<2x8x128xf32>
    %cst_232 = arith.constant 9.99999974E-6 : f32
    %417 = vector.broadcast %cst_232 : f32 to vector<2x8x1xf32>
    %418 = arith.addf %414, %417 : vector<2x8x1xf32>
    %419 = math.rsqrt %418 : vector<2x8x1xf32>
    %420 = vector.broadcast %419 : vector<2x8x1xf32> to vector<2x8x128xf32>
    %421 = arith.mulf %416, %420 : vector<2x8x128xf32>
    %c0_233 = arith.constant 0 : index
    %c0_234 = arith.constant 0 : index
    %422 = vector.load %arg27[%c0_233, %c0_234] : memref<1x128xf32, #tpu.memory_space<vmem>>, vector<1x128xf32>
    %423 = vector.shape_cast %422 : vector<1x128xf32> to vector<1x1x128xf32>
    %424 = vector.broadcast %423 : vector<1x1x128xf32> to vector<2x8x128xf32>
    %425 = arith.mulf %421, %424 : vector<2x8x128xf32>
    %c0_235 = arith.constant 0 : index
    %c0_236 = arith.constant 0 : index
    %426 = vector.load %arg28[%c0_235, %c0_236] : memref<1x128xf32, #tpu.memory_space<vmem>>, vector<1x128xf32>
    %427 = vector.shape_cast %426 : vector<1x128xf32> to vector<1x1x128xf32>
    %428 = vector.broadcast %427 : vector<1x1x128xf32> to vector<2x8x128xf32>
    %429 = arith.addf %425, %428 : vector<2x8x128xf32>
    %430 = vector.shape_cast %429 : vector<2x8x128xf32> to vector<16x128xf32>
    %431 = arith.truncf %430 : vector<16x128xf32> to vector<16x128xbf16>
    %c0_237 = arith.constant 0 : index
    %c0_238 = arith.constant 0 : index
    %432 = vector.load %arg21[%c0_237, %c0_238] : memref<128x128xbf16, #tpu.memory_space<vmem>>, vector<128x128xbf16>
    %cst_239 = arith.constant dense<0.000000e+00> : vector<16x128xf32>
    %433 = tpu.matmul %431, %432, %cst_239 {dimension_numbers = #tpu.dot_dimension_numbers<[1], [0], [0], [1], [0, 0, 1, 1], [], []>} : vector<16x128xbf16>, vector<128x128xbf16>, vector<16x128xf32> -> vector<16x128xf32>
    %c0_240 = arith.constant 0 : index
    %c0_241 = arith.constant 0 : index
    %434 = vector.load %arg22[%c0_240, %c0_241] : memref<1x128xf32, #tpu.memory_space<vmem>>, vector<1x128xf32>
    %435 = vector.broadcast %434 : vector<1x128xf32> to vector<16x128xf32>
    %436 = arith.addf %433, %435 : vector<16x128xf32>
    %cst_242 = arith.constant 0.000000e+00 : f32
    %437 = vector.broadcast %cst_242 : f32 to vector<16x128xf32>
    %438 = arith.maximumf %436, %437 : vector<16x128xf32>
    %439 = arith.truncf %438 : vector<16x128xf32> to vector<16x128xbf16>
    %c0_243 = arith.constant 0 : index
    %c0_244 = arith.constant 0 : index
    %440 = vector.load %arg23[%c0_243, %c0_244] : memref<128x128xbf16, #tpu.memory_space<vmem>>, vector<128x128xbf16>
    %cst_245 = arith.constant dense<0.000000e+00> : vector<16x128xf32>
    %441 = tpu.matmul %439, %440, %cst_245 {dimension_numbers = #tpu.dot_dimension_numbers<[1], [0], [0], [1], [0, 0, 1, 1], [], []>} : vector<16x128xbf16>, vector<128x128xbf16>, vector<16x128xf32> -> vector<16x128xf32>
    %c0_246 = arith.constant 0 : index
    %c0_247 = arith.constant 0 : index
    %442 = vector.load %arg24[%c0_246, %c0_247] : memref<1x128xf32, #tpu.memory_space<vmem>>, vector<1x128xf32>
    %443 = vector.broadcast %442 : vector<1x128xf32> to vector<16x128xf32>
    %444 = arith.addf %441, %443 : vector<16x128xf32>
    %445 = vector.shape_cast %444 : vector<16x128xf32> to vector<2x8x128xf32>
    %446 = arith.addf %429, %445 : vector<2x8x128xf32>
    %cst_248 = arith.constant dense<0.000000e+00> : vector<2x8xf32>
    %447 = vector.multi_reduction <add>, %446, %cst_248 [2] : vector<2x8x128xf32> to vector<2x8xf32>
    %448 = vector.shape_cast %447 : vector<2x8xf32> to vector<2x8x1xf32>
    %cst_249 = arith.constant 3.125000e-02 : f32
    %449 = vector.broadcast %cst_249 : f32 to vector<2x8x1xf32>
    %450 = arith.mulf %448, %449 : vector<2x8x1xf32>
    %451 = arith.mulf %446, %446 : vector<2x8x128xf32>
    %cst_250 = arith.constant dense<0.000000e+00> : vector<2x8xf32>
    %452 = vector.multi_reduction <add>, %451, %cst_250 [2] : vector<2x8x128xf32> to vector<2x8xf32>
    %453 = vector.shape_cast %452 : vector<2x8xf32> to vector<2x8x1xf32>
    %cst_251 = arith.constant 3.125000e-02 : f32
    %454 = vector.broadcast %cst_251 : f32 to vector<2x8x1xf32>
    %455 = arith.mulf %453, %454 : vector<2x8x1xf32>
    %456 = arith.mulf %450, %450 : vector<2x8x1xf32>
    %457 = arith.subf %455, %456 : vector<2x8x1xf32>
    %cst_252 = arith.constant 0.000000e+00 : f32
    %458 = vector.broadcast %cst_252 : f32 to vector<2x8x1xf32>
    %459 = arith.maximumf %457, %458 : vector<2x8x1xf32>
    %460 = vector.broadcast %450 : vector<2x8x1xf32> to vector<2x8x128xf32>
    %461 = arith.subf %446, %460 : vector<2x8x128xf32>
    %cst_253 = arith.constant 9.99999974E-6 : f32
    %462 = vector.broadcast %cst_253 : f32 to vector<2x8x1xf32>
    %463 = arith.addf %459, %462 : vector<2x8x1xf32>
    %464 = math.rsqrt %463 : vector<2x8x1xf32>
    %465 = vector.broadcast %464 : vector<2x8x1xf32> to vector<2x8x128xf32>
    %466 = arith.mulf %461, %465 : vector<2x8x128xf32>
    %c0_254 = arith.constant 0 : index
    %c0_255 = arith.constant 0 : index
    %467 = vector.load %arg29[%c0_254, %c0_255] : memref<1x128xf32, #tpu.memory_space<vmem>>, vector<1x128xf32>
    %468 = vector.shape_cast %467 : vector<1x128xf32> to vector<1x1x128xf32>
    %469 = vector.broadcast %468 : vector<1x1x128xf32> to vector<2x8x128xf32>
    %470 = arith.mulf %466, %469 : vector<2x8x128xf32>
    %c0_256 = arith.constant 0 : index
    %c0_257 = arith.constant 0 : index
    %471 = vector.load %arg30[%c0_256, %c0_257] : memref<1x128xf32, #tpu.memory_space<vmem>>, vector<1x128xf32>
    %472 = vector.shape_cast %471 : vector<1x128xf32> to vector<1x1x128xf32>
    %473 = vector.broadcast %472 : vector<1x1x128xf32> to vector<2x8x128xf32>
    %474 = arith.addf %470, %473 : vector<2x8x128xf32>
    %c0_258 = arith.constant 0 : index
    %c0_259 = arith.constant 0 : index
    %c0_260 = arith.constant 0 : index
    %475 = vector.load %arg31[%c0_258, %c0_259, %c0_260] : memref<2x8x128xf32, #tpu.memory_space<vmem>>, vector<2x8x128xf32>
    tpu.vector_store %arg31[%c0_258, %c0_259, %c0_260], %474 {strides = array<i32>} : memref<2x8x128xf32, #tpu.memory_space<vmem>>, vector<2x8x128xf32>,
    return
  }
  func.func @transform_0(%arg0: i32) -> (i32, i32, i32) {
    %c0_i32 = arith.constant 0 : i32
    %c0_i32_0 = arith.constant 0 : i32
    %c0_i32_1 = arith.constant 0 : i32
    return %arg0, %c0_i32, %c0_i32_0 : i32, i32, i32
  }
  func.func @transform_1(%arg0: i32) -> (i32, i32, i32) {
    %c0_i32 = arith.constant 0 : i32
    %c0_i32_0 = arith.constant 0 : i32
    %c0_i32_1 = arith.constant 0 : i32
    return %arg0, %c0_i32, %c0_i32_0 : i32, i32, i32
  }
  func.func @transform_2(%arg0: i32) -> (i32, i32, i32) {
    %c0_i32 = arith.constant 0 : i32
    %c0_i32_0 = arith.constant 0 : i32
    %c0_i32_1 = arith.constant 0 : i32
    %c0_i32_2 = arith.constant 0 : i32
    return %c0_i32, %c0_i32_0, %c0_i32_1 : i32, i32, i32
  }
  func.func @transform_3(%arg0: i32) -> (i32, i32, i32) {
    %c0_i32 = arith.constant 0 : i32
    %c0_i32_0 = arith.constant 0 : i32
    %c0_i32_1 = arith.constant 0 : i32
    %c0_i32_2 = arith.constant 0 : i32
    return %c0_i32, %c0_i32_0, %c0_i32_1 : i32, i32, i32
  }
  func.func @transform_4(%arg0: i32) -> (i32, i32, i32) {
    %c0_i32 = arith.constant 0 : i32
    %c0_i32_0 = arith.constant 0 : i32
    %c0_i32_1 = arith.constant 0 : i32
    %c0_i32_2 = arith.constant 0 : i32
    return %c0_i32, %c0_i32_0, %c0_i32_1 : i32, i32, i32
  }
  func.func @transform_5(%arg0: i32) -> (i32, i32, i32) {
    %c0_i32 = arith.constant 0 : i32
    %c0_i32_0 = arith.constant 0 : i32
    %c0_i32_1 = arith.constant 0 : i32
    %c0_i32_2 = arith.constant 0 : i32
    return %c0_i32, %c0_i32_0, %c0_i32_1 : i32, i32, i32
  }
  func.func @transform_6(%arg0: i32) -> (i32, i32, i32) {
    %c0_i32 = arith.constant 0 : i32
    %c0_i32_0 = arith.constant 0 : i32
    %c0_i32_1 = arith.constant 0 : i32
    %c0_i32_2 = arith.constant 0 : i32
    return %c0_i32, %c0_i32_0, %c0_i32_1 : i32, i32, i32
  }
  func.func @transform_7(%arg0: i32) -> (i32, i32, i32) {
    %c0_i32 = arith.constant 0 : i32
    %c0_i32_0 = arith.constant 0 : i32
    %c0_i32_1 = arith.constant 0 : i32
    %c0_i32_2 = arith.constant 0 : i32
    return %c0_i32, %c0_i32_0, %c0_i32_1 : i32, i32, i32
  }
  func.func @transform_8(%arg0: i32) -> (i32, i32, i32) {
    %c0_i32 = arith.constant 0 : i32
    %c0_i32_0 = arith.constant 0 : i32
    %c0_i32_1 = arith.constant 0 : i32
    %c0_i32_2 = arith.constant 0 : i32
    return %c0_i32, %c0_i32_0, %c0_i32_1 : i32, i32, i32
  }
  func.func @transform_9(%arg0: i32) -> (i32, i32, i32) {
    %c0_i32 = arith.constant 0 : i32
    %c0_i32_0 = arith.constant 0 : i32
    %c0_i32_1 = arith.constant 0 : i32
    %c0_i32_2 = arith.constant 0 : i32
    return %c0_i32, %c0_i32_0, %c0_i32_1 : i32, i32, i32
  }
  func.func @transform_10(%arg0: i32) -> (i32, i32) {
    %c0_i32 = arith.constant 0 : i32
    %c0_i32_0 = arith.constant 0 : i32
    %c0_i32_1 = arith.constant 0 : i32
    return %c0_i32, %c0_i32_0 : i32, i32
  }
  func.func @transform_11(%arg0: i32) -> (i32, i32) {
    %c0_i32 = arith.constant 0 : i32
    %c0_i32_0 = arith.constant 0 : i32
    %c0_i32_1 = arith.constant 0 : i32
    return %c0_i32, %c0_i32_0 : i32, i32
  }
  func.func @transform_12(%arg0: i32) -> (i32, i32, i32) {
    %c0_i32 = arith.constant 0 : i32
    %c0_i32_0 = arith.constant 0 : i32
    %c0_i32_1 = arith.constant 0 : i32
    %c0_i32_2 = arith.constant 0 : i32
    return %c0_i32, %c0_i32_0, %c0_i32_1 : i32, i32, i32
  }
  func.func @transform_13(%arg0: i32) -> (i32, i32, i32) {
    %c0_i32 = arith.constant 0 : i32
    %c0_i32_0 = arith.constant 0 : i32
    %c0_i32_1 = arith.constant 0 : i32
    %c0_i32_2 = arith.constant 0 : i32
    return %c0_i32, %c0_i32_0, %c0_i32_1 : i32, i32, i32
  }
  func.func @transform_14(%arg0: i32) -> (i32, i32, i32) {
    %c0_i32 = arith.constant 0 : i32
    %c0_i32_0 = arith.constant 0 : i32
    %c0_i32_1 = arith.constant 0 : i32
    %c0_i32_2 = arith.constant 0 : i32
    return %c0_i32, %c0_i32_0, %c0_i32_1 : i32, i32, i32
  }
  func.func @transform_15(%arg0: i32) -> (i32, i32, i32) {
    %c0_i32 = arith.constant 0 : i32
    %c0_i32_0 = arith.constant 0 : i32
    %c0_i32_1 = arith.constant 0 : i32
    %c0_i32_2 = arith.constant 0 : i32
    return %c0_i32, %c0_i32_0, %c0_i32_1 : i32, i32, i32
  }
  func.func @transform_16(%arg0: i32) -> (i32, i32, i32) {
    %c0_i32 = arith.constant 0 : i32
    %c0_i32_0 = arith.constant 0 : i32
    %c0_i32_1 = arith.constant 0 : i32
    %c0_i32_2 = arith.constant 0 : i32
    return %c0_i32, %c0_i32_0, %c0_i32_1 : i32, i32, i32
  }
  func.func @transform_17(%arg0: i32) -> (i32, i32, i32) {
    %c0_i32 = arith.constant 0 : i32
    %c0_i32_0 = arith.constant 0 : i32
    %c0_i32_1 = arith.constant 0 : i32
    %c0_i32_2 = arith.constant 0 : i32
    return %c0_i32, %c0_i32_0, %c0_i32_1 : i32, i32, i32
  }
  func.func @transform_18(%arg0: i32) -> (i32, i32) {
    %c0_i32 = arith.constant 0 : i32
    %c0_i32_0 = arith.constant 0 : i32
    %c0_i32_1 = arith.constant 0 : i32
    return %c0_i32, %c0_i32_0 : i32, i32
  }
  func.func @transform_19(%arg0: i32) -> (i32, i32) {
    %c0_i32 = arith.constant 0 : i32
    %c0_i32_0 = arith.constant 0 : i32
    %c0_i32_1 = arith.constant 0 : i32
    return %c0_i32, %c0_i32_0 : i32, i32
  }
  func.func @transform_20(%arg0: i32) -> (i32, i32) {
    %c0_i32 = arith.constant 0 : i32
    %c0_i32_0 = arith.constant 0 : i32
    %c0_i32_1 = arith.constant 0 : i32
    return %c0_i32, %c0_i32_0 : i32, i32
  }
  func.func @transform_21(%arg0: i32) -> (i32, i32) {
    %c0_i32 = arith.constant 0 : i32
    %c0_i32_0 = arith.constant 0 : i32
    %c0_i32_1 = arith.constant 0 : i32
    return %c0_i32, %c0_i32_0 : i32, i32
  }
  func.func @transform_22(%arg0: i32) -> (i32, i32) {
    %c0_i32 = arith.constant 0 : i32
    %c0_i32_0 = arith.constant 0 : i32
    %c0_i32_1 = arith.constant 0 : i32
    return %c0_i32, %c0_i32_0 : i32, i32
  }
  func.func @transform_23(%arg0: i32) -> (i32, i32) {
    %c0_i32 = arith.constant 0 : i32
    %c0_i32_0 = arith.constant 0 : i32
    %c0_i32_1 = arith.constant 0 : i32
    return %c0_i32, %c0_i32_0 : i32, i32
  }
  func.func @transform_24(%arg0: i32) -> (i32, i32) {
    %c0_i32 = arith.constant 0 : i32
    %c0_i32_0 = arith.constant 0 : i32
    %c0_i32_1 = arith.constant 0 : i32
    return %c0_i32, %c0_i32_0 : i32, i32
  }
  func.func @transform_25(%arg0: i32) -> (i32, i32) {
    %c0_i32 = arith.constant 0 : i32
    %c0_i32_0 = arith.constant 0 : i32
    %c0_i32_1 = arith.constant 0 : i32
    return %c0_i32, %c0_i32_0 : i32, i32
  }
  func.func @transform_26(%arg0: i32) -> (i32, i32) {
    %c0_i32 = arith.constant 0 : i32
    %c0_i32_0 = arith.constant 0 : i32
    %c0_i32_1 = arith.constant 0 : i32
    return %c0_i32, %c0_i32_0 : i32, i32
  }
  func.func @transform_27(%arg0: i32) -> (i32, i32) {
    %c0_i32 = arith.constant 0 : i32
    %c0_i32_0 = arith.constant 0 : i32
    %c0_i32_1 = arith.constant 0 : i32
    return %c0_i32, %c0_i32_0 : i32, i32
  }
  func.func @transform_28(%arg0: i32) -> (i32, i32) {
    %c0_i32 = arith.constant 0 : i32
    %c0_i32_0 = arith.constant 0 : i32
    %c0_i32_1 = arith.constant 0 : i32
    return %c0_i32, %c0_i32_0 : i32, i32
  }
  func.func @transform_29(%arg0: i32) -> (i32, i32) {
    %c0_i32 = arith.constant 0 : i32
    %c0_i32_0 = arith.constant 0 : i32
    %c0_i32_1 = arith.constant 0 : i32
    return %c0_i32, %c0_i32_0 : i32, i32
  }
  func.func @transform_30(%arg0: i32) -> (i32, i32, i32) {
    %c0_i32 = arith.constant 0 : i32
    %c0_i32_0 = arith.constant 0 : i32
    %c0_i32_1 = arith.constant 0 : i32
    return %arg0, %c0_i32, %c0_i32_0 : i32, i32, i32
  }
}

module attributes {stable_mosaic.version = 11 : i64} {
  func.func @decoder_layer_kernel(%arg0: i32, %arg1: memref<2x8x128xf32, #tpu.memory_space<vmem>>, %arg2: memref<2x8x128xf32, #tpu.memory_space<vmem>>, %arg3: memref<1x8x8xf32, #tpu.memory_space<vmem>>, %arg4: memref<1x8x8xf32, #tpu.memory_space<vmem>>, %arg5: memref<4x128x128xbf16, #tpu.memory_space<vmem>>, %arg6: memref<4x1x128xf32, #tpu.memory_space<vmem>>, %arg7: memref<4x128x128xbf16, #tpu.memory_space<vmem>>, %arg8: memref<4x1x128xf32, #tpu.memory_space<vmem>>, %arg9: memref<4x128x128xbf16, #tpu.memory_space<vmem>>, %arg10: memref<4x1x128xf32, #tpu.memory_space<vmem>>, %arg11: memref<512x128xbf16, #tpu.memory_space<vmem>>, %arg12: memref<1x128xf32, #tpu.memory_space<vmem>>, %arg13: memref<4x128x128xbf16, #tpu.memory_space<vmem>>, %arg14: memref<4x1x128xf32, #tpu.memory_space<vmem>>, %arg15: memref<4x128x128xbf16, #tpu.memory_space<vmem>>, %arg16: memref<4x1x128xf32, #tpu.memory_space<vmem>>, %arg17: memref<4x128x128xbf16, #tpu.memory_space<vmem>>, %arg18: memref<4x1x128xf32, #tpu.memory_space<vmem>>, %arg19: memref<512x128xbf16, #tpu.memory_space<vmem>>, %arg20: memref<1x128xf32, #tpu.memory_space<vmem>>, %arg21: memref<128x128xbf16, #tpu.memory_space<vmem>>, %arg22: memref<1x128xf32, #tpu.memory_space<vmem>>, %arg23: memref<128x128xbf16, #tpu.memory_space<vmem>>, %arg24: memref<1x128xf32, #tpu.memory_space<vmem>>, %arg25: memref<1x128xf32, #tpu.memory_space<vmem>>, %arg26: memref<1x128xf32, #tpu.memory_space<vmem>>, %arg27: memref<1x128xf32, #tpu.memory_space<vmem>>, %arg28: memref<1x128xf32, #tpu.memory_space<vmem>>, %arg29: memref<1x128xf32, #tpu.memory_space<vmem>>, %arg30: memref<1x128xf32, #tpu.memory_space<vmem>>, %arg31: memref<2x8x128xf32, #tpu.memory_space<vmem>>) attributes {dimension_semantics = [#tpu.dimension_semantics<parallel>], iteration_bounds = array<i64: 1>, scalar_prefetch = 0 : i64, scratch_operands = 0 : i64, tpu.core_type = #tpu.core_type<tc>, window_params = [{transform_indices = @transform_0, window_bounds = array<i64: 2, 8, 128>}, {transform_indices = @transform_1, window_bounds = array<i64: 2, 8, 128>}, {pipeline_mode = #tpu.pipeline_mode<synchronous>, transform_indices = @transform_2, window_bounds = array<i64: 1, 8, 8>}, {pipeline_mode = #tpu.pipeline_mode<synchronous>, transform_indices = @transform_3, window_bounds = array<i64: 1, 8, 8>}, {pipeline_mode = #tpu.pipeline_mode<synchronous>, transform_indices = @transform_4, window_bounds = array<i64: 4, 128, 128>}, {pipeline_mode = #tpu.pipeline_mode<synchronous>, transform_indices = @transform_5, window_bounds = array<i64: 4, 1, 128>}, {pipeline_mode = #tpu.pipeline_mode<synchronous>, transform_indices = @transform_6, window_bounds = array<i64: 4, 128, 128>}, {pipeline_mode = #tpu.pipeline_mode<synchronous>, transform_indices = @transform_7, window_bounds = array<i64: 4, 1, 128>}, {pipeline_mode = #tpu.pipeline_mode<synchronous>, transform_indices = @transform_8, window_bounds = array<i64: 4, 128, 128>}, {pipeline_mode = #tpu.pipeline_mode<synchronous>, transform_indices = @transform_9, window_bounds = array<i64: 4, 1, 128>}, {pipeline_mode = #tpu.pipeline_mode<synchronous>, transform_indices = @transform_10, window_bounds = array<i64: 512, 128>}, {pipeline_mode = #tpu.pipeline_mode<synchronous>, transform_indices = @transform_11, window_bounds = array<i64: 1, 128>}, {pipeline_mode = #tpu.pipeline_mode<synchronous>, transform_indices = @transform_12, window_bounds = array<i64: 4, 128, 128>}, {pipeline_mode = #tpu.pipeline_mode<synchronous>, transform_indices = @transform_13, window_bounds = array<i64: 4, 1, 128>}, {pipeline_mode = #tpu.pipeline_mode<synchronous>, transform_indices = @transform_14, window_bounds = array<i64: 4, 128, 128>}, {pipeline_mode = #tpu.pipeline_mode<synchronous>, transform_indices = @transform_15, window_bounds = array<i64: 4, 1, 128>}, {pipeline_mode = #tpu.pipeline_mode<synchronous>, transform_indices = @transform_16, window_bounds = array<i64: 4, 128, 128>}, {pipeline_mode = #tpu.pipeline_mode<synchronous>, transform_indices = @transform_17, window_bounds = array<i64: 4, 1, 128>}, {pipeline_mode = #tpu.pipeline_mode<synchronous>, transform_indices = @transform_18, window_bounds = array<i64: 512, 128>}, {pipeline_mode = #tpu.pipeline_mode<synchronous>, transform_indices = @transform_19, window_bounds = array<i64: 1, 128>}, {pipeline_mode = #tpu.pipeline_mode<synchronous>, transform_indices = @transform_20, window_bounds = array<i64: 128, 128>}, {pipeline_mode = #tpu.pipeline_mode<synchronous>, transform_indices = @transform_21, window_bounds = array<i64: 1, 128>}, {pipeline_mode = #tpu.pipeline_mode<synchronous>, transform_indices = @transform_22, window_bounds = array<i64: 128, 128>}, {pipeline_mode = #tpu.pipeline_mode<synchronous>, transform_indices = @transform_23, window_bounds = array<i64: 1, 128>}, {pipeline_mode = #tpu.pipeline_mode<synchronous>, transform_indices = @transform_24, window_bounds = array<i64: 1, 128>}, {pipeline_mode = #tpu.pipeline_mode<synchronous>, transform_indices = @transform_25, window_bounds = array<i64: 1, 128>}, {pipeline_mode = #tpu.pipeline_mode<synchronous>, transform_indices = @transform_26, window_bounds = array<i64: 1, 128>}, {pipeline_mode = #tpu.pipeline_mode<synchronous>, transform_indices = @transform_27, window_bounds = array<i64: 1, 128>}, {pipeline_mode = #tpu.pipeline_mode<synchronous>, transform_indices = @transform_28, window_bounds = array<i64: 1, 128>}, {pipeline_mode = #tpu.pipeline_mode<synchronous>, transform_indices = @transform_29, window_bounds = array<i64: 1, 128>}, {transform_indices = @transform_30, window_bounds = array<i64: 2, 8, 128>}]} {
    %c0 = arith.constant 0 : index
    %c0_0 = arith.constant 0 : index
    %c0_1 = arith.constant 0 : index
    %0 = vector.load %arg1[%c0, %c0_0, %c0_1] : memref<2x8x128xf32, #tpu.memory_space<vmem>>, vector<2x8x128xf32>
    %c0_2 = arith.constant 0 : index
    %c0_3 = arith.constant 0 : index
    %c0_4 = arith.constant 0 : index
    %1 = vector.load %arg2[%c0_2, %c0_3, %c0_4] : memref<2x8x128xf32, #tpu.memory_space<vmem>>, vector<2x8x128xf32>
    %c0_5 = arith.constant 0 : index
    %c0_6 = arith.constant 0 : index
    %c0_7 = arith.constant 0 : index
    %2 = vector.load %arg3[%c0_5, %c0_6, %c0_7] : memref<1x8x8xf32, #tpu.memory_space<vmem>>, vector<1x8x8xf32>
    %c0_8 = arith.constant 0 : index
    %c0_9 = arith.constant 0 : index
    %c0_10 = arith.constant 0 : index
    %3 = vector.load %arg4[%c0_8, %c0_9, %c0_10] : memref<1x8x8xf32, #tpu.memory_space<vmem>>, vector<1x8x8xf32>
    %4 = vector.shape_cast %0 : vector<2x8x128xf32> to vector<16x128xf32>
    %5 = arith.truncf %4 : vector<16x128xf32> to vector<16x128xbf16>
    %6 = vector.shape_cast %0 : vector<2x8x128xf32> to vector<16x128xf32>
    %7 = arith.truncf %6 : vector<16x128xf32> to vector<16x128xbf16>
    %c0_11 = arith.constant 0 : index
    %c0_12 = arith.constant 0 : index
    %c0_13 = arith.constant 0 : index
    %8 = vector.load %arg5[%c0_11, %c0_12, %c0_13] : memref<4x128x128xbf16, #tpu.memory_space<vmem>>, vector<1x128x128xbf16>
    %9 = vector.shape_cast %8 : vector<1x128x128xbf16> to vector<128x128xbf16>
    %cst = arith.constant dense<0.000000e+00> : vector<16x128xf32>
    %10 = tpu.matmul %5, %9, %cst {dimension_numbers = #tpu.dot_dimension_numbers<[1], [0], [0], [1], [0, 0, 1, 1], [], []>} : vector<16x128xbf16>, vector<128x128xbf16>, vector<16x128xf32> -> vector<16x128xf32>
    %c0_14 = arith.constant 0 : index
    %c0_15 = arith.constant 0 : index
    %c0_16 = arith.constant 0 : index
    %11 = vector.load %arg6[%c0_14, %c0_15, %c0_16] : memref<4x1x128xf32, #tpu.memory_space<vmem>>, vector<1x1x128xf32>
    %12 = vector.shape_cast %11 : vector<1x1x128xf32> to vector<1x128xf32>
    %13 = vector.broadcast %12 : vector<1x128xf32> to vector<16x128xf32>
    %14 = arith.addf %10, %13 : vector<16x128xf32>
    %15 = vector.shape_cast %14 : vector<16x128xf32> to vector<2x8x128xf32>
    %c0_17 = arith.constant 0 : index
    %c0_18 = arith.constant 0 : index
    %c0_19 = arith.constant 0 : index
    %16 = vector.load %arg7[%c0_17, %c0_18, %c0_19] : memref<4x128x128xbf16, #tpu.memory_space<vmem>>, vector<1x128x128xbf16>
    %17 = vector.shape_cast %16 : vector<1x128x128xbf16> to vector<128x128xbf16>
    %cst_20 = arith.constant dense<0.000000e+00> : vector<16x128xf32>
    %18 = tpu.matmul %7, %17, %cst_20 {dimension_numbers = #tpu.dot_dimension_numbers<[1], [0], [0], [1], [0, 0, 1, 1], [], []>} : vector<16x128xbf16>, vector<128x128xbf16>, vector<16x128xf32> -> vector<16x128xf32>
    %c0_21 = arith.constant 0 : index
    %c0_22 = arith.constant 0 : index
    %c0_23 = arith.constant 0 : index
    %19 = vector.load %arg8[%c0_21, %c0_22, %c0_23] : memref<4x1x128xf32, #tpu.memory_space<vmem>>, vector<1x1x128xf32>
    %20 = vector.shape_cast %19 : vector<1x1x128xf32> to vector<1x128xf32>
    %21 = vector.broadcast %20 : vector<1x128xf32> to vector<16x128xf32>
    %22 = arith.addf %18, %21 : vector<16x128xf32>
    %23 = vector.shape_cast %22 : vector<16x128xf32> to vector<2x8x128xf32>
    %c0_24 = arith.constant 0 : index
    %c0_25 = arith.constant 0 : index
    %c0_26 = arith.constant 0 : index
    %24 = vector.load %arg9[%c0_24, %c0_25, %c0_26] : memref<4x128x128xbf16, #tpu.memory_space<vmem>>, vector<1x128x128xbf16>
    %25 = vector.shape_cast %24 : vector<1x128x128xbf16> to vector<128x128xbf16>
    %cst_27 = arith.constant dense<0.000000e+00> : vector<16x128xf32>
    %26 = tpu.matmul %7, %25, %cst_27 {dimension_numbers = #tpu.dot_dimension_numbers<[1], [0], [0], [1], [0, 0, 1, 1], [], []>} : vector<16x128xbf16>, vector<128x128xbf16>, vector<16x128xf32> -> vector<16x128xf32>
    %c0_28 = arith.constant 0 : index
    %c0_29 = arith.constant 0 : index
    %c0_30 = arith.constant 0 : index
    %27 = vector.load %arg10[%c0_28, %c0_29, %c0_30] : memref<4x1x128xf32, #tpu.memory_space<vmem>>, vector<1x1x128xf32>
    %28 = vector.shape_cast %27 : vector<1x1x128xf32> to vector<1x128xf32>
    %29 = vector.broadcast %28 : vector<1x128xf32> to vector<16x128xf32>
    %30 = arith.addf %26, %29 : vector<16x128xf32>
    %31 = vector.shape_cast %30 : vector<16x128xf32> to vector<2x8x128xf32>
    %32 = arith.truncf %15 : vector<2x8x128xf32> to vector<2x8x128xbf16>
    %33 = arith.truncf %23 : vector<2x8x128xf32> to vector<2x8x128xbf16>
    "tpu.trace_start"() <{level = 10 : i32, message = "bqd,bkd->bqk"}> : () -> ()
    %cst_31 = arith.constant dense<0.000000e+00> : vector<2x8x8xf32>
    %34 = tpu.matmul %32, %33, %cst_31 {dimension_numbers = #tpu.dot_dimension_numbers<[2], [2], [1], [1], [0, 0, 0, 1, 1, 1], [0], [0]>} : vector<2x8x128xbf16>, vector<2x8x128xbf16>, vector<2x8x8xf32> -> vector<2x8x8xf32>
    "tpu.trace_stop"() : () -> ()
    %35 = vector.broadcast %2 : vector<1x8x8xf32> to vector<2x8x8xf32>
    %36 = arith.addf %34, %35 : vector<2x8x8xf32>
    %cst_32 = arith.constant dense<0xFF800000> : vector<2x8xf32>
    %37 = vector.multi_reduction <maximumf>, %36, %cst_32 [2] : vector<2x8x8xf32> to vector<2x8xf32>
    %38 = vector.shape_cast %37 : vector<2x8xf32> to vector<2x8x1xf32>
    %39 = vector.broadcast %38 : vector<2x8x1xf32> to vector<2x8x8xf32>
    %40 = arith.subf %36, %39 : vector<2x8x8xf32>
    %41 = math.exp %40 : vector<2x8x8xf32>
    %cst_33 = arith.constant dense<0.000000e+00> : vector<2x8xf32>
    %42 = vector.multi_reduction <add>, %41, %cst_33 [2] : vector<2x8x8xf32> to vector<2x8xf32>
    %43 = vector.shape_cast %42 : vector<2x8xf32> to vector<2x8x1xf32>
    %44 = tpu.reciprocal %43 {approx = true} : vector<2x8x1xf32> -> vector<2x8x1xf32>
    %45 = vector.broadcast %44 : vector<2x8x1xf32> to vector<2x8x8xf32>
    %46 = arith.mulf %41, %45 : vector<2x8x8xf32>
    %47 = arith.truncf %46 : vector<2x8x8xf32> to vector<2x8x8xbf16>
    %48 = arith.truncf %31 : vector<2x8x128xf32> to vector<2x8x128xbf16>
    "tpu.trace_start"() <{level = 10 : i32, message = "bqk,bkd->bqd"}> : () -> ()
    %cst_34 = arith.constant dense<0.000000e+00> : vector<2x8x128xf32>
    %49 = tpu.matmul %47, %48, %cst_34 {dimension_numbers = #tpu.dot_dimension_numbers<[2], [1], [1], [2], [0, 0, 0, 1, 1, 2], [0], [0]>} : vector<2x8x8xbf16>, vector<2x8x128xbf16>, vector<2x8x128xf32> -> vector<2x8x128xf32>
    "tpu.trace_stop"() : () -> ()
    %50 = arith.truncf %49 : vector<2x8x128xf32> to vector<2x8x128xbf16>
    %c1 = arith.constant 1 : index
    %c0_35 = arith.constant 0 : index
    %c0_36 = arith.constant 0 : index
    %51 = vector.load %arg5[%c1, %c0_35, %c0_36] : memref<4x128x128xbf16, #tpu.memory_space<vmem>>, vector<1x128x128xbf16>
    %52 = vector.shape_cast %51 : vector<1x128x128xbf16> to vector<128x128xbf16>
    %cst_37 = arith.constant dense<0.000000e+00> : vector<16x128xf32>
    %53 = tpu.matmul %5, %52, %cst_37 {dimension_numbers = #tpu.dot_dimension_numbers<[1], [0], [0], [1], [0, 0, 1, 1], [], []>} : vector<16x128xbf16>, vector<128x128xbf16>, vector<16x128xf32> -> vector<16x128xf32>
    %c1_38 = arith.constant 1 : index
    %c0_39 = arith.constant 0 : index
    %c0_40 = arith.constant 0 : index
    %54 = vector.load %arg6[%c1_38, %c0_39, %c0_40] : memref<4x1x128xf32, #tpu.memory_space<vmem>>, vector<1x1x128xf32>
    %55 = vector.shape_cast %54 : vector<1x1x128xf32> to vector<1x128xf32>
    %56 = vector.broadcast %55 : vector<1x128xf32> to vector<16x128xf32>
    %57 = arith.addf %53, %56 : vector<16x128xf32>
    %58 = vector.shape_cast %57 : vector<16x128xf32> to vector<2x8x128xf32>
    %c1_41 = arith.constant 1 : index
    %c0_42 = arith.constant 0 : index
    %c0_43 = arith.constant 0 : index
    %59 = vector.load %arg7[%c1_41, %c0_42, %c0_43] : memref<4x128x128xbf16, #tpu.memory_space<vmem>>, vector<1x128x128xbf16>
    %60 = vector.shape_cast %59 : vector<1x128x128xbf16> to vector<128x128xbf16>
    %cst_44 = arith.constant dense<0.000000e+00> : vector<16x128xf32>
    %61 = tpu.matmul %7, %60, %cst_44 {dimension_numbers = #tpu.dot_dimension_numbers<[1], [0], [0], [1], [0, 0, 1, 1], [], []>} : vector<16x128xbf16>, vector<128x128xbf16>, vector<16x128xf32> -> vector<16x128xf32>
    %c1_45 = arith.constant 1 : index
    %c0_46 = arith.constant 0 : index
    %c0_47 = arith.constant 0 : index
    %62 = vector.load %arg8[%c1_45, %c0_46, %c0_47] : memref<4x1x128xf32, #tpu.memory_space<vmem>>, vector<1x1x128xf32>
    %63 = vector.shape_cast %62 : vector<1x1x128xf32> to vector<1x128xf32>
    %64 = vector.broadcast %63 : vector<1x128xf32> to vector<16x128xf32>
    %65 = arith.addf %61, %64 : vector<16x128xf32>
    %66 = vector.shape_cast %65 : vector<16x128xf32> to vector<2x8x128xf32>
    %c1_48 = arith.constant 1 : index
    %c0_49 = arith.constant 0 : index
    %c0_50 = arith.constant 0 : index
    %67 = vector.load %arg9[%c1_48, %c0_49, %c0_50] : memref<4x128x128xbf16, #tpu.memory_space<vmem>>, vector<1x128x128xbf16>
    %68 = vector.shape_cast %67 : vector<1x128x128xbf16> to vector<128x128xbf16>
    %cst_51 = arith.constant dense<0.000000e+00> : vector<16x128xf32>
    %69 = tpu.matmul %7, %68, %cst_51 {dimension_numbers = #tpu.dot_dimension_numbers<[1], [0], [0], [1], [0, 0, 1, 1], [], []>} : vector<16x128xbf16>, vector<128x128xbf16>, vector<16x128xf32> -> vector<16x128xf32>
    %c1_52 = arith.constant 1 : index
    %c0_53 = arith.constant 0 : index
    %c0_54 = arith.constant 0 : index
    %70 = vector.load %arg10[%c1_52, %c0_53, %c0_54] : memref<4x1x128xf32, #tpu.memory_space<vmem>>, vector<1x1x128xf32>
    %71 = vector.shape_cast %70 : vector<1x1x128xf32> to vector<1x128xf32>
    %72 = vector.broadcast %71 : vector<1x128xf32> to vector<16x128xf32>
    %73 = arith.addf %69, %72 : vector<16x128xf32>
    %74 = vector.shape_cast %73 : vector<16x128xf32> to vector<2x8x128xf32>
    %75 = arith.truncf %58 : vector<2x8x128xf32> to vector<2x8x128xbf16>
    %76 = arith.truncf %66 : vector<2x8x128xf32> to vector<2x8x128xbf16>
    "tpu.trace_start"() <{level = 10 : i32, message = "bqd,bkd->bqk"}> : () -> ()
    %cst_55 = arith.constant dense<0.000000e+00> : vector<2x8x8xf32>
    %77 = tpu.matmul %75, %76, %cst_55 {dimension_numbers = #tpu.dot_dimension_numbers<[2], [2], [1], [1], [0, 0, 0, 1, 1, 1], [0], [0]>} : vector<2x8x128xbf16>, vector<2x8x128xbf16>, vector<2x8x8xf32> -> vector<2x8x8xf32>
    "tpu.trace_stop"() : () -> ()
    %78 = vector.broadcast %2 : vector<1x8x8xf32> to vector<2x8x8xf32>
    %79 = arith.addf %77, %78 : vector<2x8x8xf32>
    %cst_56 = arith.constant dense<0xFF800000> : vector<2x8xf32>
    %80 = vector.multi_reduction <maximumf>, %79, %cst_56 [2] : vector<2x8x8xf32> to vector<2x8xf32>
    %81 = vector.shape_cast %80 : vector<2x8xf32> to vector<2x8x1xf32>
    %82 = vector.broadcast %81 : vector<2x8x1xf32> to vector<2x8x8xf32>
    %83 = arith.subf %79, %82 : vector<2x8x8xf32>
    %84 = math.exp %83 : vector<2x8x8xf32>
    %cst_57 = arith.constant dense<0.000000e+00> : vector<2x8xf32>
    %85 = vector.multi_reduction <add>, %84, %cst_57 [2] : vector<2x8x8xf32> to vector<2x8xf32>
    %86 = vector.shape_cast %85 : vector<2x8xf32> to vector<2x8x1xf32>
    %87 = tpu.reciprocal %86 {approx = true} : vector<2x8x1xf32> -> vector<2x8x1xf32>
    %88 = vector.broadcast %87 : vector<2x8x1xf32> to vector<2x8x8xf32>
    %89 = arith.mulf %84, %88 : vector<2x8x8xf32>
    %90 = arith.truncf %89 : vector<2x8x8xf32> to vector<2x8x8xbf16>
    %91 = arith.truncf %74 : vector<2x8x128xf32> to vector<2x8x128xbf16>
    "tpu.trace_start"() <{level = 10 : i32, message = "bqk,bkd->bqd"}> : () -> ()
    %cst_58 = arith.constant dense<0.000000e+00> : vector<2x8x128xf32>
    %92 = tpu.matmul %90, %91, %cst_58 {dimension_numbers = #tpu.dot_dimension_numbers<[2], [1], [1], [2], [0, 0, 0, 1, 1, 2], [0], [0]>} : vector<2x8x8xbf16>, vector<2x8x128xbf16>, vector<2x8x128xf32> -> vector<2x8x128xf32>
    "tpu.trace_stop"() : () -> ()
    %93 = arith.truncf %92 : vector<2x8x128xf32> to vector<2x8x128xbf16>
    %c2 = arith.constant 2 : index
    %c0_59 = arith.constant 0 : index
    %c0_60 = arith.constant 0 : index
    %94 = vector.load %arg5[%c2, %c0_59, %c0_60] : memref<4x128x128xbf16, #tpu.memory_space<vmem>>, vector<1x128x128xbf16>
    %95 = vector.shape_cast %94 : vector<1x128x128xbf16> to vector<128x128xbf16>
    %cst_61 = arith.constant dense<0.000000e+00> : vector<16x128xf32>
    %96 = tpu.matmul %5, %95, %cst_61 {dimension_numbers = #tpu.dot_dimension_numbers<[1], [0], [0], [1], [0, 0, 1, 1], [], []>} : vector<16x128xbf16>, vector<128x128xbf16>, vector<16x128xf32> -> vector<16x128xf32>
    %c2_62 = arith.constant 2 : index
    %c0_63 = arith.constant 0 : index
    %c0_64 = arith.constant 0 : index
    %97 = vector.load %arg6[%c2_62, %c0_63, %c0_64] : memref<4x1x128xf32, #tpu.memory_space<vmem>>, vector<1x1x128xf32>
    %98 = vector.shape_cast %97 : vector<1x1x128xf32> to vector<1x128xf32>
    %99 = vector.broadcast %98 : vector<1x128xf32> to vector<16x128xf32>
    %100 = arith.addf %96, %99 : vector<16x128xf32>
    %101 = vector.shape_cast %100 : vector<16x128xf32> to vector<2x8x128xf32>
    %c2_65 = arith.constant 2 : index
    %c0_66 = arith.constant 0 : index
    %c0_67 = arith.constant 0 : index
    %102 = vector.load %arg7[%c2_65, %c0_66, %c0_67] : memref<4x128x128xbf16, #tpu.memory_space<vmem>>, vector<1x128x128xbf16>
    %103 = vector.shape_cast %102 : vector<1x128x128xbf16> to vector<128x128xbf16>
    %cst_68 = arith.constant dense<0.000000e+00> : vector<16x128xf32>
    %104 = tpu.matmul %7, %103, %cst_68 {dimension_numbers = #tpu.dot_dimension_numbers<[1], [0], [0], [1], [0, 0, 1, 1], [], []>} : vector<16x128xbf16>, vector<128x128xbf16>, vector<16x128xf32> -> vector<16x128xf32>
    %c2_69 = arith.constant 2 : index
    %c0_70 = arith.constant 0 : index
    %c0_71 = arith.constant 0 : index
    %105 = vector.load %arg8[%c2_69, %c0_70, %c0_71] : memref<4x1x128xf32, #tpu.memory_space<vmem>>, vector<1x1x128xf32>
    %106 = vector.shape_cast %105 : vector<1x1x128xf32> to vector<1x128xf32>
    %107 = vector.broadcast %106 : vector<1x128xf32> to vector<16x128xf32>
    %108 = arith.addf %104, %107 : vector<16x128xf32>
    %109 = vector.shape_cast %108 : vector<16x128xf32> to vector<2x8x128xf32>
    %c2_72 = arith.constant 2 : index
    %c0_73 = arith.constant 0 : index
    %c0_74 = arith.constant 0 : index
    %110 = vector.load %arg9[%c2_72, %c0_73, %c0_74] : memref<4x128x128xbf16, #tpu.memory_space<vmem>>, vector<1x128x128xbf16>
    %111 = vector.shape_cast %110 : vector<1x128x128xbf16> to vector<128x128xbf16>
    %cst_75 = arith.constant dense<0.000000e+00> : vector<16x128xf32>
    %112 = tpu.matmul %7, %111, %cst_75 {dimension_numbers = #tpu.dot_dimension_numbers<[1], [0], [0], [1], [0, 0, 1, 1], [], []>} : vector<16x128xbf16>, vector<128x128xbf16>, vector<16x128xf32> -> vector<16x128xf32>
    %c2_76 = arith.constant 2 : index
    %c0_77 = arith.constant 0 : index
    %c0_78 = arith.constant 0 : index
    %113 = vector.load %arg10[%c2_76, %c0_77, %c0_78] : memref<4x1x128xf32, #tpu.memory_space<vmem>>, vector<1x1x128xf32>
    %114 = vector.shape_cast %113 : vector<1x1x128xf32> to vector<1x128xf32>
    %115 = vector.broadcast %114 : vector<1x128xf32> to vector<16x128xf32>
    %116 = arith.addf %112, %115 : vector<16x128xf32>
    %117 = vector.shape_cast %116 : vector<16x128xf32> to vector<2x8x128xf32>
    %118 = arith.truncf %101 : vector<2x8x128xf32> to vector<2x8x128xbf16>
    %119 = arith.truncf %109 : vector<2x8x128xf32> to vector<2x8x128xbf16>
    "tpu.trace_start"() <{level = 10 : i32, message = "bqd,bkd->bqk"}> : () -> ()
    %cst_79 = arith.constant dense<0.000000e+00> : vector<2x8x8xf32>
    %120 = tpu.matmul %118, %119, %cst_79 {dimension_numbers = #tpu.dot_dimension_numbers<[2], [2], [1], [1], [0, 0, 0, 1, 1, 1], [0], [0]>} : vector<2x8x128xbf16>, vector<2x8x128xbf16>, vector<2x8x8xf32> -> vector<2x8x8xf32>
    "tpu.trace_stop"() : () -> ()
    %121 = vector.broadcast %2 : vector<1x8x8xf32> to vector<2x8x8xf32>
    %122 = arith.addf %120, %121 : vector<2x8x8xf32>
    %cst_80 = arith.constant dense<0xFF800000> : vector<2x8xf32>
    %123 = vector.multi_reduction <maximumf>, %122, %cst_80 [2] : vector<2x8x8xf32> to vector<2x8xf32>
    %124 = vector.shape_cast %123 : vector<2x8xf32> to vector<2x8x1xf32>
    %125 = vector.broadcast %124 : vector<2x8x1xf32> to vector<2x8x8xf32>
    %126 = arith.subf %122, %125 : vector<2x8x8xf32>
    %127 = math.exp %126 : vector<2x8x8xf32>
    %cst_81 = arith.constant dense<0.000000e+00> : vector<2x8xf32>
    %128 = vector.multi_reduction <add>, %127, %cst_81 [2] : vector<2x8x8xf32> to vector<2x8xf32>
    %129 = vector.shape_cast %128 : vector<2x8xf32> to vector<2x8x1xf32>
    %130 = tpu.reciprocal %129 {approx = true} : vector<2x8x1xf32> -> vector<2x8x1xf32>
    %131 = vector.broadcast %130 : vector<2x8x1xf32> to vector<2x8x8xf32>
    %132 = arith.mulf %127, %131 : vector<2x8x8xf32>
    %133 = arith.truncf %132 : vector<2x8x8xf32> to vector<2x8x8xbf16>
    %134 = arith.truncf %117 : vector<2x8x128xf32> to vector<2x8x128xbf16>
    "tpu.trace_start"() <{level = 10 : i32, message = "bqk,bkd->bqd"}> : () -> ()
    %cst_82 = arith.constant dense<0.000000e+00> : vector<2x8x128xf32>
    %135 = tpu.matmul %133, %134, %cst_82 {dimension_numbers = #tpu.dot_dimension_numbers<[2], [1], [1], [2], [0, 0, 0, 1, 1, 2], [0], [0]>} : vector<2x8x8xbf16>, vector<2x8x128xbf16>, vector<2x8x128xf32> -> vector<2x8x128xf32>
    "tpu.trace_stop"() : () -> ()
    %136 = arith.truncf %135 : vector<2x8x128xf32> to vector<2x8x128xbf16>
    %c3 = arith.constant 3 : index
    %c0_83 = arith.constant 0 : index
    %c0_84 = arith.constant 0 : index
    %137 = vector.load %arg5[%c3, %c0_83, %c0_84] : memref<4x128x128xbf16, #tpu.memory_space<vmem>>, vector<1x128x128xbf16>
    %138 = vector.shape_cast %137 : vector<1x128x128xbf16> to vector<128x128xbf16>
    %cst_85 = arith.constant dense<0.000000e+00> : vector<16x128xf32>
    %139 = tpu.matmul %5, %138, %cst_85 {dimension_numbers = #tpu.dot_dimension_numbers<[1], [0], [0], [1], [0, 0, 1, 1], [], []>} : vector<16x128xbf16>, vector<128x128xbf16>, vector<16x128xf32> -> vector<16x128xf32>
    %c3_86 = arith.constant 3 : index
    %c0_87 = arith.constant 0 : index
    %c0_88 = arith.constant 0 : index
    %140 = vector.load %arg6[%c3_86, %c0_87, %c0_88] : memref<4x1x128xf32, #tpu.memory_space<vmem>>, vector<1x1x128xf32>
    %141 = vector.shape_cast %140 : vector<1x1x128xf32> to vector<1x128xf32>
    %142 = vector.broadcast %141 : vector<1x128xf32> to vector<16x128xf32>
    %143 = arith.addf %139, %142 : vector<16x128xf32>
    %144 = vector.shape_cast %143 : vector<16x128xf32> to vector<2x8x128xf32>
    %c3_89 = arith.constant 3 : index
    %c0_90 = arith.constant 0 : index
    %c0_91 = arith.constant 0 : index
    %145 = vector.load %arg7[%c3_89, %c0_90, %c0_91] : memref<4x128x128xbf16, #tpu.memory_space<vmem>>, vector<1x128x128xbf16>
    %146 = vector.shape_cast %145 : vector<1x128x128xbf16> to vector<128x128xbf16>
    %cst_92 = arith.constant dense<0.000000e+00> : vector<16x128xf32>
    %147 = tpu.matmul %7, %146, %cst_92 {dimension_numbers = #tpu.dot_dimension_numbers<[1], [0], [0], [1], [0, 0, 1, 1], [], []>} : vector<16x128xbf16>, vector<128x128xbf16>, vector<16x128xf32> -> vector<16x128xf32>
    %c3_93 = arith.constant 3 : index
    %c0_94 = arith.constant 0 : index
    %c0_95 = arith.constant 0 : index
    %148 = vector.load %arg8[%c3_93, %c0_94, %c0_95] : memref<4x1x128xf32, #tpu.memory_space<vmem>>, vector<1x1x128xf32>
    %149 = vector.shape_cast %148 : vector<1x1x128xf32> to vector<1x128xf32>
    %150 = vector.broadcast %149 : vector<1x128xf32> to vector<16x128xf32>
    %151 = arith.addf %147, %150 : vector<16x128xf32>
    %152 = vector.shape_cast %151 : vector<16x128xf32> to vector<2x8x128xf32>
    %c3_96 = arith.constant 3 : index
    %c0_97 = arith.constant 0 : index
    %c0_98 = arith.constant 0 : index
    %153 = vector.load %arg9[%c3_96, %c0_97, %c0_98] : memref<4x128x128xbf16, #tpu.memory_space<vmem>>, vector<1x128x128xbf16>
    %154 = vector.shape_cast %153 : vector<1x128x128xbf16> to vector<128x128xbf16>
    %cst_99 = arith.constant dense<0.000000e+00> : vector<16x128xf32>
    %155 = tpu.matmul %7, %154, %cst_99 {dimension_numbers = #tpu.dot_dimension_numbers<[1], [0], [0], [1], [0, 0, 1, 1], [], []>} : vector<16x128xbf16>, vector<128x128xbf16>, vector<16x128xf32> -> vector<16x128xf32>
    %c3_100 = arith.constant 3 : index
    %c0_101 = arith.constant 0 : index
    %c0_102 = arith.constant 0 : index
    %156 = vector.load %arg10[%c3_100, %c0_101, %c0_102] : memref<4x1x128xf32, #tpu.memory_space<vmem>>, vector<1x1x128xf32>
    %157 = vector.shape_cast %156 : vector<1x1x128xf32> to vector<1x128xf32>
    %158 = vector.broadcast %157 : vector<1x128xf32> to vector<16x128xf32>
    %159 = arith.addf %155, %158 : vector<16x128xf32>
    %160 = vector.shape_cast %159 : vector<16x128xf32> to vector<2x8x128xf32>
    %161 = arith.truncf %144 : vector<2x8x128xf32> to vector<2x8x128xbf16>
    %162 = arith.truncf %152 : vector<2x8x128xf32> to vector<2x8x128xbf16>
    "tpu.trace_start"() <{level = 10 : i32, message = "bqd,bkd->bqk"}> : () -> ()
    %cst_103 = arith.constant dense<0.000000e+00> : vector<2x8x8xf32>
    %163 = tpu.matmul %161, %162, %cst_103 {dimension_numbers = #tpu.dot_dimension_numbers<[2], [2], [1], [1], [0, 0, 0, 1, 1, 1], [0], [0]>} : vector<2x8x128xbf16>, vector<2x8x128xbf16>, vector<2x8x8xf32> -> vector<2x8x8xf32>
    "tpu.trace_stop"() : () -> ()
    %164 = vector.broadcast %2 : vector<1x8x8xf32> to vector<2x8x8xf32>
    %165 = arith.addf %163, %164 : vector<2x8x8xf32>
    %cst_104 = arith.constant dense<0xFF800000> : vector<2x8xf32>
    %166 = vector.multi_reduction <maximumf>, %165, %cst_104 [2] : vector<2x8x8xf32> to vector<2x8xf32>
    %167 = vector.shape_cast %166 : vector<2x8xf32> to vector<2x8x1xf32>
    %168 = vector.broadcast %167 : vector<2x8x1xf32> to vector<2x8x8xf32>
    %169 = arith.subf %165, %168 : vector<2x8x8xf32>
    %170 = math.exp %169 : vector<2x8x8xf32>
    %cst_105 = arith.constant dense<0.000000e+00> : vector<2x8xf32>
    %171 = vector.multi_reduction <add>, %170, %cst_105 [2] : vector<2x8x8xf32> to vector<2x8xf32>
    %172 = vector.shape_cast %171 : vector<2x8xf32> to vector<2x8x1xf32>
    %173 = tpu.reciprocal %172 {approx = true} : vector<2x8x1xf32> -> vector<2x8x1xf32>
    %174 = vector.broadcast %173 : vector<2x8x1xf32> to vector<2x8x8xf32>
    %175 = arith.mulf %170, %174 : vector<2x8x8xf32>
    %176 = arith.truncf %175 : vector<2x8x8xf32> to vector<2x8x8xbf16>
    %177 = arith.truncf %160 : vector<2x8x128xf32> to vector<2x8x128xbf16>
    "tpu.trace_start"() <{level = 10 : i32, message = "bqk,bkd->bqd"}> : () -> ()
    %cst_106 = arith.constant dense<0.000000e+00> : vector<2x8x128xf32>
    %178 = tpu.matmul %176, %177, %cst_106 {dimension_numbers = #tpu.dot_dimension_numbers<[2], [1], [1], [2], [0, 0, 0, 1, 1, 2], [0], [0]>} : vector<2x8x8xbf16>, vector<2x8x128xbf16>, vector<2x8x128xf32> -> vector<2x8x128xf32>
    "tpu.trace_stop"() : () -> ()
    %179 = arith.truncf %178 : vector<2x8x128xf32> to vector<2x8x128xbf16>
    %180 = tpu.concatenate %50, %93, %136, %179 in 2 : vector<2x8x128xbf16>, vector<2x8x128xbf16>, vector<2x8x128xbf16>, vector<2x8x128xbf16> -> vector<2x8x512xbf16>
    %181 = vector.shape_cast %180 : vector<2x8x512xbf16> to vector<16x512xbf16>
    %c0_107 = arith.constant 0 : index
    %c0_108 = arith.constant 0 : index
    %182 = vector.load %arg11[%c0_107, %c0_108] : memref<512x128xbf16, #tpu.memory_space<vmem>>, vector<512x128xbf16>
    %cst_109 = arith.constant dense<0.000000e+00> : vector<16x128xf32>
    %183 = tpu.matmul %181, %182, %cst_109 {dimension_numbers = #tpu.dot_dimension_numbers<[1], [0], [0], [1], [0, 0, 1, 1], [], []>} : vector<16x512xbf16>, vector<512x128xbf16>, vector<16x128xf32> -> vector<16x128xf32>
    %c0_110 = arith.constant 0 : index
    %c0_111 = arith.constant 0 : index
    %184 = vector.load %arg12[%c0_110, %c0_111] : memref<1x128xf32, #tpu.memory_space<vmem>>, vector<1x128xf32>
    %185 = vector.broadcast %184 : vector<1x128xf32> to vector<16x128xf32>
    %186 = arith.addf %183, %185 : vector<16x128xf32>
    %187 = vector.shape_cast %186 : vector<16x128xf32> to vector<2x8x128xf32>
    %188 = arith.addf %0, %187 : vector<2x8x128xf32>
    %cst_112 = arith.constant dense<0.000000e+00> : vector<2x8xf32>
    %189 = vector.multi_reduction <add>, %188, %cst_112 [2] : vector<2x8x128xf32> to vector<2x8xf32>
    %190 = vector.shape_cast %189 : vector<2x8xf32> to vector<2x8x1xf32>
    %cst_113 = arith.constant 3.125000e-02 : f32
    %191 = vector.broadcast %cst_113 : f32 to vector<2x8x1xf32>
    %192 = arith.mulf %190, %191 : vector<2x8x1xf32>
    %193 = arith.mulf %188, %188 : vector<2x8x128xf32>
    %cst_114 = arith.constant dense<0.000000e+00> : vector<2x8xf32>
    %194 = vector.multi_reduction <add>, %193, %cst_114 [2] : vector<2x8x128xf32> to vector<2x8xf32>
    %195 = vector.shape_cast %194 : vector<2x8xf32> to vector<2x8x1xf32>
    %cst_115 = arith.constant 3.125000e-02 : f32
    %196 = vector.broadcast %cst_115 : f32 to vector<2x8x1xf32>
    %197 = arith.mulf %195, %196 : vector<2x8x1xf32>
    %198 = arith.mulf %192, %192 : vector<2x8x1xf32>
    %199 = arith.subf %197, %198 : vector<2x8x1xf32>
    %cst_116 = arith.constant 0.000000e+00 : f32
    %200 = vector.broadcast %cst_116 : f32 to vector<2x8x1xf32>
    %201 = arith.maximumf %199, %200 : vector<2x8x1xf32>
    %202 = vector.broadcast %192 : vector<2x8x1xf32> to vector<2x8x128xf32>
    %203 = arith.subf %188, %202 : vector<2x8x128xf32>
    %cst_117 = arith.constant 9.99999974E-6 : f32
    %204 = vector.broadcast %cst_117 : f32 to vector<2x8x1xf32>
    %205 = arith.addf %201, %204 : vector<2x8x1xf32>
    %206 = math.rsqrt %205 : vector<2x8x1xf32>
    %207 = vector.broadcast %206 : vector<2x8x1xf32> to vector<2x8x128xf32>
    %208 = arith.mulf %203, %207 : vector<2x8x128xf32>
    %c0_118 = arith.constant 0 : index
    %c0_119 = arith.constant 0 : index
    %209 = vector.load %arg25[%c0_118, %c0_119] : memref<1x128xf32, #tpu.memory_space<vmem>>, vector<1x128xf32>
    %210 = vector.shape_cast %209 : vector<1x128xf32> to vector<1x1x128xf32>
    %211 = vector.broadcast %210 : vector<1x1x128xf32> to vector<2x8x128xf32>
    %212 = arith.mulf %208, %211 : vector<2x8x128xf32>
    %c0_120 = arith.constant 0 : index
    %c0_121 = arith.constant 0 : index
    %213 = vector.load %arg26[%c0_120, %c0_121] : memref<1x128xf32, #tpu.memory_space<vmem>>, vector<1x128xf32>
    %214 = vector.shape_cast %213 : vector<1x128xf32> to vector<1x1x128xf32>
    %215 = vector.broadcast %214 : vector<1x1x128xf32> to vector<2x8x128xf32>
    %216 = arith.addf %212, %215 : vector<2x8x128xf32>
    %217 = vector.shape_cast %216 : vector<2x8x128xf32> to vector<16x128xf32>
    %218 = arith.truncf %217 : vector<16x128xf32> to vector<16x128xbf16>
    %219 = vector.shape_cast %1 : vector<2x8x128xf32> to vector<16x128xf32>
    %220 = arith.truncf %219 : vector<16x128xf32> to vector<16x128xbf16>
    %c0_122 = arith.constant 0 : index
    %c0_123 = arith.constant 0 : index
    %c0_124 = arith.constant 0 : index
    %221 = vector.load %arg13[%c0_122, %c0_123, %c0_124] : memref<4x128x128xbf16, #tpu.memory_space<vmem>>, vector<1x128x128xbf16>
    %222 = vector.shape_cast %221 : vector<1x128x128xbf16> to vector<128x128xbf16>
    %cst_125 = arith.constant dense<0.000000e+00> : vector<16x128xf32>
    %223 = tpu.matmul %218, %222, %cst_125 {dimension_numbers = #tpu.dot_dimension_numbers<[1], [0], [0], [1], [0, 0, 1, 1], [], []>} : vector<16x128xbf16>, vector<128x128xbf16>, vector<16x128xf32> -> vector<16x128xf32>
    %c0_126 = arith.constant 0 : index
    %c0_127 = arith.constant 0 : index
    %c0_128 = arith.constant 0 : index
    %224 = vector.load %arg14[%c0_126, %c0_127, %c0_128] : memref<4x1x128xf32, #tpu.memory_space<vmem>>, vector<1x1x128xf32>
    %225 = vector.shape_cast %224 : vector<1x1x128xf32> to vector<1x128xf32>
    %226 = vector.broadcast %225 : vector<1x128xf32> to vector<16x128xf32>
    %227 = arith.addf %223, %226 : vector<16x128xf32>
    %228 = vector.shape_cast %227 : vector<16x128xf32> to vector<2x8x128xf32>
    %c0_129 = arith.constant 0 : index
    %c0_130 = arith.constant 0 : index
    %c0_131 = arith.constant 0 : index
    %229 = vector.load %arg15[%c0_129, %c0_130, %c0_131] : memref<4x128x128xbf16, #tpu.memory_space<vmem>>, vector<1x128x128xbf16>
    %230 = vector.shape_cast %229 : vector<1x128x128xbf16> to vector<128x128xbf16>
    %cst_132 = arith.constant dense<0.000000e+00> : vector<16x128xf32>
    %231 = tpu.matmul %220, %230, %cst_132 {dimension_numbers = #tpu.dot_dimension_numbers<[1], [0], [0], [1], [0, 0, 1, 1], [], []>} : vector<16x128xbf16>, vector<128x128xbf16>, vector<16x128xf32> -> vector<16x128xf32>
    %c0_133 = arith.constant 0 : index
    %c0_134 = arith.constant 0 : index
    %c0_135 = arith.constant 0 : index
    %232 = vector.load %arg16[%c0_133, %c0_134, %c0_135] : memref<4x1x128xf32, #tpu.memory_space<vmem>>, vector<1x1x128xf32>
    %233 = vector.shape_cast %232 : vector<1x1x128xf32> to vector<1x128xf32>
    %234 = vector.broadcast %233 : vector<1x128xf32> to vector<16x128xf32>
    %235 = arith.addf %231, %234 : vector<16x128xf32>
    %236 = vector.shape_cast %235 : vector<16x128xf32> to vector<2x8x128xf32>
    %c0_136 = arith.constant 0 : index
    %c0_137 = arith.constant 0 : index
    %c0_138 = arith.constant 0 : index
    %237 = vector.load %arg17[%c0_136, %c0_137, %c0_138] : memref<4x128x128xbf16, #tpu.memory_space<vmem>>, vector<1x128x128xbf16>
    %238 = vector.shape_cast %237 : vector<1x128x128xbf16> to vector<128x128xbf16>
    %cst_139 = arith.constant dense<0.000000e+00> : vector<16x128xf32>
    %239 = tpu.matmul %220, %238, %cst_139 {dimension_numbers = #tpu.dot_dimension_numbers<[1], [0], [0], [1], [0, 0, 1, 1], [], []>} : vector<16x128xbf16>, vector<128x128xbf16>, vector<16x128xf32> -> vector<16x128xf32>
    %c0_140 = arith.constant 0 : index
    %c0_141 = arith.constant 0 : index
    %c0_142 = arith.constant 0 : index
    %240 = vector.load %arg18[%c0_140, %c0_141, %c0_142] : memref<4x1x128xf32, #tpu.memory_space<vmem>>, vector<1x1x128xf32>
    %241 = vector.shape_cast %240 : vector<1x1x128xf32> to vector<1x128xf32>
    %242 = vector.broadcast %241 : vector<1x128xf32> to vector<16x128xf32>
    %243 = arith.addf %239, %242 : vector<16x128xf32>
    %244 = vector.shape_cast %243 : vector<16x128xf32> to vector<2x8x128xf32>
    %245 = arith.truncf %228 : vector<2x8x128xf32> to vector<2x8x128xbf16>
    %246 = arith.truncf %236 : vector<2x8x128xf32> to vector<2x8x128xbf16>
    "tpu.trace_start"() <{level = 10 : i32, message = "bqd,bkd->bqk"}> : () -> ()
    %cst_143 = arith.constant dense<0.000000e+00> : vector<2x8x8xf32>
    %247 = tpu.matmul %245, %246, %cst_143 {dimension_numbers = #tpu.dot_dimension_numbers<[2], [2], [1], [1], [0, 0, 0, 1, 1, 1], [0], [0]>} : vector<2x8x128xbf16>, vector<2x8x128xbf16>, vector<2x8x8xf32> -> vector<2x8x8xf32>
    "tpu.trace_stop"() : () -> ()
    %248 = vector.broadcast %3 : vector<1x8x8xf32> to vector<2x8x8xf32>
    %249 = arith.addf %247, %248 : vector<2x8x8xf32>
    %cst_144 = arith.constant dense<0xFF800000> : vector<2x8xf32>
    %250 = vector.multi_reduction <maximumf>, %249, %cst_144 [2] : vector<2x8x8xf32> to vector<2x8xf32>
    %251 = vector.shape_cast %250 : vector<2x8xf32> to vector<2x8x1xf32>
    %252 = vector.broadcast %251 : vector<2x8x1xf32> to vector<2x8x8xf32>
    %253 = arith.subf %249, %252 : vector<2x8x8xf32>
    %254 = math.exp %253 : vector<2x8x8xf32>
    %cst_145 = arith.constant dense<0.000000e+00> : vector<2x8xf32>
    %255 = vector.multi_reduction <add>, %254, %cst_145 [2] : vector<2x8x8xf32> to vector<2x8xf32>
    %256 = vector.shape_cast %255 : vector<2x8xf32> to vector<2x8x1xf32>
    %257 = tpu.reciprocal %256 {approx = true} : vector<2x8x1xf32> -> vector<2x8x1xf32>
    %258 = vector.broadcast %257 : vector<2x8x1xf32> to vector<2x8x8xf32>
    %259 = arith.mulf %254, %258 : vector<2x8x8xf32>
    %260 = arith.truncf %259 : vector<2x8x8xf32> to vector<2x8x8xbf16>
    %261 = arith.truncf %244 : vector<2x8x128xf32> to vector<2x8x128xbf16>
    "tpu.trace_start"() <{level = 10 : i32, message = "bqk,bkd->bqd"}> : () -> ()
    %cst_146 = arith.constant dense<0.000000e+00> : vector<2x8x128xf32>
    %262 = tpu.matmul %260, %261, %cst_146 {dimension_numbers = #tpu.dot_dimension_numbers<[2], [1], [1], [2], [0, 0, 0, 1, 1, 2], [0], [0]>} : vector<2x8x8xbf16>, vector<2x8x128xbf16>, vector<2x8x128xf32> -> vector<2x8x128xf32>
    "tpu.trace_stop"() : () -> ()
    %263 = arith.truncf %262 : vector<2x8x128xf32> to vector<2x8x128xbf16>
    %c1_147 = arith.constant 1 : index
    %c0_148 = arith.constant 0 : index
    %c0_149 = arith.constant 0 : index
    %264 = vector.load %arg13[%c1_147, %c0_148, %c0_149] : memref<4x128x128xbf16, #tpu.memory_space<vmem>>, vector<1x128x128xbf16>
    %265 = vector.shape_cast %264 : vector<1x128x128xbf16> to vector<128x128xbf16>
    %cst_150 = arith.constant dense<0.000000e+00> : vector<16x128xf32>
    %266 = tpu.matmul %218, %265, %cst_150 {dimension_numbers = #tpu.dot_dimension_numbers<[1], [0], [0], [1], [0, 0, 1, 1], [], []>} : vector<16x128xbf16>, vector<128x128xbf16>, vector<16x128xf32> -> vector<16x128xf32>
    %c1_151 = arith.constant 1 : index
    %c0_152 = arith.constant 0 : index
    %c0_153 = arith.constant 0 : index
    %267 = vector.load %arg14[%c1_151, %c0_152, %c0_153] : memref<4x1x128xf32, #tpu.memory_space<vmem>>, vector<1x1x128xf32>
    %268 = vector.shape_cast %267 : vector<1x1x128xf32> to vector<1x128xf32>
    %269 = vector.broadcast %268 : vector<1x128xf32> to vector<16x128xf32>
    %270 = arith.addf %266, %269 : vector<16x128xf32>
    %271 = vector.shape_cast %270 : vector<16x128xf32> to vector<2x8x128xf32>
    %c1_154 = arith.constant 1 : index
    %c0_155 = arith.constant 0 : index
    %c0_156 = arith.constant 0 : index
    %272 = vector.load %arg15[%c1_154, %c0_155, %c0_156] : memref<4x128x128xbf16, #tpu.memory_space<vmem>>, vector<1x128x128xbf16>
    %273 = vector.shape_cast %272 : vector<1x128x128xbf16> to vector<128x128xbf16>
    %cst_157 = arith.constant dense<0.000000e+00> : vector<16x128xf32>
    %274 = tpu.matmul %220, %273, %cst_157 {dimension_numbers = #tpu.dot_dimension_numbers<[1], [0], [0], [1], [0, 0, 1, 1], [], []>} : vector<16x128xbf16>, vector<128x128xbf16>, vector<16x128xf32> -> vector<16x128xf32>
    %c1_158 = arith.constant 1 : index
    %c0_159 = arith.constant 0 : index
    %c0_160 = arith.constant 0 : index
    %275 = vector.load %arg16[%c1_158, %c0_159, %c0_160] : memref<4x1x128xf32, #tpu.memory_space<vmem>>, vector<1x1x128xf32>
    %276 = vector.shape_cast %275 : vector<1x1x128xf32> to vector<1x128xf32>
    %277 = vector.broadcast %276 : vector<1x128xf32> to vector<16x128xf32>
    %278 = arith.addf %274, %277 : vector<16x128xf32>
    %279 = vector.shape_cast %278 : vector<16x128xf32> to vector<2x8x128xf32>
    %c1_161 = arith.constant 1 : index
    %c0_162 = arith.constant 0 : index
    %c0_163 = arith.constant 0 : index
    %280 = vector.load %arg17[%c1_161, %c0_162, %c0_163] : memref<4x128x128xbf16, #tpu.memory_space<vmem>>, vector<1x128x128xbf16>
    %281 = vector.shape_cast %280 : vector<1x128x128xbf16> to vector<128x128xbf16>
    %cst_164 = arith.constant dense<0.000000e+00> : vector<16x128xf32>
    %282 = tpu.matmul %220, %281, %cst_164 {dimension_numbers = #tpu.dot_dimension_numbers<[1], [0], [0], [1], [0, 0, 1, 1], [], []>} : vector<16x128xbf16>, vector<128x128xbf16>, vector<16x128xf32> -> vector<16x128xf32>
    %c1_165 = arith.constant 1 : index
    %c0_166 = arith.constant 0 : index
    %c0_167 = arith.constant 0 : index
    %283 = vector.load %arg18[%c1_165, %c0_166, %c0_167] : memref<4x1x128xf32, #tpu.memory_space<vmem>>, vector<1x1x128xf32>
    %284 = vector.shape_cast %283 : vector<1x1x128xf32> to vector<1x128xf32>
    %285 = vector.broadcast %284 : vector<1x128xf32> to vector<16x128xf32>
    %286 = arith.addf %282, %285 : vector<16x128xf32>
    %287 = vector.shape_cast %286 : vector<16x128xf32> to vector<2x8x128xf32>
    %288 = arith.truncf %271 : vector<2x8x128xf32> to vector<2x8x128xbf16>
    %289 = arith.truncf %279 : vector<2x8x128xf32> to vector<2x8x128xbf16>
    "tpu.trace_start"() <{level = 10 : i32, message = "bqd,bkd->bqk"}> : () -> ()
    %cst_168 = arith.constant dense<0.000000e+00> : vector<2x8x8xf32>
    %290 = tpu.matmul %288, %289, %cst_168 {dimension_numbers = #tpu.dot_dimension_numbers<[2], [2], [1], [1], [0, 0, 0, 1, 1, 1], [0], [0]>} : vector<2x8x128xbf16>, vector<2x8x128xbf16>, vector<2x8x8xf32> -> vector<2x8x8xf32>
    "tpu.trace_stop"() : () -> ()
    %291 = vector.broadcast %3 : vector<1x8x8xf32> to vector<2x8x8xf32>
    %292 = arith.addf %290, %291 : vector<2x8x8xf32>
    %cst_169 = arith.constant dense<0xFF800000> : vector<2x8xf32>
    %293 = vector.multi_reduction <maximumf>, %292, %cst_169 [2] : vector<2x8x8xf32> to vector<2x8xf32>
    %294 = vector.shape_cast %293 : vector<2x8xf32> to vector<2x8x1xf32>
    %295 = vector.broadcast %294 : vector<2x8x1xf32> to vector<2x8x8xf32>
    %296 = arith.subf %292, %295 : vector<2x8x8xf32>
    %297 = math.exp %296 : vector<2x8x8xf32>
    %cst_170 = arith.constant dense<0.000000e+00> : vector<2x8xf32>
    %298 = vector.multi_reduction <add>, %297, %cst_170 [2] : vector<2x8x8xf32> to vector<2x8xf32>
    %299 = vector.shape_cast %298 : vector<2x8xf32> to vector<2x8x1xf32>
    %300 = tpu.reciprocal %299 {approx = true} : vector<2x8x1xf32> -> vector<2x8x1xf32>
    %301 = vector.broadcast %300 : vector<2x8x1xf32> to vector<2x8x8xf32>
    %302 = arith.mulf %297, %301 : vector<2x8x8xf32>
    %303 = arith.truncf %302 : vector<2x8x8xf32> to vector<2x8x8xbf16>
    %304 = arith.truncf %287 : vector<2x8x128xf32> to vector<2x8x128xbf16>
    "tpu.trace_start"() <{level = 10 : i32, message = "bqk,bkd->bqd"}> : () -> ()
    %cst_171 = arith.constant dense<0.000000e+00> : vector<2x8x128xf32>
    %305 = tpu.matmul %303, %304, %cst_171 {dimension_numbers = #tpu.dot_dimension_numbers<[2], [1], [1], [2], [0, 0, 0, 1, 1, 2], [0], [0]>} : vector<2x8x8xbf16>, vector<2x8x128xbf16>, vector<2x8x128xf32> -> vector<2x8x128xf32>
    "tpu.trace_stop"() : () -> ()
    %306 = arith.truncf %305 : vector<2x8x128xf32> to vector<2x8x128xbf16>
    %c2_172 = arith.constant 2 : index
    %c0_173 = arith.constant 0 : index
    %c0_174 = arith.constant 0 : index
    %307 = vector.load %arg13[%c2_172, %c0_173, %c0_174] : memref<4x128x128xbf16, #tpu.memory_space<vmem>>, vector<1x128x128xbf16>
    %308 = vector.shape_cast %307 : vector<1x128x128xbf16> to vector<128x128xbf16>
    %cst_175 = arith.constant dense<0.000000e+00> : vector<16x128xf32>
    %309 = tpu.matmul %218, %308, %cst_175 {dimension_numbers = #tpu.dot_dimension_numbers<[1], [0], [0], [1], [0, 0, 1, 1], [], []>} : vector<16x128xbf16>, vector<128x128xbf16>, vector<16x128xf32> -> vector<16x128xf32>
    %c2_176 = arith.constant 2 : index
    %c0_177 = arith.constant 0 : index
    %c0_178 = arith.constant 0 : index
    %310 = vector.load %arg14[%c2_176, %c0_177, %c0_178] : memref<4x1x128xf32, #tpu.memory_space<vmem>>, vector<1x1x128xf32>
    %311 = vector.shape_cast %310 : vector<1x1x128xf32> to vector<1x128xf32>
    %312 = vector.broadcast %311 : vector<1x128xf32> to vector<16x128xf32>
    %313 = arith.addf %309, %312 : vector<16x128xf32>
    %314 = vector.shape_cast %313 : vector<16x128xf32> to vector<2x8x128xf32>
    %c2_179 = arith.constant 2 : index
    %c0_180 = arith.constant 0 : index
    %c0_181 = arith.constant 0 : index
    %315 = vector.load %arg15[%c2_179, %c0_180, %c0_181] : memref<4x128x128xbf16, #tpu.memory_space<vmem>>, vector<1x128x128xbf16>
    %316 = vector.shape_cast %315 : vector<1x128x128xbf16> to vector<128x128xbf16>
    %cst_182 = arith.constant dense<0.000000e+00> : vector<16x128xf32>
    %317 = tpu.matmul %220, %316, %cst_182 {dimension_numbers = #tpu.dot_dimension_numbers<[1], [0], [0], [1], [0, 0, 1, 1], [], []>} : vector<16x128xbf16>, vector<128x128xbf16>, vector<16x128xf32> -> vector<16x128xf32>
    %c2_183 = arith.constant 2 : index
    %c0_184 = arith.constant 0 : index
    %c0_185 = arith.constant 0 : index
    %318 = vector.load %arg16[%c2_183, %c0_184, %c0_185] : memref<4x1x128xf32, #tpu.memory_space<vmem>>, vector<1x1x128xf32>
    %319 = vector.shape_cast %318 : vector<1x1x128xf32> to vector<1x128xf32>
    %320 = vector.broadcast %319 : vector<1x128xf32> to vector<16x128xf32>
    %321 = arith.addf %317, %320 : vector<16x128xf32>
    %322 = vector.shape_cast %321 : vector<16x128xf32> to vector<2x8x128xf32>
    %c2_186 = arith.constant 2 : index
    %c0_187 = arith.constant 0 : index
    %c0_188 = arith.constant 0 : index
    %323 = vector.load %arg17[%c2_186, %c0_187, %c0_188] : memref<4x128x128xbf16, #tpu.memory_space<vmem>>, vector<1x128x128xbf16>
    %324 = vector.shape_cast %323 : vector<1x128x128xbf16> to vector<128x128xbf16>
    %cst_189 = arith.constant dense<0.000000e+00> : vector<16x128xf32>
    %325 = tpu.matmul %220, %324, %cst_189 {dimension_numbers = #tpu.dot_dimension_numbers<[1], [0], [0], [1], [0, 0, 1, 1], [], []>} : vector<16x128xbf16>, vector<128x128xbf16>, vector<16x128xf32> -> vector<16x128xf32>
    %c2_190 = arith.constant 2 : index
    %c0_191 = arith.constant 0 : index
    %c0_192 = arith.constant 0 : index
    %326 = vector.load %arg18[%c2_190, %c0_191, %c0_192] : memref<4x1x128xf32, #tpu.memory_space<vmem>>, vector<1x1x128xf32>
    %327 = vector.shape_cast %326 : vector<1x1x128xf32> to vector<1x128xf32>
    %328 = vector.broadcast %327 : vector<1x128xf32> to vector<16x128xf32>
    %329 = arith.addf %325, %328 : vector<16x128xf32>
    %330 = vector.shape_cast %329 : vector<16x128xf32> to vector<2x8x128xf32>
    %331 = arith.truncf %314 : vector<2x8x128xf32> to vector<2x8x128xbf16>
    %332 = arith.truncf %322 : vector<2x8x128xf32> to vector<2x8x128xbf16>
    "tpu.trace_start"() <{level = 10 : i32, message = "bqd,bkd->bqk"}> : () -> ()
    %cst_193 = arith.constant dense<0.000000e+00> : vector<2x8x8xf32>
    %333 = tpu.matmul %331, %332, %cst_193 {dimension_numbers = #tpu.dot_dimension_numbers<[2], [2], [1], [1], [0, 0, 0, 1, 1, 1], [0], [0]>} : vector<2x8x128xbf16>, vector<2x8x128xbf16>, vector<2x8x8xf32> -> vector<2x8x8xf32>
    "tpu.trace_stop"() : () -> ()
    %334 = vector.broadcast %3 : vector<1x8x8xf32> to vector<2x8x8xf32>
    %335 = arith.addf %333, %334 : vector<2x8x8xf32>
    %cst_194 = arith.constant dense<0xFF800000> : vector<2x8xf32>
    %336 = vector.multi_reduction <maximumf>, %335, %cst_194 [2] : vector<2x8x8xf32> to vector<2x8xf32>
    %337 = vector.shape_cast %336 : vector<2x8xf32> to vector<2x8x1xf32>
    %338 = vector.broadcast %337 : vector<2x8x1xf32> to vector<2x8x8xf32>
    %339 = arith.subf %335, %338 : vector<2x8x8xf32>
    %340 = math.exp %339 : vector<2x8x8xf32>
    %cst_195 = arith.constant dense<0.000000e+00> : vector<2x8xf32>
    %341 = vector.multi_reduction <add>, %340, %cst_195 [2] : vector<2x8x8xf32> to vector<2x8xf32>
    %342 = vector.shape_cast %341 : vector<2x8xf32> to vector<2x8x1xf32>
    %343 = tpu.reciprocal %342 {approx = true} : vector<2x8x1xf32> -> vector<2x8x1xf32>
    %344 = vector.broadcast %343 : vector<2x8x1xf32> to vector<2x8x8xf32>
    %345 = arith.mulf %340, %344 : vector<2x8x8xf32>
    %346 = arith.truncf %345 : vector<2x8x8xf32> to vector<2x8x8xbf16>
    %347 = arith.truncf %330 : vector<2x8x128xf32> to vector<2x8x128xbf16>
    "tpu.trace_start"() <{level = 10 : i32, message = "bqk,bkd->bqd"}> : () -> ()
    %cst_196 = arith.constant dense<0.000000e+00> : vector<2x8x128xf32>
    %348 = tpu.matmul %346, %347, %cst_196 {dimension_numbers = #tpu.dot_dimension_numbers<[2], [1], [1], [2], [0, 0, 0, 1, 1, 2], [0], [0]>} : vector<2x8x8xbf16>, vector<2x8x128xbf16>, vector<2x8x128xf32> -> vector<2x8x128xf32>
    "tpu.trace_stop"() : () -> ()
    %349 = arith.truncf %348 : vector<2x8x128xf32> to vector<2x8x128xbf16>
    %c3_197 = arith.constant 3 : index
    %c0_198 = arith.constant 0 : index
    %c0_199 = arith.constant 0 : index
    %350 = vector.load %arg13[%c3_197, %c0_198, %c0_199] : memref<4x128x128xbf16, #tpu.memory_space<vmem>>, vector<1x128x128xbf16>
    %351 = vector.shape_cast %350 : vector<1x128x128xbf16> to vector<128x128xbf16>
    %cst_200 = arith.constant dense<0.000000e+00> : vector<16x128xf32>
    %352 = tpu.matmul %218, %351, %cst_200 {dimension_numbers = #tpu.dot_dimension_numbers<[1], [0], [0], [1], [0, 0, 1, 1], [], []>} : vector<16x128xbf16>, vector<128x128xbf16>, vector<16x128xf32> -> vector<16x128xf32>
    %c3_201 = arith.constant 3 : index
    %c0_202 = arith.constant 0 : index
    %c0_203 = arith.constant 0 : index
    %353 = vector.load %arg14[%c3_201, %c0_202, %c0_203] : memref<4x1x128xf32, #tpu.memory_space<vmem>>, vector<1x1x128xf32>
    %354 = vector.shape_cast %353 : vector<1x1x128xf32> to vector<1x128xf32>
    %355 = vector.broadcast %354 : vector<1x128xf32> to vector<16x128xf32>
    %356 = arith.addf %352, %355 : vector<16x128xf32>
    %357 = vector.shape_cast %356 : vector<16x128xf32> to vector<2x8x128xf32>
    %c3_204 = arith.constant 3 : index
    %c0_205 = arith.constant 0 : index
    %c0_206 = arith.constant 0 : index
    %358 = vector.load %arg15[%c3_204, %c0_205, %c0_206] : memref<4x128x128xbf16, #tpu.memory_space<vmem>>, vector<1x128x128xbf16>
    %359 = vector.shape_cast %358 : vector<1x128x128xbf16> to vector<128x128xbf16>
    %cst_207 = arith.constant dense<0.000000e+00> : vector<16x128xf32>
    %360 = tpu.matmul %220, %359, %cst_207 {dimension_numbers = #tpu.dot_dimension_numbers<[1], [0], [0], [1], [0, 0, 1, 1], [], []>} : vector<16x128xbf16>, vector<128x128xbf16>, vector<16x128xf32> -> vector<16x128xf32>
    %c3_208 = arith.constant 3 : index
    %c0_209 = arith.constant 0 : index
    %c0_210 = arith.constant 0 : index
    %361 = vector.load %arg16[%c3_208, %c0_209, %c0_210] : memref<4x1x128xf32, #tpu.memory_space<vmem>>, vector<1x1x128xf32>
    %362 = vector.shape_cast %361 : vector<1x1x128xf32> to vector<1x128xf32>
    %363 = vector.broadcast %362 : vector<1x128xf32> to vector<16x128xf32>
    %364 = arith.addf %360, %363 : vector<16x128xf32>
    %365 = vector.shape_cast %364 : vector<16x128xf32> to vector<2x8x128xf32>
    %c3_211 = arith.constant 3 : index
    %c0_212 = arith.constant 0 : index
    %c0_213 = arith.constant 0 : index
    %366 = vector.load %arg17[%c3_211, %c0_212, %c0_213] : memref<4x128x128xbf16, #tpu.memory_space<vmem>>, vector<1x128x128xbf16>
    %367 = vector.shape_cast %366 : vector<1x128x128xbf16> to vector<128x128xbf16>
    %cst_214 = arith.constant dense<0.000000e+00> : vector<16x128xf32>
    %368 = tpu.matmul %220, %367, %cst_214 {dimension_numbers = #tpu.dot_dimension_numbers<[1], [0], [0], [1], [0, 0, 1, 1], [], []>} : vector<16x128xbf16>, vector<128x128xbf16>, vector<16x128xf32> -> vector<16x128xf32>
    %c3_215 = arith.constant 3 : index
    %c0_216 = arith.constant 0 : index
    %c0_217 = arith.constant 0 : index
    %369 = vector.load %arg18[%c3_215, %c0_216, %c0_217] : memref<4x1x128xf32, #tpu.memory_space<vmem>>, vector<1x1x128xf32>
    %370 = vector.shape_cast %369 : vector<1x1x128xf32> to vector<1x128xf32>
    %371 = vector.broadcast %370 : vector<1x128xf32> to vector<16x128xf32>
    %372 = arith.addf %368, %371 : vector<16x128xf32>
    %373 = vector.shape_cast %372 : vector<16x128xf32> to vector<2x8x128xf32>
    %374 = arith.truncf %357 : vector<2x8x128xf32> to vector<2x8x128xbf16>
    %375 = arith.truncf %365 : vector<2x8x128xf32> to vector<2x8x128xbf16>
    "tpu.trace_start"() <{level = 10 : i32, message = "bqd,bkd->bqk"}> : () -> ()
    %cst_218 = arith.constant dense<0.000000e+00> : vector<2x8x8xf32>
    %376 = tpu.matmul %374, %375, %cst_218 {dimension_numbers = #tpu.dot_dimension_numbers<[2], [2], [1], [1], [0, 0, 0, 1, 1, 1], [0], [0]>} : vector<2x8x128xbf16>, vector<2x8x128xbf16>, vector<2x8x8xf32> -> vector<2x8x8xf32>
    "tpu.trace_stop"() : () -> ()
    %377 = vector.broadcast %3 : vector<1x8x8xf32> to vector<2x8x8xf32>
    %378 = arith.addf %376, %377 : vector<2x8x8xf32>
    %cst_219 = arith.constant dense<0xFF800000> : vector<2x8xf32>
    %379 = vector.multi_reduction <maximumf>, %378, %cst_219 [2] : vector<2x8x8xf32> to vector<2x8xf32>
    %380 = vector.shape_cast %379 : vector<2x8xf32> to vector<2x8x1xf32>
    %381 = vector.broadcast %380 : vector<2x8x1xf32> to vector<2x8x8xf32>
    %382 = arith.subf %378, %381 : vector<2x8x8xf32>
    %383 = math.exp %382 : vector<2x8x8xf32>
    %cst_220 = arith.constant dense<0.000000e+00> : vector<2x8xf32>
    %384 = vector.multi_reduction <add>, %383, %cst_220 [2] : vector<2x8x8xf32> to vector<2x8xf32>
    %385 = vector.shape_cast %384 : vector<2x8xf32> to vector<2x8x1xf32>
    %386 = tpu.reciprocal %385 {approx = true} : vector<2x8x1xf32> -> vector<2x8x1xf32>
    %387 = vector.broadcast %386 : vector<2x8x1xf32> to vector<2x8x8xf32>
    %388 = arith.mulf %383, %387 : vector<2x8x8xf32>
    %389 = arith.truncf %388 : vector<2x8x8xf32> to vector<2x8x8xbf16>
    %390 = arith.truncf %373 : vector<2x8x128xf32> to vector<2x8x128xbf16>
    "tpu.trace_start"() <{level = 10 : i32, message = "bqk,bkd->bqd"}> : () -> ()
    %cst_221 = arith.constant dense<0.000000e+00> : vector<2x8x128xf32>
    %391 = tpu.matmul %389, %390, %cst_221 {dimension_numbers = #tpu.dot_dimension_numbers<[2], [1], [1], [2], [0, 0, 0, 1, 1, 2], [0], [0]>} : vector<2x8x8xbf16>, vector<2x8x128xbf16>, vector<2x8x128xf32> -> vector<2x8x128xf32>
    "tpu.trace_stop"() : () -> ()
    %392 = arith.truncf %391 : vector<2x8x128xf32> to vector<2x8x128xbf16>
    %393 = tpu.concatenate %263, %306, %349, %392 in 2 : vector<2x8x128xbf16>, vector<2x8x128xbf16>, vector<2x8x128xbf16>, vector<2x8x128xbf16> -> vector<2x8x512xbf16>
    %394 = vector.shape_cast %393 : vector<2x8x512xbf16> to vector<16x512xbf16>
    %c0_222 = arith.constant 0 : index
    %c0_223 = arith.constant 0 : index
    %395 = vector.load %arg19[%c0_222, %c0_223] : memref<512x128xbf16, #tpu.memory_space<vmem>>, vector<512x128xbf16>
    %cst_224 = arith.constant dense<0.000000e+00> : vector<16x128xf32>
    %396 = tpu.matmul %394, %395, %cst_224 {dimension_numbers = #tpu.dot_dimension_numbers<[1], [0], [0], [1], [0, 0, 1, 1], [], []>} : vector<16x512xbf16>, vector<512x128xbf16>, vector<16x128xf32> -> vector<16x128xf32>
    %c0_225 = arith.constant 0 : index
    %c0_226 = arith.constant 0 : index
    %397 = vector.load %arg20[%c0_225, %c0_226] : memref<1x128xf32, #tpu.memory_space<vmem>>, vector<1x128xf32>
    %398 = vector.broadcast %397 : vector<1x128xf32> to vector<16x128xf32>
    %399 = arith.addf %396, %398 : vector<16x128xf32>
    %400 = vector.shape_cast %399 : vector<16x128xf32> to vector<2x8x128xf32>
    %401 = arith.addf %216, %400 : vector<2x8x128xf32>
    %cst_227 = arith.constant dense<0.000000e+00> : vector<2x8xf32>
    %402 = vector.multi_reduction <add>, %401, %cst_227 [2] : vector<2x8x128xf32> to vector<2x8xf32>
    %403 = vector.shape_cast %402 : vector<2x8xf32> to vector<2x8x1xf32>
    %cst_228 = arith.constant 3.125000e-02 : f32
    %404 = vector.broadcast %cst_228 : f32 to vector<2x8x1xf32>
    %405 = arith.mulf %403, %404 : vector<2x8x1xf32>
    %406 = arith.mulf %401, %401 : vector<2x8x128xf32>
    %cst_229 = arith.constant dense<0.000000e+00> : vector<2x8xf32>
    %407 = vector.multi_reduction <add>, %406, %cst_229 [2] : vector<2x8x128xf32> to vector<2x8xf32>
    %408 = vector.shape_cast %407 : vector<2x8xf32> to vector<2x8x1xf32>
    %cst_230 = arith.constant 3.125000e-02 : f32
    %409 = vector.broadcast %cst_230 : f32 to vector<2x8x1xf32>
    %410 = arith.mulf %408, %409 : vector<2x8x1xf32>
    %411 = arith.mulf %405, %405 : vector<2x8x1xf32>
    %412 = arith.subf %410, %411 : vector<2x8x1xf32>
    %cst_231 = arith.constant 0.000000e+00 : f32
    %413 = vector.broadcast %cst_231 : f32 to vector<2x8x1xf32>
    %414 = arith.maximumf %412, %413 : vector<2x8x1xf32>
    %415 = vector.broadcast %405 : vector<2x8x1xf32> to vector<2x8x128xf32>
    %416 = arith.subf %401, %415 : vector<2x8x128xf32>
    %cst_232 = arith.constant 9.99999974E-6 : f32
    %417 = vector.broadcast %cst_232 : f32 to vector<2x8x1xf32>
    %418 = arith.addf %414, %417 : vector<2x8x1xf32>
    %419 = math.rsqrt %418 : vector<2x8x1xf32>
    %420 = vector.broadcast %419 : vector<2x8x1xf32> to vector<2x8x128xf32>
    %421 = arith.mulf %416, %420 : vector<2x8x128xf32>
    %c0_233 = arith.constant 0 : index
    %c0_234 = arith.constant 0 : index
    %422 = vector.load %arg27[%c0_233, %c0_234] : memref<1x128xf32, #tpu.memory_space<vmem>>, vector<1x128xf32>
    %423 = vector.shape_cast %422 : vector<1x128xf32> to vector<1x1x128xf32>
    %424 = vector.broadcast %423 : vector<1x1x128xf32> to vector<2x8x128xf32>
    %425 = arith.mulf %421, %424 : vector<2x8x128xf32>
    %c0_235 = arith.constant 0 : index
    %c0_236 = arith.constant 0 : index
    %426 = vector.load %arg28[%c0_235, %c0_236] : memref<1x128xf32, #tpu.memory_space<vmem>>, vector<1x128xf32>
    %427 = vector.shape_cast %426 : vector<1x128xf32> to vector<1x1x128xf32>
    %428 = vector.broadcast %427 : vector<1x1x128xf32> to vector<2x8x128xf32>
    %429 = arith.addf %425, %428 : vector<2x8x128xf32>
    %430 = vector.shape_cast %429 : vector<2x8x128xf32> to vector<16x128xf32>
    %431 = arith.truncf %430 : vector<16x128xf32> to vector<16x128xbf16>
    %c0_237 = arith.constant 0 : index
    %c0_238 = arith.constant 0 : index
    %432 = vector.load %arg21[%c0_237, %c0_238] : memref<128x128xbf16, #tpu.memory_space<vmem>>, vector<128x128xbf16>
    %cst_239 = arith.constant dense<0.000000e+00> : vector<16x128xf32>
    %433 = tpu.matmul %431, %432, %cst_239 {dimension_numbers = #tpu.dot_dimension_numbers<[1], [0], [0], [1], [0, 0, 1, 1], [], []>} : vector<16x128xbf16>, vector<128x128xbf16>, vector<16x128xf32> -> vector<16x128xf32>
    %c0_240 = arith.constant 0 : index
    %c0_241 = arith.constant 0 : index
    %434 = vector.load %arg22[%c0_240, %c0_241] : memref<1x128xf32, #tpu.memory_space<vmem>>, vector<1x128xf32>
    %435 = vector.broadcast %434 : vector<1x128xf32> to vector<16x128xf32>
    %436 = arith.addf %433, %435 : vector<16x128xf32>
    %cst_242 = arith.constant 0.000000e+00 : f32
    %437 = vector.broadcast %cst_242 : f32 to vector<16x128xf32>
    %438 = arith.maximumf %436, %437 : vector<16x128xf32>
    %439 = arith.truncf %438 : vector<16x128xf32> to vector<16x128xbf16>
    %c0_243 = arith.constant 0 : index
    %c0_244 = arith.constant 0 : index
    %440 = vector.load %arg23[%c0_243, %c0_244] : memref<128x128xbf16, #tpu.memory_space<vmem>>, vector<128x128xbf16>
    %cst_245 = arith.constant dense<0.000000e+00> : vector<16x128xf32>
    %441 = tpu.matmul %439, %440, %cst_245 {dimension_numbers = #tpu.dot_dimension_numbers<[1], [0], [0], [1], [0, 0, 1, 1], [], []>} : vector<16x128xbf16>, vector<128x128xbf16>, vector<16x128xf32> -> vector<16x128xf32>
    %c0_246 = arith.constant 0 : index
    %c0_247 = arith.constant 0 : index
    %442 = vector.load %arg24[%c0_246, %c0_247] : memref<1x128xf32, #tpu.memory_space<vmem>>, vector<1x128xf32>
    %443 = vector.broadcast %442 : vector<1x128xf32> to vector<16x128xf32>
    %444 = arith.addf %441, %443 : vector<16x128xf32>
    %445 = vector.shape_cast %444 : vector<16x128xf32> to vector<2x8x128xf32>
    %446 = arith.addf %429, %445 : vector<2x8x128xf32>
    %cst_248 = arith.constant dense<0.000000e+00> : vector<2x8xf32>
    %447 = vector.multi_reduction <add>, %446, %cst_248 [2] : vector<2x8x128xf32> to vector<2x8xf32>
    %448 = vector.shape_cast %447 : vector<2x8xf32> to vector<2x8x1xf32>
    %cst_249 = arith.constant 3.125000e-02 : f32
    %449 = vector.broadcast %cst_249 : f32 to vector<2x8x1xf32>
    %450 = arith.mulf %448, %449 : vector<2x8x1xf32>
    %451 = arith.mulf %446, %446 : vector<2x8x128xf32>
    %cst_250 = arith.constant dense<0.000000e+00> : vector<2x8xf32>
    %452 = vector.multi_reduction <add>, %451, %cst_250 [2] : vector<2x8x128xf32> to vector<2x8xf32>
    %453 = vector.shape_cast %452 : vector<2x8xf32> to vector<2x8x1xf32>
    %cst_251 = arith.constant 3.125000e-02 : f32
    %454 = vector.broadcast %cst_251 : f32 to vector<2x8x1xf32>
    %455 = arith.mulf %453, %454 : vector<2x8x1xf32>
    %456 = arith.mulf %450, %450 : vector<2x8x1xf32>
    %457 = arith.subf %455, %456 : vector<2x8x1xf32>
    %cst_252 = arith.constant 0.000000e+00 : f32
    %458 = vector.broadcast %cst_252 : f32 to vector<2x8x1xf32>
    %459 = arith.maximumf %457, %458 : vector<2x8x1xf32>
    %460 = vector.broadcast %450 : vector<2x8x1xf32> to vector<2x8x128xf32>
    %461 = arith.subf %446, %460 : vector<2x8x128xf32>
    %cst_253 = arith.constant 9.99999974E-6 : f32
    %462 = vector.broadcast %cst_253 : f32 to vector<2x8x1xf32>
    %463 = arith.addf %459, %462 : vector<2x8x1xf32>
    %464 = math.rsqrt %463 : vector<2x8x1xf32>
    %465 = vector.broadcast %464 : vector<2x8x1xf32> to vector<2x8x128xf32>
    %466 = arith.mulf %461, %465 : vector<2x8x128xf32>
    %c0_254 = arith.constant 0 : index
    %c0_255 = arith.constant 0 : index
    %467 = vector.load %arg29[%c0_254, %c0_255] : memref<1x128xf32, #tpu.memory_space<vmem>>, vector<1x128xf32>
    %468 = vector.shape_cast %467 : vector<1x128xf32> to vector<1x1x128xf32>
    %469 = vector.broadcast %468 : vector<1x1x128xf32> to vector<2x8x128xf32>
    %470 = arith.mulf %466, %469 : vector<2x8x128xf32>
    %c0_256 = arith.constant 0 : index
    %c0_257 = arith.constant 0 : index
    %471 = vector.load %arg30[%c0_256, %c0_257] : memref<1x128xf32, #tpu.memory_space<vmem>>, vector<1x128xf32>
    %472 = vector.shape_cast %471 : vector<1x128xf32> to vector<1x1x128xf32>
    %473 = vector.broadcast %472 : vector<1x1x128xf32> to vector<2x8x128xf32>
    %474 = arith.addf %470, %473 : vector<2x8x128xf32>
    %c0_258 = arith.constant 0 : index
    %c0_259 = arith.constant 0 : index
    %c0_260 = arith.constant 0 : index
    %475 = vector.load %arg31[%c0_258, %c0_259, %c0_260] : memref<2x8x128xf32, #tpu.memory_space<vmem>>, vector<2x8x128xf32>
    tpu.vector_store %arg31[%c0_258, %c0_259, %c0_260], %474 {strides = array<i32>} : memref<2x8x128xf32, #tpu.memory_space<vmem>>, vector<2x8x128xf32>,
    return
  }
  func.func @transform_0(%arg0: i32) -> (i32, i32, i32) {
    %c0_i32 = arith.constant 0 : i32
    %c0_i32_0 = arith.constant 0 : i32
    %c0_i32_1 = arith.constant 0 : i32
    return %arg0, %c0_i32, %c0_i32_0 : i32, i32, i32
  }
  func.func @transform_1(%arg0: i32) -> (i32, i32, i32) {
    %c0_i32 = arith.constant 0 : i32
    %c0_i32_0 = arith.constant 0 : i32
    %c0_i32_1 = arith.constant 0 : i32
    return %arg0, %c0_i32, %c0_i32_0 : i32, i32, i32
  }
  func.func @transform_2(%arg0: i32) -> (i32, i32, i32) {
    %c0_i32 = arith.constant 0 : i32
    %c0_i32_0 = arith.constant 0 : i32
    %c0_i32_1 = arith.constant 0 : i32
    %c0_i32_2 = arith.constant 0 : i32
    return %c0_i32, %c0_i32_0, %c0_i32_1 : i32, i32, i32
  }
  func.func @transform_3(%arg0: i32) -> (i32, i32, i32) {
    %c0_i32 = arith.constant 0 : i32
    %c0_i32_0 = arith.constant 0 : i32
    %c0_i32_1 = arith.constant 0 : i32
    %c0_i32_2 = arith.constant 0 : i32
    return %c0_i32, %c0_i32_0, %c0_i32_1 : i32, i32, i32
  }
  func.func @transform_4(%arg0: i32) -> (i32, i32, i32) {
    %c0_i32 = arith.constant 0 : i32
    %c0_i32_0 = arith.constant 0 : i32
    %c0_i32_1 = arith.constant 0 : i32
    %c0_i32_2 = arith.constant 0 : i32
    return %c0_i32, %c0_i32_0, %c0_i32_1 : i32, i32, i32
  }
  func.func @transform_5(%arg0: i32) -> (i32, i32, i32) {
    %c0_i32 = arith.constant 0 : i32
    %c0_i32_0 = arith.constant 0 : i32
    %c0_i32_1 = arith.constant 0 : i32
    %c0_i32_2 = arith.constant 0 : i32
    return %c0_i32, %c0_i32_0, %c0_i32_1 : i32, i32, i32
  }
  func.func @transform_6(%arg0: i32) -> (i32, i32, i32) {
    %c0_i32 = arith.constant 0 : i32
    %c0_i32_0 = arith.constant 0 : i32
    %c0_i32_1 = arith.constant 0 : i32
    %c0_i32_2 = arith.constant 0 : i32
    return %c0_i32, %c0_i32_0, %c0_i32_1 : i32, i32, i32
  }
  func.func @transform_7(%arg0: i32) -> (i32, i32, i32) {
    %c0_i32 = arith.constant 0 : i32
    %c0_i32_0 = arith.constant 0 : i32
    %c0_i32_1 = arith.constant 0 : i32
    %c0_i32_2 = arith.constant 0 : i32
    return %c0_i32, %c0_i32_0, %c0_i32_1 : i32, i32, i32
  }
  func.func @transform_8(%arg0: i32) -> (i32, i32, i32) {
    %c0_i32 = arith.constant 0 : i32
    %c0_i32_0 = arith.constant 0 : i32
    %c0_i32_1 = arith.constant 0 : i32
    %c0_i32_2 = arith.constant 0 : i32
    return %c0_i32, %c0_i32_0, %c0_i32_1 : i32, i32, i32
  }
  func.func @transform_9(%arg0: i32) -> (i32, i32, i32) {
    %c0_i32 = arith.constant 0 : i32
    %c0_i32_0 = arith.constant 0 : i32
    %c0_i32_1 = arith.constant 0 : i32
    %c0_i32_2 = arith.constant 0 : i32
    return %c0_i32, %c0_i32_0, %c0_i32_1 : i32, i32, i32
  }
  func.func @transform_10(%arg0: i32) -> (i32, i32) {
    %c0_i32 = arith.constant 0 : i32
    %c0_i32_0 = arith.constant 0 : i32
    %c0_i32_1 = arith.constant 0 : i32
    return %c0_i32, %c0_i32_0 : i32, i32
  }
  func.func @transform_11(%arg0: i32) -> (i32, i32) {
    %c0_i32 = arith.constant 0 : i32
    %c0_i32_0 = arith.constant 0 : i32
    %c0_i32_1 = arith.constant 0 : i32
    return %c0_i32, %c0_i32_0 : i32, i32
  }
  func.func @transform_12(%arg0: i32) -> (i32, i32, i32) {
    %c0_i32 = arith.constant 0 : i32
    %c0_i32_0 = arith.constant 0 : i32
    %c0_i32_1 = arith.constant 0 : i32
    %c0_i32_2 = arith.constant 0 : i32
    return %c0_i32, %c0_i32_0, %c0_i32_1 : i32, i32, i32
  }
  func.func @transform_13(%arg0: i32) -> (i32, i32, i32) {
    %c0_i32 = arith.constant 0 : i32
    %c0_i32_0 = arith.constant 0 : i32
    %c0_i32_1 = arith.constant 0 : i32
    %c0_i32_2 = arith.constant 0 : i32
    return %c0_i32, %c0_i32_0, %c0_i32_1 : i32, i32, i32
  }
  func.func @transform_14(%arg0: i32) -> (i32, i32, i32) {
    %c0_i32 = arith.constant 0 : i32
    %c0_i32_0 = arith.constant 0 : i32
    %c0_i32_1 = arith.constant 0 : i32
    %c0_i32_2 = arith.constant 0 : i32
    return %c0_i32, %c0_i32_0, %c0_i32_1 : i32, i32, i32
  }
  func.func @transform_15(%arg0: i32) -> (i32, i32, i32) {
    %c0_i32 = arith.constant 0 : i32
    %c0_i32_0 = arith.constant 0 : i32
    %c0_i32_1 = arith.constant 0 : i32
    %c0_i32_2 = arith.constant 0 : i32
    return %c0_i32, %c0_i32_0, %c0_i32_1 : i32, i32, i32
  }
  func.func @transform_16(%arg0: i32) -> (i32, i32, i32) {
    %c0_i32 = arith.constant 0 : i32
    %c0_i32_0 = arith.constant 0 : i32
    %c0_i32_1 = arith.constant 0 : i32
    %c0_i32_2 = arith.constant 0 : i32
    return %c0_i32, %c0_i32_0, %c0_i32_1 : i32, i32, i32
  }
  func.func @transform_17(%arg0: i32) -> (i32, i32, i32) {
    %c0_i32 = arith.constant 0 : i32
    %c0_i32_0 = arith.constant 0 : i32
    %c0_i32_1 = arith.constant 0 : i32
    %c0_i32_2 = arith.constant 0 : i32
    return %c0_i32, %c0_i32_0, %c0_i32_1 : i32, i32, i32
  }
  func.func @transform_18(%arg0: i32) -> (i32, i32) {
    %c0_i32 = arith.constant 0 : i32
    %c0_i32_0 = arith.constant 0 : i32
    %c0_i32_1 = arith.constant 0 : i32
    return %c0_i32, %c0_i32_0 : i32, i32
  }
  func.func @transform_19(%arg0: i32) -> (i32, i32) {
    %c0_i32 = arith.constant 0 : i32
    %c0_i32_0 = arith.constant 0 : i32
    %c0_i32_1 = arith.constant 0 : i32
    return %c0_i32, %c0_i32_0 : i32, i32
  }
  func.func @transform_20(%arg0: i32) -> (i32, i32) {
    %c0_i32 = arith.constant 0 : i32
    %c0_i32_0 = arith.constant 0 : i32
    %c0_i32_1 = arith.constant 0 : i32
    return %c0_i32, %c0_i32_0 : i32, i32
  }
  func.func @transform_21(%arg0: i32) -> (i32, i32) {
    %c0_i32 = arith.constant 0 : i32
    %c0_i32_0 = arith.constant 0 : i32
    %c0_i32_1 = arith.constant 0 : i32
    return %c0_i32, %c0_i32_0 : i32, i32
  }
  func.func @transform_22(%arg0: i32) -> (i32, i32) {
    %c0_i32 = arith.constant 0 : i32
    %c0_i32_0 = arith.constant 0 : i32
    %c0_i32_1 = arith.constant 0 : i32
    return %c0_i32, %c0_i32_0 : i32, i32
  }
  func.func @transform_23(%arg0: i32) -> (i32, i32) {
    %c0_i32 = arith.constant 0 : i32
    %c0_i32_0 = arith.constant 0 : i32
    %c0_i32_1 = arith.constant 0 : i32
    return %c0_i32, %c0_i32_0 : i32, i32
  }
  func.func @transform_24(%arg0: i32) -> (i32, i32) {
    %c0_i32 = arith.constant 0 : i32
    %c0_i32_0 = arith.constant 0 : i32
    %c0_i32_1 = arith.constant 0 : i32
    return %c0_i32, %c0_i32_0 : i32, i32
  }
  func.func @transform_25(%arg0: i32) -> (i32, i32) {
    %c0_i32 = arith.constant 0 : i32
    %c0_i32_0 = arith.constant 0 : i32
    %c0_i32_1 = arith.constant 0 : i32
    return %c0_i32, %c0_i32_0 : i32, i32
  }
  func.func @transform_26(%arg0: i32) -> (i32, i32) {
    %c0_i32 = arith.constant 0 : i32
    %c0_i32_0 = arith.constant 0 : i32
    %c0_i32_1 = arith.constant 0 : i32
    return %c0_i32, %c0_i32_0 : i32, i32
  }
  func.func @transform_27(%arg0: i32) -> (i32, i32) {
    %c0_i32 = arith.constant 0 : i32
    %c0_i32_0 = arith.constant 0 : i32
    %c0_i32_1 = arith.constant 0 : i32
    return %c0_i32, %c0_i32_0 : i32, i32
  }
  func.func @transform_28(%arg0: i32) -> (i32, i32) {
    %c0_i32 = arith.constant 0 : i32
    %c0_i32_0 = arith.constant 0 : i32
    %c0_i32_1 = arith.constant 0 : i32
    return %c0_i32, %c0_i32_0 : i32, i32
  }
  func.func @transform_29(%arg0: i32) -> (i32, i32) {
    %c0_i32 = arith.constant 0 : i32
    %c0_i32_0 = arith.constant 0 : i32
    %c0_i32_1 = arith.constant 0 : i32
    return %c0_i32, %c0_i32_0 : i32, i32
  }
  func.func @transform_30(%arg0: i32) -> (i32, i32, i32) {
    %c0_i32 = arith.constant 0 : i32
    %c0_i32_0 = arith.constant 0 : i32
    %c0_i32_1 = arith.constant 0 : i32
    return %arg0, %c0_i32, %c0_i32_0 : i32, i32, i32
  }
}

</mosaic_0001>

<bundles_post_ra>
// kernel: tpu_custom_call.1
= control target key start
LH: loop header
LB: loop body
LE: loop exit
PB: predicated region body
PF: predicated region fallthrough
CT: control target
= control target key end

     0   :  { %s8189_s6 = smov 1   ;;  %s8190_s10 = smov 2   ;;  %s9209_s0 = inlined_call_operand.smem [shape: u32[31], index: -1, kind: input, shape index: {}] }
   0x1   :  { %s8254_s5 = sld [smem:[%s9209_s0]]   ;;  %s8191_s14 = smov 3  }
   0x2   :  { %s8259_s9 = sld [smem:[%s9209_s0 + %s8189_s6]]   ;;  %s8192_s18 = smov 4  }
   0x3   :  { %s8264_s13 = sld [smem:[%s9209_s0 + %s8190_s10]]   ;;  %s8193_s22 = smov 5  }
   0x4   :  { %s8269_s17 = sld [smem:[%s9209_s0 + %s8191_s14]]   ;;  %s8194_s26 = smov 6  }
   0x5   :  { %s8274_s21 = sld [smem:[%s9209_s0 + %s8192_s18]]   ;;  %s8195_s30 = smov 7  }
   0x6   :  { %s8279_s25 = sld [smem:[%s9209_s0 + %s8193_s22]]   ;;  %s8196_s4 = smov 8  }
   0x7   :  { %s8284_s29 = sld [smem:[%s9209_s0 + %s8194_s26]]   ;;  %s8197_s10 = smov 9  }
   0x8   :  { %s8289_s3 = sld [smem:[%s9209_s0 + %s8195_s30]]   ;;  %s8198_s15 = smov 10  }
   0x9   :  { %s8294_s8 = sld [smem:[%s9209_s0 + %s8196_s4]]   ;;  %s8199_s20 = smov 11  }
   0xa   :  { %9215 = sst [smem:[#allocation43_spill]] %s8269_s17  ;;  %s8200_s26 = smov 12  }
   0xb   :  { %s8299_s14 = sld [smem:[%s9209_s0 + %s8197_s10]]   ;;  %s8201_s1 = smov 13  }
   0xc   :  { %s8304_s19 = sld [smem:[%s9209_s0 + %s8198_s15]]   ;;  %s8202_s7 = smov 14  }
   0xd   :  { %s8309_s24 = sld [smem:[%s9209_s0 + %s8199_s20]]   ;;  %s8203_s15 = smov 15  }
   0xe   :  { %s8314_s30 = sld [smem:[%s9209_s0 + %s8200_s26]]   ;;  %s8204_s22 = smov 16  }
   0xf   :  { %s8319_s6 = sld [smem:[%s9209_s0 + %s8201_s1]]   ;;  %s8205_s28 = smov 17  }
  0x10   :  { %s8324_s12 = sld [smem:[%s9209_s0 + %s8202_s7]]   ;;  %s8206_s7 = smov 18  }
  0x11   :  { %s8329_s20 = sld [smem:[%s9209_s0 + %s8203_s15]]   ;;  %s8207_s15 = smov 19  }
  0x12   :  { %s8334_s27 = sld [smem:[%s9209_s0 + %s8204_s22]]   ;;  %s8208_s22 = smov 20  }
  0x13   :  { %9216 = sst [smem:[#allocation44_spill]] %s8309_s24 }
  0x14   :  { %s8339_s4 = sld [smem:[%s9209_s0 + %s8205_s28]]   ;;  %s8209_s28 = smov 21  }
  0x15   :  { %s8344_s17 = sld [smem:[%s9209_s0 + %s8206_s7]]   ;;  %s8210_s7 = smov 22  }
  0x16   :  { %9217 = sst [smem:[#allocation45_spill]] %s8324_s12 }
  0x17   :  { %s8349_s24 = sld [smem:[%s9209_s0 + %s8207_s15]]   ;;  %s8211_s15 = smov 23  }
  0x18   :  { %9218 = sst [smem:[#allocation46_spill]] %s8334_s27 }
  0x19   :  { %s8354_s27 = sld [smem:[%s9209_s0 + %s8208_s22]]   ;;  %s8212_s22 = smov 24  }
  0x1a   :  { %s8359_s12 = sld [smem:[%s9209_s0 + %s8209_s28]]   ;;  %s8213_s28 = smov 25  }
  0x1b   :  { %9219 = sst [smem:[#allocation47_spill]] %s8344_s17 }
  0x1c   :  { %s8364_s17 = sld [smem:[%s9209_s0 + %s8210_s7]]   ;;  %s8214_s7 = smov 26  }
  0x1d   :  { %9220 = sst [smem:[#allocation48_spill]] %s8349_s24 }
  0x1e   :  { %s8369_s24 = sld [smem:[%s9209_s0 + %s8211_s15]]   ;;  %s8215_s15 = smov 27  }
  0x1f   :  { %9221 = sst [smem:[#allocation49_spill]] %s8354_s27 }
  0x20   :  { %9222 = sst [smem:[#allocation50_spill]] %s8359_s12 }
  0x21   :  { %s8374_s27 = sld [smem:[%s9209_s0 + %s8212_s22]]   ;;  %s8216_s22 = smov 28  }
  0x22   :  { %9223 = sst [smem:[#allocation51_spill]] %s8364_s17 }
  0x23   :  { %s8379_s12 = sld [smem:[%s9209_s0 + %s8213_s28]]   ;;  %s8217_s28 = smov 29  }
  0x24   :  { %9224 = sst [smem:[#allocation52_spill]] %s8369_s24 }
  0x25   :  { %s8384_s17 = sld [smem:[%s9209_s0 + %s8214_s7]]   ;;  %s8218_s7 = smov 30  }
  0x26   :  { %s8389_s24 = sld [smem:[%s9209_s0 + %s8215_s15]]  }
  0x27   :  { %9225 = sst [smem:[#allocation53_spill]] %s8374_s27 }
  0x28   :  { %s8394_s27 = sld [smem:[%s9209_s0 + %s8216_s22]]  }
  0x29   :  { %9226 = sst [smem:[#allocation54_spill]] %s8379_s12 }
  0x2a   :  { %s8399_s12 = sld [smem:[%s9209_s0 + %s8217_s28]]  }
  0x2b   :  { %9227 = sst [smem:[#allocation55_spill]] %s8384_s17 }
  0x2c   :  { %s8404_s17 = sld [smem:[%s9209_s0 + %s8218_s7]]  }
  0x2d   :  { %66 = vsyncpa [#allocation3], 0 }
  0x2e   :  { %67 = vsyncpa [#allocation6], 0 }
  0x2f   :  { %68 = vsyncpa [#allocation9], 0 }
  0x30   :  { %69 = vsyncpa [#allocation12], 0 }
  0x31   :  { %70 = vsyncpa [#allocation15], 0 }
  0x32   :  { %71 = vsyncpa [#allocation18], 0 }
  0x33   :  { %72 = vsyncpa [#allocation21], 0 }
  0x34   :  { %73 = vsyncpa [#allocation24], 0 }
  0x35   :  { %74 = vsyncpa [#allocation27], 0 }
  0x36   :  { %75 = vsyncpa [#allocation30], 0 }
  0x37   :  { %76 = vsyncpa [#allocation4], 0  ;;  %s8219_s15 = smov [#allocation5]   ;;  %s8220_s18 = smov [#allocation8]  }
  0x38   :  { %s94_s16 = sshll.u32 %s8219_s15, 4  ;;  %s118_s22 = sshll.u32 %s8220_s18, 4  ;;  %s95_s16 = int_to_ptr.vmem [resolvable:$true] %s94_s16  ;;  %s8406_s22 = int_to_ptr.vmem [resolvable:$true] %s118_s22 }
  0x39   :  { %s7749_s0 = scalar_lea.hbm %s8259_s9, 256 }
  0x3a   :  { %p7750_p0 = scmp.ne.s32.totalorder %s8259_s9, %s7749_s0  ;;  %p7753_p1 = scmp.lt.u32.totalorder %s7749_s0, %s8259_s9 }
  0x3c   :  { %p7755_p2 = pnand %p7753_p1, %p7750_p0 }
  0x3e   :  { %7758 = shalt.err (!%p7755_p2)
}
  0x3f   :  { %s7759_s23 = scalar_lea.vmem %s95_s16, 256  ;;  %p7764_p4 = scmp.lt.s32.totalorder %s95_s16, %s95_s16 }
  0x40   :  { %p7760_p3 = scmp.ne.s32.totalorder %s95_s16, %s7759_s23  ;;  %p7765_p5 = scmp.lt.s32.totalorder %s7759_s23, %s7759_s23 }
  0x42   :  { %p7766_p6 = por %p7765_p5, %p7764_p4 }
  0x44   :  { %p7767_p7 = pnand %p7766_p6, %p7760_p3 }
  0x46   :  { %7770 = shalt.err (!%p7767_p7)
}
  0x47   :  { %s8221_s26 = smov 128   ;;  %s8222_s28 = smov 8  }
  0x48   :  { %100 = dma.hbm_to_vmem [thread:$0]  %s8259_s9, 256, %s95_s16, [#allocation6], %s8221_s26, %s8221_s26, %s8222_s28  }
  0x49   :  { %s7771_s1 = scalar_lea.hbm %s8274_s21, 4096 }
  0x4a   :  { %p7772_p8 = scmp.ne.s32.totalorder %s8274_s21, %s7771_s1  ;;  %p7775_p9 = scmp.lt.u32.totalorder %s7771_s1, %s8274_s21 }
  0x4c   :  { %p7777_p10 = pnand %p7775_p9, %p7772_p8 }
  0x4e   :  { %7780 = shalt.err (!%p7777_p10)
}
  0x4f   :  { %s7781_s2 = scalar_lea.vmem %s8406_s22, 4096  ;;  %p7786_p12 = scmp.lt.s32.totalorder %s8406_s22, %s8406_s22 }
  0x50   :  { %p7782_p11 = scmp.ne.s32.totalorder %s8406_s22, %s7781_s2  ;;  %p7787_p13 = scmp.lt.s32.totalorder %s7781_s2, %s7781_s2 }
  0x52   :  { %p7788_p0 = por %p7787_p13, %p7786_p12 }
  0x54   :  { %p7789_p1 = pnand %p7788_p0, %p7782_p11 }
  0x56   :  { %7792 = shalt.err (!%p7789_p1)
}
  0x57   :  { %s8223_s7 = smov 64   ;;  %s8224_s9 = smov 4  }
  0x58   :  { %124 = dma.hbm_to_vmem [thread:$0]  %s8274_s21, 4096, %s8406_s22, [#allocation9], %s8223_s7, %s8223_s7, %s8224_s9  }
  0x59   :  { %s8225_s10 = smov [#allocation11]   ;;  %s8226_s15 = smov [#allocation14]  }
  0x5a   :  { %s142_s11 = sshll.u32 %s8225_s10, 4  ;;  %s166_s16 = sshll.u32 %s8226_s15, 4  ;;  %s143_s11 = int_to_ptr.vmem [resolvable:$true] %s142_s11  ;;  %s8427_s16 = int_to_ptr.vmem [resolvable:$true] %s166_s16 }
  0x5b   :  { %s7793_s18 = scalar_lea.hbm %s8284_s29, 4096 }
  0x5c   :  { %p7794_p2 = scmp.ne.s32.totalorder %s8284_s29, %s7793_s18  ;;  %p7797_p3 = scmp.lt.u32.totalorder %s7793_s18, %s8284_s29 }
  0x5e   :  { %p7799_p4 = pnand %p7797_p3, %p7794_p2 }
  0x60   :  { %7802 = shalt.err (!%p7799_p4)
}
  0x61   :  { %s7803_s0 = scalar_lea.vmem %s143_s11, 4096  ;;  %p7808_p6 = scmp.lt.s32.totalorder %s143_s11, %s143_s11 }
  0x62   :  { %p7804_p5 = scmp.ne.s32.totalorder %s143_s11, %s7803_s0  ;;  %p7809_p7 = scmp.lt.s32.totalorder %s7803_s0, %s7803_s0 }
  0x64   :  { %p7810_p8 = por %p7809_p7, %p7808_p6 }
  0x66   :  { %p7811_p9 = pnand %p7810_p8, %p7804_p5 }
  0x68   :  { %7814 = shalt.err (!%p7811_p9)
}
  0x69   :  { %148 = dma.hbm_to_vmem [thread:$0]  %s8284_s29, 4096, %s143_s11, [#allocation12], %s8223_s7, %s8223_s7, %s8224_s9  }
  0x6a   :  { %s7815_s21 = scalar_lea.hbm %s8294_s8, 4096 }
  0x6b   :  { %p7816_p10 = scmp.ne.s32.totalorder %s8294_s8, %s7815_s21  ;;  %p7819_p11 = scmp.lt.u32.totalorder %s7815_s21, %s8294_s8 }
  0x6d   :  { %p7821_p12 = pnand %p7819_p11, %p7816_p10 }
  0x6f   :  { %7824 = shalt.err (!%p7821_p12)
}
  0x70   :  { %s7825_s22 = scalar_lea.vmem %s8427_s16, 4096  ;;  %p7830_p0 = scmp.lt.s32.totalorder %s8427_s16, %s8427_s16 }
  0x71   :  { %p7826_p13 = scmp.ne.s32.totalorder %s8427_s16, %s7825_s22  ;;  %p7831_p1 = scmp.lt.s32.totalorder %s7825_s22, %s7825_s22 }
  0x73   :  { %p7832_p2 = por %p7831_p1, %p7830_p0 }
  0x75   :  { %p7833_p3 = pnand %p7832_p2, %p7826_p13 }
  0x77   :  { %7836 = shalt.err (!%p7833_p3)
}
  0x78   :  { %172 = dma.hbm_to_vmem [thread:$0]  %s8294_s8, 4096, %s8427_s16, [#allocation15], %s8223_s7, %s8223_s7, %s8224_s9  }
  0x79   :  { %s8227_s29 = smov [#allocation17]   ;;  %s7837_s1 = scalar_lea.hbm %s8304_s19, 4096 }
  0x7a   :  { %s190_s23 = sshll.u32 %s8227_s29, 4  ;;  %p7838_p4 = scmp.ne.s32.totalorder %s8304_s19, %s7837_s1  ;;  %s191_s23 = int_to_ptr.vmem [resolvable:$true] %s190_s23 }
  0x7b   :  { %p7841_p5 = scmp.lt.u32.totalorder %s7837_s1, %s8304_s19 }
  0x7d   :  { %p7843_p6 = pnand %p7841_p5, %p7838_p4 }
  0x7f   :  { %7846 = shalt.err (!%p7843_p6)
}
  0x80   :  { %s7847_s2 = scalar_lea.vmem %s191_s23, 4096  ;;  %p7852_p8 = scmp.lt.s32.totalorder %s191_s23, %s191_s23 }
  0x81   :  { %p7848_p7 = scmp.ne.s32.totalorder %s191_s23, %s7847_s2  ;;  %p7853_p9 = scmp.lt.s32.totalorder %s7847_s2, %s7847_s2 }
  0x83   :  { %p7854_p10 = por %p7853_p9, %p7852_p8 }
  0x85   :  { %p7855_p11 = pnand %p7854_p10, %p7848_p7 }
  0x87   :  { %7858 = shalt.err (!%p7855_p11)
}
  0x88   :  { %196 = dma.hbm_to_vmem [thread:$0]  %s8304_s19, 4096, %s191_s23, [#allocation18], %s8223_s7, %s8223_s7, %s8224_s9  }
  0x89   :  { %s8228_s8 = smov [#allocation20]   ;;  %s8229_s11 = smov [#allocation23]  }
  0x8a   :  { %s216_s10 = sshll.u32 %s8228_s8, 4  ;;  %s240_s15 = sshll.u32 %s8229_s11, 4  ;;  %s217_s10 = int_to_ptr.vmem [resolvable:$true] %s216_s10  ;;  %s241_s15 = int_to_ptr.vmem [resolvable:$true] %s240_s15 }
  0x8b   :  { %s7859_s16 = scalar_lea.hbm %s8319_s6, 64 }
  0x8c   :  { %p7860_p12 = scmp.ne.s32.totalorder %s8319_s6, %s7859_s16  ;;  %p7863_p13 = scmp.lt.u32.totalorder %s7859_s16, %s8319_s6 }
  0x8e   :  { %p7865_p0 = pnand %p7863_p13, %p7860_p12 }
  0x90   :  { %7868 = shalt.err (!%p7865_p0)
}
  0x91   :  { %s7869_s18 = scalar_lea.vmem %s217_s10, 64  ;;  %p7874_p2 = scmp.lt.s32.totalorder %s217_s10, %s217_s10 }
  0x92   :  { %p7870_p1 = scmp.ne.s32.totalorder %s217_s10, %s7869_s18  ;;  %p7875_p3 = scmp.lt.s32.totalorder %s7869_s18, %s7869_s18 }
  0x94   :  { %p7876_p4 = por %p7875_p3, %p7874_p2 }
  0x96   :  { %p7877_p5 = pnand %p7876_p4, %p7870_p1 }
  0x98   :  { %7880 = shalt.err (!%p7877_p5)
}
  0x99   :  { %s8230_s0 = smov 16   ;;  %s8231_s19 = smov 1  }
  0x9a   :  { %222 = dma.hbm_to_vmem [thread:$0]  %s8319_s6, 64, %s217_s10, [#allocation21], %s8230_s0, %s8230_s0, %s8231_s19  }
  0x9b   :  { %s7881_s21 = scalar_lea.hbm %s8329_s20, 64 }
  0x9c   :  { %p7882_p6 = scmp.ne.s32.totalorder %s8329_s20, %s7881_s21  ;;  %p7885_p7 = scmp.lt.u32.totalorder %s7881_s21, %s8329_s20 }
  0x9e   :  { %p7887_p8 = pnand %p7885_p7, %p7882_p6 }
  0xa0   :  { %7890 = shalt.err (!%p7887_p8)
}
  0xa1   :  { %s7891_s22 = scalar_lea.vmem %s241_s15, 64  ;;  %p7896_p10 = scmp.lt.s32.totalorder %s241_s15, %s241_s15 }
  0xa2   :  { %p7892_p9 = scmp.ne.s32.totalorder %s241_s15, %s7891_s22  ;;  %p7897_p11 = scmp.lt.s32.totalorder %s7891_s22, %s7891_s22 }
  0xa4   :  { %p7898_p12 = por %p7897_p11, %p7896_p10 }
  0xa6   :  { %p7899_p13 = pnand %p7898_p12, %p7892_p9 }
  0xa8   :  { %7902 = shalt.err (!%p7899_p13)
}
  0xa9   :  { %246 = dma.hbm_to_vmem [thread:$0]  %s8329_s20, 64, %s241_s15, [#allocation24], %s8230_s0, %s8230_s0, %s8231_s19  }
  0xaa   :  { %s8232_s6 = smov [#allocation26]   ;;  %s8233_s23 = smov [#allocation2]  }
  0xab   :  { %s264_s29 = sshll.u32 %s8232_s6, 4  ;;  %s82_s1 = sshll.u32 %s8233_s23, 4  ;;  %s265_s29 = int_to_ptr.vmem [resolvable:$true] %s264_s29  ;;  %s83_s1 = int_to_ptr.vmem [resolvable:$true] %s82_s1 }
  0xac   :  { %s7903_s2 = scalar_lea.hbm %s8339_s4, 64 }
  0xad   :  { %p7904_p0 = scmp.ne.s32.totalorder %s8339_s4, %s7903_s2  ;;  %p7907_p1 = scmp.lt.u32.totalorder %s7903_s2, %s8339_s4 }
  0xaf   :  { %p7909_p2 = pnand %p7907_p1, %p7904_p0 }
  0xb1   :  { %7912 = shalt.err (!%p7909_p2)
}
  0xb2   :  { %s7913_s8 = scalar_lea.vmem %s265_s29, 64  ;;  %p7918_p4 = scmp.lt.s32.totalorder %s265_s29, %s265_s29 }
  0xb3   :  { %p7914_p3 = scmp.ne.s32.totalorder %s265_s29, %s7913_s8  ;;  %p7919_p5 = scmp.lt.s32.totalorder %s7913_s8, %s7913_s8 }
  0xb5   :  { %p7920_p6 = por %p7919_p5, %p7918_p4 }
  0xb7   :  { %p7921_p7 = pnand %p7920_p6, %p7914_p3 }
  0xb9   :  { %7924 = shalt.err (!%p7921_p7)
}
  0xba   :  { %270 = dma.hbm_to_vmem [thread:$0]  %s8339_s4, 64, %s265_s29, [#allocation27], %s8230_s0, %s8230_s0, %s8231_s19  }
  0xbb   :  { %s7925_s20 = scalar_lea.hbm %s8254_s5, 256 }
  0xbc   :  { %p7926_p8 = scmp.ne.s32.totalorder %s8254_s5, %s7925_s20  ;;  %p7929_p9 = scmp.lt.u32.totalorder %s7925_s20, %s8254_s5 }
  0xbe   :  { %p7931_p10 = pnand %p7929_p9, %p7926_p8 }
  0xc0   :  { %7934 = shalt.err (!%p7931_p10)
}
  0xc1   :  { %s7935_s10 = scalar_lea.vmem %s83_s1, 256  ;;  %p7940_p12 = scmp.lt.s32.totalorder %s83_s1, %s83_s1 }
  0xc2   :  { %p7936_p11 = scmp.ne.s32.totalorder %s83_s1, %s7935_s10  ;;  %p7941_p13 = scmp.lt.s32.totalorder %s7935_s10, %s7935_s10 }
  0xc4   :  { %p7942_p0 = por %p7941_p13, %p7940_p12 }
  0xc6   :  { %p7943_p1 = pnand %p7942_p0, %p7936_p11 }
  0xc8   :  { %7946 = shalt.err (!%p7943_p1)
}
  0xc9   :  { %88 = dma.hbm_to_vmem [thread:$0]  %s8254_s5, 256, %s83_s1, [#allocation3], %s8221_s26, %s8221_s26, %s8222_s28  }
  0xca   :  { %s8234_s4 = smov [#allocation7]   ;;  %s8235_s15 = smov [#allocation10]  }
  0xcb   :  { %s107_s11 = sshll.u32 %s8234_s4, 4  ;;  %s130_s16 = sshll.u32 %s8235_s15, 4  ;;  %s108_s11 = int_to_ptr.vmem [resolvable:$true] %s107_s11  ;;  %s131_s16 = int_to_ptr.vmem [resolvable:$true] %s130_s16 }
  0xcc   :  { %s7947_s18 = scalar_lea.hbm %s8264_s13, 128 }
  0xcd   :  { %p7948_p2 = scmp.ne.s32.totalorder %s8264_s13, %s7947_s18  ;;  %p7951_p3 = scmp.lt.u32.totalorder %s7947_s18, %s8264_s13 }
  0xcf   :  { %p7953_p4 = pnand %p7951_p3, %p7948_p2 }
  0xd1   :  { %7956 = shalt.err (!%p7953_p4)
}
  0xd2   :  { %s7957_s21 = scalar_lea.vmem %s108_s11, 128  ;;  %p7962_p6 = scmp.lt.s32.totalorder %s108_s11, %s108_s11 }
  0xd3   :  { %p7958_p5 = scmp.ne.s32.totalorder %s108_s11, %s7957_s21  ;;  %p7963_p7 = scmp.lt.s32.totalorder %s7957_s21, %s7957_s21 }
  0xd5   :  { %p7964_p8 = por %p7963_p7, %p7962_p6 }
  0xd7   :  { %p7965_p9 = pnand %p7964_p8, %p7958_p5 }
  0xd9   :  { %7968 = shalt.err (!%p7965_p9)
}
  0xda   :  { %110 = dma.hbm_to_vmem [thread:$0]  %s8264_s13, 128, %s108_s11, [#allocation6]  }
  0xdb   :  { %s7969_s5 = scalar_lea.hbm %s8279_s25, 64 }
  0xdc   :  { %p7970_p10 = scmp.ne.s32.totalorder %s8279_s25, %s7969_s5  ;;  %p7973_p11 = scmp.lt.u32.totalorder %s7969_s5, %s8279_s25 }
  0xde   :  { %p7975_p12 = pnand %p7973_p11, %p7970_p10 }
  0xe0   :  { %7978 = shalt.err (!%p7975_p12)
}
  0xe1   :  { %s7979_s22 = scalar_lea.vmem %s131_s16, 64  ;;  %p7984_p0 = scmp.lt.s32.totalorder %s131_s16, %s131_s16 }
  0xe2   :  { %p7980_p13 = scmp.ne.s32.totalorder %s131_s16, %s7979_s22  ;;  %p7985_p1 = scmp.lt.s32.totalorder %s7979_s22, %s7979_s22 }
  0xe4   :  { %p7986_p2 = por %p7985_p1, %p7984_p0 }
  0xe6   :  { %p7987_p3 = pnand %p7986_p2, %p7980_p13 }
  0xe8   :  { %7990 = shalt.err (!%p7987_p3)
}
  0xe9   :  { %136 = dma.hbm_to_vmem [thread:$0]  %s8279_s25, 64, %s131_s16, [#allocation9], %s8230_s0, %s8230_s0, %s8231_s19  }
  0xea   :  { %s8236_s13 = smov [#allocation13]   ;;  %s8237_s29 = smov [#allocation16]  }
  0xeb   :  { %s154_s6 = sshll.u32 %s8236_s13, 4  ;;  %s178_s23 = sshll.u32 %s8237_s29, 4  ;;  %s155_s6 = int_to_ptr.vmem [resolvable:$true] %s154_s6  ;;  %s179_s23 = int_to_ptr.vmem [resolvable:$true] %s178_s23 }
  0xec   :  { %s7991_s1 = scalar_lea.hbm %s8289_s3, 64 }
  0xed   :  { %p7992_p4 = scmp.ne.s32.totalorder %s8289_s3, %s7991_s1  ;;  %p7995_p5 = scmp.lt.u32.totalorder %s7991_s1, %s8289_s3 }
  0xef   :  { %p7997_p6 = pnand %p7995_p5, %p7992_p4 }
  0xf1   :  { %8000 = shalt.err (!%p7997_p6)
}
  0xf2   :  { %s8001_s2 = scalar_lea.vmem %s155_s6, 64  ;;  %p8006_p8 = scmp.lt.s32.totalorder %s155_s6, %s155_s6 }
  0xf3   :  { %p8002_p7 = scmp.ne.s32.totalorder %s155_s6, %s8001_s2  ;;  %p8007_p9 = scmp.lt.s32.totalorder %s8001_s2, %s8001_s2 }
  0xf5   :  { %p8008_p10 = por %p8007_p9, %p8006_p8 }
  0xf7   :  { %p8009_p11 = pnand %p8008_p10, %p8002_p7 }
  0xf9   :  { %8012 = shalt.err (!%p8009_p11)
}
  0xfa   :  { %160 = dma.hbm_to_vmem [thread:$0]  %s8289_s3, 64, %s155_s6, [#allocation12], %s8230_s0, %s8230_s0, %s8231_s19  }
  0xfb   :  { %s8013_s25 = scalar_lea.hbm %s8299_s14, 64 }
  0xfc   :  { %p8014_p12 = scmp.ne.s32.totalorder %s8299_s14, %s8013_s25  ;;  %p8017_p13 = scmp.lt.u32.totalorder %s8013_s25, %s8299_s14 }
  0xfe   :  { %p8019_p0 = pnand %p8017_p13, %p8014_p12 }
 0x100   :  { %8022 = shalt.err (!%p8019_p0)
}
 0x101   :  { %s8023_s8 = scalar_lea.vmem %s179_s23, 64  ;;  %p8028_p2 = scmp.lt.s32.totalorder %s179_s23, %s179_s23 }
 0x102   :  { %p8024_p1 = scmp.ne.s32.totalorder %s179_s23, %s8023_s8  ;;  %p8029_p3 = scmp.lt.s32.totalorder %s8023_s8, %s8023_s8 }
 0x104   :  { %p8030_p4 = por %p8029_p3, %p8028_p2 }
 0x106   :  { %p8031_p5 = pnand %p8030_p4, %p8024_p1 }
 0x108   :  { %8034 = shalt.err (!%p8031_p5)
}
 0x109   :  { %184 = dma.hbm_to_vmem [thread:$0]  %s8299_s14, 64, %s179_s23, [#allocation15], %s8230_s0, %s8230_s0, %s8231_s19  }
 0x10a   :  { %s8238_s3 = smov [#allocation19]   ;;  %s8239_s10 = smov [#allocation22]  }
 0x10b   :  { %s204_s20 = sshll.u32 %s8238_s3, 4  ;;  %s228_s4 = sshll.u32 %s8239_s10, 4  ;;  %s205_s20 = int_to_ptr.vmem [resolvable:$true] %s204_s20  ;;  %s229_s4 = int_to_ptr.vmem [resolvable:$true] %s228_s4 }
 0x10c   :  { %s8035_s11 = scalar_lea.hbm %s8314_s30, 4096 }
 0x10d   :  { %p8036_p6 = scmp.ne.s32.totalorder %s8314_s30, %s8035_s11  ;;  %p8039_p7 = scmp.lt.u32.totalorder %s8035_s11, %s8314_s30 }
 0x10f   :  { %p8041_p8 = pnand %p8039_p7, %p8036_p6 }
 0x111   :  { %8044 = shalt.err (!%p8041_p8)
}
 0x112   :  { %s8045_s15 = scalar_lea.vmem %s205_s20, 4096  ;;  %p8050_p10 = scmp.lt.s32.totalorder %s205_s20, %s205_s20 }
 0x113   :  { %p8046_p9 = scmp.ne.s32.totalorder %s205_s20, %s8045_s15  ;;  %p8051_p11 = scmp.lt.s32.totalorder %s8045_s15, %s8045_s15 }
 0x115   :  { %p8052_p12 = por %p8051_p11, %p8050_p10 }
 0x117   :  { %p8053_p13 = pnand %p8052_p12, %p8046_p9 }
 0x119   :  { %8056 = shalt.err (!%p8053_p13)
}
 0x11a   :  { %s9228_s14 = sld [smem:[#allocation45_spill]] }
 0x11b   :  { %210 = dma.hbm_to_vmem [thread:$0]  %s8314_s30, 4096, %s205_s20, [#allocation18], %s8223_s7, %s8223_s7, %s8224_s9  }
 0x120   :  { %s8057_s0 = scalar_lea.hbm %s9228_s14, 4096 }
 0x121   :  { %p8058_p0 = scmp.ne.s32.totalorder %s9228_s14, %s8057_s0  ;;  %p8061_p1 = scmp.lt.u32.totalorder %s8057_s0, %s9228_s14 }
 0x123   :  { %p8063_p2 = pnand %p8061_p1, %p8058_p0 }
 0x125   :  { %8066 = shalt.err (!%p8063_p2)
}
 0x126   :  { %s8067_s19 = scalar_lea.vmem %s229_s4, 4096  ;;  %p8072_p4 = scmp.lt.s32.totalorder %s229_s4, %s229_s4 }
 0x127   :  { %p8068_p3 = scmp.ne.s32.totalorder %s229_s4, %s8067_s19  ;;  %p8073_p5 = scmp.lt.s32.totalorder %s8067_s19, %s8067_s19 }
 0x129   :  { %p8074_p6 = por %p8073_p5, %p8072_p4 }
 0x12b   :  { %p8075_p7 = pnand %p8074_p6, %p8068_p3 }
 0x12d   :  { %8078 = shalt.err (!%p8075_p7)
}
 0x12e   :  { %s9229_s16 = sld [smem:[#allocation46_spill]]  ;;  %s8240_s30 = smov [#allocation25]  }
 0x12f   :  { %234 = dma.hbm_to_vmem [thread:$0]  %s9228_s14, 4096, %s229_s4, [#allocation21], %s8223_s7, %s8223_s7, %s8224_s9  }
 0x130   :  { %s252_s18 = sshll.u32 %s8240_s30, 4  ;;  %s8241_s21 = smov [#allocation28]   ;;  %s253_s18 = int_to_ptr.vmem [resolvable:$true] %s252_s18 }
 0x131   :  { %s276_s5 = sshll.u32 %s8241_s21, 4  ;;  %s277_s5 = int_to_ptr.vmem [resolvable:$true] %s276_s5 }
 0x134   :  { %s8079_s22 = scalar_lea.hbm %s9229_s16, 4096 }
 0x135   :  { %p8080_p8 = scmp.ne.s32.totalorder %s9229_s16, %s8079_s22  ;;  %p8083_p9 = scmp.lt.u32.totalorder %s8079_s22, %s9229_s16 }
 0x137   :  { %p8085_p10 = pnand %p8083_p9, %p8080_p8 }
 0x139   :  { %8088 = shalt.err (!%p8085_p10)
}
 0x13a   :  { %s8089_s13 = scalar_lea.vmem %s253_s18, 4096  ;;  %p8094_p12 = scmp.lt.s32.totalorder %s253_s18, %s253_s18 }
 0x13b   :  { %p8090_p11 = scmp.ne.s32.totalorder %s253_s18, %s8089_s13  ;;  %p8095_p13 = scmp.lt.s32.totalorder %s8089_s13, %s8089_s13 }
 0x13d   :  { %p8096_p0 = por %p8095_p13, %p8094_p12 }
 0x13f   :  { %p8097_p1 = pnand %p8096_p0, %p8090_p11 }
 0x141   :  { %8100 = shalt.err (!%p8097_p1)
}
 0x142   :  { %s9230_s6 = sld [smem:[#allocation47_spill]] }
 0x143   :  { %258 = dma.hbm_to_vmem [thread:$0]  %s9229_s16, 4096, %s253_s18, [#allocation24], %s8223_s7, %s8223_s7, %s8224_s9  }
 0x148   :  { %s8101_s29 = scalar_lea.hbm %s9230_s6, 4096 }
 0x149   :  { %p8102_p2 = scmp.ne.s32.totalorder %s9230_s6, %s8101_s29  ;;  %p8105_p3 = scmp.lt.u32.totalorder %s8101_s29, %s9230_s6 }
 0x14b   :  { %p8107_p4 = pnand %p8105_p3, %p8102_p2 }
 0x14d   :  { %8110 = shalt.err (!%p8107_p4)
}
 0x14e   :  { %s8111_s23 = scalar_lea.vmem %s277_s5, 4096  ;;  %p8116_p6 = scmp.lt.s32.totalorder %s277_s5, %s277_s5 }
 0x14f   :  { %p8112_p5 = scmp.ne.s32.totalorder %s277_s5, %s8111_s23  ;;  %p8117_p7 = scmp.lt.s32.totalorder %s8111_s23, %s8111_s23 }
 0x151   :  { %p8118_p8 = por %p8117_p7, %p8116_p6 }
 0x153   :  { %p8119_p9 = pnand %p8118_p8, %p8112_p5 }
 0x155   :  { %8122 = shalt.err (!%p8119_p9)
}
 0x156   :  { %s9231_s1 = sld [smem:[#allocation51_spill]]  ;;  %s8242_s2 = smov [#allocation29]  }
 0x157   :  { %282 = dma.hbm_to_vmem [thread:$0]  %s9230_s6, 4096, %s277_s5, [#allocation27], %s8223_s7, %s8223_s7, %s8224_s9  }
 0x158   :  { %s294_s25 = sshll.u32 %s8242_s2, 4  ;;  %s295_s25 = int_to_ptr.vmem [resolvable:$true] %s294_s25 }
 0x15c   :  { %s8123_s8 = scalar_lea.hbm %s9231_s1, 1024 }
 0x15d   :  { %p8124_p10 = scmp.ne.s32.totalorder %s9231_s1, %s8123_s8  ;;  %p8127_p11 = scmp.lt.u32.totalorder %s8123_s8, %s9231_s1 }
 0x15f   :  { %p8129_p12 = pnand %p8127_p11, %p8124_p10 }
 0x161   :  { %8132 = shalt.err (!%p8129_p12)
}
 0x162   :  { %s8133_s3 = scalar_lea.vmem %s295_s25, 1024  ;;  %p8138_p0 = scmp.lt.s32.totalorder %s295_s25, %s295_s25 }
 0x163   :  { %p8134_p13 = scmp.ne.s32.totalorder %s295_s25, %s8133_s3  ;;  %p8139_p1 = scmp.lt.s32.totalorder %s8133_s3, %s8133_s3 }
 0x165   :  { %p8140_p2 = por %p8139_p1, %p8138_p0 }
 0x167   :  { %p8141_p3 = pnand %p8140_p2, %p8134_p13 }
 0x169   :  { %8144 = shalt.err (!%p8141_p3)
}
 0x16a   :  { %300 = dma.hbm_to_vmem [thread:$0]  %s9231_s1, 1024, %s295_s25, [#allocation30], %s8223_s7, %s8223_s7, %s8224_s9  }
 0x16b   :  { %8167 = dma.done.wait [#allocation3], 256  }
 0x16c   :  { %8168 = vsyncadd [#allocation3], 4294967040 }
 0x16d   :  { %8169 = dma.done.wait [#allocation6], 384  }
 0x16e   :  { %8170 = vsyncadd [#allocation6], 4294966912 }
 0x16f   :  { %8171 = dma.done.wait [#allocation9], 4160  }
 0x170   :  { %8172 = vsyncadd [#allocation9], 4294963136 }
 0x171   :  { %8173 = dma.done.wait [#allocation12], 4160  }
 0x172   :  { %8174 = vsyncadd [#allocation12], 4294963136 }
 0x173   :  { %8175 = dma.done.wait [#allocation15], 4160  }
 0x174   :  { %8176 = vsyncadd [#allocation15], 4294963136 }
 0x175   :  { %8177 = dma.done.wait [#allocation18], 8192  }
 0x176   :  { %8178 = vsyncadd [#allocation18], 4294959104 }
 0x177   :  { %8179 = dma.done.wait [#allocation21], 4160  }
 0x178   :  { %8180 = vsyncadd [#allocation21], 4294963136 }
 0x179   :  { %8181 = dma.done.wait [#allocation24], 4160  }
 0x17a   :  { %8182 = vsyncadd [#allocation24], 4294963136 }
 0x17b   :  { %8183 = dma.done.wait [#allocation27], 4160  }
 0x17c   :  { %8184 = vsyncadd [#allocation27], 4294963136 }
 0x17d   :  { %8185 = dma.done.wait [#allocation30], 1024  }
 0x17e   :  { %8186 = vsyncadd [#allocation30], 4294966272  ;;  %v8243_v0 = vmov 0.0   ;;  %vm8244_vm0 = vmmov 0   ;;  %v7398_v1 = vld [vmem:[#allocation11] sm:$0xff]   ;;  %v7400_v3 = vld [vmem:[#allocation11 + $0x8] sm:$0xff]  }
 0x17f   :  { %6649 = vmatprep.subr.bf16.mxu1 %v8243_v0  ;;  %6629 = vmatprep.subr.bf16.mxu0 %v8243_v0  ;;  %v7399_v2 = vld [vmem:[#allocation8] sm:$0xff]   ;;  %v7401_v4 = vld [vmem:[#allocation8 + $0x8] sm:$0xff]   ;;  %v7402_v5 = vld [vmem:[#allocation11 + $0x10] sm:$0xff]   ;;  %vm797_vm1 = vcmask 64512   ;;  %vm827_vm2 = vcmask 1043456   ;;  %s9232_s7 = sld [smem:[#allocation44_spill]] }
 0x180   :  { %6665 = vmatprep.mubr.msk.bf16.mxu1 %vm8244_vm0, %v8243_v0  ;;  %6645 = vmatprep.mubr.msk.bf16.mxu0 %vm8244_vm0, %v8243_v0  ;;  %v7403_v6 = vld [vmem:[#allocation8 + $0x10] sm:$0xff]   ;;  %v7404_v7 = vld [vmem:[#allocation11 + $0x18] sm:$0xff]   ;;  %v7406_v9 = vld [vmem:[#allocation11 + $0x20] sm:$0xff]   ;;  %s9233_s9 = sld [smem:[#allocation53_spill]]  ;;  %s9234_s20 = sld [smem:[#allocation54_spill]] }
 0x181   :  { %6650 = vmatpush3.bf16.msra.mxu1 %v7398_v1  ;;  %6630 = vmatpush3.bf16.msra.mxu0 %v7399_v2  ;;  %v7405_v8 = vld [vmem:[#allocation8 + $0x18] sm:$0xff]   ;;  %v7407_v10 = vld [vmem:[#allocation8 + $0x20] sm:$0xff]   ;;  %v7408_v11 = vld [vmem:[#allocation11 + $0x28] sm:$0xff]   ;;  %s9235_s10 = sld [smem:[#allocation43_spill]]  ;;  %s9236_s4 = sld [smem:[#allocation48_spill]] }
 0x182   :  { %6651 = vmatprep.subr.bf16.mxu1 %v8243_v0  ;;  %6631 = vmatprep.subr.bf16.mxu0 %v8243_v0  ;;  %v7409_v12 = vld [vmem:[#allocation8 + $0x28] sm:$0xff]   ;;  %v7410_v13 = vld [vmem:[#allocation11 + $0x30] sm:$0xff]   ;;  %v7412_v15 = vld [vmem:[#allocation11 + $0x38] sm:$0xff]   ;;  %s9237_s11 = sld [smem:[#allocation49_spill]]  ;;  %s9238_s15 = sld [smem:[#allocation55_spill]] }
 0x183   :  { %v7411_v14 = vld [vmem:[#allocation8 + $0x30] sm:$0xff]   ;;  %v370_v16 = vld [vmem:[#allocation2] sm:$0xff]  ;;  %v371_v17 = vld [vmem:[#allocation2 + $0x8] sm:$0xff]  ;;  %s9239_s14 = sld [smem:[#allocation50_spill]]  ;;  %s9240_s0 = sld [smem:[#allocation52_spill]] }
 0x184   :  { %v7413_v18 = vld [vmem:[#allocation8 + $0x38] sm:$0xff]   ;;  %v8563_v19 = vpack.c.bf16 %v371_v17, %v370_v16  ;;  %v5914_v20 = vld [vmem:[#allocation13] ss:$0 sm:$0xff]  ;;  %v5905_v24 = vld [vmem:[#allocation10] ss:$0 sm:$0xff] }
 0x185   :  { %6652 = vmatpush3.bf16.msra.mxu1 %v7400_v3  ;;  %6632 = vmatpush3.bf16.msra.mxu0 %v7401_v4  ;;  %v7414_v38 = vld [vmem:[#allocation14] sm:$0xff]   ;;  %v7415_v39 = vld [vmem:[#allocation14 + $0x8] sm:$0xff]   ;;  %v7416_v40 = vld [vmem:[#allocation14 + $0x10] sm:$0xff]  }
 0x186   :  { %6653 = vmatprep.subr.bf16.mxu1 %v8243_v0  ;;  %6633 = vmatprep.subr.bf16.mxu0 %v8243_v0  ;;  %v7417_v41 = vld [vmem:[#allocation14 + $0x18] sm:$0xff]   ;;  %v7418_v42 = vld [vmem:[#allocation14 + $0x20] sm:$0xff]   ;;  %v7419_v43 = vld [vmem:[#allocation14 + $0x28] sm:$0xff]  }
 0x187   :  { %v7420_v44 = vld [vmem:[#allocation14 + $0x30] sm:$0xff]   ;;  %v7421_v45 = vld [vmem:[#allocation14 + $0x38] sm:$0xff]   ;;  %v7425_v16 = vld [vmem:[#allocation8 + $0x48] sm:$0xff]  }
 0x188   :  { %v8590_v46 = vld [vmem:[#allocation7] sm:$0xff]  ;;  %v7427_v17 = vld [vmem:[#allocation8 + $0x50] sm:$0xff]  }
 0x189   :  { %6654 = vmatpush3.bf16.msra.mxu1 %v7402_v5  ;;  %6634 = vmatpush3.bf16.msra.mxu0 %v7403_v6 }
 0x18a   :  { %6655 = vmatprep.subr.bf16.mxu1 %v8243_v0  ;;  %6635 = vmatprep.subr.bf16.mxu0 %v8243_v0 }
 0x18d   :  { %6656 = vmatpush3.bf16.msra.mxu1 %v7404_v7  ;;  %6636 = vmatpush3.bf16.msra.mxu0 %v7405_v8  ;;  %v5923_v8 = vld [vmem:[#allocation16] ss:$0 sm:$0xff] }
 0x18e   :  { %6657 = vmatprep.subr.bf16.mxu1 %v8243_v0  ;;  %6637 = vmatprep.subr.bf16.mxu0 %v8243_v0 }
 0x191   :  { %6658 = vmatpush3.bf16.msra.mxu1 %v7406_v9  ;;  %6638 = vmatpush3.bf16.msra.mxu0 %v7407_v10 }
 0x192   :  { %6659 = vmatprep.subr.bf16.mxu1 %v8243_v0  ;;  %6639 = vmatprep.subr.bf16.mxu0 %v8243_v0 }
 0x195   :  { %6660 = vmatpush3.bf16.msra.mxu1 %v7408_v11  ;;  %6640 = vmatpush3.bf16.msra.mxu0 %v7409_v12 }
 0x196   :  { %6661 = vmatprep.subr.bf16.mxu1 %v8243_v0  ;;  %6641 = vmatprep.subr.bf16.mxu0 %v8243_v0 }
 0x199   :  { %6662 = vmatpush3.bf16.msra.mxu1 %v7410_v13  ;;  %6642 = vmatpush3.bf16.msra.mxu0 %v7411_v14 }
 0x19a   :  { %6663 = vmatprep.subr.bf16.mxu1 %v8243_v0  ;;  %6643 = vmatprep.subr.bf16.mxu0 %v8243_v0 }
 0x19d   :  { %6664 = vmatpush3.bf16.msra.mxu1 %v7412_v15  ;;  %6644 = vmatpush3.bf16.msra.mxu0 %v7413_v18  ;;  %v7423_v15 = vld [vmem:[#allocation8 + $0x40] sm:$0xff]   ;;  %v7429_v18 = vld [vmem:[#allocation8 + $0x58] sm:$0xff]  }
 0x19e   :  { %6689 = vmatprep.subr.bf16.mxu1 %v8243_v0  ;;  %6669 = vmatprep.subr.bf16.mxu0 %v8243_v0 }
 0x1a0   :  { %6666 = vmatmul.mubr.bf16.vlgmr.msra.gmra.mrb[0].mxu1 %v8563_v19  ;;  %6646 = vmatmul.mubr.bf16.vlgmr.msra.gmra.mrb[0].mxu0 %v8563_v19 }
 0x1a1   :  { %6691 = vmatprep.mubr.msk.bf16.mxu1 %vm8244_vm0, %v8243_v0  ;;  %6685 = vmatprep.mubr.msk.bf16.mxu0 %vm8244_vm0, %v8243_v0 }
 0x1a2   :  { %6670 = vmatpush3.bf16.msra.mxu0 %v7414_v38  ;;  %v7430_v38 = vld [vmem:[#allocation11 + $0x60] sm:$0xff]  }
 0x1a3   :  { %6671 = vmatprep.subr.bf16.mxu0 %v8243_v0 }
 0x1a6   :  { %6672 = vmatpush3.bf16.msra.mxu0 %v7415_v39  ;;  %v7432_v39 = vld [vmem:[#allocation11 + $0x68] sm:$0xff]  }
 0x1a7   :  { %6673 = vmatprep.subr.bf16.mxu0 %v8243_v0 }
 0x1aa   :  { %6674 = vmatpush3.bf16.msra.mxu0 %v7416_v40  ;;  %v7434_v40 = vld [vmem:[#allocation11 + $0x70] sm:$0xff]  }
 0x1ab   :  { %6675 = vmatprep.subr.bf16.mxu0 %v8243_v0 }
 0x1ae   :  { %6676 = vmatpush3.bf16.msra.mxu0 %v7417_v41  ;;  %v7436_v41 = vld [vmem:[#allocation11 + $0x78] sm:$0xff]  }
 0x1af   :  { %6677 = vmatprep.subr.bf16.mxu0 %v8243_v0 }
 0x1b2   :  { %6678 = vmatpush3.bf16.msra.mxu0 %v7418_v42 }
 0x1b3   :  { %6679 = vmatprep.subr.bf16.mxu0 %v8243_v0 }
 0x1b6   :  { %6680 = vmatpush3.bf16.msra.mxu0 %v7419_v43 }
 0x1b7   :  { %6681 = vmatprep.subr.bf16.mxu0 %v8243_v0 }
 0x1ba   :  { %6682 = vmatpush3.bf16.msra.mxu0 %v7420_v44 }
 0x1bb   :  { %6683 = vmatprep.subr.bf16.mxu0 %v8243_v0 }
 0x1be   :  { %6684 = vmatpush3.bf16.msra.mxu0 %v7421_v45 }
 0x1bf   :  { %6713 = vmatprep.subr.bf16.mxu0 %v8243_v0 }
 0x1c1   :  { %6686 = vmatmul.mubr.bf16.vlgmr.msra.gmra.mrb[4].mxu0 %v8563_v19 }
 0x1c2   :  { %6729 = vmatprep.mubr.msk.bf16.mxu0 %vm8244_vm0, %v8243_v0  ;;  %6714 = vmatpush3.bf16.msra.mxu0 %v7423_v15 }
 0x1c3   :  { %6715 = vmatprep.subr.bf16.mxu0 %v8243_v0 }
 0x1c6   :  { %6716 = vmatpush3.bf16.msra.mxu0 %v7425_v16 }
 0x1c7   :  { %6717 = vmatprep.subr.bf16.mxu0 %v8243_v0 }
 0x1ca   :  { %6718 = vmatpush3.bf16.msra.mxu0 %v7427_v17 }
 0x1cb   :  { %6719 = vmatprep.subr.bf16.mxu0 %v8243_v0 }
 0x1ce   :  { %6720 = vmatpush3.bf16.msra.mxu0 %v7429_v18 }
 0x1cf   :  { %6721 = vmatprep.subr.bf16.mxu0 %v8243_v0 }
 0x273   :  { %v594_v21 = vpop.f32.mrb[0].mxu1  ;;  %v482_v25 = vpop.f32.mrb[0].mxu0 }
 0x274   :  { %v595_v22 = vadd.f32 %v5914_v20, %v594_v21  ;;  %v6667_v23 = vpop.f32.mrb[1].mxu1  ;;  %v6647_v27 = vpop.f32.mrb[1].mxu0  ;;  %v483_v31 = vadd.f32 %v5905_v24, %v482_v25  ;;  %v7433_v21 = vld [vmem:[#allocation8 + $0x68] sm:$0xff]  }
 0x275   :  { %v597_v26 = vpop.f32.mrb[2].mxu1  ;;  %v485_v30 = vpop.f32.mrb[2].mxu0  ;;  %v7437_v23 = vld [vmem:[#allocation8 + $0x78] sm:$0xff]  }
 0x276   :  { %v715_v28 = vpack.c.bf16 %v595_v22, %v595_v22  ;;  %v6668_v29 = vpop.f32.mrb[3].mxu1  ;;  %v6648_v32 = vpop.f32.mrb[3].mxu0  ;;  %v598_v33 = vadd.f32 %v5914_v20, %v597_v26  ;;  %v713_v34 = vpack.c.bf16 %v483_v31, %v483_v31  ;;  %v486_v36 = vadd.f32 %v5905_v24, %v485_v30  ;;  %v7431_v20 = vld [vmem:[#allocation8 + $0x60] sm:$0xff]   ;;  %v7435_v22 = vld [vmem:[#allocation8 + $0x70] sm:$0xff]  }
 0x277   :  { %6722 = vmatpush3.bf16.msra.mxu0 %v7431_v20 }
 0x278   :  { %6690 = vmatpush3.bf16.xpose.msra.mxu1 %v715_v28  ;;  %v716_v35 = vpack.c.bf16 %v598_v33, %v598_v33  ;;  %v714_v37 = vpack.c.bf16 %v486_v36, %v486_v36  ;;  %6723 = vmatprep.subr.bf16.mxu0 %v8243_v0  ;;  %v7422_v33 = vld [vmem:[#allocation11 + $0x40] sm:$0xff]   ;;  %v7426_v36 = vld [vmem:[#allocation11 + $0x50] sm:$0xff]  }
 0x279   :  { %6695 = vmatprep.subr.bf16.mxu1 %v8243_v0 }
 0x27b   :  { %6724 = vmatpush3.bf16.msra.mxu0 %v7433_v21 }
 0x27c   :  { %6725 = vmatprep.subr.bf16.mxu0 %v8243_v0 }
 0x27f   :  { %6692 = vmatmul.mubr.bf16.vlgmr.msra.gmra.mrb[4].mxu1 %v713_v34  ;;  %6726 = vmatpush3.bf16.msra.mxu0 %v7435_v22 }
 0x280   :  { %6696 = vmatpush3.bf16.xpose.msra.mxu1 %v716_v35  ;;  %6697 = vmatprep.mubr.msk.bf16.mxu1 %vm8244_vm0, %v8243_v0  ;;  %v7424_v35 = vld [vmem:[#allocation11 + $0x48] sm:$0xff]  }
 0x281   :  { %6701 = vmatprep.subr.bf16.mxu1 %v8243_v0  ;;  %6727 = vmatprep.subr.bf16.mxu0 %v8243_v0 }
 0x283   :  { %6728 = vmatpush3.bf16.msra.mxu0 %v7437_v23 }
 0x284   :  { %6753 = vmatprep.subr.bf16.mxu0 %v8243_v0 }
 0x286   :  { %6730 = vmatmul.mubr.bf16.vlgmr.msra.gmra.mrb[8].mxu0 %v8563_v19 }
 0x287   :  { %6698 = vmatmul.mubr.bf16.vlgmr.msra.gmra.mrb[8].mxu1 %v714_v37  ;;  %6769 = vmatprep.mubr.msk.bf16.mxu0 %vm8244_vm0, %v8243_v0  ;;  %v7428_v37 = vld [vmem:[#allocation11 + $0x58] sm:$0xff]  }
 0x288   :  { %6703 = vmatprep.mubr.msk.bf16.mxu1 %vm8244_vm0, %v8243_v0 }
 0x294   :  { %v706_v6 = vpop.f32.mrb[4].mxu0 }
 0x295   :  { %v6687_v7 = vpop.f32.mrb[5].mxu0  ;;  %v707_v10 = vadd.f32 %v5923_v8, %v706_v6 }
 0x296   :  { %v709_v9 = vpop.f32.mrb[6].mxu0  ;;  %v7438_v7 = vld [vmem:[#allocation14 + $0x40] sm:$0xff]  }
 0x297   :  { %v6688_v11 = vpop.f32.mrb[7].mxu0  ;;  %v710_v12 = vadd.f32 %v5923_v8, %v709_v9  ;;  %v822_v13 = vpack.c.bf16 %v707_v10, %v707_v10  ;;  %6754 = vmatpush3.bf16.msra.mxu0 %v7438_v7  ;;  %v7439_v8 = vld [vmem:[#allocation14 + $0x48] sm:$0xff]   ;;  %v7440_v9 = vld [vmem:[#allocation14 + $0x50] sm:$0xff]   ;;  %v7441_v10 = vld [vmem:[#allocation14 + $0x58] sm:$0xff]  }
 0x298   :  { %6755 = vmatprep.subr.bf16.mxu0 %v8243_v0  ;;  %v7442_v11 = vld [vmem:[#allocation14 + $0x60] sm:$0xff]   ;;  %v7473_v7 = vld [vmem:[#allocation8 + $0xd8] sm:$0xff]  }
 0x299   :  { %v829_v14 = vsel %vm827_vm2, %v822_v13, 0  ;;  %v823_v28 = vpack.c.bf16 %v710_v12, %v710_v12  ;;  %v7443_v12 = vld [vmem:[#allocation14 + $0x68] sm:$0xff]   ;;  %v7444_v13 = vld [vmem:[#allocation14 + $0x70] sm:$0xff]  }
 0x29a   :  { %6702 = vmatpush3.bf16.msra.mxu1 %v829_v14  ;;  %v7445_v14 = vld [vmem:[#allocation14 + $0x78] sm:$0xff]  }
 0x29b   :  { %6707 = vmatprep.subr.bf16.mxu1 %v8243_v0  ;;  %v875_v30 = vsel %vm827_vm2, %v823_v28, 0  ;;  %6756 = vmatpush3.bf16.msra.mxu0 %v7439_v8  ;;  %v7474_v8 = vld [vmem:[#allocation8 + $0xe0] sm:$0xff]  }
 0x29c   :  { %6757 = vmatprep.subr.bf16.mxu0 %v8243_v0 }
 0x29f   :  { %6758 = vmatpush3.bf16.msra.mxu0 %v7440_v9  ;;  %v7475_v9 = vld [vmem:[#allocation8 + $0xe8] sm:$0xff]  }
 0x2a0   :  { %6759 = vmatprep.subr.bf16.mxu0 %v8243_v0 }
 0x2a3   :  { %6760 = vmatpush3.bf16.msra.mxu0 %v7441_v10  ;;  %v7476_v10 = vld [vmem:[#allocation8 + $0xf0] sm:$0xff]  }
 0x2a4   :  { %6761 = vmatprep.subr.bf16.mxu0 %v8243_v0 }
 0x2a7   :  { %6762 = vmatpush3.bf16.msra.mxu0 %v7442_v11  ;;  %v7477_v11 = vld [vmem:[#allocation8 + $0xf8] sm:$0xff]  }
 0x2a8   :  { %6763 = vmatprep.subr.bf16.mxu0 %v8243_v0 }
 0x2ab   :  { %6764 = vmatpush3.bf16.msra.mxu0 %v7443_v12  ;;  %v7478_v12 = vld [vmem:[#allocation14 + $0xc0] sm:$0xff]  }
 0x2ac   :  { %6765 = vmatprep.subr.bf16.mxu0 %v8243_v0 }
 0x2af   :  { %6766 = vmatpush3.bf16.msra.mxu0 %v7444_v13  ;;  %v7479_v13 = vld [vmem:[#allocation14 + $0xc8] sm:$0xff]  }
 0x2b0   :  { %6767 = vmatprep.subr.bf16.mxu0 %v8243_v0 }
 0x2b3   :  { %6768 = vmatpush3.bf16.msra.mxu0 %v7445_v14 }
 0x2b4   :  { %6797 = vmatprep.subr.bf16.mxu0 %v8243_v0 }
 0x2b6   :  { %6770 = vmatmul.mubr.bf16.vlgmr.msra.gmra.mrb[12].mxu0 %v8563_v19 }
 0x2b7   :  { %6813 = vmatprep.mubr.msk.bf16.mxu0 %vm8244_vm0, %v8243_v0 }
 0x352   :  { %v751_v47 = vpop.f32.mrb[4].mxu1 }
 0x353   :  { %v752_v48 = vadd.f32 %v751_v47, %v8590_v46  ;;  %v6693_v49 = vpop.f32.mrb[5].mxu1 }
 0x354   :  { %v754_v50 = vpop.f32.mrb[6].mxu1 }
 0x355   :  { %v6694_v51 = vpop.f32.mrb[7].mxu1  ;;  %v798_v52 = vsel %vm797_vm1, %v752_v48, -inf }
 0x356   :  { %799 = vmax.xlane.f32.xlu0 %v798_v52 }
 0x359   :  { %v1026_v42 = vpop.f32.mrb[8].mxu0 }
 0x35a   :  { %v791_v53 = vpop.f32.mrb[8].mxu1  ;;  %v6731_v43 = vpop.f32.mrb[9].mxu0 }
 0x35b   :  { %v792_v54 = vadd.f32 %v791_v53, %v8590_v46  ;;  %v6699_v55 = vpop.f32.mrb[9].mxu1  ;;  %v1029_v44 = vpop.f32.mrb[10].mxu0 }
 0x35c   :  { %v794_v56 = vpop.f32.mrb[10].mxu1  ;;  %v6732_v45 = vpop.f32.mrb[11].mxu0 }
 0x35d   :  { %v6700_v57 = vpop.f32.mrb[11].mxu1  ;;  %v801_v58 = vsel %vm797_vm1, %v792_v54, -inf  ;;  %v5943_v56 = vld [vmem:[#allocation13 + $0x1] ss:$0 sm:$0xff] }
 0x35e   :  { %802 = vmax.xlane.f32.xlu0 %v801_v58 }
 0x3e3   :  { %v800_v59 = vpop.xlane.xlu0 %799 }
 0x3e4   :  { %v804_v60 = vsub.f32 %v752_v48, %v800_v59 }
 0x3e6   :  { %v806_v61 = vmul.f32 1.442695, %v804_v60  ;;  %v5934_v60 = vld [vmem:[#allocation10 + $0x1] ss:$0 sm:$0xff] }
 0x3e8   :  { %7670 = vpow2.f32 %v806_v61 }
 0x3eb   :  { %v803_v62 = vpop.xlane.xlu0 %802 }
 0x3ec   :  { %v805_v63 = vsub.f32 %v792_v54, %v803_v62 }
 0x3ee   :  { %v808_v1 = vmul.f32 1.442695, %v805_v63 }
 0x3f0   :  { %7672 = vpow2.f32 %v808_v1  ;;  %v1027_v1 = vadd.f32 %v5934_v60, %v1026_v42 }
 0x3f2   :  { %v7671_v2 = vpop.eup %7670 }
 0x3f3   :  { %v810_v3 = vsel %vm797_vm1, %v7671_v2, 0.0 }
 0x3f4   :  { %811 = vadd.xlane.f32.xlu1 %v810_v3  ;;  %v1261_v3 = vpack.c.bf16 %v1027_v1, %v1027_v1  ;;  %v7467_v1 = vld [vmem:[#allocation14 + $0xa8] sm:$0xff]  }
 0x3fa   :  { %v7673_v4 = vpop.eup %7672 }
 0x3fb   :  { %v813_v5 = vsel %vm797_vm1, %v7673_v4, 0.0 }
 0x3fc   :  { %814 = vadd.xlane.f32.xlu1 %v813_v5  ;;  %v1030_v5 = vadd.f32 %v5934_v60, %v1029_v44  ;;  %v7463_v60 = vld [vmem:[#allocation14 + $0x88] sm:$0xff]  }
 0x3fe   :  { %v1262_v6 = vpack.c.bf16 %v1030_v5, %v1030_v5  ;;  %v7471_v5 = vld [vmem:[#allocation8 + $0xc8] sm:$0xff]  }
 0x481   :  { %v812_v24 = vpop.xlane.xlu1 %811 }
 0x482   :  { %7674 = vrcp.f32 %v812_v24 }
 0x489   :  { %v815_v25 = vpop.xlane.xlu1 %814 }
 0x48a   :  { %7676 = vrcp.f32 %v815_v25 }
 0x48c   :  { %v7675_v26 = vpop.eup %7674 }
 0x48d   :  { %v818_v27 = vmul.f32 %v7675_v26, %v7671_v2 }
 0x48f   :  { %v820_v29 = vpack.c.bf16 %v818_v27, %v818_v27 }
 0x491   :  { %6704 = vmatmul.mubr.msk.bf16.vlgmr.msra.gmra.mrb[12].mxu1 %vm797_vm1, %v820_v29 }
 0x492   :  { %6708 = vmatpush3.bf16.msra.mxu1 %v875_v30  ;;  %6709 = vmatprep.mubr.msk.bf16.mxu1 %vm8244_vm0, %v8243_v0 }
 0x493   :  { %6733 = vmatprep.subr.bf16.mxu1 %v8243_v0 }
 0x494   :  { %v7677_v31 = vpop.eup %7676 }
 0x495   :  { %v819_v32 = vmul.f32 %v7677_v31, %v7673_v4 }
 0x497   :  { %v821_v34 = vpack.c.bf16 %v819_v32, %v819_v32 }
 0x499   :  { %6710 = vmatmul.mubr.msk.bf16.vlgmr.msra.gmra.mrb[16].mxu1 %vm797_vm1, %v821_v34 }
 0x49a   :  { %6734 = vmatpush3.bf16.msra.mxu1 %v7422_v33  ;;  %6749 = vmatprep.mubr.msk.bf16.mxu1 %vm8244_vm0, %v8243_v0 }
 0x49b   :  { %6735 = vmatprep.subr.bf16.mxu1 %v8243_v0 }
 0x49e   :  { %6736 = vmatpush3.bf16.msra.mxu1 %v7424_v35 }
 0x49f   :  { %6737 = vmatprep.subr.bf16.mxu1 %v8243_v0 }
 0x4a2   :  { %6738 = vmatpush3.bf16.msra.mxu1 %v7426_v36 }
 0x4a3   :  { %6739 = vmatprep.subr.bf16.mxu1 %v8243_v0 }
 0x4a6   :  { %6740 = vmatpush3.bf16.msra.mxu1 %v7428_v37 }
 0x4a7   :  { %6741 = vmatprep.subr.bf16.mxu1 %v8243_v0 }
 0x4aa   :  { %6742 = vmatpush3.bf16.msra.mxu1 %v7430_v38  ;;  %v1254_v38 = vpop.f32.mrb[12].mxu0 }
 0x4ab   :  { %6743 = vmatprep.subr.bf16.mxu1 %v8243_v0 }
 0x4ae   :  { %6744 = vmatpush3.bf16.msra.mxu1 %v7432_v39  ;;  %v6771_v39 = vpop.f32.mrb[13].mxu0 }
 0x4af   :  { %6745 = vmatprep.subr.bf16.mxu1 %v8243_v0  ;;  %v7452_v39 = vld [vmem:[#allocation11 + $0x98] sm:$0xff]  }
 0x4b2   :  { %6746 = vmatpush3.bf16.msra.mxu1 %v7434_v40  ;;  %v5952_v40 = vld [vmem:[#allocation16 + $0x1] ss:$0 sm:$0xff] }
 0x4b3   :  { %6747 = vmatprep.subr.bf16.mxu1 %v8243_v0  ;;  %v1255_v42 = vadd.f32 %v5952_v40, %v1254_v38  ;;  %v7490_v38 = vld [vmem:[#allocation17 + $0x50] sm:$0xff]  }
 0x4b5   :  { %v1369_v45 = vpack.c.bf16 %v1255_v42, %v1255_v42  ;;  %v7454_v42 = vld [vmem:[#allocation11 + $0xa0] sm:$0xff]  }
 0x4b6   :  { %6748 = vmatpush3.bf16.msra.mxu1 %v7436_v41  ;;  %v1257_v41 = vpop.f32.mrb[14].mxu0 }
 0x4b7   :  { %6773 = vmatprep.subr.bf16.mxu1 %v8243_v0  ;;  %v6772_v43 = vpop.f32.mrb[15].mxu0  ;;  %v8665_v44 = vadd.f32 %v5952_v40, %v1257_v41  ;;  %v7491_v40 = vld [vmem:[#allocation17 + $0x10] sm:$0xff]   ;;  %v7492_v41 = vld [vmem:[#allocation17 + $0x58] sm:$0xff]  }
 0x4b8   :  { %v7493_v43 = vld [vmem:[#allocation17 + $0x18] sm:$0xff]  }
 0x4b9   :  { %6750 = vmatmul.mubr.bf16.vlgmr.msra.gmra.mrb[20].mxu1 %v8563_v19 }
 0x4ba   :  { %6775 = vmatprep.mubr.msk.bf16.mxu1 %vm8244_vm0, %v8243_v0 }
 0x564   :  { %v8630_v47 = vpop.f32.mrb[12].mxu1 }
 0x565   :  { %v6705_v48 = vpop.f32.mrb[13].mxu1 }
 0x566   :  { %v868_v49 = vpop.f32.mrb[14].mxu1  ;;  %v1375_v48 = vsel %vm827_vm2, %v1369_v45, 0  ;;  %v7456_v45 = vld [vmem:[#allocation11 + $0xa8] sm:$0xff]  }
 0x567   :  { %v6706_v50 = vpop.f32.mrb[15].mxu1  ;;  %v7447_v49 = vld [vmem:[#allocation8 + $0x80] sm:$0xff]  }
 0x568   :  { %6798 = vmatpush3.bf16.msra.mxu0 %v7447_v49  ;;  %v7449_v50 = vld [vmem:[#allocation8 + $0x88] sm:$0xff]   ;;  %v7458_v49 = vld [vmem:[#allocation11 + $0xb0] sm:$0xff]  }
 0x569   :  { %6799 = vmatprep.subr.bf16.mxu0 %v8243_v0 }
 0x56c   :  { %v8632_v51 = vpop.f32.mrb[16].mxu1  ;;  %6800 = vmatpush3.bf16.msra.mxu0 %v7449_v50  ;;  %v7460_v50 = vld [vmem:[#allocation11 + $0xb8] sm:$0xff]  }
 0x56d   :  { %v6235_v52 = vpack.c.bf16 %v8632_v51, %v8630_v47  ;;  %v6711_v53 = vpop.f32.mrb[17].mxu1  ;;  %6801 = vmatprep.subr.bf16.mxu0 %v8243_v0 }
 0x56e   :  { %v914_v54 = vpop.f32.mrb[18].mxu1  ;;  %v7451_v53 = vld [vmem:[#allocation8 + $0x90] sm:$0xff]  }
 0x56f   :  { %v6712_v55 = vpop.f32.mrb[19].mxu1  ;;  %v7453_v54 = vld [vmem:[#allocation8 + $0x98] sm:$0xff]  }
 0x570   :  { %6802 = vmatpush3.bf16.msra.mxu0 %v7451_v53  ;;  %v7455_v55 = vld [vmem:[#allocation8 + $0xa0] sm:$0xff]   ;;  %v7496_v53 = vld [vmem:[#allocation17 + $0x68] sm:$0xff]  }
 0x571   :  { %6803 = vmatprep.subr.bf16.mxu0 %v8243_v0 }
 0x574   :  { %6804 = vmatpush3.bf16.msra.mxu0 %v7453_v54  ;;  %v7497_v54 = vld [vmem:[#allocation17 + $0x28] sm:$0xff]  }
 0x575   :  { %6805 = vmatprep.subr.bf16.mxu0 %v8243_v0 }
 0x578   :  { %6806 = vmatpush3.bf16.msra.mxu0 %v7455_v55  ;;  %v7498_v55 = vld [vmem:[#allocation17 + $0x70] sm:$0xff]  }
 0x579   :  { %6807 = vmatprep.subr.bf16.mxu0 %v8243_v0 }
 0x58c   :  { %v1140_v57 = vpop.f32.mrb[20].mxu1 }
 0x58d   :  { %v1141_v58 = vadd.f32 %v5943_v56, %v1140_v57  ;;  %v6751_v59 = vpop.f32.mrb[21].mxu1  ;;  %v7459_v57 = vld [vmem:[#allocation8 + $0xb0] sm:$0xff]  }
 0x58e   :  { %v1143_v61 = vpop.f32.mrb[22].mxu1  ;;  %v7462_v59 = vld [vmem:[#allocation14 + $0x80] sm:$0xff]  }
 0x58f   :  { %v1263_v62 = vpack.c.bf16 %v1141_v58, %v1141_v58  ;;  %v6752_v63 = vpop.f32.mrb[23].mxu1  ;;  %v1144_v2 = vadd.f32 %v5943_v56, %v1143_v61  ;;  %v7457_v56 = vld [vmem:[#allocation8 + $0xa8] sm:$0xff]   ;;  %v7461_v58 = vld [vmem:[#allocation8 + $0xb8] sm:$0xff]  }
 0x590   :  { %6808 = vmatpush3.bf16.msra.mxu0 %v7457_v56  ;;  %v7464_v61 = vld [vmem:[#allocation14 + $0x90] sm:$0xff]   ;;  %v7466_v63 = vld [vmem:[#allocation14 + $0xa0] sm:$0xff]  }
 0x591   :  { %6774 = vmatpush3.bf16.xpose.msra.mxu1 %v1263_v62  ;;  %v1264_v4 = vpack.c.bf16 %v1144_v2, %v1144_v2  ;;  %6809 = vmatprep.subr.bf16.mxu0 %v8243_v0  ;;  %v7465_v62 = vld [vmem:[#allocation14 + $0x98] sm:$0xff]   ;;  %v7468_v2 = vld [vmem:[#allocation14 + $0xb0] sm:$0xff]  }
 0x592   :  { %6779 = vmatprep.subr.bf16.mxu1 %v8243_v0  ;;  %v7499_v56 = vld [vmem:[#allocation17 + $0x30] sm:$0xff]  }
 0x594   :  { %6810 = vmatpush3.bf16.msra.mxu0 %v7459_v57  ;;  %v7500_v57 = vld [vmem:[#allocation17 + $0x78] sm:$0xff]  }
 0x595   :  { %6811 = vmatprep.subr.bf16.mxu0 %v8243_v0 }
 0x598   :  { %6776 = vmatmul.mubr.bf16.vlgmr.msra.gmra.mrb[24].mxu1 %v1261_v3  ;;  %6812 = vmatpush3.bf16.msra.mxu0 %v7461_v58  ;;  %v7469_v3 = vld [vmem:[#allocation14 + $0xb8] sm:$0xff]  }
 0x599   :  { %6780 = vmatpush3.bf16.xpose.msra.mxu1 %v1264_v4  ;;  %6781 = vmatprep.mubr.msk.bf16.mxu1 %vm8244_vm0, %v8243_v0  ;;  %v7470_v4 = vld [vmem:[#allocation8 + $0xc0] sm:$0xff]  }
 0x59a   :  { %6785 = vmatprep.subr.bf16.mxu1 %v8243_v0  ;;  %6837 = vmatprep.subr.bf16.mxu0 %v8243_v0  ;;  %v7501_v58 = vld [vmem:[#allocation17 + $0x38] sm:$0xff]  }
 0x59b   :  { %6814 = vmatmul.mubr.bf16.vlgmr.msra.gmra.mrb[16].mxu0 %v8563_v19 }
 0x59c   :  { %6838 = vmatpush3.bf16.msra.mxu0 %v7462_v59  ;;  %6853 = vmatprep.mubr.msk.bf16.mxu0 %vm8244_vm0, %v8243_v0 }
 0x59d   :  { %6839 = vmatprep.subr.bf16.mxu0 %v8243_v0 }
 0x5a0   :  { %6782 = vmatmul.mubr.bf16.vlgmr.msra.gmra.mrb[28].mxu1 %v1262_v6  ;;  %6840 = vmatpush3.bf16.msra.mxu0 %v7463_v60  ;;  %v7472_v6 = vld [vmem:[#allocation8 + $0xd0] sm:$0xff]  }
 0x5a1   :  { %6787 = vmatprep.mubr.msk.bf16.mxu1 %vm8244_vm0, %v8243_v0  ;;  %6786 = vmatpush3.bf16.msra.mxu1 %v1375_v48  ;;  %v7495_v48 = vld [vmem:[#allocation17 + $0x20] sm:$0xff]  }
 0x5a2   :  { %6791 = vmatprep.subr.bf16.mxu1 %v8243_v0  ;;  %6841 = vmatprep.subr.bf16.mxu0 %v8243_v0 }
 0x5a4   :  { %6842 = vmatpush3.bf16.msra.mxu0 %v7464_v61 }
 0x5a5   :  { %6843 = vmatprep.subr.bf16.mxu0 %v8243_v0 }
 0x5a8   :  { %6844 = vmatpush3.bf16.msra.mxu0 %v7465_v62 }
 0x5a9   :  { %6845 = vmatprep.subr.bf16.mxu0 %v8243_v0 }
 0x5ac   :  { %6846 = vmatpush3.bf16.msra.mxu0 %v7466_v63  ;;  %v5981_v63 = vld [vmem:[#allocation16 + $0x2] ss:$0 sm:$0xff] }
 0x5ad   :  { %6847 = vmatprep.subr.bf16.mxu0 %v8243_v0 }
 0x5b0   :  { %6848 = vmatpush3.bf16.msra.mxu0 %v7467_v1 }
 0x5b1   :  { %6849 = vmatprep.subr.bf16.mxu0 %v8243_v0 }
 0x5b4   :  { %6850 = vmatpush3.bf16.msra.mxu0 %v7468_v2 }
 0x5b5   :  { %6851 = vmatprep.subr.bf16.mxu0 %v8243_v0 }
 0x5b8   :  { %6852 = vmatpush3.bf16.msra.mxu0 %v7469_v3 }
 0x5b9   :  { %6881 = vmatprep.subr.bf16.mxu0 %v8243_v0 }
 0x5bb   :  { %6854 = vmatmul.mubr.bf16.vlgmr.msra.gmra.mrb[20].mxu0 %v8563_v19 }
 0x5bc   :  { %6882 = vmatpush3.bf16.msra.mxu0 %v7470_v4  ;;  %6897 = vmatprep.mubr.msk.bf16.mxu0 %vm8244_vm0, %v8243_v0 }
 0x5bd   :  { %6883 = vmatprep.subr.bf16.mxu0 %v8243_v0 }
 0x5c0   :  { %6884 = vmatpush3.bf16.msra.mxu0 %v7471_v5 }
 0x5c1   :  { %6885 = vmatprep.subr.bf16.mxu0 %v8243_v0 }
 0x5c4   :  { %6886 = vmatpush3.bf16.msra.mxu0 %v7472_v6 }
 0x5c5   :  { %6887 = vmatprep.subr.bf16.mxu0 %v8243_v0 }
 0x5c8   :  { %6888 = vmatpush3.bf16.msra.mxu0 %v7473_v7 }
 0x5c9   :  { %6889 = vmatprep.subr.bf16.mxu0 %v8243_v0 }
 0x5cc   :  { %6890 = vmatpush3.bf16.msra.mxu0 %v7474_v8 }
 0x5cd   :  { %6891 = vmatprep.subr.bf16.mxu0 %v8243_v0 }
 0x5d0   :  { %6892 = vmatpush3.bf16.msra.mxu0 %v7475_v9 }
 0x5d1   :  { %6893 = vmatprep.subr.bf16.mxu0 %v8243_v0 }
 0x5d4   :  { %6894 = vmatpush3.bf16.msra.mxu0 %v7476_v10 }
 0x5d5   :  { %6895 = vmatprep.subr.bf16.mxu0 %v8243_v0 }
 0x5d8   :  { %6896 = vmatpush3.bf16.msra.mxu0 %v7477_v11 }
 0x5d9   :  { %6921 = vmatprep.subr.bf16.mxu0 %v8243_v0 }
 0x5db   :  { %6898 = vmatmul.mubr.bf16.vlgmr.msra.gmra.mrb[24].mxu0 %v8563_v19 }
 0x5dc   :  { %6922 = vmatpush3.bf16.msra.mxu0 %v7478_v12  ;;  %6937 = vmatprep.mubr.msk.bf16.mxu0 %vm8244_vm0, %v8243_v0 }
 0x5dd   :  { %6923 = vmatprep.subr.bf16.mxu0 %v8243_v0 }
 0x5e0   :  { %6924 = vmatpush3.bf16.msra.mxu0 %v7479_v13 }
 0x5e1   :  { %6925 = vmatprep.subr.bf16.mxu0 %v8243_v0 }
 0x66b   :  { %v1299_v15 = vpop.f32.mrb[24].mxu1 }
 0x66c   :  { %v1300_v16 = vadd.f32 %v1299_v15, %v8590_v46  ;;  %v6777_v17 = vpop.f32.mrb[25].mxu1  ;;  %v7480_v15 = vld [vmem:[#allocation14 + $0xd0] sm:$0xff]  }
 0x66d   :  { %v1302_v18 = vpop.f32.mrb[26].mxu1  ;;  %6926 = vmatpush3.bf16.msra.mxu0 %v7480_v15 }
 0x66e   :  { %v6778_v20 = vpop.f32.mrb[27].mxu1  ;;  %v1345_v21 = vsel %vm797_vm1, %v1300_v16, -inf  ;;  %6927 = vmatprep.subr.bf16.mxu0 %v8243_v0  ;;  %v7482_v18 = vld [vmem:[#allocation14 + $0xe0] sm:$0xff]   ;;  %v1572_v59 = vpop.f32.mrb[16].mxu0 }
 0x66f   :  { %1346 = vmax.xlane.f32.xlu0 %v1345_v21  ;;  %v6815_v60 = vpop.f32.mrb[17].mxu0 }
 0x670   :  { %v1575_v61 = vpop.f32.mrb[18].mxu0 }
 0x671   :  { %v6816_v62 = vpop.f32.mrb[19].mxu0 }
 0x673   :  { %v1339_v22 = vpop.f32.mrb[28].mxu1 }
 0x674   :  { %v1340_v23 = vadd.f32 %v1339_v22, %v8590_v46  ;;  %v6783_v24 = vpop.f32.mrb[29].mxu1  ;;  %v1370_v22 = vpack.c.bf16 %v8665_v44, %v8665_v44  ;;  %v7494_v44 = vld [vmem:[#allocation17 + $0x60] sm:$0xff]  }
 0x675   :  { %v1342_v25 = vpop.f32.mrb[30].mxu1  ;;  %v7483_v24 = vld [vmem:[#allocation14 + $0xe8] sm:$0xff]  }
 0x676   :  { %v6784_v26 = vpop.f32.mrb[31].mxu1  ;;  %v1348_v27 = vsel %vm797_vm1, %v1340_v23, -inf  ;;  %v1421_v25 = vsel %vm827_vm2, %v1370_v22, 0 }
 0x677   :  { %1349 = vmax.xlane.f32.xlu1 %v1348_v27  ;;  %v7484_v26 = vld [vmem:[#allocation14 + $0xf0] sm:$0xff]  }
 0x68e   :  { %v1800_v1 = vpop.f32.mrb[20].mxu0 }
 0x68f   :  { %v6855_v2 = vpop.f32.mrb[21].mxu0 }
 0x690   :  { %v1803_v3 = vpop.f32.mrb[22].mxu0 }
 0x691   :  { %v8734_v4 = vadd.f32 %v5981_v63, %v1803_v3  ;;  %v6856_v5 = vpop.f32.mrb[23].mxu0 }
 0x6ae   :  { %v8736_v6 = vpop.f32.mrb[24].mxu0 }
 0x6af   :  { %v6899_v7 = vpop.f32.mrb[25].mxu0 }
 0x6b0   :  { %v8738_v8 = vpop.f32.mrb[26].mxu0 }
 0x6b1   :  { %v6900_v9 = vpop.f32.mrb[27].mxu0 }
 0x6fc   :  { %v1347_v28 = vpop.xlane.xlu0 %1346 }
 0x6fd   :  { %v1351_v29 = vsub.f32 %v1300_v16, %v1347_v28  ;;  %v7481_v16 = vld [vmem:[#allocation14 + $0xd8] sm:$0xff]  }
 0x6fe   :  { %6928 = vmatpush3.bf16.msra.mxu0 %v7481_v16 }
 0x6ff   :  { %v1353_v30 = vmul.f32 1.442695, %v1351_v29  ;;  %6929 = vmatprep.subr.bf16.mxu0 %v8243_v0  ;;  %v7446_v29 = vld [vmem:[#allocation11 + $0x80] sm:$0xff]  }
 0x701   :  { %7678 = vpow2.f32 %v1353_v30 }
 0x702   :  { %6930 = vmatpush3.bf16.msra.mxu0 %v7482_v18 }
 0x703   :  { %6931 = vmatprep.subr.bf16.mxu0 %v8243_v0 }
 0x704   :  { %v1350_v31 = vpop.xlane.xlu1 %1349 }
 0x705   :  { %v1352_v32 = vsub.f32 %v1340_v23, %v1350_v31  ;;  %v7485_v31 = vld [vmem:[#allocation14 + $0xf8] sm:$0xff]  }
 0x706   :  { %6932 = vmatpush3.bf16.msra.mxu0 %v7483_v24 }
 0x707   :  { %v1355_v33 = vmul.f32 1.442695, %v1352_v32  ;;  %6933 = vmatprep.subr.bf16.mxu0 %v8243_v0  ;;  %v7486_v32 = vld [vmem:[#allocation17 + $0x40] sm:$0xff]  }
 0x709   :  { %7680 = vpow2.f32 %v1355_v33  ;;  %v7448_v33 = vld [vmem:[#allocation11 + $0x88] sm:$0xff]  }
 0x70a   :  { %6934 = vmatpush3.bf16.msra.mxu0 %v7484_v26  ;;  %v5972_v26 = vld [vmem:[#allocation13 + $0x2] ss:$0 sm:$0xff] }
 0x70b   :  { %v8657_v34 = vpop.eup %7678  ;;  %6935 = vmatprep.subr.bf16.mxu0 %v8243_v0 }
 0x70c   :  { %v1357_v35 = vsel %vm797_vm1, %v8657_v34, 0.0 }
 0x70d   :  { %1358 = vadd.xlane.f32.xlu0 %v1357_v35  ;;  %v7488_v35 = vld [vmem:[#allocation17 + $0x48] sm:$0xff]  }
 0x70e   :  { %6936 = vmatpush3.bf16.msra.mxu0 %v7485_v31 }
 0x70f   :  { %6383 = vmatprep.subr.bf16.mxu0 %v7486_v32 }
 0x711   :  { %6938 = vmatmul.mubr.bf16.vlgmr.msra.gmra.mrb[28].mxu0 %v8563_v19 }
 0x713   :  { %v8661_v36 = vpop.eup %7680 }
 0x714   :  { %v1360_v37 = vsel %vm797_vm1, %v8661_v36, 0.0 }
 0x715   :  { %1361 = vadd.xlane.f32.xlu1 %v1360_v37  ;;  %v7489_v37 = vld [vmem:[#allocation17 + $0x8] sm:$0xff]  }
 0x79a   :  { %v1359_v14 = vpop.xlane.xlu0 %1358 }
 0x79b   :  { %7682 = vrcp.f32 %v1359_v14 }
 0x7a2   :  { %v1362_v17 = vpop.xlane.xlu1 %1361 }
 0x7a3   :  { %7684 = vrcp.f32 %v1362_v17 }
 0x7a5   :  { %v7683_v20 = vpop.eup %7682 }
 0x7a6   :  { %v1365_v21 = vmul.f32 %v7683_v20, %v8657_v34  ;;  %v7487_v34 = vld [vmem:[#allocation17] sm:$0xff]   ;;  %v8743_v20 = vld [vmem:[#allocation16 + $0x3] ss:$0 sm:$0xff] }
 0x7a7   :  { %6384 = vmatpush3.bf16.msra.mxu0 %v7487_v34  ;;  %v1801_v34 = vadd.f32 %v5981_v63, %v1800_v1 }
 0x7a8   :  { %v1367_v23 = vpack.c.bf16 %v1365_v21, %v1365_v21  ;;  %6385 = vmatprep.subr.bf16.mxu0 %v7488_v35 }
 0x7aa   :  { %6788 = vmatmul.mubr.msk.bf16.vlgmr.msra.gmra.mrb[32].mxu1 %vm797_vm1, %v1367_v23 }
 0x7ab   :  { %6792 = vmatpush3.bf16.msra.mxu1 %v1421_v25  ;;  %6793 = vmatprep.mubr.msk.bf16.mxu1 %vm8244_vm0, %v8243_v0 }
 0x7ac   :  { %6817 = vmatprep.subr.bf16.mxu1 %v8243_v0  ;;  %6386 = vmatpush3.bf16.msra.mxu0 %v7489_v37  ;;  %v1915_v37 = vpack.c.bf16 %v1801_v34, %v1801_v34 }
 0x7ad   :  { %v7685_v27 = vpop.eup %7684  ;;  %6387 = vmatprep.subr.bf16.mxu0 %v7490_v38 }
 0x7ae   :  { %v1366_v28 = vmul.f32 %v7685_v27, %v8661_v36  ;;  %v7450_v36 = vld [vmem:[#allocation11 + $0x90] sm:$0xff]  }
 0x7b0   :  { %v1368_v30 = vpack.c.bf16 %v1366_v28, %v1366_v28  ;;  %6388 = vmatpush3.bf16.msra.mxu0 %v7491_v40 }
 0x7b1   :  { %6389 = vmatprep.subr.bf16.mxu0 %v7492_v41 }
 0x7b2   :  { %6794 = vmatmul.mubr.msk.bf16.vlgmr.msra.gmra.mrb[36].mxu1 %vm797_vm1, %v1368_v30  ;;  %v5963_v30 = vld [vmem:[#allocation10 + $0x2] ss:$0 sm:$0xff] }
 0x7b3   :  { %6818 = vmatpush3.bf16.msra.mxu1 %v7446_v29  ;;  %6833 = vmatprep.mubr.msk.bf16.mxu1 %vm8244_vm0, %v8243_v0  ;;  %v1573_v31 = vadd.f32 %v5963_v30, %v1572_v59 }
 0x7b4   :  { %6819 = vmatprep.subr.bf16.mxu1 %v8243_v0  ;;  %6390 = vmatpush3.bf16.msra.mxu0 %v7493_v43 }
 0x7b5   :  { %6391 = vmatprep.subr.bf16.mxu0 %v7494_v44 }
 0x7b7   :  { %6820 = vmatpush3.bf16.msra.mxu1 %v7448_v33  ;;  %v1807_v33 = vpack.c.bf16 %v1573_v31, %v1573_v31 }
 0x7b8   :  { %6821 = vmatprep.subr.bf16.mxu1 %v8243_v0  ;;  %6392 = vmatpush3.bf16.msra.mxu0 %v7495_v48 }
 0x7b9   :  { %6393 = vmatprep.subr.bf16.mxu0 %v7496_v53 }
 0x7bb   :  { %6822 = vmatpush3.bf16.msra.mxu1 %v7450_v36  ;;  %v1576_v36 = vadd.f32 %v5963_v30, %v1575_v61  ;;  %v7508_v30 = vld [vmem:[#allocation11 + $0xf0] sm:$0xff]  }
 0x7bc   :  { %6823 = vmatprep.subr.bf16.mxu1 %v8243_v0  ;;  %6394 = vmatpush3.bf16.msra.mxu0 %v7497_v54 }
 0x7bd   :  { %6395 = vmatprep.subr.bf16.mxu0 %v7498_v55  ;;  %v1808_v38 = vpack.c.bf16 %v1576_v36, %v1576_v36 }
 0x7bf   :  { %6824 = vmatpush3.bf16.msra.mxu1 %v7452_v39  ;;  %v1921_v39 = vsel %vm827_vm2, %v1915_v37, 0 }
 0x7c0   :  { %6825 = vmatprep.subr.bf16.mxu1 %v8243_v0  ;;  %6396 = vmatpush3.bf16.msra.mxu0 %v7499_v56 }
 0x7c1   :  { %6397 = vmatprep.subr.bf16.mxu0 %v7500_v57 }
 0x7c3   :  { %6826 = vmatpush3.bf16.msra.mxu1 %v7454_v42 }
 0x7c4   :  { %6827 = vmatprep.subr.bf16.mxu1 %v8243_v0  ;;  %6398 = vmatpush3.bf16.msra.mxu0 %v7501_v58 }
 0x7c5   :  { %6965 = vmatprep.subr.bf16.mxu0 %v8243_v0 }
 0x7c7   :  { %6828 = vmatpush3.bf16.msra.mxu1 %v7456_v45 }
 0x7c8   :  { %6829 = vmatprep.subr.bf16.mxu1 %v8243_v0 }
 0x7cb   :  { %6830 = vmatpush3.bf16.msra.mxu1 %v7458_v49 }
 0x7cc   :  { %6831 = vmatprep.subr.bf16.mxu1 %v8243_v0 }
 0x7cf   :  { %6832 = vmatpush3.bf16.msra.mxu1 %v7460_v50 }
 0x7d0   :  { %6857 = vmatprep.subr.bf16.mxu1 %v8243_v0 }
 0x7d2   :  { %6834 = vmatmul.mubr.bf16.vlgmr.msra.gmra.mrb[40].mxu1 %v8563_v19 }
 0x7d3   :  { %6859 = vmatprep.mubr.msk.bf16.mxu1 %vm8244_vm0, %v8243_v0 }
 0x7e4   :  { %v8745_v21 = vpop.f32.mrb[28].mxu0 }
 0x7e5   :  { %v6939_v22 = vpop.f32.mrb[29].mxu0 }
 0x7e6   :  { %v2349_v23 = vpop.f32.mrb[30].mxu0 }
 0x7e7   :  { %v8750_v24 = vadd.f32 %v8743_v20, %v2349_v23  ;;  %v6940_v25 = vpop.f32.mrb[31].mxu0  ;;  %v7502_v23 = vld [vmem:[#allocation11 + $0xc0] sm:$0xff]  }
 0x87d   :  { %v1411_v10 = vpop.f32.mrb[32].mxu1 }
 0x87e   :  { %v6789_v11 = vpop.f32.mrb[33].mxu1 }
 0x87f   :  { %v1414_v12 = vpop.f32.mrb[34].mxu1 }
 0x880   :  { %v6790_v13 = vpop.f32.mrb[35].mxu1 }
 0x885   :  { %v1457_v14 = vpop.f32.mrb[36].mxu1 }
 0x886   :  { %v6236_v15 = vpack.c.bf16 %v1457_v14, %v1411_v10  ;;  %v6795_v16 = vpop.f32.mrb[37].mxu1  ;;  %v1916_v14 = vpack.c.bf16 %v8734_v4, %v8734_v4  ;;  %v7503_v4 = vld [vmem:[#allocation11 + $0xc8] sm:$0xff]  }
 0x887   :  { %v1460_v17 = vpop.f32.mrb[38].mxu1 }
 0x888   :  { %v6796_v18 = vpop.f32.mrb[39].mxu1  ;;  %2876 = vmatprep.mubr.bf16.mxu0 %v6236_v15  ;;  %v1967_v17 = vsel %vm827_vm2, %v1916_v14, 0 }
 0x889   :  { %2877 = vmatmul.mubr.bf16.vlgmr.msra.gmra.mrb[32].mxu0 %v6235_v52 }
 0x88a   :  { %6981 = vmatprep.mubr.msk.bf16.mxu0 %vm8244_vm0, %v8243_v0 }
 0x8a5   :  { %v1686_v27 = vpop.f32.mrb[40].mxu1 }
 0x8a6   :  { %v1687_v28 = vadd.f32 %v5972_v26, %v1686_v27  ;;  %v6835_v29 = vpop.f32.mrb[41].mxu1  ;;  %v7505_v27 = vld [vmem:[#allocation11 + $0xd8] sm:$0xff]  }
 0x8a7   :  { %v1689_v47 = vpop.f32.mrb[42].mxu1  ;;  %v7507_v29 = vld [vmem:[#allocation11 + $0xe8] sm:$0xff]  }
 0x8a8   :  { %v1809_v51 = vpack.c.bf16 %v1687_v28, %v1687_v28  ;;  %v6836_v52 = vpop.f32.mrb[43].mxu1  ;;  %v1690_v32 = vadd.f32 %v5972_v26, %v1689_v47  ;;  %v7504_v26 = vld [vmem:[#allocation11 + $0xd0] sm:$0xff]   ;;  %v7506_v28 = vld [vmem:[#allocation11 + $0xe0] sm:$0xff]   ;;  %v7509_v47 = vld [vmem:[#allocation11 + $0xf8] sm:$0xff]  }
 0x8aa   :  { %6858 = vmatpush3.bf16.xpose.msra.mxu1 %v1809_v51  ;;  %v1810_v35 = vpack.c.bf16 %v1690_v32, %v1690_v32 }
 0x8ab   :  { %6863 = vmatprep.subr.bf16.mxu1 %v8243_v0 }
 0x8b1   :  { %6860 = vmatmul.mubr.bf16.vlgmr.msra.gmra.mrb[44].mxu1 %v1807_v33 }
 0x8b2   :  { %6864 = vmatpush3.bf16.xpose.msra.mxu1 %v1810_v35  ;;  %6865 = vmatprep.mubr.msk.bf16.mxu1 %vm8244_vm0, %v8243_v0 }
 0x8b3   :  { %6869 = vmatprep.subr.bf16.mxu1 %v8243_v0 }
 0x8b9   :  { %6866 = vmatmul.mubr.bf16.vlgmr.msra.gmra.mrb[48].mxu1 %v1808_v38  ;;  %v6001_v38 = vld [vmem:[#allocation13 + $0x3] ss:$0 sm:$0xff] }
 0x8ba   :  { %6870 = vmatpush3.bf16.msra.mxu1 %v1921_v39  ;;  %6871 = vmatprep.mubr.msk.bf16.mxu1 %vm8244_vm0, %v8243_v0 }
 0x8bb   :  { %6875 = vmatprep.subr.bf16.mxu1 %v8243_v0 }
 0x95c   :  { %v6399_v40 = vpop.f32.mrb[32].mxu0 }
 0x95d   :  { %v6400_v41 = vpop.f32.mrb[33].mxu0 }
 0x95e   :  { %v8760_v42 = vadd.f32 %v6400_v41, %v6399_v40  ;;  %v6402_v43 = vpop.f32.mrb[34].mxu0  ;;  %v5992_v40 = vld [vmem:[#allocation10 + $0x3] ss:$0 sm:$0xff] }
 0x95f   :  { %v6403_v44 = vpop.f32.mrb[35].mxu0 }
 0x960   :  { %v8762_v45 = vadd.f32 %v6403_v44, %v6402_v43 }
 0x984   :  { %v1845_v48 = vpop.f32.mrb[44].mxu1 }
 0x985   :  { %v1846_v49 = vadd.f32 %v1845_v48, %v8590_v46  ;;  %v6861_v50 = vpop.f32.mrb[45].mxu1 }
 0x986   :  { %v1848_v53 = vpop.f32.mrb[46].mxu1 }
 0x987   :  { %v6862_v54 = vpop.f32.mrb[47].mxu1  ;;  %v1891_v55 = vsel %vm797_vm1, %v1846_v49, -inf }
 0x988   :  { %1892 = vmax.xlane.f32.xlu0 %v1891_v55  ;;  %v2347_v54 = vadd.f32 %v8743_v20, %v8745_v21  ;;  %v7746_v21 = vld [vmem:[#allocation7] sm:$0xff] }
 0x98c   :  { %v1885_v56 = vpop.f32.mrb[48].mxu1 }
 0x98d   :  { %v1886_v57 = vadd.f32 %v1885_v56, %v8590_v46  ;;  %v6867_v58 = vpop.f32.mrb[49].mxu1  ;;  %v2122_v56 = vadd.f32 %v5992_v40, %v8738_v8 }
 0x98e   :  { %v1888_v59 = vpop.f32.mrb[50].mxu1 }
 0x98f   :  { %v6868_v60 = vpop.f32.mrb[51].mxu1  ;;  %v1894_v61 = vsel %vm797_vm1, %v1886_v57, -inf }
 0x990   :  { %1895 = vmax.xlane.f32.xlu1 %v1894_v61 }
 0xa15   :  { %v1893_v62 = vpop.xlane.xlu0 %1892 }
 0xa16   :  { %v1897_v63 = vsub.f32 %v1846_v49, %v1893_v62  ;;  %v2119_v49 = vadd.f32 %v5992_v40, %v8736_v6  ;;  %v2354_v6 = vpack.c.bf16 %v2122_v56, %v2122_v56  ;;  %v7520_v40 = vld [vmem:[#allocation17 + $0xe8] sm:$0xff]  }
 0xa18   :  { %v1899_v1 = vmul.f32 1.442695, %v1897_v63  ;;  %v2353_v53 = vpack.c.bf16 %v2119_v49, %v2119_v49 }
 0xa1a   :  { %7686 = vpow2.f32 %v1899_v1 }
 0xa1d   :  { %v1896_v2 = vpop.xlane.xlu1 %1895 }
 0xa1e   :  { %v1898_v3 = vsub.f32 %v1886_v57, %v1896_v2  ;;  %v2461_v57 = vpack.c.bf16 %v2347_v54, %v2347_v54 }
 0xa20   :  { %v1901_v5 = vmul.f32 1.442695, %v1898_v3  ;;  %v2467_v58 = vsel %vm827_vm2, %v2461_v57, 0 }
 0xa22   :  { %7688 = vpow2.f32 %v1901_v5 }
 0xa24   :  { %v7687_v7 = vpop.eup %7686 }
 0xa25   :  { %v1903_v9 = vsel %vm797_vm1, %v7687_v7, 0.0 }
 0xa26   :  { %1904 = vadd.xlane.f32.xlu0 %v1903_v9 }
 0xa2c   :  { %v7689_v10 = vpop.eup %7688 }
 0xa2d   :  { %v1906_v46 = vsel %vm797_vm1, %v7689_v10, 0.0 }
 0xa2e   :  { %1907 = vadd.xlane.f32.xlu1 %v1906_v46 }
 0xab3   :  { %v1905_v11 = vpop.xlane.xlu0 %1904 }
 0xab4   :  { %7690 = vrcp.f32 %v1905_v11 }
 0xabb   :  { %v1908_v12 = vpop.xlane.xlu1 %1907 }
 0xabc   :  { %7692 = vrcp.f32 %v1908_v12 }
 0xabe   :  { %v7691_v13 = vpop.eup %7690 }
 0xabf   :  { %v1911_v15 = vmul.f32 %v7691_v13, %v7687_v7 }
 0xac1   :  { %v1913_v16 = vpack.c.bf16 %v1911_v15, %v1911_v15 }
 0xac3   :  { %6872 = vmatmul.mubr.msk.bf16.vlgmr.msra.gmra.mrb[52].mxu1 %vm797_vm1, %v1913_v16 }
 0xac4   :  { %6876 = vmatpush3.bf16.msra.mxu1 %v1967_v17  ;;  %6877 = vmatprep.mubr.msk.bf16.mxu1 %vm8244_vm0, %v8243_v0 }
 0xac5   :  { %6901 = vmatprep.subr.bf16.mxu1 %v8243_v0 }
 0xac6   :  { %v7693_v18 = vpop.eup %7692 }
 0xac7   :  { %v1912_v22 = vmul.f32 %v7693_v18, %v7689_v10 }
 0xac9   :  { %v1914_v25 = vpack.c.bf16 %v1912_v22, %v1912_v22 }
 0xacb   :  { %6878 = vmatmul.mubr.msk.bf16.vlgmr.msra.gmra.mrb[56].mxu1 %vm797_vm1, %v1914_v25  ;;  %v2462_v25 = vpack.c.bf16 %v8750_v24, %v8750_v24  ;;  %v7513_v24 = vld [vmem:[#allocation17 + $0x88] sm:$0xff]  }
 0xacc   :  { %6902 = vmatpush3.bf16.msra.mxu1 %v7502_v23  ;;  %6917 = vmatprep.mubr.msk.bf16.mxu1 %vm8244_vm0, %v8243_v0 }
 0xacd   :  { %6903 = vmatprep.subr.bf16.mxu1 %v8243_v0 }
 0xad0   :  { %6904 = vmatpush3.bf16.msra.mxu1 %v7503_v4 }
 0xad1   :  { %6905 = vmatprep.subr.bf16.mxu1 %v8243_v0 }
 0xad4   :  { %6906 = vmatpush3.bf16.msra.mxu1 %v7504_v26 }
 0xad5   :  { %6907 = vmatprep.subr.bf16.mxu1 %v8243_v0 }
 0xad8   :  { %6908 = vmatpush3.bf16.msra.mxu1 %v7505_v27  ;;  %v7510_v27 = vld [vmem:[#allocation17 + $0xc0] sm:$0xff]  }
 0xad9   :  { %6909 = vmatprep.subr.bf16.mxu1 %v8243_v0 }
 0xadc   :  { %6910 = vmatpush3.bf16.msra.mxu1 %v7506_v28  ;;  %v2513_v28 = vsel %vm827_vm2, %v2462_v25, 0  ;;  %v373_v25 = vld [vmem:[#allocation5 + $0x8] sm:$0xff] }
 0xadd   :  { %6911 = vmatprep.subr.bf16.mxu1 %v8243_v0 }
 0xae0   :  { %6912 = vmatpush3.bf16.msra.mxu1 %v7507_v29 }
 0xae1   :  { %6913 = vmatprep.subr.bf16.mxu1 %v8243_v0 }
 0xae4   :  { %6914 = vmatpush3.bf16.msra.mxu1 %v7508_v30 }
 0xae5   :  { %6915 = vmatprep.subr.bf16.mxu1 %v8243_v0 }
 0xae8   :  { %6916 = vmatpush3.bf16.msra.mxu1 %v7509_v47  ;;  %v7511_v47 = vld [vmem:[#allocation17 + $0x80] sm:$0xff]  }
 0xae9   :  { %6941 = vmatprep.subr.bf16.mxu1 %v8243_v0 }
 0xaeb   :  { %6918 = vmatmul.mubr.bf16.vlgmr.msra.gmra.mrb[60].mxu1 %v8563_v19 }
 0xaec   :  { %6943 = vmatprep.mubr.msk.bf16.mxu1 %vm8244_vm0, %v8243_v0 }
 0xb96   :  { %v8791_v51 = vpop.f32.mrb[52].mxu1 }
 0xb97   :  { %v6873_v52 = vpop.f32.mrb[53].mxu1 }
 0xb98   :  { %v1960_v31 = vpop.f32.mrb[54].mxu1 }
 0xb99   :  { %v6874_v32 = vpop.f32.mrb[55].mxu1  ;;  %v7512_v31 = vld [vmem:[#allocation17 + $0xc8] sm:$0xff]  }
 0xb9a   :  { %v7514_v32 = vld [vmem:[#allocation17 + $0xd0] sm:$0xff]  }
 0xb9e   :  { %v8793_v33 = vpop.f32.mrb[56].mxu1 }
 0xb9f   :  { %v6237_v34 = vpack.c.bf16 %v8793_v33, %v8791_v51  ;;  %v6879_v35 = vpop.f32.mrb[57].mxu1 }
 0xba0   :  { %v2006_v36 = vpop.f32.mrb[58].mxu1  ;;  %v7515_v35 = vld [vmem:[#allocation17 + $0x90] sm:$0xff]  }
 0xba1   :  { %v6880_v37 = vpop.f32.mrb[59].mxu1  ;;  %v7516_v36 = vld [vmem:[#allocation17 + $0xd8] sm:$0xff]  }
 0xba2   :  { %v7517_v37 = vld [vmem:[#allocation17 + $0x98] sm:$0xff]  }
 0xbbe   :  { %v2232_v39 = vpop.f32.mrb[60].mxu1 }
 0xbbf   :  { %v2233_v19 = vadd.f32 %v6001_v38, %v2232_v39  ;;  %v6919_v41 = vpop.f32.mrb[61].mxu1  ;;  %v7519_v39 = vld [vmem:[#allocation17 + $0xa0] sm:$0xff]  }
 0xbc0   :  { %v2235_v43 = vpop.f32.mrb[62].mxu1  ;;  %v7522_v41 = vld [vmem:[#allocation17 + $0xf0] sm:$0xff]  }
 0xbc1   :  { %v2355_v44 = vpack.c.bf16 %v2233_v19, %v2233_v19  ;;  %v6920_v48 = vpop.f32.mrb[63].mxu1  ;;  %v2236_v50 = vadd.f32 %v6001_v38, %v2235_v43  ;;  %v7518_v38 = vld [vmem:[#allocation17 + $0xe0] sm:$0xff]   ;;  %v7521_v19 = vld [vmem:[#allocation17 + $0xa8] sm:$0xff]   ;;  %v7523_v43 = vld [vmem:[#allocation17 + $0xb0] sm:$0xff]  }
 0xbc2   :  { %v7525_v48 = vld [vmem:[#allocation17 + $0xb8] sm:$0xff]  }
 0xbc3   :  { %6942 = vmatpush3.bf16.xpose.msra.mxu1 %v2355_v44  ;;  %v2356_v55 = vpack.c.bf16 %v2236_v50, %v2236_v50  ;;  %v7524_v44 = vld [vmem:[#allocation17 + $0xf8] sm:$0xff]  }
 0xbc4   :  { %6947 = vmatprep.subr.bf16.mxu1 %v8243_v0 }
 0xbca   :  { %6944 = vmatmul.mubr.bf16.vlgmr.msra.gmra.mrb[64].mxu1 %v2353_v53 }
 0xbcb   :  { %6948 = vmatpush3.bf16.xpose.msra.mxu1 %v2356_v55  ;;  %6949 = vmatprep.mubr.msk.bf16.mxu1 %vm8244_vm0, %v8243_v0 }
 0xbcc   :  { %6953 = vmatprep.subr.bf16.mxu1 %v8243_v0 }
 0xbd2   :  { %6950 = vmatmul.mubr.bf16.vlgmr.msra.gmra.mrb[68].mxu1 %v2354_v6 }
 0xbd3   :  { %6954 = vmatpush3.bf16.msra.mxu1 %v2467_v58  ;;  %6955 = vmatprep.mubr.msk.bf16.mxu1 %vm8244_vm0, %v8243_v0 }
 0xbd4   :  { %6959 = vmatprep.subr.bf16.mxu1 %v8243_v0 }
 0xc9d   :  { %v2391_v20 = vpop.f32.mrb[64].mxu1 }
 0xc9e   :  { %v2392_v59 = vadd.f32 %v7746_v21, %v2391_v20  ;;  %v6945_v60 = vpop.f32.mrb[65].mxu1  ;;  %v7526_v20 = vld [vmem:[#allocation22] sm:$0xff]  }
 0xc9f   :  { %v2394_v61 = vpop.f32.mrb[66].mxu1 }
 0xca0   :  { %v6946_v62 = vpop.f32.mrb[67].mxu1  ;;  %v2437_v8 = vsel %vm797_vm1, %v2392_v59, -inf }
 0xca1   :  { %2438 = vmax.xlane.f32.xlu0 %v2437_v8 }
 0xca5   :  { %v2431_v63 = vpop.f32.mrb[68].mxu1 }
 0xca6   :  { %v2432_v1 = vadd.f32 %v7746_v21, %v2431_v63  ;;  %v6951_v2 = vpop.f32.mrb[69].mxu1  ;;  %v7527_v21 = vld [vmem:[#allocation22 + $0x8] sm:$0xff]  }
 0xca7   :  { %v2434_v3 = vpop.f32.mrb[70].mxu1 }
 0xca8   :  { %v6952_v5 = vpop.f32.mrb[71].mxu1  ;;  %v2440_v7 = vsel %vm797_vm1, %v2432_v1, -inf  ;;  %v7747_v3 = vld [vmem:[#allocation2] sm:$0xff] }
 0xca9   :  { %2441 = vmax.xlane.f32.xlu1 %v2440_v7  ;;  %v7748_v7 = vld [vmem:[#allocation2 + $0x8] sm:$0xff] }
 0xd2e   :  { %v2439_v9 = vpop.xlane.xlu0 %2438 }
 0xd2f   :  { %v2443_v10 = vsub.f32 %v2392_v59, %v2439_v9  ;;  %v6021_v59 = vld [vmem:[%s9232_s7] ss:$0 sm:$0xff] }
 0xd30   :  { %v2879_v62 = vadd.f32 %v8760_v42, %v6021_v59  ;;  %v2882_v33 = vadd.f32 %v8762_v45, %v6021_v59 }
 0xd31   :  { %v2445_v46 = vmul.f32 1.442695, %v2443_v10  ;;  %v7528_v10 = vld [vmem:[#allocation22 + $0x10] sm:$0xff]  }
 0xd33   :  { %7694 = vpow2.f32 %v2445_v46  ;;  %v7529_v46 = vld [vmem:[#allocation19] sm:$0xff]  }
 0xd34   :  { %6966 = vmatpush3.bf16.msra.mxu0 %v7529_v46  ;;  %v7560_v46 = vld [vmem:[#allocation25 + $0x50] sm:$0xff]  }
 0xd35   :  { %6967 = vmatprep.subr.bf16.mxu0 %v8243_v0 }
 0xd36   :  { %v2442_v11 = vpop.xlane.xlu1 %2441 }
 0xd37   :  { %v2444_v12 = vsub.f32 %v2432_v1, %v2442_v11  ;;  %v7530_v11 = vld [vmem:[#allocation22 + $0x18] sm:$0xff]  }
 0xd39   :  { %v2447_v13 = vmul.f32 1.442695, %v2444_v12  ;;  %v7531_v12 = vld [vmem:[#allocation19 + $0x8] sm:$0xff]  }
 0xd3a   :  { %6968 = vmatpush3.bf16.msra.mxu0 %v7531_v12  ;;  %v7561_v12 = vld [vmem:[#allocation25 + $0x58] sm:$0xff]  }
 0xd3b   :  { %7696 = vpow2.f32 %v2447_v13  ;;  %6969 = vmatprep.subr.bf16.mxu0 %v8243_v0  ;;  %v7532_v13 = vld [vmem:[#allocation22 + $0x20] sm:$0xff]  }
 0xd3d   :  { %v7695_v14 = vpop.eup %7694 }
 0xd3e   :  { %v2449_v15 = vsel %vm797_vm1, %v7695_v14, 0.0 }
 0xd3f   :  { %2450 = vadd.xlane.f32.xlu0 %v2449_v15  ;;  %v7534_v15 = vld [vmem:[#allocation22 + $0x28] sm:$0xff]  }
 0xd45   :  { %v7697_v16 = vpop.eup %7696 }
 0xd46   :  { %v2452_v17 = vsel %vm797_vm1, %v7697_v16, 0.0 }
 0xd47   :  { %2453 = vadd.xlane.f32.xlu1 %v2452_v17  ;;  %v7536_v17 = vld [vmem:[#allocation22 + $0x30] sm:$0xff]  }
 0xdcc   :  { %v2451_v18 = vpop.xlane.xlu0 %2450 }
 0xdcd   :  { %7698 = vrcp.f32 %v2451_v18  ;;  %v7537_v18 = vld [vmem:[#allocation19 + $0x20] sm:$0xff]  }
 0xdd4   :  { %v2454_v22 = vpop.xlane.xlu1 %2453 }
 0xdd5   :  { %7700 = vrcp.f32 %v2454_v22  ;;  %v7538_v22 = vld [vmem:[#allocation22 + $0x38] sm:$0xff]  }
 0xdd7   :  { %v7699_v23 = vpop.eup %7698 }
 0xdd8   :  { %v2457_v4 = vmul.f32 %v7699_v23, %v7695_v14  ;;  %v7533_v14 = vld [vmem:[#allocation19 + $0x10] sm:$0xff]   ;;  %v372_v23 = vld [vmem:[#allocation5] sm:$0xff] }
 0xdd9   :  { %6970 = vmatpush3.bf16.msra.mxu0 %v7533_v14 }
 0xdda   :  { %v2459_v26 = vpack.c.bf16 %v2457_v4, %v2457_v4  ;;  %6971 = vmatprep.subr.bf16.mxu0 %v8243_v0  ;;  %v7539_v4 = vld [vmem:[#allocation19 + $0x28] sm:$0xff]  }
 0xddc   :  { %6956 = vmatmul.mubr.msk.bf16.vlgmr.msra.gmra.mrb[72].mxu1 %vm797_vm1, %v2459_v26  ;;  %v8851_v26 = vpack.c.bf16 %v373_v25, %v372_v23  ;;  %v7563_v25 = vld [vmem:[#allocation25 + $0x68] sm:$0xff]  }
 0xddd   :  { %6960 = vmatpush3.bf16.msra.mxu1 %v2513_v28  ;;  %6961 = vmatprep.mubr.msk.bf16.mxu1 %vm8244_vm0, %v8243_v0  ;;  %v7541_v28 = vld [vmem:[#allocation19 + $0x38] sm:$0xff]  }
 0xdde   :  { %6405 = vmatprep.subr.bf16.mxu1 %v7510_v27  ;;  %v7540_v27 = vld [vmem:[#allocation19 + $0x30] sm:$0xff]  }
 0xddf   :  { %v7701_v29 = vpop.eup %7700 }
 0xde0   :  { %v2458_v30 = vmul.f32 %v7701_v29, %v7697_v16  ;;  %v7535_v16 = vld [vmem:[#allocation19 + $0x18] sm:$0xff]  }
 0xde1   :  { %6972 = vmatpush3.bf16.msra.mxu0 %v7535_v16 }
 0xde2   :  { %v2460_v52 = vpack.c.bf16 %v2458_v30, %v2458_v30  ;;  %6973 = vmatprep.subr.bf16.mxu0 %v8243_v0 }
 0xde4   :  { %6962 = vmatmul.mubr.msk.bf16.vlgmr.msra.gmra.mrb[76].mxu1 %vm797_vm1, %v2460_v52 }
 0xde5   :  { %6406 = vmatpush3.bf16.msra.mxu1 %v7511_v47  ;;  %6974 = vmatpush3.bf16.msra.mxu0 %v7537_v18 }
 0xde6   :  { %6407 = vmatprep.subr.bf16.mxu1 %v7512_v31  ;;  %6975 = vmatprep.subr.bf16.mxu0 %v8243_v0 }
 0xde9   :  { %6408 = vmatpush3.bf16.msra.mxu1 %v7513_v24  ;;  %6976 = vmatpush3.bf16.msra.mxu0 %v7539_v4  ;;  %v7564_v4 = vld [vmem:[#allocation25 + $0x70] sm:$0xff]  }
 0xdea   :  { %6409 = vmatprep.subr.bf16.mxu1 %v7514_v32  ;;  %6977 = vmatprep.subr.bf16.mxu0 %v8243_v0 }
 0xded   :  { %6410 = vmatpush3.bf16.msra.mxu1 %v7515_v35  ;;  %6978 = vmatpush3.bf16.msra.mxu0 %v7540_v27  ;;  %v7565_v27 = vld [vmem:[#allocation25 + $0x78] sm:$0xff]  }
 0xdee   :  { %6411 = vmatprep.subr.bf16.mxu1 %v7516_v36  ;;  %6979 = vmatprep.subr.bf16.mxu0 %v8243_v0 }
 0xdf1   :  { %6412 = vmatpush3.bf16.msra.mxu1 %v7517_v37  ;;  %6980 = vmatpush3.bf16.msra.mxu0 %v7541_v28  ;;  %v7566_v28 = vld [vmem:[#allocation19 + $0x80] sm:$0xff]  }
 0xdf2   :  { %6413 = vmatprep.subr.bf16.mxu1 %v7518_v38  ;;  %7005 = vmatprep.subr.bf16.mxu0 %v8243_v0 }
 0xdf5   :  { %6414 = vmatpush3.bf16.msra.mxu1 %v7519_v39 }
 0xdf6   :  { %6415 = vmatprep.subr.bf16.mxu1 %v7520_v40 }
 0xdf9   :  { %6416 = vmatpush3.bf16.msra.mxu1 %v7521_v19 }
 0xdfa   :  { %6417 = vmatprep.subr.bf16.mxu1 %v7522_v41 }
 0xdfd   :  { %6418 = vmatpush3.bf16.msra.mxu1 %v7523_v43 }
 0xdfe   :  { %6419 = vmatprep.subr.bf16.mxu1 %v7524_v44 }
 0xe01   :  { %6420 = vmatpush3.bf16.msra.mxu1 %v7525_v48 }
 0xe02   :  { %6985 = vmatprep.subr.bf16.mxu1 %v8243_v0 }
 0xeaf   :  { %v2503_v49 = vpop.f32.mrb[72].mxu1 }
 0xeb0   :  { %v6957_v50 = vpop.f32.mrb[73].mxu1 }
 0xeb1   :  { %v2506_v53 = vpop.f32.mrb[74].mxu1 }
 0xeb2   :  { %v6958_v54 = vpop.f32.mrb[75].mxu1 }
 0xeb7   :  { %v2549_v55 = vpop.f32.mrb[76].mxu1 }
 0xeb8   :  { %v6238_v56 = vpack.c.bf16 %v2549_v55, %v2503_v49  ;;  %v6963_v57 = vpop.f32.mrb[77].mxu1  ;;  %v6058_v49 = vld [vmem:[%s9233_s9] ss:$0 sm:$0xff] }
 0xeb9   :  { %v2552_v6 = vpop.f32.mrb[78].mxu1  ;;  %v6059_v57 = vld [vmem:[%s9234_s20] ss:$0 sm:$0xff] }
 0xeba   :  { %v6964_v58 = vpop.f32.mrb[79].mxu1  ;;  %2917 = vmatprep.mubr.bf16.mxu1 %v6238_v56 }
 0xebb   :  { %2918 = vmatmul.mubr.bf16.vlgmr.msra.gmra.mrb[80].mxu1 %v6237_v34 }
 0xebc   :  { %7001 = vmatprep.mubr.msk.bf16.mxu1 %vm8244_vm0, %v8243_v0  ;;  %6986 = vmatpush3.bf16.msra.mxu1 %v7526_v20 }
 0xebd   :  { %6987 = vmatprep.subr.bf16.mxu1 %v8243_v0 }
 0xec0   :  { %6988 = vmatpush3.bf16.msra.mxu1 %v7527_v21  ;;  %v7542_v21 = vld [vmem:[#allocation25] sm:$0xff]  }
 0xec1   :  { %6989 = vmatprep.subr.bf16.mxu1 %v8243_v0 }
 0xec4   :  { %6990 = vmatpush3.bf16.msra.mxu1 %v7528_v10  ;;  %v7559_v10 = vld [vmem:[#allocation25 + $0x48] sm:$0xff]  }
 0xec5   :  { %6991 = vmatprep.subr.bf16.mxu1 %v8243_v0 }
 0xec8   :  { %6992 = vmatpush3.bf16.msra.mxu1 %v7530_v11  ;;  %v6069_v11 = vld [vmem:[#allocation23] ss:$0 sm:$0xff] }
 0xec9   :  { %6993 = vmatprep.subr.bf16.mxu1 %v8243_v0 }
 0xecc   :  { %6994 = vmatpush3.bf16.msra.mxu1 %v7532_v13 }
 0xecd   :  { %6995 = vmatprep.subr.bf16.mxu1 %v8243_v0 }
 0xed0   :  { %6996 = vmatpush3.bf16.msra.mxu1 %v7534_v15 }
 0xed1   :  { %6997 = vmatprep.subr.bf16.mxu1 %v8243_v0 }
 0xed4   :  { %6998 = vmatpush3.bf16.msra.mxu1 %v7536_v17  ;;  %v7562_v17 = vld [vmem:[#allocation25 + $0x60] sm:$0xff]  }
 0xed5   :  { %6999 = vmatprep.subr.bf16.mxu1 %v8243_v0 }
 0xed8   :  { %7000 = vmatpush3.bf16.msra.mxu1 %v7538_v22 }
 0xed9   :  { %7025 = vmatprep.subr.bf16.mxu1 %v8243_v0 }
 0xedb   :  { %7002 = vmatmul.mubr.bf16.vlgmr.msra.gmra.mrb[84].mxu1 %v8851_v26 }
 0xedc   :  { %7027 = vmatprep.mubr.msk.bf16.mxu1 %vm8244_vm0, %v8243_v0 }
 0xf8e   :  { %v6421_v60 = vpop.f32.mrb[80].mxu1 }
 0xf8f   :  { %v6422_v61 = vpop.f32.mrb[81].mxu1 }
 0xf90   :  { %v6423_v8 = vadd.f32 %v6422_v61, %v6421_v60  ;;  %v6424_v63 = vpop.f32.mrb[82].mxu1  ;;  %v7543_v60 = vld [vmem:[#allocation25 + $0x8] sm:$0xff]   ;;  %v7544_v61 = vld [vmem:[#allocation25 + $0x10] sm:$0xff]  }
 0xf91   :  { %v6425_v51 = vpop.f32.mrb[83].mxu1 }
 0xf92   :  { %v2920_v34 = vadd.f32 %v6423_v8, %v2879_v62  ;;  %v6426_v1 = vadd.f32 %v6425_v51, %v6424_v63  ;;  %v7545_v62 = vld [vmem:[#allocation25 + $0x18] sm:$0xff]   ;;  %v7546_v8 = vld [vmem:[#allocation25 + $0x20] sm:$0xff]   ;;  %v7547_v63 = vld [vmem:[#allocation25 + $0x28] sm:$0xff]  }
 0xf93   :  { %v7548_v51 = vld [vmem:[#allocation25 + $0x30] sm:$0xff]  }
 0xf94   :  { %v2923_v2 = vadd.f32 %v6426_v1, %v2882_v33  ;;  %v8831_v5 = vadd.f32 %v7747_v3, %v2920_v34  ;;  %v7549_v33 = vld [vmem:[#allocation25 + $0x38] sm:$0xff]   ;;  %v7551_v1 = vld [vmem:[#allocation19 + $0x48] sm:$0xff]   ;;  %v7553_v3 = vld [vmem:[#allocation19 + $0x58] sm:$0xff]  }
 0xf95   :  { %v7550_v34 = vld [vmem:[#allocation19 + $0x40] sm:$0xff]  }
 0xf96   :  { %2928 = vadd.xlane.f32.xlu0 %v8831_v5  ;;  %v8834_v9 = vadd.f32 %v7748_v7, %v2923_v2  ;;  %v2934_v42 = vmul.f32 %v8831_v5, %v8831_v5  ;;  %v7552_v2 = vld [vmem:[#allocation19 + $0x50] sm:$0xff]   ;;  %v7555_v7 = vld [vmem:[#allocation19 + $0x68] sm:$0xff]  }
 0xf98   :  { %2930 = vadd.xlane.f32.xlu1 %v8834_v9  ;;  %v2935_v45 = vmul.f32 %v8834_v9, %v8834_v9 }
 0xf9a   :  { %2936 = vadd.xlane.f32.xlu0 %v2934_v42  ;;  %v7557_v42 = vld [vmem:[#allocation19 + $0x78] sm:$0xff]  }
 0xf9c   :  { %2938 = vadd.xlane.f32.xlu1 %v2935_v45  ;;  %v7558_v45 = vld [vmem:[#allocation25 + $0x40] sm:$0xff]  }
 0xfae   :  { %v3193_v13 = vpop.f32.mrb[84].mxu1 }
 0xfaf   :  { %v3194_v14 = vadd.f32 %v6069_v11, %v3193_v13  ;;  %v7003_v15 = vpop.f32.mrb[85].mxu1 }
 0xfb0   :  { %v3196_v16 = vpop.f32.mrb[86].mxu1 }
 0xfb1   :  { %v3314_v18 = vpack.c.bf16 %v3194_v14, %v3194_v14  ;;  %v8900_v22 = vadd.f32 %v6069_v11, %v3196_v16  ;;  %v7004_v23 = vpop.f32.mrb[87].mxu1  ;;  %v8959_v11 = vld [vmem:[#allocation26 + $0x1] ss:$0 sm:$0xff] }
 0xfb3   :  { %7026 = vmatpush3.bf16.xpose.msra.mxu1 %v3314_v18 }
 0xfb4   :  { %7031 = vmatprep.subr.bf16.mxu1 %v8243_v0 }
0x1023   :  { %v2929_v29 = vpop.xlane.xlu0 %2928 }
0x1024   :  { %v2932_v30 = vmul.f32 0.03125, %v2929_v29  ;;  %v7567_v29 = vld [vmem:[#allocation19 + $0x88] sm:$0xff]  }
0x1025   :  { %v2931_v47 = vpop.xlane.xlu1 %2930 }
0x1026   :  { %v2933_v52 = vmul.f32 0.03125, %v2931_v47  ;;  %v2942_v24 = vmul.f32 %v2932_v30, %v2932_v30  ;;  %v2948_v44 = vsub.f32 %v8831_v5, %v2932_v30  ;;  %v7554_v5 = vld [vmem:[#allocation19 + $0x60] sm:$0xff]   ;;  %v7568_v30 = vld [vmem:[#allocation19 + $0x90] sm:$0xff]   ;;  %v7569_v47 = vld [vmem:[#allocation19 + $0x98] sm:$0xff]  }
0x1027   :  { %v2937_v31 = vpop.xlane.xlu0 %2936 }
0x1028   :  { %v2940_v32 = vmul.f32 0.03125, %v2937_v31  ;;  %v2943_v36 = vmul.f32 %v2933_v52, %v2933_v52  ;;  %v2949_v50 = vsub.f32 %v8834_v9, %v2933_v52  ;;  %v7556_v9 = vld [vmem:[#allocation19 + $0x70] sm:$0xff]   ;;  %v7570_v52 = vld [vmem:[#allocation19 + $0xa0] sm:$0xff]   ;;  %v7571_v31 = vld [vmem:[#allocation19 + $0xa8] sm:$0xff]  }
0x1029   :  { %v2939_v35 = vpop.xlane.xlu1 %2938 }
0x102a   :  { %v2944_v37 = vsub.f32 %v2940_v32, %v2942_v24  ;;  %v2941_v38 = vmul.f32 0.03125, %v2939_v35  ;;  %v7572_v24 = vld [vmem:[#allocation19 + $0xb0] sm:$0xff]   ;;  %v7573_v32 = vld [vmem:[#allocation19 + $0xb8] sm:$0xff]   ;;  %v7574_v35 = vld [vmem:[#allocation25 + $0x80] sm:$0xff]  }
0x102c   :  { %v2946_v39 = vmax.f32 %v2944_v37, 0.0  ;;  %v2945_v40 = vsub.f32 %v2941_v38, %v2943_v36  ;;  %v7575_v36 = vld [vmem:[#allocation25 + $0x88] sm:$0xff]   ;;  %v7576_v37 = vld [vmem:[#allocation25 + $0x90] sm:$0xff]   ;;  %v7577_v38 = vld [vmem:[#allocation25 + $0x98] sm:$0xff]  }
0x102e   :  { %v2950_v19 = vadd.f32 1e-05, %v2946_v39  ;;  %v2947_v41 = vmax.f32 %v2945_v40, 0.0  ;;  %v7578_v39 = vld [vmem:[#allocation25 + $0xa0] sm:$0xff]   ;;  %v7579_v40 = vld [vmem:[#allocation25 + $0xa8] sm:$0xff]  }
0x1030   :  { %7702 = vrsqrt.f32 %v2950_v19  ;;  %v2951_v43 = vadd.f32 1e-05, %v2947_v41  ;;  %v7580_v19 = vld [vmem:[#allocation25 + $0xb0] sm:$0xff]   ;;  %v7581_v41 = vld [vmem:[#allocation25 + $0xb8] sm:$0xff]  }
0x1032   :  { %7704 = vrsqrt.f32 %v2951_v43  ;;  %v7582_v43 = vld [vmem:[#allocation19 + $0xc0] sm:$0xff]  }
0x103a   :  { %v7703_v48 = vpop.eup %7702 }
0x103b   :  { %v2954_v53 = vmul.f32 %v7703_v48, %v2948_v44  ;;  %v7583_v44 = vld [vmem:[#allocation19 + $0xc8] sm:$0xff]   ;;  %v7584_v48 = vld [vmem:[#allocation19 + $0xd0] sm:$0xff]  }
0x103c   :  { %v7705_v54 = vpop.eup %7704 }
0x103d   :  { %v2955_v55 = vmul.f32 %v7705_v54, %v2949_v50  ;;  %v2963_v56 = vmul.f32 %v6058_v49, %v2954_v53  ;;  %v7586_v50 = vld [vmem:[#allocation19 + $0xe0] sm:$0xff]   ;;  %v7587_v53 = vld [vmem:[#allocation19 + $0xe8] sm:$0xff]   ;;  %v7588_v54 = vld [vmem:[#allocation19 + $0xf0] sm:$0xff]  }
0x103f   :  { %v2964_v6 = vmul.f32 %v6058_v49, %v2955_v55  ;;  %v8864_v58 = vadd.f32 %v6059_v57, %v2963_v56  ;;  %v7585_v49 = vld [vmem:[#allocation19 + $0xd8] sm:$0xff]   ;;  %v6060_v56 = vld [vmem:[#allocation20] ss:$0 sm:$0xff] }
0x1040   :  { %v7589_v55 = vld [vmem:[#allocation19 + $0xf8] sm:$0xff]  }
0x1041   :  { %v8866_v20 = vadd.f32 %v6059_v57, %v2964_v6 }
0x1043   :  { %v8870_v59 = vpack.c.bf16 %v8866_v20, %v8864_v58 }
0x1045   :  { %6982 = vmatmul.mubr.bf16.vlgmr.msra.gmra.mrb[36].mxu0 %v8870_v59 }
0x1046   :  { %7006 = vmatpush3.bf16.msra.mxu0 %v7542_v21  ;;  %7021 = vmatprep.mubr.msk.bf16.mxu0 %vm8244_vm0, %v8243_v0 }
0x1047   :  { %7007 = vmatprep.subr.bf16.mxu0 %v8243_v0 }
0x104a   :  { %7008 = vmatpush3.bf16.msra.mxu0 %v7543_v60 }
0x104b   :  { %7009 = vmatprep.subr.bf16.mxu0 %v8243_v0 }
0x104e   :  { %7010 = vmatpush3.bf16.msra.mxu0 %v7544_v61 }
0x104f   :  { %7011 = vmatprep.subr.bf16.mxu0 %v8243_v0 }
0x1052   :  { %7012 = vmatpush3.bf16.msra.mxu0 %v7545_v62 }
0x1053   :  { %7013 = vmatprep.subr.bf16.mxu0 %v8243_v0 }
0x1056   :  { %7014 = vmatpush3.bf16.msra.mxu0 %v7546_v8  ;;  %v3315_v8 = vpack.c.bf16 %v8900_v22, %v8900_v22 }
0x1057   :  { %7015 = vmatprep.subr.bf16.mxu0 %v8243_v0 }
0x105a   :  { %7016 = vmatpush3.bf16.msra.mxu0 %v7547_v63 }
0x105b   :  { %7017 = vmatprep.subr.bf16.mxu0 %v8243_v0 }
0x105e   :  { %7018 = vmatpush3.bf16.msra.mxu0 %v7548_v51  ;;  %v6078_v51 = vld [vmem:[#allocation26] ss:$0 sm:$0xff] }
0x105f   :  { %7019 = vmatprep.subr.bf16.mxu0 %v8243_v0 }
0x1062   :  { %7020 = vmatpush3.bf16.msra.mxu0 %v7549_v33 }
0x1063   :  { %7049 = vmatprep.subr.bf16.mxu0 %v8243_v0 }
0x1065   :  { %7022 = vmatmul.mubr.bf16.vlgmr.msra.gmra.mrb[40].mxu0 %v8851_v26 }
0x1066   :  { %7050 = vmatpush3.bf16.msra.mxu0 %v7550_v34  ;;  %7065 = vmatprep.mubr.msk.bf16.mxu0 %vm8244_vm0, %v8243_v0 }
0x1067   :  { %7051 = vmatprep.subr.bf16.mxu0 %v8243_v0 }
0x106a   :  { %7052 = vmatpush3.bf16.msra.mxu0 %v7551_v1 }
0x106b   :  { %7053 = vmatprep.subr.bf16.mxu0 %v8243_v0 }
0x106e   :  { %7054 = vmatpush3.bf16.msra.mxu0 %v7552_v2 }
0x106f   :  { %7055 = vmatprep.subr.bf16.mxu0 %v8243_v0 }
0x1072   :  { %7056 = vmatpush3.bf16.msra.mxu0 %v7553_v3 }
0x1073   :  { %7057 = vmatprep.subr.bf16.mxu0 %v8243_v0 }
0x1076   :  { %7058 = vmatpush3.bf16.msra.mxu0 %v7554_v5 }
0x1077   :  { %7059 = vmatprep.subr.bf16.mxu0 %v8243_v0 }
0x107a   :  { %7060 = vmatpush3.bf16.msra.mxu0 %v7555_v7 }
0x107b   :  { %7061 = vmatprep.subr.bf16.mxu0 %v8243_v0 }
0x107e   :  { %7062 = vmatpush3.bf16.msra.mxu0 %v7556_v9 }
0x107f   :  { %7063 = vmatprep.subr.bf16.mxu0 %v8243_v0 }
0x1082   :  { %7064 = vmatpush3.bf16.msra.mxu0 %v7557_v42 }
0x1083   :  { %7089 = vmatprep.subr.bf16.mxu0 %v8243_v0 }
0x1085   :  { %7066 = vmatmul.mubr.bf16.vlgmr.msra.gmra.mrb[44].mxu0 %v8870_v59 }
0x1086   :  { %7090 = vmatpush3.bf16.msra.mxu0 %v7558_v45  ;;  %7105 = vmatprep.mubr.msk.bf16.mxu0 %vm8244_vm0, %v8243_v0 }
0x1087   :  { %7091 = vmatprep.subr.bf16.mxu0 %v8243_v0 }
0x108a   :  { %7092 = vmatpush3.bf16.msra.mxu0 %v7559_v10 }
0x108b   :  { %7093 = vmatprep.subr.bf16.mxu0 %v8243_v0 }
0x108e   :  { %7094 = vmatpush3.bf16.msra.mxu0 %v7560_v46 }
0x108f   :  { %7095 = vmatprep.subr.bf16.mxu0 %v8243_v0 }
0x1092   :  { %7096 = vmatpush3.bf16.msra.mxu0 %v7561_v12 }
0x1093   :  { %7097 = vmatprep.subr.bf16.mxu0 %v8243_v0 }
0x1096   :  { %7098 = vmatpush3.bf16.msra.mxu0 %v7562_v17 }
0x1097   :  { %7099 = vmatprep.subr.bf16.mxu0 %v8243_v0 }
0x109a   :  { %7100 = vmatpush3.bf16.msra.mxu0 %v7563_v25  ;;  %v8970_v25 = vld [vmem:[#allocation26 + $0x2] ss:$0 sm:$0xff] }
0x109b   :  { %7101 = vmatprep.subr.bf16.mxu0 %v8243_v0 }
0x109e   :  { %7102 = vmatpush3.bf16.msra.mxu0 %v7564_v4 }
0x109f   :  { %7103 = vmatprep.subr.bf16.mxu0 %v8243_v0 }
0x10a2   :  { %7104 = vmatpush3.bf16.msra.mxu0 %v7565_v27 }
0x10a3   :  { %7133 = vmatprep.subr.bf16.mxu0 %v8243_v0 }
0x10a5   :  { %7106 = vmatmul.mubr.bf16.vlgmr.msra.gmra.mrb[48].mxu0 %v8851_v26 }
0x10a6   :  { %7134 = vmatpush3.bf16.msra.mxu0 %v7566_v28  ;;  %7149 = vmatprep.mubr.msk.bf16.mxu0 %vm8244_vm0, %v8243_v0 }
0x10a7   :  { %7135 = vmatprep.subr.bf16.mxu0 %v8243_v0 }
0x10aa   :  { %7136 = vmatpush3.bf16.msra.mxu0 %v7567_v29 }
0x10ab   :  { %7137 = vmatprep.subr.bf16.mxu0 %v8243_v0 }
0x10ae   :  { %7138 = vmatpush3.bf16.msra.mxu0 %v7568_v30 }
0x10af   :  { %7139 = vmatprep.subr.bf16.mxu0 %v8243_v0 }
0x10b2   :  { %7140 = vmatpush3.bf16.msra.mxu0 %v7569_v47 }
0x10b3   :  { %7141 = vmatprep.subr.bf16.mxu0 %v8243_v0 }
0x10b6   :  { %7142 = vmatpush3.bf16.msra.mxu0 %v7570_v52 }
0x10b7   :  { %7143 = vmatprep.subr.bf16.mxu0 %v8243_v0 }
0x10ba   :  { %7144 = vmatpush3.bf16.msra.mxu0 %v7571_v31 }
0x10bb   :  { %7145 = vmatprep.subr.bf16.mxu0 %v8243_v0 }
0x10be   :  { %7146 = vmatpush3.bf16.msra.mxu0 %v7572_v24 }
0x10bf   :  { %7147 = vmatprep.subr.bf16.mxu0 %v8243_v0 }
0x10c2   :  { %7148 = vmatpush3.bf16.msra.mxu0 %v7573_v32  ;;  %v8982_v32 = vld [vmem:[%s9235_s10] sm:$0xff] }
0x10c3   :  { %7173 = vmatprep.subr.bf16.mxu0 %v8243_v0 }
0x10c5   :  { %7150 = vmatmul.mubr.bf16.vlgmr.msra.gmra.mrb[52].mxu0 %v8870_v59 }
0x10c6   :  { %7174 = vmatpush3.bf16.msra.mxu0 %v7574_v35  ;;  %7189 = vmatprep.mubr.msk.bf16.mxu0 %vm8244_vm0, %v8243_v0 }
0x10c7   :  { %7175 = vmatprep.subr.bf16.mxu0 %v8243_v0 }
0x10ca   :  { %7176 = vmatpush3.bf16.msra.mxu0 %v7575_v36 }
0x10cb   :  { %7177 = vmatprep.subr.bf16.mxu0 %v8243_v0 }
0x10ce   :  { %7178 = vmatpush3.bf16.msra.mxu0 %v7576_v37 }
0x10cf   :  { %7179 = vmatprep.subr.bf16.mxu0 %v8243_v0 }
0x10d2   :  { %7180 = vmatpush3.bf16.msra.mxu0 %v7577_v38 }
0x10d3   :  { %7181 = vmatprep.subr.bf16.mxu0 %v8243_v0 }
0x10d6   :  { %7182 = vmatpush3.bf16.msra.mxu0 %v7578_v39 }
0x10d7   :  { %7183 = vmatprep.subr.bf16.mxu0 %v8243_v0 }
0x10da   :  { %7184 = vmatpush3.bf16.msra.mxu0 %v7579_v40 }
0x10db   :  { %7185 = vmatprep.subr.bf16.mxu0 %v8243_v0 }
0x10de   :  { %7186 = vmatpush3.bf16.msra.mxu0 %v7580_v19 }
0x10df   :  { %7187 = vmatprep.subr.bf16.mxu0 %v8243_v0 }
0x10e2   :  { %7188 = vmatpush3.bf16.msra.mxu0 %v7581_v41 }
0x10e3   :  { %7217 = vmatprep.subr.bf16.mxu0 %v8243_v0 }
0x10e5   :  { %7190 = vmatmul.mubr.bf16.vlgmr.msra.gmra.mrb[56].mxu0 %v8851_v26 }
0x10e6   :  { %7218 = vmatpush3.bf16.msra.mxu0 %v7582_v43  ;;  %7233 = vmatprep.mubr.msk.bf16.mxu0 %vm8244_vm0, %v8243_v0 }
0x10e7   :  { %7219 = vmatprep.subr.bf16.mxu0 %v8243_v0 }
0x10ea   :  { %7220 = vmatpush3.bf16.msra.mxu0 %v7583_v44 }
0x10eb   :  { %7221 = vmatprep.subr.bf16.mxu0 %v8243_v0 }
0x10ee   :  { %7222 = vmatpush3.bf16.msra.mxu0 %v7584_v48 }
0x10ef   :  { %7223 = vmatprep.subr.bf16.mxu0 %v8243_v0 }
0x10f2   :  { %7224 = vmatpush3.bf16.msra.mxu0 %v7585_v49 }
0x10f3   :  { %7225 = vmatprep.subr.bf16.mxu0 %v8243_v0 }
0x10f6   :  { %7226 = vmatpush3.bf16.msra.mxu0 %v7586_v50 }
0x10f7   :  { %7227 = vmatprep.subr.bf16.mxu0 %v8243_v0 }
0x10fa   :  { %7228 = vmatpush3.bf16.msra.mxu0 %v7587_v53 }
0x10fb   :  { %7229 = vmatprep.subr.bf16.mxu0 %v8243_v0 }
0x10fe   :  { %7230 = vmatpush3.bf16.msra.mxu0 %v7588_v54 }
0x10ff   :  { %7231 = vmatprep.subr.bf16.mxu0 %v8243_v0 }
0x1102   :  { %7232 = vmatpush3.bf16.msra.mxu0 %v7589_v55 }
0x1103   :  { %7257 = vmatprep.subr.bf16.mxu0 %v8243_v0 }
0x1105   :  { %7234 = vmatmul.mubr.bf16.vlgmr.msra.gmra.mrb[60].mxu0 %v8870_v59 }
0x1106   :  { %7273 = vmatprep.mubr.msk.bf16.mxu0 %vm8244_vm0, %v8243_v0 }
0x1118   :  { %v3081_v57 = vpop.f32.mrb[36].mxu0 }
0x1119   :  { %v3082_v6 = vadd.f32 %v6060_v56, %v3081_v57  ;;  %v6983_v21 = vpop.f32.mrb[37].mxu0 }
0x111a   :  { %v3084_v60 = vpop.f32.mrb[38].mxu0 }
0x111b   :  { %v3312_v61 = vpack.c.bf16 %v3082_v6, %v3082_v6  ;;  %v6984_v62 = vpop.f32.mrb[39].mxu0  ;;  %v3085_v63 = vadd.f32 %v6060_v56, %v3084_v60 }
0x111d   :  { %7028 = vmatmul.mubr.bf16.vlgmr.msra.gmra.mrb[88].mxu1 %v3312_v61  ;;  %v3313_v59 = vpack.c.bf16 %v3085_v63, %v3085_v63 }
0x111e   :  { %7032 = vmatpush3.bf16.xpose.msra.mxu1 %v3315_v8  ;;  %7033 = vmatprep.mubr.msk.bf16.mxu1 %vm8244_vm0, %v8243_v0 }
0x111f   :  { %7037 = vmatprep.subr.bf16.mxu1 %v8243_v0 }
0x1125   :  { %7034 = vmatmul.mubr.bf16.vlgmr.msra.gmra.mrb[92].mxu1 %v3313_v59 }
0x1126   :  { %7039 = vmatprep.mubr.msk.bf16.mxu1 %vm8244_vm0, %v8243_v0 }
0x1138   :  { %v3305_v33 = vpop.f32.mrb[40].mxu0 }
0x1139   :  { %v3306_v34 = vadd.f32 %v6078_v51, %v3305_v33  ;;  %v7023_v1 = vpop.f32.mrb[41].mxu0 }
0x113a   :  { %v3308_v2 = vpop.f32.mrb[42].mxu0 }
0x113b   :  { %v3420_v3 = vpack.c.bf16 %v3306_v34, %v3306_v34  ;;  %v8951_v5 = vadd.f32 %v6078_v51, %v3308_v2  ;;  %v7024_v7 = vpop.f32.mrb[43].mxu0 }
0x113d   :  { %v3426_v9 = vsel %vm827_vm2, %v3420_v3, 0  ;;  %v3421_v59 = vpack.c.bf16 %v8951_v5, %v8951_v5  ;;  %v7590_v3 = vld [vmem:[#allocation22 + $0x40] sm:$0xff]   ;;  %v7591_v5 = vld [vmem:[#allocation22 + $0x48] sm:$0xff]  }
0x113e   :  { %7038 = vmatpush3.bf16.msra.mxu1 %v3426_v9  ;;  %v7592_v9 = vld [vmem:[#allocation22 + $0x50] sm:$0xff]  }
0x113f   :  { %7043 = vmatprep.subr.bf16.mxu1 %v8243_v0  ;;  %v3472_v34 = vsel %vm827_vm2, %v3421_v59, 0 }
0x1158   :  { %v8955_v42 = vpop.f32.mrb[44].mxu0 }
0x1159   :  { %v7067_v45 = vpop.f32.mrb[45].mxu0 }
0x115a   :  { %v8957_v10 = vpop.f32.mrb[46].mxu0  ;;  %v7593_v45 = vld [vmem:[#allocation22 + $0x58] sm:$0xff]  }
0x115b   :  { %v7068_v46 = vpop.f32.mrb[47].mxu0 }
0x115c   :  { %v7594_v46 = vld [vmem:[#allocation22 + $0x60] sm:$0xff]  }
0x1178   :  { %v8961_v12 = vpop.f32.mrb[48].mxu0 }
0x1179   :  { %v7107_v13 = vpop.f32.mrb[49].mxu0 }
0x117a   :  { %v3854_v14 = vpop.f32.mrb[50].mxu0  ;;  %v7595_v13 = vld [vmem:[#allocation22 + $0x68] sm:$0xff]  }
0x117b   :  { %v8964_v15 = vadd.f32 %v8959_v11, %v3854_v14  ;;  %v7108_v16 = vpop.f32.mrb[51].mxu0  ;;  %v7596_v14 = vld [vmem:[#allocation22 + $0x70] sm:$0xff]  }
0x117c   :  { %v7597_v16 = vld [vmem:[#allocation22 + $0x78] sm:$0xff]  }
0x1198   :  { %v8966_v17 = vpop.f32.mrb[52].mxu0 }
0x1199   :  { %v7151_v18 = vpop.f32.mrb[53].mxu0 }
0x119a   :  { %v8968_v22 = vpop.f32.mrb[54].mxu0 }
0x119b   :  { %v7152_v23 = vpop.f32.mrb[55].mxu0 }
0x11b8   :  { %v8972_v4 = vpop.f32.mrb[56].mxu0 }
0x11b9   :  { %v7191_v27 = vpop.f32.mrb[57].mxu0 }
0x11ba   :  { %v4400_v28 = vpop.f32.mrb[58].mxu0 }
0x11bb   :  { %v8975_v29 = vadd.f32 %v8970_v25, %v4400_v28  ;;  %v7192_v30 = vpop.f32.mrb[59].mxu0 }
0x11d8   :  { %v8977_v47 = vpop.f32.mrb[60].mxu0 }
0x11d9   :  { %v7235_v52 = vpop.f32.mrb[61].mxu0 }
0x11da   :  { %v8979_v31 = vpop.f32.mrb[62].mxu0 }
0x11db   :  { %v7236_v24 = vpop.f32.mrb[63].mxu0 }
0x11f0   :  { %v3350_v35 = vpop.f32.mrb[88].mxu1 }
0x11f1   :  { %v3351_v36 = vadd.f32 %v3350_v35, %v8982_v32  ;;  %v7029_v37 = vpop.f32.mrb[89].mxu1 }
0x11f2   :  { %v3353_v38 = vpop.f32.mrb[90].mxu1  ;;  %v6098_v37 = vld [vmem:[#allocation23 + $0x1] ss:$0 sm:$0xff] }
0x11f3   :  { %v7030_v39 = vpop.f32.mrb[91].mxu1  ;;  %v3396_v40 = vsel %vm797_vm1, %v3351_v36, -inf }
0x11f4   :  { %3397 = vmax.xlane.f32.xlu0 %v3396_v40 }
0x11f8   :  { %v3390_v19 = vpop.f32.mrb[92].mxu1 }
0x11f9   :  { %v3391_v41 = vadd.f32 %v3390_v19, %v8982_v32  ;;  %v7035_v43 = vpop.f32.mrb[93].mxu1 }
0x11fa   :  { %v3393_v44 = vpop.f32.mrb[94].mxu1 }
0x11fb   :  { %v7036_v48 = vpop.f32.mrb[95].mxu1  ;;  %v3399_v49 = vsel %vm797_vm1, %v3391_v41, -inf }
0x11fc   :  { %3400 = vmax.xlane.f32.xlu1 %v3399_v49 }
0x1281   :  { %v3398_v50 = vpop.xlane.xlu0 %3397 }
0x1282   :  { %v3402_v53 = vsub.f32 %v3351_v36, %v3398_v50 }
0x1284   :  { %v3404_v54 = vmul.f32 1.442695, %v3402_v53  ;;  %v3852_v53 = vadd.f32 %v8959_v11, %v8961_v12 }
0x1286   :  { %7706 = vpow2.f32 %v3404_v54 }
0x1289   :  { %v3401_v55 = vpop.xlane.xlu1 %3400 }
0x128a   :  { %v3403_v56 = vsub.f32 %v3391_v41, %v3401_v55  ;;  %v6089_v41 = vld [vmem:[#allocation20 + $0x1] ss:$0 sm:$0xff] }
0x128b   :  { %v3624_v48 = vadd.f32 %v6089_v41, %v8955_v42  ;;  %v3627_v55 = vadd.f32 %v6089_v41, %v8957_v10  ;;  %v7620_v41 = vld [vmem:[#allocation28 + $0x58] sm:$0xff]  }
0x128c   :  { %v3406_v57 = vmul.f32 1.442695, %v3403_v56  ;;  %v3966_v56 = vpack.c.bf16 %v3852_v53, %v3852_v53 }
0x128d   :  { %v3858_v50 = vpack.c.bf16 %v3624_v48, %v3624_v48  ;;  %v7623_v48 = vld [vmem:[#allocation28 + $0x20] sm:$0xff]  }
0x128e   :  { %7708 = vpow2.f32 %v3406_v57  ;;  %v3859_v57 = vpack.c.bf16 %v3627_v55, %v3627_v55  ;;  %v3972_v42 = vsel %vm827_vm2, %v3966_v56, 0 }
0x1290   :  { %v7707_v6 = vpop.eup %7706 }
0x1291   :  { %v3408_v21 = vsel %vm797_vm1, %v7707_v6, 0.0 }
0x1292   :  { %3409 = vadd.xlane.f32.xlu0 %v3408_v21 }
0x1298   :  { %v7709_v60 = vpop.eup %7708 }
0x1299   :  { %v3411_v61 = vsel %vm797_vm1, %v7709_v60, 0.0 }
0x129a   :  { %3412 = vadd.xlane.f32.xlu1 %v3411_v61 }
0x131f   :  { %v3410_v62 = vpop.xlane.xlu0 %3409 }
0x1320   :  { %7710 = vrcp.f32 %v3410_v62 }
0x1327   :  { %v3413_v8 = vpop.xlane.xlu1 %3412 }
0x1328   :  { %7712 = vrcp.f32 %v3413_v8 }
0x132a   :  { %v7711_v63 = vpop.eup %7710 }
0x132b   :  { %v3416_v51 = vmul.f32 %v7711_v63, %v7707_v6 }
0x132d   :  { %v3418_v33 = vpack.c.bf16 %v3416_v51, %v3416_v51 }
0x132f   :  { %7040 = vmatmul.mubr.msk.bf16.vlgmr.msra.gmra.mrb[96].mxu1 %vm797_vm1, %v3418_v33 }
0x1330   :  { %7044 = vmatpush3.bf16.msra.mxu1 %v3472_v34  ;;  %7045 = vmatprep.mubr.msk.bf16.mxu1 %vm8244_vm0, %v8243_v0 }
0x1331   :  { %7069 = vmatprep.subr.bf16.mxu1 %v8243_v0 }
0x1332   :  { %v7713_v1 = vpop.eup %7712 }
0x1333   :  { %v3417_v2 = vmul.f32 %v7713_v1, %v7709_v60 }
0x1335   :  { %v3419_v7 = vpack.c.bf16 %v3417_v2, %v3417_v2 }
0x1337   :  { %7046 = vmatmul.mubr.msk.bf16.vlgmr.msra.gmra.mrb[100].mxu1 %vm797_vm1, %v3419_v7 }
0x1338   :  { %7070 = vmatpush3.bf16.msra.mxu1 %v7590_v3  ;;  %7085 = vmatprep.mubr.msk.bf16.mxu1 %vm8244_vm0, %v8243_v0 }
0x1339   :  { %7071 = vmatprep.subr.bf16.mxu1 %v8243_v0 }
0x133c   :  { %7072 = vmatpush3.bf16.msra.mxu1 %v7591_v5 }
0x133d   :  { %7073 = vmatprep.subr.bf16.mxu1 %v8243_v0 }
0x1340   :  { %7074 = vmatpush3.bf16.msra.mxu1 %v7592_v9 }
0x1341   :  { %7075 = vmatprep.subr.bf16.mxu1 %v8243_v0 }
0x1344   :  { %7076 = vmatpush3.bf16.msra.mxu1 %v7593_v45 }
0x1345   :  { %7077 = vmatprep.subr.bf16.mxu1 %v8243_v0 }
0x1348   :  { %7078 = vmatpush3.bf16.msra.mxu1 %v7594_v46 }
0x1349   :  { %7079 = vmatprep.subr.bf16.mxu1 %v8243_v0 }
0x134c   :  { %7080 = vmatpush3.bf16.msra.mxu1 %v7595_v13  ;;  %v7606_v13 = vld [vmem:[#allocation25 + $0xc0] sm:$0xff]  }
0x134d   :  { %7081 = vmatprep.subr.bf16.mxu1 %v8243_v0  ;;  %7258 = vmatpush3.bf16.msra.mxu0 %v7606_v13 }
0x134e   :  { %7259 = vmatprep.subr.bf16.mxu0 %v8243_v0 }
0x1350   :  { %7082 = vmatpush3.bf16.msra.mxu1 %v7596_v14  ;;  %v7607_v14 = vld [vmem:[#allocation25 + $0xc8] sm:$0xff]  }
0x1351   :  { %7083 = vmatprep.subr.bf16.mxu1 %v8243_v0  ;;  %7260 = vmatpush3.bf16.msra.mxu0 %v7607_v14 }
0x1352   :  { %7261 = vmatprep.subr.bf16.mxu0 %v8243_v0 }
0x1354   :  { %7084 = vmatpush3.bf16.msra.mxu1 %v7597_v16  ;;  %v7608_v16 = vld [vmem:[#allocation25 + $0xd0] sm:$0xff]  }
0x1355   :  { %7109 = vmatprep.subr.bf16.mxu1 %v8243_v0  ;;  %7262 = vmatpush3.bf16.msra.mxu0 %v7608_v16 }
0x1356   :  { %7263 = vmatprep.subr.bf16.mxu0 %v8243_v0 }
0x1357   :  { %7086 = vmatmul.mubr.bf16.vlgmr.msra.gmra.mrb[104].mxu1 %v8851_v26 }
0x1358   :  { %7111 = vmatprep.mubr.msk.bf16.mxu1 %vm8244_vm0, %v8243_v0 }
0x1402   :  { %v9011_v18 = vpop.f32.mrb[96].mxu1 }
0x1403   :  { %v7041_v23 = vpop.f32.mrb[97].mxu1 }
0x1404   :  { %v3465_v27 = vpop.f32.mrb[98].mxu1  ;;  %v7609_v23 = vld [vmem:[#allocation25 + $0xd8] sm:$0xff]  }
0x1405   :  { %v7042_v28 = vpop.f32.mrb[99].mxu1  ;;  %7264 = vmatpush3.bf16.msra.mxu0 %v7609_v23  ;;  %v7610_v27 = vld [vmem:[#allocation25 + $0xe0] sm:$0xff]  }
0x1406   :  { %7265 = vmatprep.subr.bf16.mxu0 %v8243_v0  ;;  %v7611_v28 = vld [vmem:[#allocation25 + $0xe8] sm:$0xff]  }
0x1409   :  { %7266 = vmatpush3.bf16.msra.mxu0 %v7610_v27 }
0x140a   :  { %v9013_v30 = vpop.f32.mrb[100].mxu1  ;;  %7267 = vmatprep.subr.bf16.mxu0 %v8243_v0 }
0x140b   :  { %v6239_v52 = vpack.c.bf16 %v9013_v30, %v9011_v18  ;;  %v7047_v24 = vpop.f32.mrb[101].mxu1  ;;  %v4398_v18 = vadd.f32 %v8970_v25, %v8972_v4 }
0x140c   :  { %v3511_v35 = vpop.f32.mrb[102].mxu1  ;;  %v7612_v24 = vld [vmem:[#allocation25 + $0xf0] sm:$0xff]  }
0x140d   :  { %v7048_v36 = vpop.f32.mrb[103].mxu1  ;;  %7268 = vmatpush3.bf16.msra.mxu0 %v7611_v28  ;;  %v7613_v35 = vld [vmem:[#allocation25 + $0xf8] sm:$0xff]  }
0x140e   :  { %7269 = vmatprep.subr.bf16.mxu0 %v8243_v0  ;;  %v7614_v36 = vld [vmem:[#allocation28 + $0x40] sm:$0xff]  }
0x1411   :  { %7270 = vmatpush3.bf16.msra.mxu0 %v7612_v24 }
0x1412   :  { %7271 = vmatprep.subr.bf16.mxu0 %v8243_v0 }
0x1415   :  { %7272 = vmatpush3.bf16.msra.mxu0 %v7613_v35 }
0x1416   :  { %6567 = vmatprep.subr.bf16.mxu0 %v7614_v36  ;;  %v6127_v36 = vld [vmem:[#allocation23 + $0x2] ss:$0 sm:$0xff] }
0x1418   :  { %7274 = vmatmul.mubr.bf16.vlgmr.msra.gmra.mrb[64].mxu0 %v8851_v26 }
0x142a   :  { %v3737_v38 = vpop.f32.mrb[104].mxu1 }
0x142b   :  { %v3738_v39 = vadd.f32 %v6098_v37, %v3737_v38  ;;  %v7087_v40 = vpop.f32.mrb[105].mxu1  ;;  %v7616_v38 = vld [vmem:[#allocation28 + $0x48] sm:$0xff]  }
0x142c   :  { %v3740_v19 = vpop.f32.mrb[106].mxu1  ;;  %v7618_v40 = vld [vmem:[#allocation28 + $0x50] sm:$0xff]  }
0x142d   :  { %v3860_v43 = vpack.c.bf16 %v3738_v39, %v3738_v39  ;;  %v7088_v44 = vpop.f32.mrb[107].mxu1  ;;  %v3741_v49 = vadd.f32 %v6098_v37, %v3740_v19  ;;  %v7615_v37 = vld [vmem:[#allocation28] sm:$0xff]   ;;  %v7617_v39 = vld [vmem:[#allocation28 + $0x8] sm:$0xff]   ;;  %v7619_v19 = vld [vmem:[#allocation28 + $0x10] sm:$0xff]  }
0x142e   :  { %6568 = vmatpush3.bf16.msra.mxu0 %v7615_v37  ;;  %v7622_v44 = vld [vmem:[#allocation28 + $0x60] sm:$0xff]  }
0x142f   :  { %7110 = vmatpush3.bf16.xpose.msra.mxu1 %v3860_v43  ;;  %v3861_v54 = vpack.c.bf16 %v3741_v49, %v3741_v49  ;;  %6569 = vmatprep.subr.bf16.mxu0 %v7616_v38  ;;  %v7621_v43 = vld [vmem:[#allocation28 + $0x18] sm:$0xff]  }
0x1430   :  { %7115 = vmatprep.subr.bf16.mxu1 %v8243_v0 }
0x1432   :  { %6570 = vmatpush3.bf16.msra.mxu0 %v7617_v39 }
0x1433   :  { %6571 = vmatprep.subr.bf16.mxu0 %v7618_v40 }
0x1436   :  { %7112 = vmatmul.mubr.bf16.vlgmr.msra.gmra.mrb[108].mxu1 %v3858_v50  ;;  %6572 = vmatpush3.bf16.msra.mxu0 %v7619_v19  ;;  %v6118_v19 = vld [vmem:[#allocation20 + $0x2] ss:$0 sm:$0xff] }
0x1437   :  { %7116 = vmatpush3.bf16.xpose.msra.mxu1 %v3861_v54  ;;  %7117 = vmatprep.mubr.msk.bf16.mxu1 %vm8244_vm0, %v8243_v0  ;;  %v3967_v54 = vpack.c.bf16 %v8964_v15, %v8964_v15  ;;  %v7599_v15 = vld [vmem:[#allocation22 + $0x88] sm:$0xff]  }
0x1438   :  { %7121 = vmatprep.subr.bf16.mxu1 %v8243_v0  ;;  %6573 = vmatprep.subr.bf16.mxu0 %v7620_v41 }
0x143a   :  { %6574 = vmatpush3.bf16.msra.mxu0 %v7621_v43 }
0x143b   :  { %6575 = vmatprep.subr.bf16.mxu0 %v7622_v44  ;;  %v4170_v44 = vadd.f32 %v6118_v19, %v8966_v17 }
0x143e   :  { %7118 = vmatmul.mubr.bf16.vlgmr.msra.gmra.mrb[112].mxu1 %v3859_v57  ;;  %6576 = vmatpush3.bf16.msra.mxu0 %v7623_v48  ;;  %v4018_v57 = vsel %vm827_vm2, %v3967_v54, 0 }
0x143f   :  { %7122 = vmatpush3.bf16.msra.mxu1 %v3972_v42  ;;  %7123 = vmatprep.mubr.msk.bf16.mxu1 %vm8244_vm0, %v8243_v0 }
0x1440   :  { %7127 = vmatprep.subr.bf16.mxu1 %v8243_v0 }
0x1509   :  { %v3896_v11 = vpop.f32.mrb[108].mxu1 }
0x150a   :  { %v3897_v12 = vadd.f32 %v3896_v11, %v8982_v32  ;;  %v7113_v6 = vpop.f32.mrb[109].mxu1 }
0x150b   :  { %v3899_v21 = vpop.f32.mrb[110].mxu1 }
0x150c   :  { %v7114_v60 = vpop.f32.mrb[111].mxu1  ;;  %v3942_v10 = vsel %vm797_vm1, %v3897_v12, -inf  ;;  %v7600_v21 = vld [vmem:[#allocation22 + $0x90] sm:$0xff]  }
0x150d   :  { %3943 = vmax.xlane.f32.xlu0 %v3942_v10  ;;  %v7601_v60 = vld [vmem:[#allocation22 + $0x98] sm:$0xff]   ;;  %v7602_v10 = vld [vmem:[#allocation22 + $0xa0] sm:$0xff]  }
0x1511   :  { %v3936_v61 = vpop.f32.mrb[112].mxu1 }
0x1512   :  { %v3937_v62 = vadd.f32 %v3936_v61, %v8982_v32  ;;  %v7119_v8 = vpop.f32.mrb[113].mxu1  ;;  %v7603_v61 = vld [vmem:[#allocation22 + $0xa8] sm:$0xff]  }
0x1513   :  { %v3939_v63 = vpop.f32.mrb[114].mxu1  ;;  %v7605_v8 = vld [vmem:[#allocation22 + $0xb8] sm:$0xff]  }
0x1514   :  { %v7120_v59 = vpop.f32.mrb[115].mxu1  ;;  %v3945_v51 = vsel %vm797_vm1, %v3937_v62, -inf  ;;  %v7624_v63 = vld [vmem:[#allocation28 + $0x68] sm:$0xff]  }
0x1515   :  { %3946 = vmax.xlane.f32.xlu1 %v3945_v51  ;;  %v7625_v59 = vld [vmem:[#allocation28 + $0x28] sm:$0xff]   ;;  %6577 = vmatprep.subr.bf16.mxu0 %v7624_v63  ;;  %v7626_v51 = vld [vmem:[#allocation28 + $0x70] sm:$0xff]  }
0x1516   :  { %6578 = vmatpush3.bf16.msra.mxu0 %v7625_v59 }
0x1517   :  { %6579 = vmatprep.subr.bf16.mxu0 %v7626_v51 }
0x159a   :  { %v3944_v33 = vpop.xlane.xlu0 %3943 }
0x159b   :  { %v3948_v34 = vsub.f32 %v3897_v12, %v3944_v33  ;;  %v7598_v12 = vld [vmem:[#allocation22 + $0x80] sm:$0xff]   ;;  %v7627_v33 = vld [vmem:[#allocation28 + $0x30] sm:$0xff]  }
0x159c   :  { %6580 = vmatpush3.bf16.msra.mxu0 %v7627_v33 }
0x159d   :  { %v3950_v1 = vmul.f32 1.442695, %v3948_v34  ;;  %v7628_v34 = vld [vmem:[#allocation28 + $0x78] sm:$0xff]  }
0x159e   :  { %6581 = vmatprep.subr.bf16.mxu0 %v7628_v34 }
0x159f   :  { %7714 = vpow2.f32 %v3950_v1  ;;  %v7629_v1 = vld [vmem:[#allocation28 + $0x38] sm:$0xff]  }
0x15a0   :  { %6582 = vmatpush3.bf16.msra.mxu0 %v7629_v1 }
0x15a1   :  { %7301 = vmatprep.subr.bf16.mxu0 %v8243_v0 }
0x15a2   :  { %v3947_v2 = vpop.xlane.xlu1 %3946 }
0x15a3   :  { %v3949_v3 = vsub.f32 %v3937_v62, %v3947_v2  ;;  %v7604_v62 = vld [vmem:[#allocation22 + $0xb0] sm:$0xff]   ;;  %v9065_v2 = vld [vmem:[#allocation26 + $0x3] ss:$0 sm:$0xff] }
0x15a5   :  { %v3952_v7 = vmul.f32 1.442695, %v3949_v3  ;;  %v9067_v3 = vpop.f32.mrb[64].mxu0 }
0x15a7   :  { %7716 = vpow2.f32 %v3952_v7  ;;  %v7275_v7 = vpop.f32.mrb[65].mxu0 }
0x15a9   :  { %v7715_v5 = vpop.eup %7714 }
0x15aa   :  { %v3954_v9 = vsel %vm797_vm1, %v7715_v5, 0.0 }
0x15ab   :  { %3955 = vadd.xlane.f32.xlu0 %v3954_v9 }
0x15b1   :  { %v7717_v45 = vpop.eup %7716 }
0x15b2   :  { %v3957_v46 = vsel %vm797_vm1, %v7717_v45, 0.0 }
0x15b3   :  { %3958 = vadd.xlane.f32.xlu1 %v3957_v46 }
0x1638   :  { %v3956_v49 = vpop.xlane.xlu0 %3955 }
0x1639   :  { %7718 = vrcp.f32 %v3956_v49  ;;  %v4404_v49 = vpack.c.bf16 %v4170_v44, %v4170_v44  ;;  %v7637_v44 = vld [vmem:[#allocation22 + $0xf8] sm:$0xff]  }
0x1640   :  { %v3959_v50 = vpop.xlane.xlu1 %3958 }
0x1641   :  { %7720 = vrcp.f32 %v3959_v50  ;;  %v4512_v50 = vpack.c.bf16 %v4398_v18, %v4398_v18 }
0x1643   :  { %v7719_v53 = vpop.eup %7718  ;;  %v4518_v17 = vsel %vm827_vm2, %v4512_v50, 0 }
0x1644   :  { %v3962_v55 = vmul.f32 %v7719_v53, %v7715_v5  ;;  %v4946_v5 = vpop.f32.mrb[66].mxu0 }
0x1645   :  { %v9070_v9 = vadd.f32 %v9065_v2, %v4946_v5 }
0x1646   :  { %v3964_v56 = vpack.c.bf16 %v3962_v55, %v3962_v55 }
0x1648   :  { %7124 = vmatmul.mubr.msk.bf16.vlgmr.msra.gmra.mrb[116].mxu1 %vm797_vm1, %v3964_v56 }
0x1649   :  { %7128 = vmatpush3.bf16.msra.mxu1 %v4018_v57  ;;  %7129 = vmatprep.mubr.msk.bf16.mxu1 %vm8244_vm0, %v8243_v0 }
0x164a   :  { %7153 = vmatprep.subr.bf16.mxu1 %v8243_v0 }
0x164b   :  { %v7721_v42 = vpop.eup %7720 }
0x164c   :  { %v3963_v11 = vmul.f32 %v7721_v42, %v7717_v45  ;;  %v7276_v45 = vpop.f32.mrb[67].mxu0 }
0x164e   :  { %v3965_v6 = vpack.c.bf16 %v3963_v11, %v3963_v11 }
0x1650   :  { %7130 = vmatmul.mubr.msk.bf16.vlgmr.msra.gmra.mrb[120].mxu1 %vm797_vm1, %v3965_v6 }
0x1651   :  { %7154 = vmatpush3.bf16.msra.mxu1 %v7598_v12  ;;  %7169 = vmatprep.mubr.msk.bf16.mxu1 %vm8244_vm0, %v8243_v0 }
0x1652   :  { %7155 = vmatprep.subr.bf16.mxu1 %v8243_v0 }
0x1655   :  { %7156 = vmatpush3.bf16.msra.mxu1 %v7599_v15 }
0x1656   :  { %7157 = vmatprep.subr.bf16.mxu1 %v8243_v0 }
0x1659   :  { %7158 = vmatpush3.bf16.msra.mxu1 %v7600_v21 }
0x165a   :  { %7159 = vmatprep.subr.bf16.mxu1 %v8243_v0 }
0x165d   :  { %7160 = vmatpush3.bf16.msra.mxu1 %v7601_v60 }
0x165e   :  { %7161 = vmatprep.subr.bf16.mxu1 %v8243_v0 }
0x1661   :  { %7162 = vmatpush3.bf16.msra.mxu1 %v7602_v10 }
0x1662   :  { %7163 = vmatprep.subr.bf16.mxu1 %v8243_v0 }
0x1665   :  { %7164 = vmatpush3.bf16.msra.mxu1 %v7603_v61 }
0x1666   :  { %7165 = vmatprep.subr.bf16.mxu1 %v8243_v0 }
0x1669   :  { %7166 = vmatpush3.bf16.msra.mxu1 %v7604_v62 }
0x166a   :  { %7167 = vmatprep.subr.bf16.mxu1 %v8243_v0 }
0x166d   :  { %7168 = vmatpush3.bf16.msra.mxu1 %v7605_v8 }
0x166e   :  { %7193 = vmatprep.subr.bf16.mxu1 %v8243_v0 }
0x1670   :  { %7170 = vmatmul.mubr.bf16.vlgmr.msra.gmra.mrb[124].mxu1 %v8851_v26 }
0x1671   :  { %7195 = vmatprep.mubr.msk.bf16.mxu1 %vm8244_vm0, %v8243_v0 }
0x171b   :  { %v4008_v46 = vpop.f32.mrb[116].mxu1 }
0x171c   :  { %v7125_v13 = vpop.f32.mrb[117].mxu1 }
0x171d   :  { %v4011_v14 = vpop.f32.mrb[118].mxu1 }
0x171e   :  { %v7126_v16 = vpop.f32.mrb[119].mxu1 }
0x1723   :  { %v4054_v23 = vpop.f32.mrb[120].mxu1 }
0x1724   :  { %v6240_v27 = vpack.c.bf16 %v4054_v23, %v4008_v46  ;;  %v7131_v28 = vpop.f32.mrb[121].mxu1  ;;  %v4513_v23 = vpack.c.bf16 %v8975_v29, %v8975_v29  ;;  %v7631_v29 = vld [vmem:[#allocation22 + $0xc8] sm:$0xff]  }
0x1725   :  { %v4057_v24 = vpop.f32.mrb[122].mxu1 }
0x1726   :  { %v7132_v35 = vpop.f32.mrb[123].mxu1  ;;  %5473 = vmatprep.mubr.bf16.mxu0 %v6240_v27  ;;  %v4564_v24 = vsel %vm827_vm2, %v4513_v23, 0 }
0x1727   :  { %5474 = vmatmul.mubr.bf16.vlgmr.msra.gmra.mrb[68].mxu0 %v6239_v52  ;;  %v4173_v52 = vadd.f32 %v6118_v19, %v8968_v22  ;;  %v7634_v19 = vld [vmem:[#allocation22 + $0xe0] sm:$0xff]  }
0x1728   :  { %7317 = vmatprep.mubr.msk.bf16.mxu0 %vm8244_vm0, %v8243_v0 }
0x1729   :  { %v4405_v53 = vpack.c.bf16 %v4173_v52, %v4173_v52 }
0x1743   :  { %v4283_v37 = vpop.f32.mrb[124].mxu1 }
0x1744   :  { %v4284_v38 = vadd.f32 %v6127_v36, %v4283_v37  ;;  %v7171_v39 = vpop.f32.mrb[125].mxu1  ;;  %v7630_v37 = vld [vmem:[#allocation22 + $0xc0] sm:$0xff]  }
0x1745   :  { %v4286_v40 = vpop.f32.mrb[126].mxu1  ;;  %v7632_v39 = vld [vmem:[#allocation22 + $0xd0] sm:$0xff]  }
0x1746   :  { %v4406_v41 = vpack.c.bf16 %v4284_v38, %v4284_v38  ;;  %v7172_v43 = vpop.f32.mrb[127].mxu1  ;;  %v4287_v48 = vadd.f32 %v6127_v36, %v4286_v40  ;;  %v7633_v40 = vld [vmem:[#allocation22 + $0xd8] sm:$0xff]  }
0x1747   :  { %v7636_v43 = vld [vmem:[#allocation22 + $0xf0] sm:$0xff]  }
0x1748   :  { %7194 = vmatpush3.bf16.xpose.msra.mxu1 %v4406_v41  ;;  %v4407_v30 = vpack.c.bf16 %v4287_v48, %v4287_v48  ;;  %v7635_v41 = vld [vmem:[#allocation22 + $0xe8] sm:$0xff]  }
0x1749   :  { %7199 = vmatprep.subr.bf16.mxu1 %v8243_v0 }
0x174f   :  { %7196 = vmatmul.mubr.bf16.vlgmr.msra.gmra.mrb[128].mxu1 %v4404_v49 }
0x1750   :  { %7200 = vmatpush3.bf16.xpose.msra.mxu1 %v4407_v30  ;;  %7201 = vmatprep.mubr.msk.bf16.mxu1 %vm8244_vm0, %v8243_v0 }
0x1751   :  { %7205 = vmatprep.subr.bf16.mxu1 %v8243_v0 }
0x1757   :  { %7202 = vmatmul.mubr.bf16.vlgmr.msra.gmra.mrb[132].mxu1 %v4405_v53 }
0x1758   :  { %7206 = vmatpush3.bf16.msra.mxu1 %v4518_v17  ;;  %7207 = vmatprep.mubr.msk.bf16.mxu1 %vm8244_vm0, %v8243_v0 }
0x1759   :  { %7211 = vmatprep.subr.bf16.mxu1 %v8243_v0 }
0x17fa   :  { %v6583_v25 = vpop.f32.mrb[68].mxu0 }
0x17fb   :  { %v6584_v4 = vpop.f32.mrb[69].mxu0 }
0x17fc   :  { %v9089_v54 = vadd.f32 %v6584_v4, %v6583_v25  ;;  %v6586_v55 = vpop.f32.mrb[70].mxu0  ;;  %v6156_v4 = vld [vmem:[#allocation23 + $0x3] ss:$0 sm:$0xff] }
0x17fd   :  { %v6587_v56 = vpop.f32.mrb[71].mxu0 }
0x17fe   :  { %v9091_v22 = vadd.f32 %v6587_v56, %v6586_v55 }
0x1822   :  { %v4442_v57 = vpop.f32.mrb[128].mxu1 }
0x1823   :  { %v4443_v42 = vadd.f32 %v4442_v57, %v8982_v32  ;;  %v7197_v11 = vpop.f32.mrb[129].mxu1 }
0x1824   :  { %v4445_v12 = vpop.f32.mrb[130].mxu1 }
0x1825   :  { %v7198_v6 = vpop.f32.mrb[131].mxu1  ;;  %v4488_v15 = vsel %vm797_vm1, %v4443_v42, -inf }
0x1826   :  { %4489 = vmax.xlane.f32.xlu0 %v4488_v15 }
0x182a   :  { %v4482_v21 = vpop.f32.mrb[132].mxu1 }
0x182b   :  { %v4483_v60 = vadd.f32 %v4482_v21, %v8982_v32  ;;  %v7203_v10 = vpop.f32.mrb[133].mxu1 }
0x182c   :  { %v4485_v61 = vpop.f32.mrb[134].mxu1 }
0x182d   :  { %v7204_v62 = vpop.f32.mrb[135].mxu1  ;;  %v4491_v8 = vsel %vm797_vm1, %v4483_v60, -inf }
0x182e   :  { %4492 = vmax.xlane.f32.xlu1 %v4491_v8 }
0x18b3   :  { %v4490_v63 = vpop.xlane.xlu0 %4489 }
0x18b4   :  { %v4494_v59 = vsub.f32 %v4443_v42, %v4490_v63  ;;  %v6147_v42 = vld [vmem:[#allocation20 + $0x3] ss:$0 sm:$0xff] }
0x18b5   :  { %v4716_v6 = vadd.f32 %v6147_v42, %v8977_v47  ;;  %v4719_v61 = vadd.f32 %v6147_v42, %v8979_v31  ;;  %v7650_v42 = vld [vmem:[#allocation28 + $0xf0] sm:$0xff]  }
0x18b6   :  { %v4496_v51 = vmul.f32 1.442695, %v4494_v59 }
0x18b7   :  { %v4950_v21 = vpack.c.bf16 %v4716_v6, %v4716_v6  ;;  %v4951_v8 = vpack.c.bf16 %v4719_v61, %v4719_v61  ;;  %v7653_v6 = vld [vmem:[#allocation28 + $0xb8] sm:$0xff]  }
0x18b8   :  { %7722 = vpow2.f32 %v4496_v51 }
0x18bb   :  { %v4493_v33 = vpop.xlane.xlu1 %4492 }
0x18bc   :  { %v4495_v34 = vsub.f32 %v4483_v60, %v4493_v33  ;;  %v4944_v60 = vadd.f32 %v9065_v2, %v9067_v3 }
0x18be   :  { %v4498_v1 = vmul.f32 1.442695, %v4495_v34  ;;  %v5058_v62 = vpack.c.bf16 %v4944_v60, %v4944_v60 }
0x18c0   :  { %7724 = vpow2.f32 %v4498_v1  ;;  %v5064_v47 = vsel %vm827_vm2, %v5058_v62, 0 }
0x18c2   :  { %v7723_v7 = vpop.eup %7722 }
0x18c3   :  { %v4500_v5 = vsel %vm797_vm1, %v7723_v7, 0.0 }
0x18c4   :  { %4501 = vadd.xlane.f32.xlu0 %v4500_v5 }
0x18ca   :  { %v7725_v45 = vpop.eup %7724 }
0x18cb   :  { %v4503_v46 = vsel %vm797_vm1, %v7725_v45, 0.0 }
0x18cc   :  { %4504 = vadd.xlane.f32.xlu1 %v4503_v46 }
0x1951   :  { %v4502_v13 = vpop.xlane.xlu0 %4501 }
0x1952   :  { %7726 = vrcp.f32 %v4502_v13 }
0x1959   :  { %v4505_v14 = vpop.xlane.xlu1 %4504 }
0x195a   :  { %7728 = vrcp.f32 %v4505_v14 }
0x195c   :  { %v7727_v16 = vpop.eup %7726 }
0x195d   :  { %v4508_v27 = vmul.f32 %v7727_v16, %v7723_v7 }
0x195f   :  { %v4510_v28 = vpack.c.bf16 %v4508_v27, %v4508_v27 }
0x1961   :  { %7208 = vmatmul.mubr.msk.bf16.vlgmr.msra.gmra.mrb[136].mxu1 %vm797_vm1, %v4510_v28 }
0x1962   :  { %7212 = vmatpush3.bf16.msra.mxu1 %v4564_v24  ;;  %7213 = vmatprep.mubr.msk.bf16.mxu1 %vm8244_vm0, %v8243_v0 }
0x1963   :  { %7237 = vmatprep.subr.bf16.mxu1 %v8243_v0 }
0x1964   :  { %v7729_v35 = vpop.eup %7728 }
0x1965   :  { %v4509_v36 = vmul.f32 %v7729_v35, %v7725_v45 }
0x1967   :  { %v4511_v38 = vpack.c.bf16 %v4509_v36, %v4509_v36 }
0x1969   :  { %7214 = vmatmul.mubr.msk.bf16.vlgmr.msra.gmra.mrb[140].mxu1 %vm797_vm1, %v4511_v38 }
0x196a   :  { %7238 = vmatpush3.bf16.msra.mxu1 %v7630_v37  ;;  %7253 = vmatprep.mubr.msk.bf16.mxu1 %vm8244_vm0, %v8243_v0 }
0x196b   :  { %7239 = vmatprep.subr.bf16.mxu1 %v8243_v0 }
0x196e   :  { %7240 = vmatpush3.bf16.msra.mxu1 %v7631_v29  ;;  %v5059_v29 = vpack.c.bf16 %v9070_v9, %v9070_v9  ;;  %v7641_v9 = vld [vmem:[#allocation28 + $0x88] sm:$0xff]  }
0x196f   :  { %7241 = vmatprep.subr.bf16.mxu1 %v8243_v0 }
0x1972   :  { %7242 = vmatpush3.bf16.msra.mxu1 %v7632_v39 }
0x1973   :  { %7243 = vmatprep.subr.bf16.mxu1 %v8243_v0 }
0x1976   :  { %7244 = vmatpush3.bf16.msra.mxu1 %v7633_v40 }
0x1977   :  { %7245 = vmatprep.subr.bf16.mxu1 %v8243_v0 }
0x197a   :  { %7246 = vmatpush3.bf16.msra.mxu1 %v7634_v19  ;;  %v7638_v19 = vld [vmem:[#allocation28 + $0xc0] sm:$0xff]  }
0x197b   :  { %7247 = vmatprep.subr.bf16.mxu1 %v8243_v0 }
0x197e   :  { %7248 = vmatpush3.bf16.msra.mxu1 %v7635_v41  ;;  %v5110_v41 = vsel %vm827_vm2, %v5059_v29, 0 }
0x197f   :  { %7249 = vmatprep.subr.bf16.mxu1 %v8243_v0 }
0x1982   :  { %7250 = vmatpush3.bf16.msra.mxu1 %v7636_v43 }
0x1983   :  { %7251 = vmatprep.subr.bf16.mxu1 %v8243_v0 }
0x1986   :  { %7252 = vmatpush3.bf16.msra.mxu1 %v7637_v44 }
0x1987   :  { %7277 = vmatprep.subr.bf16.mxu1 %v8243_v0 }
0x1989   :  { %7254 = vmatmul.mubr.bf16.vlgmr.msra.gmra.mrb[144].mxu1 %v8851_v26 }
0x198a   :  { %7279 = vmatprep.mubr.msk.bf16.mxu1 %vm8244_vm0, %v8243_v0 }
0x1a34   :  { %v9120_v48 = vpop.f32.mrb[136].mxu1 }
0x1a35   :  { %v7209_v49 = vpop.f32.mrb[137].mxu1 }
0x1a36   :  { %v4557_v18 = vpop.f32.mrb[138].mxu1  ;;  %v7639_v49 = vld [vmem:[#allocation28 + $0x80] sm:$0xff]  }
0x1a37   :  { %v7210_v30 = vpop.f32.mrb[139].mxu1 }
0x1a38   :  { %v7640_v30 = vld [vmem:[#allocation28 + $0xc8] sm:$0xff]  }
0x1a3c   :  { %v9122_v52 = vpop.f32.mrb[140].mxu1 }
0x1a3d   :  { %v6241_v50 = vpack.c.bf16 %v9122_v52, %v9120_v48  ;;  %v7215_v53 = vpop.f32.mrb[141].mxu1 }
0x1a3e   :  { %v4603_v17 = vpop.f32.mrb[142].mxu1  ;;  %v7642_v53 = vld [vmem:[#allocation28 + $0xd0] sm:$0xff]  }
0x1a3f   :  { %v7216_v25 = vpop.f32.mrb[143].mxu1  ;;  %v7643_v17 = vld [vmem:[#allocation28 + $0x90] sm:$0xff]  }
0x1a40   :  { %v7644_v25 = vld [vmem:[#allocation28 + $0xd8] sm:$0xff]  }
0x1a5c   :  { %v4829_v55 = vpop.f32.mrb[144].mxu1 }
0x1a5d   :  { %v4830_v56 = vadd.f32 %v6156_v4, %v4829_v55  ;;  %v7255_v26 = vpop.f32.mrb[145].mxu1  ;;  %v7646_v55 = vld [vmem:[#allocation28 + $0xe0] sm:$0xff]  }
0x1a5e   :  { %v4832_v57 = vpop.f32.mrb[146].mxu1  ;;  %v7648_v26 = vld [vmem:[#allocation28 + $0xe8] sm:$0xff]  }
0x1a5f   :  { %v4952_v11 = vpack.c.bf16 %v4830_v56, %v4830_v56  ;;  %v7256_v12 = vpop.f32.mrb[147].mxu1  ;;  %v4833_v15 = vadd.f32 %v6156_v4, %v4832_v57  ;;  %v7645_v4 = vld [vmem:[#allocation28 + $0x98] sm:$0xff]   ;;  %v7647_v56 = vld [vmem:[#allocation28 + $0xa0] sm:$0xff]   ;;  %v7649_v57 = vld [vmem:[#allocation28 + $0xa8] sm:$0xff]  }
0x1a60   :  { %v7652_v12 = vld [vmem:[#allocation28 + $0xf8] sm:$0xff]  }
0x1a61   :  { %7278 = vmatpush3.bf16.xpose.msra.mxu1 %v4952_v11  ;;  %v4953_v10 = vpack.c.bf16 %v4833_v15, %v4833_v15  ;;  %v7651_v11 = vld [vmem:[#allocation28 + $0xb0] sm:$0xff]  }
0x1a62   :  { %7283 = vmatprep.subr.bf16.mxu1 %v8243_v0 }
0x1a68   :  { %7280 = vmatmul.mubr.bf16.vlgmr.msra.gmra.mrb[148].mxu1 %v4950_v21 }
0x1a69   :  { %7284 = vmatpush3.bf16.xpose.msra.mxu1 %v4953_v10  ;;  %7285 = vmatprep.mubr.msk.bf16.mxu1 %vm8244_vm0, %v8243_v0 }
0x1a6a   :  { %7289 = vmatprep.subr.bf16.mxu1 %v8243_v0 }
0x1a70   :  { %7286 = vmatmul.mubr.bf16.vlgmr.msra.gmra.mrb[152].mxu1 %v4951_v8 }
0x1a71   :  { %7290 = vmatpush3.bf16.msra.mxu1 %v5064_v47  ;;  %7291 = vmatprep.mubr.msk.bf16.mxu1 %vm8244_vm0, %v8243_v0 }
0x1a72   :  { %7295 = vmatprep.subr.bf16.mxu1 %v8243_v0 }
0x1b3b   :  { %v4988_v2 = vpop.f32.mrb[148].mxu1 }
0x1b3c   :  { %v4989_v3 = vadd.f32 %v4988_v2, %v8982_v32  ;;  %v7281_v63 = vpop.f32.mrb[149].mxu1 }
0x1b3d   :  { %v4991_v59 = vpop.f32.mrb[150].mxu1 }
0x1b3e   :  { %v7282_v51 = vpop.f32.mrb[151].mxu1  ;;  %v5034_v31 = vsel %vm797_vm1, %v4989_v3, -inf }
0x1b3f   :  { %5035 = vmax.xlane.f32.xlu0 %v5034_v31 }
0x1b43   :  { %v5028_v33 = vpop.f32.mrb[152].mxu1 }
0x1b44   :  { %v5029_v34 = vadd.f32 %v5028_v33, %v8982_v32  ;;  %v7287_v1 = vpop.f32.mrb[153].mxu1 }
0x1b45   :  { %v5031_v7 = vpop.f32.mrb[154].mxu1 }
0x1b46   :  { %v7288_v5 = vpop.f32.mrb[155].mxu1  ;;  %v5037_v45 = vsel %vm797_vm1, %v5029_v34, -inf }
0x1b47   :  { %5038 = vmax.xlane.f32.xlu1 %v5037_v45  ;;  %v7655_v45 = vld [vmem:[%s9237_s11 + $0x8] sm:$0xff]  }
0x1bcc   :  { %v5036_v46 = vpop.xlane.xlu0 %5035 }
0x1bcd   :  { %v5040_v13 = vsub.f32 %v4989_v3, %v5036_v46  ;;  %v6176_v3 = vld [vmem:[%s9236_s4] ss:$0 sm:$0xff]  ;;  %v7657_v46 = vld [vmem:[%s9237_s11 + $0x18] sm:$0xff]  }
0x1bce   :  { %v5476_v51 = vadd.f32 %v9089_v54, %v6176_v3  ;;  %v5479_v1 = vadd.f32 %v9091_v22, %v6176_v3 }
0x1bcf   :  { %v5042_v14 = vmul.f32 1.442695, %v5040_v13  ;;  %v7658_v13 = vld [vmem:[%s9237_s11 + $0x20] sm:$0xff]  }
0x1bd1   :  { %7730 = vpow2.f32 %v5042_v14  ;;  %v7659_v14 = vld [vmem:[%s9237_s11 + $0x28] sm:$0xff]  }
0x1bd4   :  { %v5039_v16 = vpop.xlane.xlu1 %5038 }
0x1bd5   :  { %v5041_v23 = vsub.f32 %v5029_v34, %v5039_v16  ;;  %v7660_v16 = vld [vmem:[%s9237_s11 + $0x30] sm:$0xff]  }
0x1bd7   :  { %v5044_v27 = vmul.f32 1.442695, %v5041_v23  ;;  %v7661_v23 = vld [vmem:[%s9237_s11 + $0x38] sm:$0xff]  }
0x1bd9   :  { %7732 = vpow2.f32 %v5044_v27  ;;  %v7662_v27 = vld [vmem:[#allocation29] sm:$0xff]  }
0x1bdb   :  { %v7731_v28 = vpop.eup %7730 }
0x1bdc   :  { %v5046_v24 = vsel %vm797_vm1, %v7731_v28, 0.0 }
0x1bdd   :  { %5047 = vadd.xlane.f32.xlu0 %v5046_v24  ;;  %v7664_v24 = vld [vmem:[#allocation29 + $0x10] sm:$0xff]  }
0x1be3   :  { %v7733_v35 = vpop.eup %7732 }
0x1be4   :  { %v5049_v32 = vsel %vm797_vm1, %v7733_v35, 0.0 }
0x1be5   :  { %5050 = vadd.xlane.f32.xlu1 %v5049_v32  ;;  %v7666_v32 = vld [vmem:[#allocation29 + $0x20] sm:$0xff]  }
0x1c6a   :  { %v5048_v36 = vpop.xlane.xlu0 %5047 }
0x1c6b   :  { %7734 = vrcp.f32 %v5048_v36  ;;  %v7667_v36 = vld [vmem:[#allocation29 + $0x28] sm:$0xff]  }
0x1c72   :  { %v5051_v37 = vpop.xlane.xlu1 %5050 }
0x1c73   :  { %7736 = vrcp.f32 %v5051_v37 }
0x1c75   :  { %v7735_v38 = vpop.eup %7734 }
0x1c76   :  { %v5054_v39 = vmul.f32 %v7735_v38, %v7731_v28  ;;  %v7663_v28 = vld [vmem:[#allocation29 + $0x8] sm:$0xff]  }
0x1c78   :  { %v5056_v40 = vpack.c.bf16 %v5054_v39, %v5054_v39 }
0x1c7a   :  { %7292 = vmatmul.mubr.msk.bf16.vlgmr.msra.gmra.mrb[156].mxu1 %vm797_vm1, %v5056_v40 }
0x1c7b   :  { %7296 = vmatpush3.bf16.msra.mxu1 %v5110_v41  ;;  %7297 = vmatprep.mubr.msk.bf16.mxu1 %vm8244_vm0, %v8243_v0 }
0x1c7c   :  { %6589 = vmatprep.subr.bf16.mxu1 %v7638_v19 }
0x1c7d   :  { %v7737_v43 = vpop.eup %7736 }
0x1c7e   :  { %v5055_v44 = vmul.f32 %v7737_v43, %v7733_v35  ;;  %v7665_v35 = vld [vmem:[#allocation29 + $0x18] sm:$0xff]  }
0x1c80   :  { %v5057_v18 = vpack.c.bf16 %v5055_v44, %v5055_v44 }
0x1c82   :  { %7298 = vmatmul.mubr.msk.bf16.vlgmr.msra.gmra.mrb[160].mxu1 %vm797_vm1, %v5057_v18 }
0x1c83   :  { %6590 = vmatpush3.bf16.msra.mxu1 %v7639_v49 }
0x1c84   :  { %6591 = vmatprep.subr.bf16.mxu1 %v7640_v30 }
0x1c87   :  { %6592 = vmatpush3.bf16.msra.mxu1 %v7641_v9 }
0x1c88   :  { %6593 = vmatprep.subr.bf16.mxu1 %v7642_v53 }
0x1c8b   :  { %6594 = vmatpush3.bf16.msra.mxu1 %v7643_v17 }
0x1c8c   :  { %6595 = vmatprep.subr.bf16.mxu1 %v7644_v25 }
0x1c8f   :  { %6596 = vmatpush3.bf16.msra.mxu1 %v7645_v4 }
0x1c90   :  { %6597 = vmatprep.subr.bf16.mxu1 %v7646_v55 }
0x1c93   :  { %6598 = vmatpush3.bf16.msra.mxu1 %v7647_v56  ;;  %v6213_v56 = vld [vmem:[%s9238_s15] ss:$0 sm:$0xff] }
0x1c94   :  { %6599 = vmatprep.subr.bf16.mxu1 %v7648_v26 }
0x1c97   :  { %6600 = vmatpush3.bf16.msra.mxu1 %v7649_v57 }
0x1c98   :  { %6601 = vmatprep.subr.bf16.mxu1 %v7650_v42 }
0x1c9b   :  { %6602 = vmatpush3.bf16.msra.mxu1 %v7651_v11 }
0x1c9c   :  { %6603 = vmatprep.subr.bf16.mxu1 %v7652_v12 }
0x1c9f   :  { %6604 = vmatpush3.bf16.msra.mxu1 %v7653_v6  ;;  %v6214_v6 = vld [vmem:[%s8389_s24] ss:$0 sm:$0xff]  ;;  %s8245_s24 = smov [#allocation31]  }
0x1ca0   :  { %7321 = vmatprep.subr.bf16.mxu1 %v8243_v0  ;;  %s5854_s19 = sshll.u32 %s8245_s24, 4  ;;  %s5855_s19 = int_to_ptr.vmem [resolvable:$true] %s5854_s19 }
0x1ca1   :  { %s8145_s16 = scalar_lea.vmem %s5855_s19, 256  ;;  %p8150_p5 = scmp.lt.s32.totalorder %s5855_s19, %s5855_s19 }
0x1ca2   :  { %p8146_p4 = scmp.ne.s32.totalorder %s5855_s19, %s8145_s16  ;;  %p8151_p6 = scmp.lt.s32.totalorder %s8145_s16, %s8145_s16 }
0x1ca4   :  { %p8152_p7 = por %p8151_p6, %p8150_p5 }
0x1ca6   :  { %p8153_p8 = pnand %p8152_p7, %p8146_p4 }
0x1d4d   :  { %v5100_v15 = vpop.f32.mrb[156].mxu1 }
0x1d4e   :  { %v7293_v21 = vpop.f32.mrb[157].mxu1 }
0x1d4f   :  { %v5103_v60 = vpop.f32.mrb[158].mxu1 }
0x1d50   :  { %v7294_v10 = vpop.f32.mrb[159].mxu1 }
0x1d55   :  { %v5146_v61 = vpop.f32.mrb[160].mxu1 }
0x1d56   :  { %v6242_v62 = vpack.c.bf16 %v5146_v61, %v5100_v15  ;;  %v7299_v8 = vpop.f32.mrb[161].mxu1  ;;  %v7668_v61 = vld [vmem:[#allocation29 + $0x30] sm:$0xff]  }
0x1d57   :  { %v5149_v47 = vpop.f32.mrb[162].mxu1  ;;  %v6215_v8 = vld [vmem:[%s9239_s14] ss:$0 sm:$0xff] }
0x1d58   :  { %v7300_v2 = vpop.f32.mrb[163].mxu1  ;;  %5514 = vmatprep.mubr.bf16.mxu1 %v6242_v62  ;;  %v7669_v62 = vld [vmem:[#allocation29 + $0x38] sm:$0xff]  }
0x1d59   :  { %5515 = vmatmul.mubr.bf16.vlgmr.msra.gmra.mrb[164].mxu1 %v6241_v50 }
0x1d5a   :  { %7337 = vmatprep.mubr.msk.bf16.mxu1 %vm8244_vm0, %v8243_v0  ;;  %7322 = vmatpush3.bf16.msra.mxu1 %v7662_v27 }
0x1d5b   :  { %7323 = vmatprep.subr.bf16.mxu1 %v8243_v0 }
0x1d5e   :  { %7324 = vmatpush3.bf16.msra.mxu1 %v7663_v28 }
0x1d5f   :  { %7325 = vmatprep.subr.bf16.mxu1 %v8243_v0 }
0x1d62   :  { %7326 = vmatpush3.bf16.msra.mxu1 %v7664_v24 }
0x1d63   :  { %7327 = vmatprep.subr.bf16.mxu1 %v8243_v0 }
0x1d66   :  { %7328 = vmatpush3.bf16.msra.mxu1 %v7665_v35 }
0x1d67   :  { %7329 = vmatprep.subr.bf16.mxu1 %v8243_v0 }
0x1d6a   :  { %7330 = vmatpush3.bf16.msra.mxu1 %v7666_v32 }
0x1d6b   :  { %7331 = vmatprep.subr.bf16.mxu1 %v8243_v0 }
0x1d6e   :  { %7332 = vmatpush3.bf16.msra.mxu1 %v7667_v36 }
0x1d6f   :  { %7333 = vmatprep.subr.bf16.mxu1 %v8243_v0 }
0x1d72   :  { %7334 = vmatpush3.bf16.msra.mxu1 %v7668_v61 }
0x1d73   :  { %7335 = vmatprep.subr.bf16.mxu1 %v8243_v0 }
0x1d76   :  { %7336 = vmatpush3.bf16.msra.mxu1 %v7669_v62 }
0x1e2c   :  { %v6605_v63 = vpop.f32.mrb[164].mxu1 }
0x1e2d   :  { %v6606_v59 = vpop.f32.mrb[165].mxu1 }
0x1e2e   :  { %v6607_v31 = vadd.f32 %v6606_v59, %v6605_v63  ;;  %v6608_v33 = vpop.f32.mrb[166].mxu1 }
0x1e2f   :  { %v6609_v34 = vpop.f32.mrb[167].mxu1 }
0x1e30   :  { %v5517_v7 = vadd.f32 %v6607_v31, %v5476_v51  ;;  %v6610_v5 = vadd.f32 %v6609_v34, %v6608_v33 }
0x1e32   :  { %v5520_v48 = vadd.f32 %v6610_v5, %v5479_v1  ;;  %v9161_v52 = vadd.f32 %v5517_v7, %v8864_v58  ;;  %v7654_v58 = vld [vmem:[%s9237_s11] sm:$0xff]  }
0x1e33   :  { %7302 = vmatpush3.bf16.msra.mxu0 %v7654_v58  ;;  %v6224_v1 = vld [vmem:[%s9240_s0] ss:$0 sm:$0xff] }
0x1e34   :  { %5525 = vadd.xlane.f32.xlu0 %v9161_v52  ;;  %v9165_v50 = vadd.f32 %v5520_v48, %v8866_v20  ;;  %v5531_v54 = vmul.f32 %v9161_v52, %v9161_v52  ;;  %7303 = vmatprep.subr.bf16.mxu0 %v8243_v0  ;;  %v7656_v20 = vld [vmem:[%s9237_s11 + $0x10] sm:$0xff]  }
0x1e36   :  { %5527 = vadd.xlane.f32.xlu1 %v9165_v50  ;;  %v5532_v22 = vmul.f32 %v9165_v50, %v9165_v50 }
0x1e37   :  { %7304 = vmatpush3.bf16.msra.mxu0 %v7655_v45 }
0x1e38   :  { %5533 = vadd.xlane.f32.xlu0 %v5531_v54  ;;  %7305 = vmatprep.subr.bf16.mxu0 %v8243_v0 }
0x1e3a   :  { %5535 = vadd.xlane.f32.xlu1 %v5532_v22 }
0x1e3b   :  { %7306 = vmatpush3.bf16.msra.mxu0 %v7656_v20 }
0x1e3c   :  { %7307 = vmatprep.subr.bf16.mxu0 %v8243_v0 }
0x1e3f   :  { %7308 = vmatpush3.bf16.msra.mxu0 %v7657_v46 }
0x1e40   :  { %7309 = vmatprep.subr.bf16.mxu0 %v8243_v0 }
0x1e43   :  { %7310 = vmatpush3.bf16.msra.mxu0 %v7658_v13 }
0x1e44   :  { %7311 = vmatprep.subr.bf16.mxu0 %v8243_v0 }
0x1e47   :  { %7312 = vmatpush3.bf16.msra.mxu0 %v7659_v14 }
0x1e48   :  { %7313 = vmatprep.subr.bf16.mxu0 %v8243_v0 }
0x1e4b   :  { %7314 = vmatpush3.bf16.msra.mxu0 %v7660_v16 }
0x1e4c   :  { %7315 = vmatprep.subr.bf16.mxu0 %v8243_v0 }
0x1e4f   :  { %7316 = vmatpush3.bf16.msra.mxu0 %v7661_v23 }
0x1ec1   :  { %v5526_v37 = vpop.xlane.xlu0 %5525 }
0x1ec2   :  { %v5529_v38 = vmul.f32 0.03125, %v5526_v37 }
0x1ec3   :  { %v5528_v29 = vpop.xlane.xlu1 %5527 }
0x1ec4   :  { %v5530_v39 = vmul.f32 0.03125, %v5528_v29  ;;  %v5539_v19 = vmul.f32 %v5529_v38, %v5529_v38  ;;  %v5545_v4 = vsub.f32 %v9161_v52, %v5529_v38 }
0x1ec5   :  { %v5534_v40 = vpop.xlane.xlu0 %5533 }
0x1ec6   :  { %v5537_v41 = vmul.f32 0.03125, %v5534_v40  ;;  %v5540_v44 = vmul.f32 %v5530_v39, %v5530_v39  ;;  %v5546_v26 = vsub.f32 %v9165_v50, %v5530_v39 }
0x1ec7   :  { %v5536_v43 = vpop.xlane.xlu1 %5535 }
0x1ec8   :  { %v5541_v49 = vsub.f32 %v5537_v41, %v5539_v19  ;;  %v5538_v18 = vmul.f32 0.03125, %v5536_v43  ;;  %v6233_v41 = vld [vmem:[%s8394_s27] ss:$0 sm:$0xff] }
0x1eca   :  { %v5543_v30 = vmax.f32 %v5541_v49, 0.0  ;;  %v5542_v9 = vsub.f32 %v5538_v18, %v5540_v44  ;;  %v6234_v18 = vld [vmem:[%s8399_s12] ss:$0 sm:$0xff] }
0x1ecc   :  { %v5547_v53 = vadd.f32 1e-05, %v5543_v30  ;;  %v5544_v17 = vmax.f32 %v5542_v9, 0.0 }
0x1ece   :  { %7738 = vrsqrt.f32 %v5547_v53  ;;  %v5548_v25 = vadd.f32 1e-05, %v5544_v17 }
0x1ed0   :  { %7740 = vrsqrt.f32 %v5548_v25 }
0x1ed8   :  { %v7739_v55 = vpop.eup %7738 }
0x1ed9   :  { %v5551_v57 = vmul.f32 %v7739_v55, %v5545_v4 }
0x1eda   :  { %v7741_v42 = vpop.eup %7740 }
0x1edb   :  { %v5552_v11 = vmul.f32 %v7741_v42, %v5546_v26  ;;  %v5560_v12 = vmul.f32 %v6213_v56, %v5551_v57 }
0x1edd   :  { %v5561_v15 = vmul.f32 %v6213_v56, %v5552_v11  ;;  %v5569_v21 = vadd.f32 %v6214_v6, %v5560_v12 }
0x1edf   :  { %v5570_v60 = vadd.f32 %v6214_v6, %v5561_v15 }
0x1ee1   :  { %v5571_v10 = vpack.c.bf16 %v5570_v60, %v5569_v21 }
0x1ee3   :  { %7318 = vmatmul.mubr.bf16.vlgmr.msra.gmra.mrb[72].mxu0 %v5571_v10 }
0x1fb6   :  { %v5677_v47 = vpop.f32.mrb[72].mxu0 }
0x1fb7   :  { %v5678_v2 = vadd.f32 %v6215_v8, %v5677_v47  ;;  %v7319_v3 = vpop.f32.mrb[73].mxu0 }
0x1fb8   :  { %v5680_v63 = vpop.f32.mrb[74].mxu0 }
0x1fb9   :  { %v5681_v59 = vadd.f32 %v6215_v8, %v5680_v63  ;;  %v7320_v51 = vpop.f32.mrb[75].mxu0  ;;  %v5684_v31 = vmax.f32 %v5678_v2, 0.0 }
0x1fbb   :  { %v5685_v33 = vmax.f32 %v5681_v59, 0.0 }
0x1fbd   :  { %v5686_v34 = vpack.c.bf16 %v5685_v33, %v5684_v31 }
0x1fbf   :  { %7338 = vmatmul.mubr.bf16.vlgmr.msra.gmra.mrb[168].mxu1 %v5686_v34 }
0x2092   :  { %v5792_v7 = vpop.f32.mrb[168].mxu1 }
0x2093   :  { %v5793_v5 = vadd.f32 %v6224_v1, %v5792_v7  ;;  %v7339_v48 = vpop.f32.mrb[169].mxu1 }
0x2094   :  { %v5795_v52 = vpop.f32.mrb[170].mxu1 }
0x2095   :  { %v5799_v50 = vadd.f32 %v5793_v5, %v5569_v21  ;;  %v5796_v0 = vadd.f32 %v6224_v1, %v5795_v52  ;;  %v7340_v54 = vpop.f32.mrb[171].mxu1 }
0x2097   :  { %v5800_v22 = vadd.f32 %v5796_v0, %v5570_v60  ;;  %5801 = vadd.xlane.f32.xlu0 %v5799_v50  ;;  %v5807_v58 = vmul.f32 %v5799_v50, %v5799_v50 }
0x2099   :  { %5803 = vadd.xlane.f32.xlu1 %v5800_v22  ;;  %v5808_v45 = vmul.f32 %v5800_v22, %v5800_v22 }
0x209b   :  { %5809 = vadd.xlane.f32.xlu0 %v5807_v58 }
0x209d   :  { %5811 = vadd.xlane.f32.xlu1 %v5808_v45 }
0x2124   :  { %v5802_v20 = vpop.xlane.xlu0 %5801 }
0x2125   :  { %v5805_v46 = vmul.f32 0.03125, %v5802_v20 }
0x2126   :  { %v5804_v13 = vpop.xlane.xlu1 %5803 }
0x2127   :  { %v5806_v14 = vmul.f32 0.03125, %v5804_v13  ;;  %v5815_v23 = vmul.f32 %v5805_v46, %v5805_v46  ;;  %v5821_v40 = vsub.f32 %v5799_v50, %v5805_v46 }
0x2128   :  { %v5810_v16 = vpop.xlane.xlu0 %5809 }
0x2129   :  { %v5813_v27 = vmul.f32 0.03125, %v5810_v16  ;;  %v5816_v24 = vmul.f32 %v5806_v14, %v5806_v14  ;;  %v5822_v43 = vsub.f32 %v5800_v22, %v5806_v14 }
0x212a   :  { %v5812_v28 = vpop.xlane.xlu1 %5811 }
0x212b   :  { %v5817_v35 = vsub.f32 %v5813_v27, %v5815_v23  ;;  %v5814_v32 = vmul.f32 0.03125, %v5812_v28 }
0x212d   :  { %v5819_v36 = vmax.f32 %v5817_v35, 0.0  ;;  %v5818_v37 = vsub.f32 %v5814_v32, %v5816_v24 }
0x212f   :  { %v5823_v38 = vadd.f32 1e-05, %v5819_v36  ;;  %v5820_v29 = vmax.f32 %v5818_v37, 0.0 }
0x2131   :  { %7742 = vrsqrt.f32 %v5823_v38  ;;  %v5824_v39 = vadd.f32 1e-05, %v5820_v29 }
0x2133   :  { %7744 = vrsqrt.f32 %v5824_v39 }
0x213b   :  { %v7743_v19 = vpop.eup %7742 }
0x213c   :  { %v5827_v44 = vmul.f32 %v7743_v19, %v5821_v40 }
0x213d   :  { %v7745_v49 = vpop.eup %7744 }
0x213e   :  { %v5828_v30 = vmul.f32 %v7745_v49, %v5822_v43  ;;  %v5836_v9 = vmul.f32 %v6233_v41, %v5827_v44 }
0x2140   :  { %v5837_v53 = vmul.f32 %v6233_v41, %v5828_v30  ;;  %v5845_v17 = vadd.f32 %v6234_v18, %v5836_v9 }
0x2142   :  { %v5846_v25 = vadd.f32 %v6234_v18, %v5837_v53  ;;  %5847 = vst [vmem:[#allocation31] sm:$0xff] %v5845_v17 }
0x2144   :  { %5848 = vst [vmem:[#allocation31 + $0x8] sm:$0xff] %v5846_v25 }
0x2145   :  { %8156 = shalt.err (!%p8153_p8)
}
0x2146   :  { %s8157_s12 = scalar_lea.hbm %s8404_s17, 256 }
0x2147   :  { %p8158_p9 = scmp.ne.s32.totalorder %s8404_s17, %s8157_s12  ;;  %p8161_p10 = scmp.lt.u32.totalorder %s8157_s12, %s8404_s17 }
0x2149   :  { %p8163_p11 = pnand %p8161_p10, %p8158_p9 }
0x214b   :  { %8166 = shalt.err (!%p8163_p11)
}
0x214c   :  { %5860 = dma.vmem_to_hbm [thread:$0]  %s5855_s19, 256, %s8404_s17, [#allocation4], %s8221_s26, %s8221_s26, %s8222_s28  }
0x214d   :  { %8187 = dma.done.wait [#allocation4], 256  }
0x214e   :  { %8188 = vsyncadd [#allocation4], 4294967040 }
0x214f   :  { %5864 = vsyncpa [#allocation3], 1 }
0x2150   :  { %5865 = vsyncpa [#allocation6], 1 }
0x2151   :  { %5866 = vsyncpa [#allocation9], 1 }
0x2152   :  { %5867 = vsyncpa [#allocation12], 1 }
0x2153   :  { %5868 = vsyncpa [#allocation15], 1 }
0x2154   :  { %5869 = vsyncpa [#allocation18], 1 }
0x2155   :  { %5870 = vsyncpa [#allocation21], 1 }
0x2156   :  { %5871 = vsyncpa [#allocation24], 1 }
0x2157   :  { %5872 = vsyncpa [#allocation27], 1 }
0x2158   :  { %5873 = vsyncpa [#allocation30], 1 }
0x2159   :  { %5874 = vsyncpa [#allocation4], 1 }

// kernel: tpu_custom_call.1
= control target key start
LH: loop header
LB: loop body
LE: loop exit
PB: predicated region body
PF: predicated region fallthrough
CT: control target
= control target key end

     0   :  { %s8189_s6 = smov 1   ;;  %s8190_s10 = smov 2   ;;  %s9209_s0 = inlined_call_operand.smem [shape: u32[31], index: -1, kind: input, shape index: {}] }
   0x1   :  { %s8254_s5 = sld [smem:[%s9209_s0]]   ;;  %s8191_s14 = smov 3  }
   0x2   :  { %s8259_s9 = sld [smem:[%s9209_s0 + %s8189_s6]]   ;;  %s8192_s18 = smov 4  }
   0x3   :  { %s8264_s13 = sld [smem:[%s9209_s0 + %s8190_s10]]   ;;  %s8193_s22 = smov 5  }
   0x4   :  { %s8269_s17 = sld [smem:[%s9209_s0 + %s8191_s14]]   ;;  %s8194_s26 = smov 6  }
   0x5   :  { %s8274_s21 = sld [smem:[%s9209_s0 + %s8192_s18]]   ;;  %s8195_s30 = smov 7  }
   0x6   :  { %s8279_s25 = sld [smem:[%s9209_s0 + %s8193_s22]]   ;;  %s8196_s4 = smov 8  }
   0x7   :  { %s8284_s29 = sld [smem:[%s9209_s0 + %s8194_s26]]   ;;  %s8197_s10 = smov 9  }
   0x8   :  { %s8289_s3 = sld [smem:[%s9209_s0 + %s8195_s30]]   ;;  %s8198_s15 = smov 10  }
   0x9   :  { %s8294_s8 = sld [smem:[%s9209_s0 + %s8196_s4]]   ;;  %s8199_s20 = smov 11  }
   0xa   :  { %9215 = sst [smem:[#allocation43_spill]] %s8269_s17  ;;  %s8200_s26 = smov 12  }
   0xb   :  { %s8299_s14 = sld [smem:[%s9209_s0 + %s8197_s10]]   ;;  %s8201_s1 = smov 13  }
   0xc   :  { %s8304_s19 = sld [smem:[%s9209_s0 + %s8198_s15]]   ;;  %s8202_s7 = smov 14  }
   0xd   :  { %s8309_s24 = sld [smem:[%s9209_s0 + %s8199_s20]]   ;;  %s8203_s15 = smov 15  }
   0xe   :  { %s8314_s30 = sld [smem:[%s9209_s0 + %s8200_s26]]   ;;  %s8204_s22 = smov 16  }
   0xf   :  { %s8319_s6 = sld [smem:[%s9209_s0 + %s8201_s1]]   ;;  %s8205_s28 = smov 17  }
  0x10   :  { %s8324_s12 = sld [smem:[%s9209_s0 + %s8202_s7]]   ;;  %s8206_s7 = smov 18  }
  0x11   :  { %s8329_s20 = sld [smem:[%s9209_s0 + %s8203_s15]]   ;;  %s8207_s15 = smov 19  }
  0x12   :  { %s8334_s27 = sld [smem:[%s9209_s0 + %s8204_s22]]   ;;  %s8208_s22 = smov 20  }
  0x13   :  { %9216 = sst [smem:[#allocation44_spill]] %s8309_s24 }
  0x14   :  { %s8339_s4 = sld [smem:[%s9209_s0 + %s8205_s28]]   ;;  %s8209_s28 = smov 21  }
  0x15   :  { %s8344_s17 = sld [smem:[%s9209_s0 + %s8206_s7]]   ;;  %s8210_s7 = smov 22  }
  0x16   :  { %9217 = sst [smem:[#allocation45_spill]] %s8324_s12 }
  0x17   :  { %s8349_s24 = sld [smem:[%s9209_s0 + %s8207_s15]]   ;;  %s8211_s15 = smov 23  }
  0x18   :  { %9218 = sst [smem:[#allocation46_spill]] %s8334_s27 }
  0x19   :  { %s8354_s27 = sld [smem:[%s9209_s0 + %s8208_s22]]   ;;  %s8212_s22 = smov 24  }
  0x1a   :  { %s8359_s12 = sld [smem:[%s9209_s0 + %s8209_s28]]   ;;  %s8213_s28 = smov 25  }
  0x1b   :  { %9219 = sst [smem:[#allocation47_spill]] %s8344_s17 }
  0x1c   :  { %s8364_s17 = sld [smem:[%s9209_s0 + %s8210_s7]]   ;;  %s8214_s7 = smov 26  }
  0x1d   :  { %9220 = sst [smem:[#allocation48_spill]] %s8349_s24 }
  0x1e   :  { %s8369_s24 = sld [smem:[%s9209_s0 + %s8211_s15]]   ;;  %s8215_s15 = smov 27  }
  0x1f   :  { %9221 = sst [smem:[#allocation49_spill]] %s8354_s27 }
  0x20   :  { %9222 = sst [smem:[#allocation50_spill]] %s8359_s12 }
  0x21   :  { %s8374_s27 = sld [smem:[%s9209_s0 + %s8212_s22]]   ;;  %s8216_s22 = smov 28  }
  0x22   :  { %9223 = sst [smem:[#allocation51_spill]] %s8364_s17 }
  0x23   :  { %s8379_s12 = sld [smem:[%s9209_s0 + %s8213_s28]]   ;;  %s8217_s28 = smov 29  }
  0x24   :  { %9224 = sst [smem:[#allocation52_spill]] %s8369_s24 }
  0x25   :  { %s8384_s17 = sld [smem:[%s9209_s0 + %s8214_s7]]   ;;  %s8218_s7 = smov 30  }
  0x26   :  { %s8389_s24 = sld [smem:[%s9209_s0 + %s8215_s15]]  }
  0x27   :  { %9225 = sst [smem:[#allocation53_spill]] %s8374_s27 }
  0x28   :  { %s8394_s27 = sld [smem:[%s9209_s0 + %s8216_s22]]  }
  0x29   :  { %9226 = sst [smem:[#allocation54_spill]] %s8379_s12 }
  0x2a   :  { %s8399_s12 = sld [smem:[%s9209_s0 + %s8217_s28]]  }
  0x2b   :  { %9227 = sst [smem:[#allocation55_spill]] %s8384_s17 }
  0x2c   :  { %s8404_s17 = sld [smem:[%s9209_s0 + %s8218_s7]]  }
  0x2d   :  { %66 = vsyncpa [#allocation3], 0 }
  0x2e   :  { %67 = vsyncpa [#allocation6], 0 }
  0x2f   :  { %68 = vsyncpa [#allocation9], 0 }
  0x30   :  { %69 = vsyncpa [#allocation12], 0 }
  0x31   :  { %70 = vsyncpa [#allocation15], 0 }
  0x32   :  { %71 = vsyncpa [#allocation18], 0 }
  0x33   :  { %72 = vsyncpa [#allocation21], 0 }
  0x34   :  { %73 = vsyncpa [#allocation24], 0 }
  0x35   :  { %74 = vsyncpa [#allocation27], 0 }
  0x36   :  { %75 = vsyncpa [#allocation30], 0 }
  0x37   :  { %76 = vsyncpa [#allocation4], 0  ;;  %s8219_s15 = smov [#allocation5]   ;;  %s8220_s18 = smov [#allocation8]  }
  0x38   :  { %s94_s16 = sshll.u32 %s8219_s15, 4  ;;  %s118_s22 = sshll.u32 %s8220_s18, 4  ;;  %s95_s16 = int_to_ptr.vmem [resolvable:$true] %s94_s16  ;;  %s8406_s22 = int_to_ptr.vmem [resolvable:$true] %s118_s22 }
  0x39   :  { %s7749_s0 = scalar_lea.hbm %s8259_s9, 256 }
  0x3a   :  { %p7750_p0 = scmp.ne.s32.totalorder %s8259_s9, %s7749_s0  ;;  %p7753_p1 = scmp.lt.u32.totalorder %s7749_s0, %s8259_s9 }
  0x3c   :  { %p7755_p2 = pnand %p7753_p1, %p7750_p0 }
  0x3e   :  { %7758 = shalt.err (!%p7755_p2)
}
  0x3f   :  { %s7759_s23 = scalar_lea.vmem %s95_s16, 256  ;;  %p7764_p4 = scmp.lt.s32.totalorder %s95_s16, %s95_s16 }
  0x40   :  { %p7760_p3 = scmp.ne.s32.totalorder %s95_s16, %s7759_s23  ;;  %p7765_p5 = scmp.lt.s32.totalorder %s7759_s23, %s7759_s23 }
  0x42   :  { %p7766_p6 = por %p7765_p5, %p7764_p4 }
  0x44   :  { %p7767_p7 = pnand %p7766_p6, %p7760_p3 }
  0x46   :  { %7770 = shalt.err (!%p7767_p7)
}
  0x47   :  { %s8221_s26 = smov 128   ;;  %s8222_s28 = smov 8  }
  0x48   :  { %100 = dma.hbm_to_vmem [thread:$0]  %s8259_s9, 256, %s95_s16, [#allocation6], %s8221_s26, %s8221_s26, %s8222_s28  }
  0x49   :  { %s7771_s1 = scalar_lea.hbm %s8274_s21, 4096 }
  0x4a   :  { %p7772_p8 = scmp.ne.s32.totalorder %s8274_s21, %s7771_s1  ;;  %p7775_p9 = scmp.lt.u32.totalorder %s7771_s1, %s8274_s21 }
  0x4c   :  { %p7777_p10 = pnand %p7775_p9, %p7772_p8 }
  0x4e   :  { %7780 = shalt.err (!%p7777_p10)
}
  0x4f   :  { %s7781_s2 = scalar_lea.vmem %s8406_s22, 4096  ;;  %p7786_p12 = scmp.lt.s32.totalorder %s8406_s22, %s8406_s22 }
  0x50   :  { %p7782_p11 = scmp.ne.s32.totalorder %s8406_s22, %s7781_s2  ;;  %p7787_p13 = scmp.lt.s32.totalorder %s7781_s2, %s7781_s2 }
  0x52   :  { %p7788_p0 = por %p7787_p13, %p7786_p12 }
  0x54   :  { %p7789_p1 = pnand %p7788_p0, %p7782_p11 }
  0x56   :  { %7792 = shalt.err (!%p7789_p1)
}
  0x57   :  { %s8223_s7 = smov 64   ;;  %s8224_s9 = smov 4  }
  0x58   :  { %124 = dma.hbm_to_vmem [thread:$0]  %s8274_s21, 4096, %s8406_s22, [#allocation9], %s8223_s7, %s8223_s7, %s8224_s9  }
  0x59   :  { %s8225_s10 = smov [#allocation11]   ;;  %s8226_s15 = smov [#allocation14]  }
  0x5a   :  { %s142_s11 = sshll.u32 %s8225_s10, 4  ;;  %s166_s16 = sshll.u32 %s8226_s15, 4  ;;  %s143_s11 = int_to_ptr.vmem [resolvable:$true] %s142_s11  ;;  %s8427_s16 = int_to_ptr.vmem [resolvable:$true] %s166_s16 }
  0x5b   :  { %s7793_s18 = scalar_lea.hbm %s8284_s29, 4096 }
  0x5c   :  { %p7794_p2 = scmp.ne.s32.totalorder %s8284_s29, %s7793_s18  ;;  %p7797_p3 = scmp.lt.u32.totalorder %s7793_s18, %s8284_s29 }
  0x5e   :  { %p7799_p4 = pnand %p7797_p3, %p7794_p2 }
  0x60   :  { %7802 = shalt.err (!%p7799_p4)
}
  0x61   :  { %s7803_s0 = scalar_lea.vmem %s143_s11, 4096  ;;  %p7808_p6 = scmp.lt.s32.totalorder %s143_s11, %s143_s11 }
  0x62   :  { %p7804_p5 = scmp.ne.s32.totalorder %s143_s11, %s7803_s0  ;;  %p7809_p7 = scmp.lt.s32.totalorder %s7803_s0, %s7803_s0 }
  0x64   :  { %p7810_p8 = por %p7809_p7, %p7808_p6 }
  0x66   :  { %p7811_p9 = pnand %p7810_p8, %p7804_p5 }
  0x68   :  { %7814 = shalt.err (!%p7811_p9)
}
  0x69   :  { %148 = dma.hbm_to_vmem [thread:$0]  %s8284_s29, 4096, %s143_s11, [#allocation12], %s8223_s7, %s8223_s7, %s8224_s9  }
  0x6a   :  { %s7815_s21 = scalar_lea.hbm %s8294_s8, 4096 }
  0x6b   :  { %p7816_p10 = scmp.ne.s32.totalorder %s8294_s8, %s7815_s21  ;;  %p7819_p11 = scmp.lt.u32.totalorder %s7815_s21, %s8294_s8 }
  0x6d   :  { %p7821_p12 = pnand %p7819_p11, %p7816_p10 }
  0x6f   :  { %7824 = shalt.err (!%p7821_p12)
}
  0x70   :  { %s7825_s22 = scalar_lea.vmem %s8427_s16, 4096  ;;  %p7830_p0 = scmp.lt.s32.totalorder %s8427_s16, %s8427_s16 }
  0x71   :  { %p7826_p13 = scmp.ne.s32.totalorder %s8427_s16, %s7825_s22  ;;  %p7831_p1 = scmp.lt.s32.totalorder %s7825_s22, %s7825_s22 }
  0x73   :  { %p7832_p2 = por %p7831_p1, %p7830_p0 }
  0x75   :  { %p7833_p3 = pnand %p7832_p2, %p7826_p13 }
  0x77   :  { %7836 = shalt.err (!%p7833_p3)
}
  0x78   :  { %172 = dma.hbm_to_vmem [thread:$0]  %s8294_s8, 4096, %s8427_s16, [#allocation15], %s8223_s7, %s8223_s7, %s8224_s9  }
  0x79   :  { %s8227_s29 = smov [#allocation17]   ;;  %s7837_s1 = scalar_lea.hbm %s8304_s19, 4096 }
  0x7a   :  { %s190_s23 = sshll.u32 %s8227_s29, 4  ;;  %p7838_p4 = scmp.ne.s32.totalorder %s8304_s19, %s7837_s1  ;;  %s191_s23 = int_to_ptr.vmem [resolvable:$true] %s190_s23 }
  0x7b   :  { %p7841_p5 = scmp.lt.u32.totalorder %s7837_s1, %s8304_s19 }
  0x7d   :  { %p7843_p6 = pnand %p7841_p5, %p7838_p4 }
  0x7f   :  { %7846 = shalt.err (!%p7843_p6)
}
  0x80   :  { %s7847_s2 = scalar_lea.vmem %s191_s23, 4096  ;;  %p7852_p8 = scmp.lt.s32.totalorder %s191_s23, %s191_s23 }
  0x81   :  { %p7848_p7 = scmp.ne.s32.totalorder %s191_s23, %s7847_s2  ;;  %p7853_p9 = scmp.lt.s32.totalorder %s7847_s2, %s7847_s2 }
  0x83   :  { %p7854_p10 = por %p7853_p9, %p7852_p8 }
  0x85   :  { %p7855_p11 = pnand %p7854_p10, %p7848_p7 }
  0x87   :  { %7858 = shalt.err (!%p7855_p11)
}
  0x88   :  { %196 = dma.hbm_to_vmem [thread:$0]  %s8304_s19, 4096, %s191_s23, [#allocation18], %s8223_s7, %s8223_s7, %s8224_s9  }
  0x89   :  { %s8228_s8 = smov [#allocation20]   ;;  %s8229_s11 = smov [#allocation23]  }
  0x8a   :  { %s216_s10 = sshll.u32 %s8228_s8, 4  ;;  %s240_s15 = sshll.u32 %s8229_s11, 4  ;;  %s217_s10 = int_to_ptr.vmem [resolvable:$true] %s216_s10  ;;  %s241_s15 = int_to_ptr.vmem [resolvable:$true] %s240_s15 }
  0x8b   :  { %s7859_s16 = scalar_lea.hbm %s8319_s6, 64 }
  0x8c   :  { %p7860_p12 = scmp.ne.s32.totalorder %s8319_s6, %s7859_s16  ;;  %p7863_p13 = scmp.lt.u32.totalorder %s7859_s16, %s8319_s6 }
  0x8e   :  { %p7865_p0 = pnand %p7863_p13, %p7860_p12 }
  0x90   :  { %7868 = shalt.err (!%p7865_p0)
}
  0x91   :  { %s7869_s18 = scalar_lea.vmem %s217_s10, 64  ;;  %p7874_p2 = scmp.lt.s32.totalorder %s217_s10, %s217_s10 }
  0x92   :  { %p7870_p1 = scmp.ne.s32.totalorder %s217_s10, %s7869_s18  ;;  %p7875_p3 = scmp.lt.s32.totalorder %s7869_s18, %s7869_s18 }
  0x94   :  { %p7876_p4 = por %p7875_p3, %p7874_p2 }
  0x96   :  { %p7877_p5 = pnand %p7876_p4, %p7870_p1 }
  0x98   :  { %7880 = shalt.err (!%p7877_p5)
}
  0x99   :  { %s8230_s0 = smov 16   ;;  %s8231_s19 = smov 1  }
  0x9a   :  { %222 = dma.hbm_to_vmem [thread:$0]  %s8319_s6, 64, %s217_s10, [#allocation21], %s8230_s0, %s8230_s0, %s8231_s19  }
  0x9b   :  { %s7881_s21 = scalar_lea.hbm %s8329_s20, 64 }
  0x9c   :  { %p7882_p6 = scmp.ne.s32.totalorder %s8329_s20, %s7881_s21  ;;  %p7885_p7 = scmp.lt.u32.totalorder %s7881_s21, %s8329_s20 }
  0x9e   :  { %p7887_p8 = pnand %p7885_p7, %p7882_p6 }
  0xa0   :  { %7890 = shalt.err (!%p7887_p8)
}
  0xa1   :  { %s7891_s22 = scalar_lea.vmem %s241_s15, 64  ;;  %p7896_p10 = scmp.lt.s32.totalorder %s241_s15, %s241_s15 }
  0xa2   :  { %p7892_p9 = scmp.ne.s32.totalorder %s241_s15, %s7891_s22  ;;  %p7897_p11 = scmp.lt.s32.totalorder %s7891_s22, %s7891_s22 }
  0xa4   :  { %p7898_p12 = por %p7897_p11, %p7896_p10 }
  0xa6   :  { %p7899_p13 = pnand %p7898_p12, %p7892_p9 }
  0xa8   :  { %7902 = shalt.err (!%p7899_p13)
}
  0xa9   :  { %246 = dma.hbm_to_vmem [thread:$0]  %s8329_s20, 64, %s241_s15, [#allocation24], %s8230_s0, %s8230_s0, %s8231_s19  }
  0xaa   :  { %s8232_s6 = smov [#allocation26]   ;;  %s8233_s23 = smov [#allocation2]  }
  0xab   :  { %s264_s29 = sshll.u32 %s8232_s6, 4  ;;  %s82_s1 = sshll.u32 %s8233_s23, 4  ;;  %s265_s29 = int_to_ptr.vmem [resolvable:$true] %s264_s29  ;;  %s83_s1 = int_to_ptr.vmem [resolvable:$true] %s82_s1 }
  0xac   :  { %s7903_s2 = scalar_lea.hbm %s8339_s4, 64 }
  0xad   :  { %p7904_p0 = scmp.ne.s32.totalorder %s8339_s4, %s7903_s2  ;;  %p7907_p1 = scmp.lt.u32.totalorder %s7903_s2, %s8339_s4 }
  0xaf   :  { %p7909_p2 = pnand %p7907_p1, %p7904_p0 }
  0xb1   :  { %7912 = shalt.err (!%p7909_p2)
}
  0xb2   :  { %s7913_s8 = scalar_lea.vmem %s265_s29, 64  ;;  %p7918_p4 = scmp.lt.s32.totalorder %s265_s29, %s265_s29 }
  0xb3   :  { %p7914_p3 = scmp.ne.s32.totalorder %s265_s29, %s7913_s8  ;;  %p7919_p5 = scmp.lt.s32.totalorder %s7913_s8, %s7913_s8 }
  0xb5   :  { %p7920_p6 = por %p7919_p5, %p7918_p4 }
  0xb7   :  { %p7921_p7 = pnand %p7920_p6, %p7914_p3 }
  0xb9   :  { %7924 = shalt.err (!%p7921_p7)
}
  0xba   :  { %270 = dma.hbm_to_vmem [thread:$0]  %s8339_s4, 64, %s265_s29, [#allocation27], %s8230_s0, %s8230_s0, %s8231_s19  }
  0xbb   :  { %s7925_s20 = scalar_lea.hbm %s8254_s5, 256 }
  0xbc   :  { %p7926_p8 = scmp.ne.s32.totalorder %s8254_s5, %s7925_s20  ;;  %p7929_p9 = scmp.lt.u32.totalorder %s7925_s20, %s8254_s5 }
  0xbe   :  { %p7931_p10 = pnand %p7929_p9, %p7926_p8 }
  0xc0   :  { %7934 = shalt.err (!%p7931_p10)
}
  0xc1   :  { %s7935_s10 = scalar_lea.vmem %s83_s1, 256  ;;  %p7940_p12 = scmp.lt.s32.totalorder %s83_s1, %s83_s1 }
  0xc2   :  { %p7936_p11 = scmp.ne.s32.totalorder %s83_s1, %s7935_s10  ;;  %p7941_p13 = scmp.lt.s32.totalorder %s7935_s10, %s7935_s10 }
  0xc4   :  { %p7942_p0 = por %p7941_p13, %p7940_p12 }
  0xc6   :  { %p7943_p1 = pnand %p7942_p0, %p7936_p11 }
  0xc8   :  { %7946 = shalt.err (!%p7943_p1)
}
  0xc9   :  { %88 = dma.hbm_to_vmem [thread:$0]  %s8254_s5, 256, %s83_s1, [#allocation3], %s8221_s26, %s8221_s26, %s8222_s28  }
  0xca   :  { %s8234_s4 = smov [#allocation7]   ;;  %s8235_s15 = smov [#allocation10]  }
  0xcb   :  { %s107_s11 = sshll.u32 %s8234_s4, 4  ;;  %s130_s16 = sshll.u32 %s8235_s15, 4  ;;  %s108_s11 = int_to_ptr.vmem [resolvable:$true] %s107_s11  ;;  %s131_s16 = int_to_ptr.vmem [resolvable:$true] %s130_s16 }
  0xcc   :  { %s7947_s18 = scalar_lea.hbm %s8264_s13, 128 }
  0xcd   :  { %p7948_p2 = scmp.ne.s32.totalorder %s8264_s13, %s7947_s18  ;;  %p7951_p3 = scmp.lt.u32.totalorder %s7947_s18, %s8264_s13 }
  0xcf   :  { %p7953_p4 = pnand %p7951_p3, %p7948_p2 }
  0xd1   :  { %7956 = shalt.err (!%p7953_p4)
}
  0xd2   :  { %s7957_s21 = scalar_lea.vmem %s108_s11, 128  ;;  %p7962_p6 = scmp.lt.s32.totalorder %s108_s11, %s108_s11 }
  0xd3   :  { %p7958_p5 = scmp.ne.s32.totalorder %s108_s11, %s7957_s21  ;;  %p7963_p7 = scmp.lt.s32.totalorder %s7957_s21, %s7957_s21 }
  0xd5   :  { %p7964_p8 = por %p7963_p7, %p7962_p6 }
  0xd7   :  { %p7965_p9 = pnand %p7964_p8, %p7958_p5 }
  0xd9   :  { %7968 = shalt.err (!%p7965_p9)
}
  0xda   :  { %110 = dma.hbm_to_vmem [thread:$0]  %s8264_s13, 128, %s108_s11, [#allocation6]  }
  0xdb   :  { %s7969_s5 = scalar_lea.hbm %s8279_s25, 64 }
  0xdc   :  { %p7970_p10 = scmp.ne.s32.totalorder %s8279_s25, %s7969_s5  ;;  %p7973_p11 = scmp.lt.u32.totalorder %s7969_s5, %s8279_s25 }
  0xde   :  { %p7975_p12 = pnand %p7973_p11, %p7970_p10 }
  0xe0   :  { %7978 = shalt.err (!%p7975_p12)
}
  0xe1   :  { %s7979_s22 = scalar_lea.vmem %s131_s16, 64  ;;  %p7984_p0 = scmp.lt.s32.totalorder %s131_s16, %s131_s16 }
  0xe2   :  { %p7980_p13 = scmp.ne.s32.totalorder %s131_s16, %s7979_s22  ;;  %p7985_p1 = scmp.lt.s32.totalorder %s7979_s22, %s7979_s22 }
  0xe4   :  { %p7986_p2 = por %p7985_p1, %p7984_p0 }
  0xe6   :  { %p7987_p3 = pnand %p7986_p2, %p7980_p13 }
  0xe8   :  { %7990 = shalt.err (!%p7987_p3)
}
  0xe9   :  { %136 = dma.hbm_to_vmem [thread:$0]  %s8279_s25, 64, %s131_s16, [#allocation9], %s8230_s0, %s8230_s0, %s8231_s19  }
  0xea   :  { %s8236_s13 = smov [#allocation13]   ;;  %s8237_s29 = smov [#allocation16]  }
  0xeb   :  { %s154_s6 = sshll.u32 %s8236_s13, 4  ;;  %s178_s23 = sshll.u32 %s8237_s29, 4  ;;  %s155_s6 = int_to_ptr.vmem [resolvable:$true] %s154_s6  ;;  %s179_s23 = int_to_ptr.vmem [resolvable:$true] %s178_s23 }
  0xec   :  { %s7991_s1 = scalar_lea.hbm %s8289_s3, 64 }
  0xed   :  { %p7992_p4 = scmp.ne.s32.totalorder %s8289_s3, %s7991_s1  ;;  %p7995_p5 = scmp.lt.u32.totalorder %s7991_s1, %s8289_s3 }
  0xef   :  { %p7997_p6 = pnand %p7995_p5, %p7992_p4 }
  0xf1   :  { %8000 = shalt.err (!%p7997_p6)
}
  0xf2   :  { %s8001_s2 = scalar_lea.vmem %s155_s6, 64  ;;  %p8006_p8 = scmp.lt.s32.totalorder %s155_s6, %s155_s6 }
  0xf3   :  { %p8002_p7 = scmp.ne.s32.totalorder %s155_s6, %s8001_s2  ;;  %p8007_p9 = scmp.lt.s32.totalorder %s8001_s2, %s8001_s2 }
  0xf5   :  { %p8008_p10 = por %p8007_p9, %p8006_p8 }
  0xf7   :  { %p8009_p11 = pnand %p8008_p10, %p8002_p7 }
  0xf9   :  { %8012 = shalt.err (!%p8009_p11)
}
  0xfa   :  { %160 = dma.hbm_to_vmem [thread:$0]  %s8289_s3, 64, %s155_s6, [#allocation12], %s8230_s0, %s8230_s0, %s8231_s19  }
  0xfb   :  { %s8013_s25 = scalar_lea.hbm %s8299_s14, 64 }
  0xfc   :  { %p8014_p12 = scmp.ne.s32.totalorder %s8299_s14, %s8013_s25  ;;  %p8017_p13 = scmp.lt.u32.totalorder %s8013_s25, %s8299_s14 }
  0xfe   :  { %p8019_p0 = pnand %p8017_p13, %p8014_p12 }
 0x100   :  { %8022 = shalt.err (!%p8019_p0)
}
 0x101   :  { %s8023_s8 = scalar_lea.vmem %s179_s23, 64  ;;  %p8028_p2 = scmp.lt.s32.totalorder %s179_s23, %s179_s23 }
 0x102   :  { %p8024_p1 = scmp.ne.s32.totalorder %s179_s23, %s8023_s8  ;;  %p8029_p3 = scmp.lt.s32.totalorder %s8023_s8, %s8023_s8 }
 0x104   :  { %p8030_p4 = por %p8029_p3, %p8028_p2 }
 0x106   :  { %p8031_p5 = pnand %p8030_p4, %p8024_p1 }
 0x108   :  { %8034 = shalt.err (!%p8031_p5)
}
 0x109   :  { %184 = dma.hbm_to_vmem [thread:$0]  %s8299_s14, 64, %s179_s23, [#allocation15], %s8230_s0, %s8230_s0, %s8231_s19  }
 0x10a   :  { %s8238_s3 = smov [#allocation19]   ;;  %s8239_s10 = smov [#allocation22]  }
 0x10b   :  { %s204_s20 = sshll.u32 %s8238_s3, 4  ;;  %s228_s4 = sshll.u32 %s8239_s10, 4  ;;  %s205_s20 = int_to_ptr.vmem [resolvable:$true] %s204_s20  ;;  %s229_s4 = int_to_ptr.vmem [resolvable:$true] %s228_s4 }
 0x10c   :  { %s8035_s11 = scalar_lea.hbm %s8314_s30, 4096 }
 0x10d   :  { %p8036_p6 = scmp.ne.s32.totalorder %s8314_s30, %s8035_s11  ;;  %p8039_p7 = scmp.lt.u32.totalorder %s8035_s11, %s8314_s30 }
 0x10f   :  { %p8041_p8 = pnand %p8039_p7, %p8036_p6 }
 0x111   :  { %8044 = shalt.err (!%p8041_p8)
}
 0x112   :  { %s8045_s15 = scalar_lea.vmem %s205_s20, 4096  ;;  %p8050_p10 = scmp.lt.s32.totalorder %s205_s20, %s205_s20 }
 0x113   :  { %p8046_p9 = scmp.ne.s32.totalorder %s205_s20, %s8045_s15  ;;  %p8051_p11 = scmp.lt.s32.totalorder %s8045_s15, %s8045_s15 }
 0x115   :  { %p8052_p12 = por %p8051_p11, %p8050_p10 }
 0x117   :  { %p8053_p13 = pnand %p8052_p12, %p8046_p9 }
 0x119   :  { %8056 = shalt.err (!%p8053_p13)
}
 0x11a   :  { %s9228_s14 = sld [smem:[#allocation45_spill]] }
 0x11b   :  { %210 = dma.hbm_to_vmem [thread:$0]  %s8314_s30, 4096, %s205_s20, [#allocation18], %s8223_s7, %s8223_s7, %s8224_s9  }
 0x120   :  { %s8057_s0 = scalar_lea.hbm %s9228_s14, 4096 }
 0x121   :  { %p8058_p0 = scmp.ne.s32.totalorder %s9228_s14, %s8057_s0  ;;  %p8061_p1 = scmp.lt.u32.totalorder %s8057_s0, %s9228_s14 }
 0x123   :  { %p8063_p2 = pnand %p8061_p1, %p8058_p0 }
 0x125   :  { %8066 = shalt.err (!%p8063_p2)
}
 0x126   :  { %s8067_s19 = scalar_lea.vmem %s229_s4, 4096  ;;  %p8072_p4 = scmp.lt.s32.totalorder %s229_s4, %s229_s4 }
 0x127   :  { %p8068_p3 = scmp.ne.s32.totalorder %s229_s4, %s8067_s19  ;;  %p8073_p5 = scmp.lt.s32.totalorder %s8067_s19, %s8067_s19 }
 0x129   :  { %p8074_p6 = por %p8073_p5, %p8072_p4 }
 0x12b   :  { %p8075_p7 = pnand %p8074_p6, %p8068_p3 }
 0x12d   :  { %8078 = shalt.err (!%p8075_p7)
}
 0x12e   :  { %s9229_s16 = sld [smem:[#allocation46_spill]]  ;;  %s8240_s30 = smov [#allocation25]  }
 0x12f   :  { %234 = dma.hbm_to_vmem [thread:$0]  %s9228_s14, 4096, %s229_s4, [#allocation21], %s8223_s7, %s8223_s7, %s8224_s9  }
 0x130   :  { %s252_s18 = sshll.u32 %s8240_s30, 4  ;;  %s8241_s21 = smov [#allocation28]   ;;  %s253_s18 = int_to_ptr.vmem [resolvable:$true] %s252_s18 }
 0x131   :  { %s276_s5 = sshll.u32 %s8241_s21, 4  ;;  %s277_s5 = int_to_ptr.vmem [resolvable:$true] %s276_s5 }
 0x134   :  { %s8079_s22 = scalar_lea.hbm %s9229_s16, 4096 }
 0x135   :  { %p8080_p8 = scmp.ne.s32.totalorder %s9229_s16, %s8079_s22  ;;  %p8083_p9 = scmp.lt.u32.totalorder %s8079_s22, %s9229_s16 }
 0x137   :  { %p8085_p10 = pnand %p8083_p9, %p8080_p8 }
 0x139   :  { %8088 = shalt.err (!%p8085_p10)
}
 0x13a   :  { %s8089_s13 = scalar_lea.vmem %s253_s18, 4096  ;;  %p8094_p12 = scmp.lt.s32.totalorder %s253_s18, %s253_s18 }
 0x13b   :  { %p8090_p11 = scmp.ne.s32.totalorder %s253_s18, %s8089_s13  ;;  %p8095_p13 = scmp.lt.s32.totalorder %s8089_s13, %s8089_s13 }
 0x13d   :  { %p8096_p0 = por %p8095_p13, %p8094_p12 }
 0x13f   :  { %p8097_p1 = pnand %p8096_p0, %p8090_p11 }
 0x141   :  { %8100 = shalt.err (!%p8097_p1)
}
 0x142   :  { %s9230_s6 = sld [smem:[#allocation47_spill]] }
 0x143   :  { %258 = dma.hbm_to_vmem [thread:$0]  %s9229_s16, 4096, %s253_s18, [#allocation24], %s8223_s7, %s8223_s7, %s8224_s9  }
 0x148   :  { %s8101_s29 = scalar_lea.hbm %s9230_s6, 4096 }
 0x149   :  { %p8102_p2 = scmp.ne.s32.totalorder %s9230_s6, %s8101_s29  ;;  %p8105_p3 = scmp.lt.u32.totalorder %s8101_s29, %s9230_s6 }
 0x14b   :  { %p8107_p4 = pnand %p8105_p3, %p8102_p2 }
 0x14d   :  { %8110 = shalt.err (!%p8107_p4)
}
 0x14e   :  { %s8111_s23 = scalar_lea.vmem %s277_s5, 4096  ;;  %p8116_p6 = scmp.lt.s32.totalorder %s277_s5, %s277_s5 }
 0x14f   :  { %p8112_p5 = scmp.ne.s32.totalorder %s277_s5, %s8111_s23  ;;  %p8117_p7 = scmp.lt.s32.totalorder %s8111_s23, %s8111_s23 }
 0x151   :  { %p8118_p8 = por %p8117_p7, %p8116_p6 }
 0x153   :  { %p8119_p9 = pnand %p8118_p8, %p8112_p5 }
 0x155   :  { %8122 = shalt.err (!%p8119_p9)
}
 0x156   :  { %s9231_s1 = sld [smem:[#allocation51_spill]]  ;;  %s8242_s2 = smov [#allocation29]  }
 0x157   :  { %282 = dma.hbm_to_vmem [thread:$0]  %s9230_s6, 4096, %s277_s5, [#allocation27], %s8223_s7, %s8223_s7, %s8224_s9  }
 0x158   :  { %s294_s25 = sshll.u32 %s8242_s2, 4  ;;  %s295_s25 = int_to_ptr.vmem [resolvable:$true] %s294_s25 }
 0x15c   :  { %s8123_s8 = scalar_lea.hbm %s9231_s1, 1024 }
 0x15d   :  { %p8124_p10 = scmp.ne.s32.totalorder %s9231_s1, %s8123_s8  ;;  %p8127_p11 = scmp.lt.u32.totalorder %s8123_s8, %s9231_s1 }
 0x15f   :  { %p8129_p12 = pnand %p8127_p11, %p8124_p10 }
 0x161   :  { %8132 = shalt.err (!%p8129_p12)
}
 0x162   :  { %s8133_s3 = scalar_lea.vmem %s295_s25, 1024  ;;  %p8138_p0 = scmp.lt.s32.totalorder %s295_s25, %s295_s25 }
 0x163   :  { %p8134_p13 = scmp.ne.s32.totalorder %s295_s25, %s8133_s3  ;;  %p8139_p1 = scmp.lt.s32.totalorder %s8133_s3, %s8133_s3 }
 0x165   :  { %p8140_p2 = por %p8139_p1, %p8138_p0 }
 0x167   :  { %p8141_p3 = pnand %p8140_p2, %p8134_p13 }
 0x169   :  { %8144 = shalt.err (!%p8141_p3)
}
 0x16a   :  { %300 = dma.hbm_to_vmem [thread:$0]  %s9231_s1, 1024, %s295_s25, [#allocation30], %s8223_s7, %s8223_s7, %s8224_s9  }
 0x16b   :  { %8167 = dma.done.wait [#allocation3], 256  }
 0x16c   :  { %8168 = vsyncadd [#allocation3], 4294967040 }
 0x16d   :  { %8169 = dma.done.wait [#allocation6], 384  }
 0x16e   :  { %8170 = vsyncadd [#allocation6], 4294966912 }
 0x16f   :  { %8171 = dma.done.wait [#allocation9], 4160  }
 0x170   :  { %8172 = vsyncadd [#allocation9], 4294963136 }
 0x171   :  { %8173 = dma.done.wait [#allocation12], 4160  }
 0x172   :  { %8174 = vsyncadd [#allocation12], 4294963136 }
 0x173   :  { %8175 = dma.done.wait [#allocation15], 4160  }
 0x174   :  { %8176 = vsyncadd [#allocation15], 4294963136 }
 0x175   :  { %8177 = dma.done.wait [#allocation18], 8192  }
 0x176   :  { %8178 = vsyncadd [#allocation18], 4294959104 }
 0x177   :  { %8179 = dma.done.wait [#allocation21], 4160  }
 0x178   :  { %8180 = vsyncadd [#allocation21], 4294963136 }
 0x179   :  { %8181 = dma.done.wait [#allocation24], 4160  }
 0x17a   :  { %8182 = vsyncadd [#allocation24], 4294963136 }
 0x17b   :  { %8183 = dma.done.wait [#allocation27], 4160  }
 0x17c   :  { %8184 = vsyncadd [#allocation27], 4294963136 }
 0x17d   :  { %8185 = dma.done.wait [#allocation30], 1024  }
 0x17e   :  { %8186 = vsyncadd [#allocation30], 4294966272  ;;  %v8243_v0 = vmov 0.0   ;;  %vm8244_vm0 = vmmov 0   ;;  %v7398_v1 = vld [vmem:[#allocation11] sm:$0xff]   ;;  %v7400_v3 = vld [vmem:[#allocation11 + $0x8] sm:$0xff]  }
 0x17f   :  { %6649 = vmatprep.subr.bf16.mxu1 %v8243_v0  ;;  %6629 = vmatprep.subr.bf16.mxu0 %v8243_v0  ;;  %v7399_v2 = vld [vmem:[#allocation8] sm:$0xff]   ;;  %v7401_v4 = vld [vmem:[#allocation8 + $0x8] sm:$0xff]   ;;  %v7402_v5 = vld [vmem:[#allocation11 + $0x10] sm:$0xff]   ;;  %vm797_vm1 = vcmask 64512   ;;  %vm827_vm2 = vcmask 1043456   ;;  %s9232_s7 = sld [smem:[#allocation44_spill]] }
 0x180   :  { %6665 = vmatprep.mubr.msk.bf16.mxu1 %vm8244_vm0, %v8243_v0  ;;  %6645 = vmatprep.mubr.msk.bf16.mxu0 %vm8244_vm0, %v8243_v0  ;;  %v7403_v6 = vld [vmem:[#allocation8 + $0x10] sm:$0xff]   ;;  %v7404_v7 = vld [vmem:[#allocation11 + $0x18] sm:$0xff]   ;;  %v7406_v9 = vld [vmem:[#allocation11 + $0x20] sm:$0xff]   ;;  %s9233_s9 = sld [smem:[#allocation53_spill]]  ;;  %s9234_s20 = sld [smem:[#allocation54_spill]] }
 0x181   :  { %6650 = vmatpush3.bf16.msra.mxu1 %v7398_v1  ;;  %6630 = vmatpush3.bf16.msra.mxu0 %v7399_v2  ;;  %v7405_v8 = vld [vmem:[#allocation8 + $0x18] sm:$0xff]   ;;  %v7407_v10 = vld [vmem:[#allocation8 + $0x20] sm:$0xff]   ;;  %v7408_v11 = vld [vmem:[#allocation11 + $0x28] sm:$0xff]   ;;  %s9235_s10 = sld [smem:[#allocation43_spill]]  ;;  %s9236_s4 = sld [smem:[#allocation48_spill]] }
 0x182   :  { %6651 = vmatprep.subr.bf16.mxu1 %v8243_v0  ;;  %6631 = vmatprep.subr.bf16.mxu0 %v8243_v0  ;;  %v7409_v12 = vld [vmem:[#allocation8 + $0x28] sm:$0xff]   ;;  %v7410_v13 = vld [vmem:[#allocation11 + $0x30] sm:$0xff]   ;;  %v7412_v15 = vld [vmem:[#allocation11 + $0x38] sm:$0xff]   ;;  %s9237_s11 = sld [smem:[#allocation49_spill]]  ;;  %s9238_s15 = sld [smem:[#allocation55_spill]] }
 0x183   :  { %v7411_v14 = vld [vmem:[#allocation8 + $0x30] sm:$0xff]   ;;  %v370_v16 = vld [vmem:[#allocation2] sm:$0xff]  ;;  %v371_v17 = vld [vmem:[#allocation2 + $0x8] sm:$0xff]  ;;  %s9239_s14 = sld [smem:[#allocation50_spill]]  ;;  %s9240_s0 = sld [smem:[#allocation52_spill]] }
 0x184   :  { %v7413_v18 = vld [vmem:[#allocation8 + $0x38] sm:$0xff]   ;;  %v8563_v19 = vpack.c.bf16 %v371_v17, %v370_v16  ;;  %v5914_v20 = vld [vmem:[#allocation13] ss:$0 sm:$0xff]  ;;  %v5905_v24 = vld [vmem:[#allocation10] ss:$0 sm:$0xff] }
 0x185   :  { %6652 = vmatpush3.bf16.msra.mxu1 %v7400_v3  ;;  %6632 = vmatpush3.bf16.msra.mxu0 %v7401_v4  ;;  %v7414_v38 = vld [vmem:[#allocation14] sm:$0xff]   ;;  %v7415_v39 = vld [vmem:[#allocation14 + $0x8] sm:$0xff]   ;;  %v7416_v40 = vld [vmem:[#allocation14 + $0x10] sm:$0xff]  }
 0x186   :  { %6653 = vmatprep.subr.bf16.mxu1 %v8243_v0  ;;  %6633 = vmatprep.subr.bf16.mxu0 %v8243_v0  ;;  %v7417_v41 = vld [vmem:[#allocation14 + $0x18] sm:$0xff]   ;;  %v7418_v42 = vld [vmem:[#allocation14 + $0x20] sm:$0xff]   ;;  %v7419_v43 = vld [vmem:[#allocation14 + $0x28] sm:$0xff]  }
 0x187   :  { %v7420_v44 = vld [vmem:[#allocation14 + $0x30] sm:$0xff]   ;;  %v7421_v45 = vld [vmem:[#allocation14 + $0x38] sm:$0xff]   ;;  %v7425_v16 = vld [vmem:[#allocation8 + $0x48] sm:$0xff]  }
 0x188   :  { %v8590_v46 = vld [vmem:[#allocation7] sm:$0xff]  ;;  %v7427_v17 = vld [vmem:[#allocation8 + $0x50] sm:$0xff]  }
 0x189   :  { %6654 = vmatpush3.bf16.msra.mxu1 %v7402_v5  ;;  %6634 = vmatpush3.bf16.msra.mxu0 %v7403_v6 }
 0x18a   :  { %6655 = vmatprep.subr.bf16.mxu1 %v8243_v0  ;;  %6635 = vmatprep.subr.bf16.mxu0 %v8243_v0 }
 0x18d   :  { %6656 = vmatpush3.bf16.msra.mxu1 %v7404_v7  ;;  %6636 = vmatpush3.bf16.msra.mxu0 %v7405_v8  ;;  %v5923_v8 = vld [vmem:[#allocation16] ss:$0 sm:$0xff] }
 0x18e   :  { %6657 = vmatprep.subr.bf16.mxu1 %v8243_v0  ;;  %6637 = vmatprep.subr.bf16.mxu0 %v8243_v0 }
 0x191   :  { %6658 = vmatpush3.bf16.msra.mxu1 %v7406_v9  ;;  %6638 = vmatpush3.bf16.msra.mxu0 %v7407_v10 }
 0x192   :  { %6659 = vmatprep.subr.bf16.mxu1 %v8243_v0  ;;  %6639 = vmatprep.subr.bf16.mxu0 %v8243_v0 }
 0x195   :  { %6660 = vmatpush3.bf16.msra.mxu1 %v7408_v11  ;;  %6640 = vmatpush3.bf16.msra.mxu0 %v7409_v12 }
 0x196   :  { %6661 = vmatprep.subr.bf16.mxu1 %v8243_v0  ;;  %6641 = vmatprep.subr.bf16.mxu0 %v8243_v0 }
 0x199   :  { %6662 = vmatpush3.bf16.msra.mxu1 %v7410_v13  ;;  %6642 = vmatpush3.bf16.msra.mxu0 %v7411_v14 }
 0x19a   :  { %6663 = vmatprep.subr.bf16.mxu1 %v8243_v0  ;;  %6643 = vmatprep.subr.bf16.mxu0 %v8243_v0 }
 0x19d   :  { %6664 = vmatpush3.bf16.msra.mxu1 %v7412_v15  ;;  %6644 = vmatpush3.bf16.msra.mxu0 %v7413_v18  ;;  %v7423_v15 = vld [vmem:[#allocation8 + $0x40] sm:$0xff]   ;;  %v7429_v18 = vld [vmem:[#allocation8 + $0x58] sm:$0xff]  }
 0x19e   :  { %6689 = vmatprep.subr.bf16.mxu1 %v8243_v0  ;;  %6669 = vmatprep.subr.bf16.mxu0 %v8243_v0 }
 0x1a0   :  { %6666 = vmatmul.mubr.bf16.vlgmr.msra.gmra.mrb[0].mxu1 %v8563_v19  ;;  %6646 = vmatmul.mubr.bf16.vlgmr.msra.gmra.mrb[0].mxu0 %v8563_v19 }
 0x1a1   :  { %6691 = vmatprep.mubr.msk.bf16.mxu1 %vm8244_vm0, %v8243_v0  ;;  %6685 = vmatprep.mubr.msk.bf16.mxu0 %vm8244_vm0, %v8243_v0 }
 0x1a2   :  { %6670 = vmatpush3.bf16.msra.mxu0 %v7414_v38  ;;  %v7430_v38 = vld [vmem:[#allocation11 + $0x60] sm:$0xff]  }
 0x1a3   :  { %6671 = vmatprep.subr.bf16.mxu0 %v8243_v0 }
 0x1a6   :  { %6672 = vmatpush3.bf16.msra.mxu0 %v7415_v39  ;;  %v7432_v39 = vld [vmem:[#allocation11 + $0x68] sm:$0xff]  }
 0x1a7   :  { %6673 = vmatprep.subr.bf16.mxu0 %v8243_v0 }
 0x1aa   :  { %6674 = vmatpush3.bf16.msra.mxu0 %v7416_v40  ;;  %v7434_v40 = vld [vmem:[#allocation11 + $0x70] sm:$0xff]  }
 0x1ab   :  { %6675 = vmatprep.subr.bf16.mxu0 %v8243_v0 }
 0x1ae   :  { %6676 = vmatpush3.bf16.msra.mxu0 %v7417_v41  ;;  %v7436_v41 = vld [vmem:[#allocation11 + $0x78] sm:$0xff]  }
 0x1af   :  { %6677 = vmatprep.subr.bf16.mxu0 %v8243_v0 }
 0x1b2   :  { %6678 = vmatpush3.bf16.msra.mxu0 %v7418_v42 }
 0x1b3   :  { %6679 = vmatprep.subr.bf16.mxu0 %v8243_v0 }
 0x1b6   :  { %6680 = vmatpush3.bf16.msra.mxu0 %v7419_v43 }
 0x1b7   :  { %6681 = vmatprep.subr.bf16.mxu0 %v8243_v0 }
 0x1ba   :  { %6682 = vmatpush3.bf16.msra.mxu0 %v7420_v44 }
 0x1bb   :  { %6683 = vmatprep.subr.bf16.mxu0 %v8243_v0 }
 0x1be   :  { %6684 = vmatpush3.bf16.msra.mxu0 %v7421_v45 }
 0x1bf   :  { %6713 = vmatprep.subr.bf16.mxu0 %v8243_v0 }
 0x1c1   :  { %6686 = vmatmul.mubr.bf16.vlgmr.msra.gmra.mrb[4].mxu0 %v8563_v19 }
 0x1c2   :  { %6729 = vmatprep.mubr.msk.bf16.mxu0 %vm8244_vm0, %v8243_v0  ;;  %6714 = vmatpush3.bf16.msra.mxu0 %v7423_v15 }
 0x1c3   :  { %6715 = vmatprep.subr.bf16.mxu0 %v8243_v0 }
 0x1c6   :  { %6716 = vmatpush3.bf16.msra.mxu0 %v7425_v16 }
 0x1c7   :  { %6717 = vmatprep.subr.bf16.mxu0 %v8243_v0 }
 0x1ca   :  { %6718 = vmatpush3.bf16.msra.mxu0 %v7427_v17 }
 0x1cb   :  { %6719 = vmatprep.subr.bf16.mxu0 %v8243_v0 }
 0x1ce   :  { %6720 = vmatpush3.bf16.msra.mxu0 %v7429_v18 }
 0x1cf   :  { %6721 = vmatprep.subr.bf16.mxu0 %v8243_v0 }
 0x273   :  { %v594_v21 = vpop.f32.mrb[0].mxu1  ;;  %v482_v25 = vpop.f32.mrb[0].mxu0 }
 0x274   :  { %v595_v22 = vadd.f32 %v5914_v20, %v594_v21  ;;  %v6667_v23 = vpop.f32.mrb[1].mxu1  ;;  %v6647_v27 = vpop.f32.mrb[1].mxu0  ;;  %v483_v31 = vadd.f32 %v5905_v24, %v482_v25  ;;  %v7433_v21 = vld [vmem:[#allocation8 + $0x68] sm:$0xff]  }
 0x275   :  { %v597_v26 = vpop.f32.mrb[2].mxu1  ;;  %v485_v30 = vpop.f32.mrb[2].mxu0  ;;  %v7437_v23 = vld [vmem:[#allocation8 + $0x78] sm:$0xff]  }
 0x276   :  { %v715_v28 = vpack.c.bf16 %v595_v22, %v595_v22  ;;  %v6668_v29 = vpop.f32.mrb[3].mxu1  ;;  %v6648_v32 = vpop.f32.mrb[3].mxu0  ;;  %v598_v33 = vadd.f32 %v5914_v20, %v597_v26  ;;  %v713_v34 = vpack.c.bf16 %v483_v31, %v483_v31  ;;  %v486_v36 = vadd.f32 %v5905_v24, %v485_v30  ;;  %v7431_v20 = vld [vmem:[#allocation8 + $0x60] sm:$0xff]   ;;  %v7435_v22 = vld [vmem:[#allocation8 + $0x70] sm:$0xff]  }
 0x277   :  { %6722 = vmatpush3.bf16.msra.mxu0 %v7431_v20 }
 0x278   :  { %6690 = vmatpush3.bf16.xpose.msra.mxu1 %v715_v28  ;;  %v716_v35 = vpack.c.bf16 %v598_v33, %v598_v33  ;;  %v714_v37 = vpack.c.bf16 %v486_v36, %v486_v36  ;;  %6723 = vmatprep.subr.bf16.mxu0 %v8243_v0  ;;  %v7422_v33 = vld [vmem:[#allocation11 + $0x40] sm:$0xff]   ;;  %v7426_v36 = vld [vmem:[#allocation11 + $0x50] sm:$0xff]  }
 0x279   :  { %6695 = vmatprep.subr.bf16.mxu1 %v8243_v0 }
 0x27b   :  { %6724 = vmatpush3.bf16.msra.mxu0 %v7433_v21 }
 0x27c   :  { %6725 = vmatprep.subr.bf16.mxu0 %v8243_v0 }
 0x27f   :  { %6692 = vmatmul.mubr.bf16.vlgmr.msra.gmra.mrb[4].mxu1 %v713_v34  ;;  %6726 = vmatpush3.bf16.msra.mxu0 %v7435_v22 }
 0x280   :  { %6696 = vmatpush3.bf16.xpose.msra.mxu1 %v716_v35  ;;  %6697 = vmatprep.mubr.msk.bf16.mxu1 %vm8244_vm0, %v8243_v0  ;;  %v7424_v35 = vld [vmem:[#allocation11 + $0x48] sm:$0xff]  }
 0x281   :  { %6701 = vmatprep.subr.bf16.mxu1 %v8243_v0  ;;  %6727 = vmatprep.subr.bf16.mxu0 %v8243_v0 }
 0x283   :  { %6728 = vmatpush3.bf16.msra.mxu0 %v7437_v23 }
 0x284   :  { %6753 = vmatprep.subr.bf16.mxu0 %v8243_v0 }
 0x286   :  { %6730 = vmatmul.mubr.bf16.vlgmr.msra.gmra.mrb[8].mxu0 %v8563_v19 }
 0x287   :  { %6698 = vmatmul.mubr.bf16.vlgmr.msra.gmra.mrb[8].mxu1 %v714_v37  ;;  %6769 = vmatprep.mubr.msk.bf16.mxu0 %vm8244_vm0, %v8243_v0  ;;  %v7428_v37 = vld [vmem:[#allocation11 + $0x58] sm:$0xff]  }
 0x288   :  { %6703 = vmatprep.mubr.msk.bf16.mxu1 %vm8244_vm0, %v8243_v0 }
 0x294   :  { %v706_v6 = vpop.f32.mrb[4].mxu0 }
 0x295   :  { %v6687_v7 = vpop.f32.mrb[5].mxu0  ;;  %v707_v10 = vadd.f32 %v5923_v8, %v706_v6 }
 0x296   :  { %v709_v9 = vpop.f32.mrb[6].mxu0  ;;  %v7438_v7 = vld [vmem:[#allocation14 + $0x40] sm:$0xff]  }
 0x297   :  { %v6688_v11 = vpop.f32.mrb[7].mxu0  ;;  %v710_v12 = vadd.f32 %v5923_v8, %v709_v9  ;;  %v822_v13 = vpack.c.bf16 %v707_v10, %v707_v10  ;;  %6754 = vmatpush3.bf16.msra.mxu0 %v7438_v7  ;;  %v7439_v8 = vld [vmem:[#allocation14 + $0x48] sm:$0xff]   ;;  %v7440_v9 = vld [vmem:[#allocation14 + $0x50] sm:$0xff]   ;;  %v7441_v10 = vld [vmem:[#allocation14 + $0x58] sm:$0xff]  }
 0x298   :  { %6755 = vmatprep.subr.bf16.mxu0 %v8243_v0  ;;  %v7442_v11 = vld [vmem:[#allocation14 + $0x60] sm:$0xff]   ;;  %v7473_v7 = vld [vmem:[#allocation8 + $0xd8] sm:$0xff]  }
 0x299   :  { %v829_v14 = vsel %vm827_vm2, %v822_v13, 0  ;;  %v823_v28 = vpack.c.bf16 %v710_v12, %v710_v12  ;;  %v7443_v12 = vld [vmem:[#allocation14 + $0x68] sm:$0xff]   ;;  %v7444_v13 = vld [vmem:[#allocation14 + $0x70] sm:$0xff]  }
 0x29a   :  { %6702 = vmatpush3.bf16.msra.mxu1 %v829_v14  ;;  %v7445_v14 = vld [vmem:[#allocation14 + $0x78] sm:$0xff]  }
 0x29b   :  { %6707 = vmatprep.subr.bf16.mxu1 %v8243_v0  ;;  %v875_v30 = vsel %vm827_vm2, %v823_v28, 0  ;;  %6756 = vmatpush3.bf16.msra.mxu0 %v7439_v8  ;;  %v7474_v8 = vld [vmem:[#allocation8 + $0xe0] sm:$0xff]  }
 0x29c   :  { %6757 = vmatprep.subr.bf16.mxu0 %v8243_v0 }
 0x29f   :  { %6758 = vmatpush3.bf16.msra.mxu0 %v7440_v9  ;;  %v7475_v9 = vld [vmem:[#allocation8 + $0xe8] sm:$0xff]  }
 0x2a0   :  { %6759 = vmatprep.subr.bf16.mxu0 %v8243_v0 }
 0x2a3   :  { %6760 = vmatpush3.bf16.msra.mxu0 %v7441_v10  ;;  %v7476_v10 = vld [vmem:[#allocation8 + $0xf0] sm:$0xff]  }
 0x2a4   :  { %6761 = vmatprep.subr.bf16.mxu0 %v8243_v0 }
 0x2a7   :  { %6762 = vmatpush3.bf16.msra.mxu0 %v7442_v11  ;;  %v7477_v11 = vld [vmem:[#allocation8 + $0xf8] sm:$0xff]  }
 0x2a8   :  { %6763 = vmatprep.subr.bf16.mxu0 %v8243_v0 }
 0x2ab   :  { %6764 = vmatpush3.bf16.msra.mxu0 %v7443_v12  ;;  %v7478_v12 = vld [vmem:[#allocation14 + $0xc0] sm:$0xff]  }
 0x2ac   :  { %6765 = vmatprep.subr.bf16.mxu0 %v8243_v0 }
 0x2af   :  { %6766 = vmatpush3.bf16.msra.mxu0 %v7444_v13  ;;  %v7479_v13 = vld [vmem:[#allocation14 + $0xc8] sm:$0xff]  }
 0x2b0   :  { %6767 = vmatprep.subr.bf16.mxu0 %v8243_v0 }
 0x2b3   :  { %6768 = vmatpush3.bf16.msra.mxu0 %v7445_v14 }
 0x2b4   :  { %6797 = vmatprep.subr.bf16.mxu0 %v8243_v0 }
 0x2b6   :  { %6770 = vmatmul.mubr.bf16.vlgmr.msra.gmra.mrb[12].mxu0 %v8563_v19 }
 0x2b7   :  { %6813 = vmatprep.mubr.msk.bf16.mxu0 %vm8244_vm0, %v8243_v0 }
 0x352   :  { %v751_v47 = vpop.f32.mrb[4].mxu1 }
 0x353   :  { %v752_v48 = vadd.f32 %v751_v47, %v8590_v46  ;;  %v6693_v49 = vpop.f32.mrb[5].mxu1 }
 0x354   :  { %v754_v50 = vpop.f32.mrb[6].mxu1 }
 0x355   :  { %v6694_v51 = vpop.f32.mrb[7].mxu1  ;;  %v798_v52 = vsel %vm797_vm1, %v752_v48, -inf }
 0x356   :  { %799 = vmax.xlane.f32.xlu0 %v798_v52 }
 0x359   :  { %v1026_v42 = vpop.f32.mrb[8].mxu0 }
 0x35a   :  { %v791_v53 = vpop.f32.mrb[8].mxu1  ;;  %v6731_v43 = vpop.f32.mrb[9].mxu0 }
 0x35b   :  { %v792_v54 = vadd.f32 %v791_v53, %v8590_v46  ;;  %v6699_v55 = vpop.f32.mrb[9].mxu1  ;;  %v1029_v44 = vpop.f32.mrb[10].mxu0 }
 0x35c   :  { %v794_v56 = vpop.f32.mrb[10].mxu1  ;;  %v6732_v45 = vpop.f32.mrb[11].mxu0 }
 0x35d   :  { %v6700_v57 = vpop.f32.mrb[11].mxu1  ;;  %v801_v58 = vsel %vm797_vm1, %v792_v54, -inf  ;;  %v5943_v56 = vld [vmem:[#allocation13 + $0x1] ss:$0 sm:$0xff] }
 0x35e   :  { %802 = vmax.xlane.f32.xlu0 %v801_v58 }
 0x3e3   :  { %v800_v59 = vpop.xlane.xlu0 %799 }
 0x3e4   :  { %v804_v60 = vsub.f32 %v752_v48, %v800_v59 }
 0x3e6   :  { %v806_v61 = vmul.f32 1.442695, %v804_v60  ;;  %v5934_v60 = vld [vmem:[#allocation10 + $0x1] ss:$0 sm:$0xff] }
 0x3e8   :  { %7670 = vpow2.f32 %v806_v61 }
 0x3eb   :  { %v803_v62 = vpop.xlane.xlu0 %802 }
 0x3ec   :  { %v805_v63 = vsub.f32 %v792_v54, %v803_v62 }
 0x3ee   :  { %v808_v1 = vmul.f32 1.442695, %v805_v63 }
 0x3f0   :  { %7672 = vpow2.f32 %v808_v1  ;;  %v1027_v1 = vadd.f32 %v5934_v60, %v1026_v42 }
 0x3f2   :  { %v7671_v2 = vpop.eup %7670 }
 0x3f3   :  { %v810_v3 = vsel %vm797_vm1, %v7671_v2, 0.0 }
 0x3f4   :  { %811 = vadd.xlane.f32.xlu1 %v810_v3  ;;  %v1261_v3 = vpack.c.bf16 %v1027_v1, %v1027_v1  ;;  %v7467_v1 = vld [vmem:[#allocation14 + $0xa8] sm:$0xff]  }
 0x3fa   :  { %v7673_v4 = vpop.eup %7672 }
 0x3fb   :  { %v813_v5 = vsel %vm797_vm1, %v7673_v4, 0.0 }
 0x3fc   :  { %814 = vadd.xlane.f32.xlu1 %v813_v5  ;;  %v1030_v5 = vadd.f32 %v5934_v60, %v1029_v44  ;;  %v7463_v60 = vld [vmem:[#allocation14 + $0x88] sm:$0xff]  }
 0x3fe   :  { %v1262_v6 = vpack.c.bf16 %v1030_v5, %v1030_v5  ;;  %v7471_v5 = vld [vmem:[#allocation8 + $0xc8] sm:$0xff]  }
 0x481   :  { %v812_v24 = vpop.xlane.xlu1 %811 }
 0x482   :  { %7674 = vrcp.f32 %v812_v24 }
 0x489   :  { %v815_v25 = vpop.xlane.xlu1 %814 }
 0x48a   :  { %7676 = vrcp.f32 %v815_v25 }
 0x48c   :  { %v7675_v26 = vpop.eup %7674 }
 0x48d   :  { %v818_v27 = vmul.f32 %v7675_v26, %v7671_v2 }
 0x48f   :  { %v820_v29 = vpack.c.bf16 %v818_v27, %v818_v27 }
 0x491   :  { %6704 = vmatmul.mubr.msk.bf16.vlgmr.msra.gmra.mrb[12].mxu1 %vm797_vm1, %v820_v29 }
 0x492   :  { %6708 = vmatpush3.bf16.msra.mxu1 %v875_v30  ;;  %6709 = vmatprep.mubr.msk.bf16.mxu1 %vm8244_vm0, %v8243_v0 }
 0x493   :  { %6733 = vmatprep.subr.bf16.mxu1 %v8243_v0 }
 0x494   :  { %v7677_v31 = vpop.eup %7676 }
 0x495   :  { %v819_v32 = vmul.f32 %v7677_v31, %v7673_v4 }
 0x497   :  { %v821_v34 = vpack.c.bf16 %v819_v32, %v819_v32 }
 0x499   :  { %6710 = vmatmul.mubr.msk.bf16.vlgmr.msra.gmra.mrb[16].mxu1 %vm797_vm1, %v821_v34 }
 0x49a   :  { %6734 = vmatpush3.bf16.msra.mxu1 %v7422_v33  ;;  %6749 = vmatprep.mubr.msk.bf16.mxu1 %vm8244_vm0, %v8243_v0 }
 0x49b   :  { %6735 = vmatprep.subr.bf16.mxu1 %v8243_v0 }
 0x49e   :  { %6736 = vmatpush3.bf16.msra.mxu1 %v7424_v35 }
 0x49f   :  { %6737 = vmatprep.subr.bf16.mxu1 %v8243_v0 }
 0x4a2   :  { %6738 = vmatpush3.bf16.msra.mxu1 %v7426_v36 }
 0x4a3   :  { %6739 = vmatprep.subr.bf16.mxu1 %v8243_v0 }
 0x4a6   :  { %6740 = vmatpush3.bf16.msra.mxu1 %v7428_v37 }
 0x4a7   :  { %6741 = vmatprep.subr.bf16.mxu1 %v8243_v0 }
 0x4aa   :  { %6742 = vmatpush3.bf16.msra.mxu1 %v7430_v38  ;;  %v1254_v38 = vpop.f32.mrb[12].mxu0 }
 0x4ab   :  { %6743 = vmatprep.subr.bf16.mxu1 %v8243_v0 }
 0x4ae   :  { %6744 = vmatpush3.bf16.msra.mxu1 %v7432_v39  ;;  %v6771_v39 = vpop.f32.mrb[13].mxu0 }
 0x4af   :  { %6745 = vmatprep.subr.bf16.mxu1 %v8243_v0  ;;  %v7452_v39 = vld [vmem:[#allocation11 + $0x98] sm:$0xff]  }
 0x4b2   :  { %6746 = vmatpush3.bf16.msra.mxu1 %v7434_v40  ;;  %v5952_v40 = vld [vmem:[#allocation16 + $0x1] ss:$0 sm:$0xff] }
 0x4b3   :  { %6747 = vmatprep.subr.bf16.mxu1 %v8243_v0  ;;  %v1255_v42 = vadd.f32 %v5952_v40, %v1254_v38  ;;  %v7490_v38 = vld [vmem:[#allocation17 + $0x50] sm:$0xff]  }
 0x4b5   :  { %v1369_v45 = vpack.c.bf16 %v1255_v42, %v1255_v42  ;;  %v7454_v42 = vld [vmem:[#allocation11 + $0xa0] sm:$0xff]  }
 0x4b6   :  { %6748 = vmatpush3.bf16.msra.mxu1 %v7436_v41  ;;  %v1257_v41 = vpop.f32.mrb[14].mxu0 }
 0x4b7   :  { %6773 = vmatprep.subr.bf16.mxu1 %v8243_v0  ;;  %v6772_v43 = vpop.f32.mrb[15].mxu0  ;;  %v8665_v44 = vadd.f32 %v5952_v40, %v1257_v41  ;;  %v7491_v40 = vld [vmem:[#allocation17 + $0x10] sm:$0xff]   ;;  %v7492_v41 = vld [vmem:[#allocation17 + $0x58] sm:$0xff]  }
 0x4b8   :  { %v7493_v43 = vld [vmem:[#allocation17 + $0x18] sm:$0xff]  }
 0x4b9   :  { %6750 = vmatmul.mubr.bf16.vlgmr.msra.gmra.mrb[20].mxu1 %v8563_v19 }
 0x4ba   :  { %6775 = vmatprep.mubr.msk.bf16.mxu1 %vm8244_vm0, %v8243_v0 }
 0x564   :  { %v8630_v47 = vpop.f32.mrb[12].mxu1 }
 0x565   :  { %v6705_v48 = vpop.f32.mrb[13].mxu1 }
 0x566   :  { %v868_v49 = vpop.f32.mrb[14].mxu1  ;;  %v1375_v48 = vsel %vm827_vm2, %v1369_v45, 0  ;;  %v7456_v45 = vld [vmem:[#allocation11 + $0xa8] sm:$0xff]  }
 0x567   :  { %v6706_v50 = vpop.f32.mrb[15].mxu1  ;;  %v7447_v49 = vld [vmem:[#allocation8 + $0x80] sm:$0xff]  }
 0x568   :  { %6798 = vmatpush3.bf16.msra.mxu0 %v7447_v49  ;;  %v7449_v50 = vld [vmem:[#allocation8 + $0x88] sm:$0xff]   ;;  %v7458_v49 = vld [vmem:[#allocation11 + $0xb0] sm:$0xff]  }
 0x569   :  { %6799 = vmatprep.subr.bf16.mxu0 %v8243_v0 }
 0x56c   :  { %v8632_v51 = vpop.f32.mrb[16].mxu1  ;;  %6800 = vmatpush3.bf16.msra.mxu0 %v7449_v50  ;;  %v7460_v50 = vld [vmem:[#allocation11 + $0xb8] sm:$0xff]  }
 0x56d   :  { %v6235_v52 = vpack.c.bf16 %v8632_v51, %v8630_v47  ;;  %v6711_v53 = vpop.f32.mrb[17].mxu1  ;;  %6801 = vmatprep.subr.bf16.mxu0 %v8243_v0 }
 0x56e   :  { %v914_v54 = vpop.f32.mrb[18].mxu1  ;;  %v7451_v53 = vld [vmem:[#allocation8 + $0x90] sm:$0xff]  }
 0x56f   :  { %v6712_v55 = vpop.f32.mrb[19].mxu1  ;;  %v7453_v54 = vld [vmem:[#allocation8 + $0x98] sm:$0xff]  }
 0x570   :  { %6802 = vmatpush3.bf16.msra.mxu0 %v7451_v53  ;;  %v7455_v55 = vld [vmem:[#allocation8 + $0xa0] sm:$0xff]   ;;  %v7496_v53 = vld [vmem:[#allocation17 + $0x68] sm:$0xff]  }
 0x571   :  { %6803 = vmatprep.subr.bf16.mxu0 %v8243_v0 }
 0x574   :  { %6804 = vmatpush3.bf16.msra.mxu0 %v7453_v54  ;;  %v7497_v54 = vld [vmem:[#allocation17 + $0x28] sm:$0xff]  }
 0x575   :  { %6805 = vmatprep.subr.bf16.mxu0 %v8243_v0 }
 0x578   :  { %6806 = vmatpush3.bf16.msra.mxu0 %v7455_v55  ;;  %v7498_v55 = vld [vmem:[#allocation17 + $0x70] sm:$0xff]  }
 0x579   :  { %6807 = vmatprep.subr.bf16.mxu0 %v8243_v0 }
 0x58c   :  { %v1140_v57 = vpop.f32.mrb[20].mxu1 }
 0x58d   :  { %v1141_v58 = vadd.f32 %v5943_v56, %v1140_v57  ;;  %v6751_v59 = vpop.f32.mrb[21].mxu1  ;;  %v7459_v57 = vld [vmem:[#allocation8 + $0xb0] sm:$0xff]  }
 0x58e   :  { %v1143_v61 = vpop.f32.mrb[22].mxu1  ;;  %v7462_v59 = vld [vmem:[#allocation14 + $0x80] sm:$0xff]  }
 0x58f   :  { %v1263_v62 = vpack.c.bf16 %v1141_v58, %v1141_v58  ;;  %v6752_v63 = vpop.f32.mrb[23].mxu1  ;;  %v1144_v2 = vadd.f32 %v5943_v56, %v1143_v61  ;;  %v7457_v56 = vld [vmem:[#allocation8 + $0xa8] sm:$0xff]   ;;  %v7461_v58 = vld [vmem:[#allocation8 + $0xb8] sm:$0xff]  }
 0x590   :  { %6808 = vmatpush3.bf16.msra.mxu0 %v7457_v56  ;;  %v7464_v61 = vld [vmem:[#allocation14 + $0x90] sm:$0xff]   ;;  %v7466_v63 = vld [vmem:[#allocation14 + $0xa0] sm:$0xff]  }
 0x591   :  { %6774 = vmatpush3.bf16.xpose.msra.mxu1 %v1263_v62  ;;  %v1264_v4 = vpack.c.bf16 %v1144_v2, %v1144_v2  ;;  %6809 = vmatprep.subr.bf16.mxu0 %v8243_v0  ;;  %v7465_v62 = vld [vmem:[#allocation14 + $0x98] sm:$0xff]   ;;  %v7468_v2 = vld [vmem:[#allocation14 + $0xb0] sm:$0xff]  }
 0x592   :  { %6779 = vmatprep.subr.bf16.mxu1 %v8243_v0  ;;  %v7499_v56 = vld [vmem:[#allocation17 + $0x30] sm:$0xff]  }
 0x594   :  { %6810 = vmatpush3.bf16.msra.mxu0 %v7459_v57  ;;  %v7500_v57 = vld [vmem:[#allocation17 + $0x78] sm:$0xff]  }
 0x595   :  { %6811 = vmatprep.subr.bf16.mxu0 %v8243_v0 }
 0x598   :  { %6776 = vmatmul.mubr.bf16.vlgmr.msra.gmra.mrb[24].mxu1 %v1261_v3  ;;  %6812 = vmatpush3.bf16.msra.mxu0 %v7461_v58  ;;  %v7469_v3 = vld [vmem:[#allocation14 + $0xb8] sm:$0xff]  }
 0x599   :  { %6780 = vmatpush3.bf16.xpose.msra.mxu1 %v1264_v4  ;;  %6781 = vmatprep.mubr.msk.bf16.mxu1 %vm8244_vm0, %v8243_v0  ;;  %v7470_v4 = vld [vmem:[#allocation8 + $0xc0] sm:$0xff]  }
 0x59a   :  { %6785 = vmatprep.subr.bf16.mxu1 %v8243_v0  ;;  %6837 = vmatprep.subr.bf16.mxu0 %v8243_v0  ;;  %v7501_v58 = vld [vmem:[#allocation17 + $0x38] sm:$0xff]  }
 0x59b   :  { %6814 = vmatmul.mubr.bf16.vlgmr.msra.gmra.mrb[16].mxu0 %v8563_v19 }
 0x59c   :  { %6838 = vmatpush3.bf16.msra.mxu0 %v7462_v59  ;;  %6853 = vmatprep.mubr.msk.bf16.mxu0 %vm8244_vm0, %v8243_v0 }
 0x59d   :  { %6839 = vmatprep.subr.bf16.mxu0 %v8243_v0 }
 0x5a0   :  { %6782 = vmatmul.mubr.bf16.vlgmr.msra.gmra.mrb[28].mxu1 %v1262_v6  ;;  %6840 = vmatpush3.bf16.msra.mxu0 %v7463_v60  ;;  %v7472_v6 = vld [vmem:[#allocation8 + $0xd0] sm:$0xff]  }
 0x5a1   :  { %6787 = vmatprep.mubr.msk.bf16.mxu1 %vm8244_vm0, %v8243_v0  ;;  %6786 = vmatpush3.bf16.msra.mxu1 %v1375_v48  ;;  %v7495_v48 = vld [vmem:[#allocation17 + $0x20] sm:$0xff]  }
 0x5a2   :  { %6791 = vmatprep.subr.bf16.mxu1 %v8243_v0  ;;  %6841 = vmatprep.subr.bf16.mxu0 %v8243_v0 }
 0x5a4   :  { %6842 = vmatpush3.bf16.msra.mxu0 %v7464_v61 }
 0x5a5   :  { %6843 = vmatprep.subr.bf16.mxu0 %v8243_v0 }
 0x5a8   :  { %6844 = vmatpush3.bf16.msra.mxu0 %v7465_v62 }
 0x5a9   :  { %6845 = vmatprep.subr.bf16.mxu0 %v8243_v0 }
 0x5ac   :  { %6846 = vmatpush3.bf16.msra.mxu0 %v7466_v63  ;;  %v5981_v63 = vld [vmem:[#allocation16 + $0x2] ss:$0 sm:$0xff] }
 0x5ad   :  { %6847 = vmatprep.subr.bf16.mxu0 %v8243_v0 }
 0x5b0   :  { %6848 = vmatpush3.bf16.msra.mxu0 %v7467_v1 }
 0x5b1   :  { %6849 = vmatprep.subr.bf16.mxu0 %v8243_v0 }
 0x5b4   :  { %6850 = vmatpush3.bf16.msra.mxu0 %v7468_v2 }
 0x5b5   :  { %6851 = vmatprep.subr.bf16.mxu0 %v8243_v0 }
 0x5b8   :  { %6852 = vmatpush3.bf16.msra.mxu0 %v7469_v3 }
 0x5b9   :  { %6881 = vmatprep.subr.bf16.mxu0 %v8243_v0 }
 0x5bb   :  { %6854 = vmatmul.mubr.bf16.vlgmr.msra.gmra.mrb[20].mxu0 %v8563_v19 }
 0x5bc   :  { %6882 = vmatpush3.bf16.msra.mxu0 %v7470_v4  ;;  %6897 = vmatprep.mubr.msk.bf16.mxu0 %vm8244_vm0, %v8243_v0 }
 0x5bd   :  { %6883 = vmatprep.subr.bf16.mxu0 %v8243_v0 }
 0x5c0   :  { %6884 = vmatpush3.bf16.msra.mxu0 %v7471_v5 }
 0x5c1   :  { %6885 = vmatprep.subr.bf16.mxu0 %v8243_v0 }
 0x5c4   :  { %6886 = vmatpush3.bf16.msra.mxu0 %v7472_v6 }
 0x5c5   :  { %6887 = vmatprep.subr.bf16.mxu0 %v8243_v0 }
 0x5c8   :  { %6888 = vmatpush3.bf16.msra.mxu0 %v7473_v7 }
 0x5c9   :  { %6889 = vmatprep.subr.bf16.mxu0 %v8243_v0 }
 0x5cc   :  { %6890 = vmatpush3.bf16.msra.mxu0 %v7474_v8 }
 0x5cd   :  { %6891 = vmatprep.subr.bf16.mxu0 %v8243_v0 }
 0x5d0   :  { %6892 = vmatpush3.bf16.msra.mxu0 %v7475_v9 }
 0x5d1   :  { %6893 = vmatprep.subr.bf16.mxu0 %v8243_v0 }
 0x5d4   :  { %6894 = vmatpush3.bf16.msra.mxu0 %v7476_v10 }
 0x5d5   :  { %6895 = vmatprep.subr.bf16.mxu0 %v8243_v0 }
 0x5d8   :  { %6896 = vmatpush3.bf16.msra.mxu0 %v7477_v11 }
 0x5d9   :  { %6921 = vmatprep.subr.bf16.mxu0 %v8243_v0 }
 0x5db   :  { %6898 = vmatmul.mubr.bf16.vlgmr.msra.gmra.mrb[24].mxu0 %v8563_v19 }
 0x5dc   :  { %6922 = vmatpush3.bf16.msra.mxu0 %v7478_v12  ;;  %6937 = vmatprep.mubr.msk.bf16.mxu0 %vm8244_vm0, %v8243_v0 }
 0x5dd   :  { %6923 = vmatprep.subr.bf16.mxu0 %v8243_v0 }
 0x5e0   :  { %6924 = vmatpush3.bf16.msra.mxu0 %v7479_v13 }
 0x5e1   :  { %6925 = vmatprep.subr.bf16.mxu0 %v8243_v0 }
 0x66b   :  { %v1299_v15 = vpop.f32.mrb[24].mxu1 }
 0x66c   :  { %v1300_v16 = vadd.f32 %v1299_v15, %v8590_v46  ;;  %v6777_v17 = vpop.f32.mrb[25].mxu1  ;;  %v7480_v15 = vld [vmem:[#allocation14 + $0xd0] sm:$0xff]  }
 0x66d   :  { %v1302_v18 = vpop.f32.mrb[26].mxu1  ;;  %6926 = vmatpush3.bf16.msra.mxu0 %v7480_v15 }
 0x66e   :  { %v6778_v20 = vpop.f32.mrb[27].mxu1  ;;  %v1345_v21 = vsel %vm797_vm1, %v1300_v16, -inf  ;;  %6927 = vmatprep.subr.bf16.mxu0 %v8243_v0  ;;  %v7482_v18 = vld [vmem:[#allocation14 + $0xe0] sm:$0xff]   ;;  %v1572_v59 = vpop.f32.mrb[16].mxu0 }
 0x66f   :  { %1346 = vmax.xlane.f32.xlu0 %v1345_v21  ;;  %v6815_v60 = vpop.f32.mrb[17].mxu0 }
 0x670   :  { %v1575_v61 = vpop.f32.mrb[18].mxu0 }
 0x671   :  { %v6816_v62 = vpop.f32.mrb[19].mxu0 }
 0x673   :  { %v1339_v22 = vpop.f32.mrb[28].mxu1 }
 0x674   :  { %v1340_v23 = vadd.f32 %v1339_v22, %v8590_v46  ;;  %v6783_v24 = vpop.f32.mrb[29].mxu1  ;;  %v1370_v22 = vpack.c.bf16 %v8665_v44, %v8665_v44  ;;  %v7494_v44 = vld [vmem:[#allocation17 + $0x60] sm:$0xff]  }
 0x675   :  { %v1342_v25 = vpop.f32.mrb[30].mxu1  ;;  %v7483_v24 = vld [vmem:[#allocation14 + $0xe8] sm:$0xff]  }
 0x676   :  { %v6784_v26 = vpop.f32.mrb[31].mxu1  ;;  %v1348_v27 = vsel %vm797_vm1, %v1340_v23, -inf  ;;  %v1421_v25 = vsel %vm827_vm2, %v1370_v22, 0 }
 0x677   :  { %1349 = vmax.xlane.f32.xlu1 %v1348_v27  ;;  %v7484_v26 = vld [vmem:[#allocation14 + $0xf0] sm:$0xff]  }
 0x68e   :  { %v1800_v1 = vpop.f32.mrb[20].mxu0 }
 0x68f   :  { %v6855_v2 = vpop.f32.mrb[21].mxu0 }
 0x690   :  { %v1803_v3 = vpop.f32.mrb[22].mxu0 }
 0x691   :  { %v8734_v4 = vadd.f32 %v5981_v63, %v1803_v3  ;;  %v6856_v5 = vpop.f32.mrb[23].mxu0 }
 0x6ae   :  { %v8736_v6 = vpop.f32.mrb[24].mxu0 }
 0x6af   :  { %v6899_v7 = vpop.f32.mrb[25].mxu0 }
 0x6b0   :  { %v8738_v8 = vpop.f32.mrb[26].mxu0 }
 0x6b1   :  { %v6900_v9 = vpop.f32.mrb[27].mxu0 }
 0x6fc   :  { %v1347_v28 = vpop.xlane.xlu0 %1346 }
 0x6fd   :  { %v1351_v29 = vsub.f32 %v1300_v16, %v1347_v28  ;;  %v7481_v16 = vld [vmem:[#allocation14 + $0xd8] sm:$0xff]  }
 0x6fe   :  { %6928 = vmatpush3.bf16.msra.mxu0 %v7481_v16 }
 0x6ff   :  { %v1353_v30 = vmul.f32 1.442695, %v1351_v29  ;;  %6929 = vmatprep.subr.bf16.mxu0 %v8243_v0  ;;  %v7446_v29 = vld [vmem:[#allocation11 + $0x80] sm:$0xff]  }
 0x701   :  { %7678 = vpow2.f32 %v1353_v30 }
 0x702   :  { %6930 = vmatpush3.bf16.msra.mxu0 %v7482_v18 }
 0x703   :  { %6931 = vmatprep.subr.bf16.mxu0 %v8243_v0 }
 0x704   :  { %v1350_v31 = vpop.xlane.xlu1 %1349 }
 0x705   :  { %v1352_v32 = vsub.f32 %v1340_v23, %v1350_v31  ;;  %v7485_v31 = vld [vmem:[#allocation14 + $0xf8] sm:$0xff]  }
 0x706   :  { %6932 = vmatpush3.bf16.msra.mxu0 %v7483_v24 }
 0x707   :  { %v1355_v33 = vmul.f32 1.442695, %v1352_v32  ;;  %6933 = vmatprep.subr.bf16.mxu0 %v8243_v0  ;;  %v7486_v32 = vld [vmem:[#allocation17 + $0x40] sm:$0xff]  }
 0x709   :  { %7680 = vpow2.f32 %v1355_v33  ;;  %v7448_v33 = vld [vmem:[#allocation11 + $0x88] sm:$0xff]  }
 0x70a   :  { %6934 = vmatpush3.bf16.msra.mxu0 %v7484_v26  ;;  %v5972_v26 = vld [vmem:[#allocation13 + $0x2] ss:$0 sm:$0xff] }
 0x70b   :  { %v8657_v34 = vpop.eup %7678  ;;  %6935 = vmatprep.subr.bf16.mxu0 %v8243_v0 }
 0x70c   :  { %v1357_v35 = vsel %vm797_vm1, %v8657_v34, 0.0 }
 0x70d   :  { %1358 = vadd.xlane.f32.xlu0 %v1357_v35  ;;  %v7488_v35 = vld [vmem:[#allocation17 + $0x48] sm:$0xff]  }
 0x70e   :  { %6936 = vmatpush3.bf16.msra.mxu0 %v7485_v31 }
 0x70f   :  { %6383 = vmatprep.subr.bf16.mxu0 %v7486_v32 }
 0x711   :  { %6938 = vmatmul.mubr.bf16.vlgmr.msra.gmra.mrb[28].mxu0 %v8563_v19 }
 0x713   :  { %v8661_v36 = vpop.eup %7680 }
 0x714   :  { %v1360_v37 = vsel %vm797_vm1, %v8661_v36, 0.0 }
 0x715   :  { %1361 = vadd.xlane.f32.xlu1 %v1360_v37  ;;  %v7489_v37 = vld [vmem:[#allocation17 + $0x8] sm:$0xff]  }
 0x79a   :  { %v1359_v14 = vpop.xlane.xlu0 %1358 }
 0x79b   :  { %7682 = vrcp.f32 %v1359_v14 }
 0x7a2   :  { %v1362_v17 = vpop.xlane.xlu1 %1361 }
 0x7a3   :  { %7684 = vrcp.f32 %v1362_v17 }
 0x7a5   :  { %v7683_v20 = vpop.eup %7682 }
 0x7a6   :  { %v1365_v21 = vmul.f32 %v7683_v20, %v8657_v34  ;;  %v7487_v34 = vld [vmem:[#allocation17] sm:$0xff]   ;;  %v8743_v20 = vld [vmem:[#allocation16 + $0x3] ss:$0 sm:$0xff] }
 0x7a7   :  { %6384 = vmatpush3.bf16.msra.mxu0 %v7487_v34  ;;  %v1801_v34 = vadd.f32 %v5981_v63, %v1800_v1 }
 0x7a8   :  { %v1367_v23 = vpack.c.bf16 %v1365_v21, %v1365_v21  ;;  %6385 = vmatprep.subr.bf16.mxu0 %v7488_v35 }
 0x7aa   :  { %6788 = vmatmul.mubr.msk.bf16.vlgmr.msra.gmra.mrb[32].mxu1 %vm797_vm1, %v1367_v23 }
 0x7ab   :  { %6792 = vmatpush3.bf16.msra.mxu1 %v1421_v25  ;;  %6793 = vmatprep.mubr.msk.bf16.mxu1 %vm8244_vm0, %v8243_v0 }
 0x7ac   :  { %6817 = vmatprep.subr.bf16.mxu1 %v8243_v0  ;;  %6386 = vmatpush3.bf16.msra.mxu0 %v7489_v37  ;;  %v1915_v37 = vpack.c.bf16 %v1801_v34, %v1801_v34 }
 0x7ad   :  { %v7685_v27 = vpop.eup %7684  ;;  %6387 = vmatprep.subr.bf16.mxu0 %v7490_v38 }
 0x7ae   :  { %v1366_v28 = vmul.f32 %v7685_v27, %v8661_v36  ;;  %v7450_v36 = vld [vmem:[#allocation11 + $0x90] sm:$0xff]  }
 0x7b0   :  { %v1368_v30 = vpack.c.bf16 %v1366_v28, %v1366_v28  ;;  %6388 = vmatpush3.bf16.msra.mxu0 %v7491_v40 }
 0x7b1   :  { %6389 = vmatprep.subr.bf16.mxu0 %v7492_v41 }
 0x7b2   :  { %6794 = vmatmul.mubr.msk.bf16.vlgmr.msra.gmra.mrb[36].mxu1 %vm797_vm1, %v1368_v30  ;;  %v5963_v30 = vld [vmem:[#allocation10 + $0x2] ss:$0 sm:$0xff] }
 0x7b3   :  { %6818 = vmatpush3.bf16.msra.mxu1 %v7446_v29  ;;  %6833 = vmatprep.mubr.msk.bf16.mxu1 %vm8244_vm0, %v8243_v0  ;;  %v1573_v31 = vadd.f32 %v5963_v30, %v1572_v59 }
 0x7b4   :  { %6819 = vmatprep.subr.bf16.mxu1 %v8243_v0  ;;  %6390 = vmatpush3.bf16.msra.mxu0 %v7493_v43 }
 0x7b5   :  { %6391 = vmatprep.subr.bf16.mxu0 %v7494_v44 }
 0x7b7   :  { %6820 = vmatpush3.bf16.msra.mxu1 %v7448_v33  ;;  %v1807_v33 = vpack.c.bf16 %v1573_v31, %v1573_v31 }
 0x7b8   :  { %6821 = vmatprep.subr.bf16.mxu1 %v8243_v0  ;;  %6392 = vmatpush3.bf16.msra.mxu0 %v7495_v48 }
 0x7b9   :  { %6393 = vmatprep.subr.bf16.mxu0 %v7496_v53 }
 0x7bb   :  { %6822 = vmatpush3.bf16.msra.mxu1 %v7450_v36  ;;  %v1576_v36 = vadd.f32 %v5963_v30, %v1575_v61  ;;  %v7508_v30 = vld [vmem:[#allocation11 + $0xf0] sm:$0xff]  }
 0x7bc   :  { %6823 = vmatprep.subr.bf16.mxu1 %v8243_v0  ;;  %6394 = vmatpush3.bf16.msra.mxu0 %v7497_v54 }
 0x7bd   :  { %6395 = vmatprep.subr.bf16.mxu0 %v7498_v55  ;;  %v1808_v38 = vpack.c.bf16 %v1576_v36, %v1576_v36 }
 0x7bf   :  { %6824 = vmatpush3.bf16.msra.mxu1 %v7452_v39  ;;  %v1921_v39 = vsel %vm827_vm2, %v1915_v37, 0 }
 0x7c0   :  { %6825 = vmatprep.subr.bf16.mxu1 %v8243_v0  ;;  %6396 = vmatpush3.bf16.msra.mxu0 %v7499_v56 }
 0x7c1   :  { %6397 = vmatprep.subr.bf16.mxu0 %v7500_v57 }
 0x7c3   :  { %6826 = vmatpush3.bf16.msra.mxu1 %v7454_v42 }
 0x7c4   :  { %6827 = vmatprep.subr.bf16.mxu1 %v8243_v0  ;;  %6398 = vmatpush3.bf16.msra.mxu0 %v7501_v58 }
 0x7c5   :  { %6965 = vmatprep.subr.bf16.mxu0 %v8243_v0 }
 0x7c7   :  { %6828 = vmatpush3.bf16.msra.mxu1 %v7456_v45 }
 0x7c8   :  { %6829 = vmatprep.subr.bf16.mxu1 %v8243_v0 }
 0x7cb   :  { %6830 = vmatpush3.bf16.msra.mxu1 %v7458_v49 }
 0x7cc   :  { %6831 = vmatprep.subr.bf16.mxu1 %v8243_v0 }
 0x7cf   :  { %6832 = vmatpush3.bf16.msra.mxu1 %v7460_v50 }
 0x7d0   :  { %6857 = vmatprep.subr.bf16.mxu1 %v8243_v0 }
 0x7d2   :  { %6834 = vmatmul.mubr.bf16.vlgmr.msra.gmra.mrb[40].mxu1 %v8563_v19 }
 0x7d3   :  { %6859 = vmatprep.mubr.msk.bf16.mxu1 %vm8244_vm0, %v8243_v0 }
 0x7e4   :  { %v8745_v21 = vpop.f32.mrb[28].mxu0 }
 0x7e5   :  { %v6939_v22 = vpop.f32.mrb[29].mxu0 }
 0x7e6   :  { %v2349_v23 = vpop.f32.mrb[30].mxu0 }
 0x7e7   :  { %v8750_v24 = vadd.f32 %v8743_v20, %v2349_v23  ;;  %v6940_v25 = vpop.f32.mrb[31].mxu0  ;;  %v7502_v23 = vld [vmem:[#allocation11 + $0xc0] sm:$0xff]  }
 0x87d   :  { %v1411_v10 = vpop.f32.mrb[32].mxu1 }
 0x87e   :  { %v6789_v11 = vpop.f32.mrb[33].mxu1 }
 0x87f   :  { %v1414_v12 = vpop.f32.mrb[34].mxu1 }
 0x880   :  { %v6790_v13 = vpop.f32.mrb[35].mxu1 }
 0x885   :  { %v1457_v14 = vpop.f32.mrb[36].mxu1 }
 0x886   :  { %v6236_v15 = vpack.c.bf16 %v1457_v14, %v1411_v10  ;;  %v6795_v16 = vpop.f32.mrb[37].mxu1  ;;  %v1916_v14 = vpack.c.bf16 %v8734_v4, %v8734_v4  ;;  %v7503_v4 = vld [vmem:[#allocation11 + $0xc8] sm:$0xff]  }
 0x887   :  { %v1460_v17 = vpop.f32.mrb[38].mxu1 }
 0x888   :  { %v6796_v18 = vpop.f32.mrb[39].mxu1  ;;  %2876 = vmatprep.mubr.bf16.mxu0 %v6236_v15  ;;  %v1967_v17 = vsel %vm827_vm2, %v1916_v14, 0 }
 0x889   :  { %2877 = vmatmul.mubr.bf16.vlgmr.msra.gmra.mrb[32].mxu0 %v6235_v52 }
 0x88a   :  { %6981 = vmatprep.mubr.msk.bf16.mxu0 %vm8244_vm0, %v8243_v0 }
 0x8a5   :  { %v1686_v27 = vpop.f32.mrb[40].mxu1 }
 0x8a6   :  { %v1687_v28 = vadd.f32 %v5972_v26, %v1686_v27  ;;  %v6835_v29 = vpop.f32.mrb[41].mxu1  ;;  %v7505_v27 = vld [vmem:[#allocation11 + $0xd8] sm:$0xff]  }
 0x8a7   :  { %v1689_v47 = vpop.f32.mrb[42].mxu1  ;;  %v7507_v29 = vld [vmem:[#allocation11 + $0xe8] sm:$0xff]  }
 0x8a8   :  { %v1809_v51 = vpack.c.bf16 %v1687_v28, %v1687_v28  ;;  %v6836_v52 = vpop.f32.mrb[43].mxu1  ;;  %v1690_v32 = vadd.f32 %v5972_v26, %v1689_v47  ;;  %v7504_v26 = vld [vmem:[#allocation11 + $0xd0] sm:$0xff]   ;;  %v7506_v28 = vld [vmem:[#allocation11 + $0xe0] sm:$0xff]   ;;  %v7509_v47 = vld [vmem:[#allocation11 + $0xf8] sm:$0xff]  }
 0x8aa   :  { %6858 = vmatpush3.bf16.xpose.msra.mxu1 %v1809_v51  ;;  %v1810_v35 = vpack.c.bf16 %v1690_v32, %v1690_v32 }
 0x8ab   :  { %6863 = vmatprep.subr.bf16.mxu1 %v8243_v0 }
 0x8b1   :  { %6860 = vmatmul.mubr.bf16.vlgmr.msra.gmra.mrb[44].mxu1 %v1807_v33 }
 0x8b2   :  { %6864 = vmatpush3.bf16.xpose.msra.mxu1 %v1810_v35  ;;  %6865 = vmatprep.mubr.msk.bf16.mxu1 %vm8244_vm0, %v8243_v0 }
 0x8b3   :  { %6869 = vmatprep.subr.bf16.mxu1 %v8243_v0 }
 0x8b9   :  { %6866 = vmatmul.mubr.bf16.vlgmr.msra.gmra.mrb[48].mxu1 %v1808_v38  ;;  %v6001_v38 = vld [vmem:[#allocation13 + $0x3] ss:$0 sm:$0xff] }
 0x8ba   :  { %6870 = vmatpush3.bf16.msra.mxu1 %v1921_v39  ;;  %6871 = vmatprep.mubr.msk.bf16.mxu1 %vm8244_vm0, %v8243_v0 }
 0x8bb   :  { %6875 = vmatprep.subr.bf16.mxu1 %v8243_v0 }
 0x95c   :  { %v6399_v40 = vpop.f32.mrb[32].mxu0 }
 0x95d   :  { %v6400_v41 = vpop.f32.mrb[33].mxu0 }
 0x95e   :  { %v8760_v42 = vadd.f32 %v6400_v41, %v6399_v40  ;;  %v6402_v43 = vpop.f32.mrb[34].mxu0  ;;  %v5992_v40 = vld [vmem:[#allocation10 + $0x3] ss:$0 sm:$0xff] }
 0x95f   :  { %v6403_v44 = vpop.f32.mrb[35].mxu0 }
 0x960   :  { %v8762_v45 = vadd.f32 %v6403_v44, %v6402_v43 }
 0x984   :  { %v1845_v48 = vpop.f32.mrb[44].mxu1 }
 0x985   :  { %v1846_v49 = vadd.f32 %v1845_v48, %v8590_v46  ;;  %v6861_v50 = vpop.f32.mrb[45].mxu1 }
 0x986   :  { %v1848_v53 = vpop.f32.mrb[46].mxu1 }
 0x987   :  { %v6862_v54 = vpop.f32.mrb[47].mxu1  ;;  %v1891_v55 = vsel %vm797_vm1, %v1846_v49, -inf }
 0x988   :  { %1892 = vmax.xlane.f32.xlu0 %v1891_v55  ;;  %v2347_v54 = vadd.f32 %v8743_v20, %v8745_v21  ;;  %v7746_v21 = vld [vmem:[#allocation7] sm:$0xff] }
 0x98c   :  { %v1885_v56 = vpop.f32.mrb[48].mxu1 }
 0x98d   :  { %v1886_v57 = vadd.f32 %v1885_v56, %v8590_v46  ;;  %v6867_v58 = vpop.f32.mrb[49].mxu1  ;;  %v2122_v56 = vadd.f32 %v5992_v40, %v8738_v8 }
 0x98e   :  { %v1888_v59 = vpop.f32.mrb[50].mxu1 }
 0x98f   :  { %v6868_v60 = vpop.f32.mrb[51].mxu1  ;;  %v1894_v61 = vsel %vm797_vm1, %v1886_v57, -inf }
 0x990   :  { %1895 = vmax.xlane.f32.xlu1 %v1894_v61 }
 0xa15   :  { %v1893_v62 = vpop.xlane.xlu0 %1892 }
 0xa16   :  { %v1897_v63 = vsub.f32 %v1846_v49, %v1893_v62  ;;  %v2119_v49 = vadd.f32 %v5992_v40, %v8736_v6  ;;  %v2354_v6 = vpack.c.bf16 %v2122_v56, %v2122_v56  ;;  %v7520_v40 = vld [vmem:[#allocation17 + $0xe8] sm:$0xff]  }
 0xa18   :  { %v1899_v1 = vmul.f32 1.442695, %v1897_v63  ;;  %v2353_v53 = vpack.c.bf16 %v2119_v49, %v2119_v49 }
 0xa1a   :  { %7686 = vpow2.f32 %v1899_v1 }
 0xa1d   :  { %v1896_v2 = vpop.xlane.xlu1 %1895 }
 0xa1e   :  { %v1898_v3 = vsub.f32 %v1886_v57, %v1896_v2  ;;  %v2461_v57 = vpack.c.bf16 %v2347_v54, %v2347_v54 }
 0xa20   :  { %v1901_v5 = vmul.f32 1.442695, %v1898_v3  ;;  %v2467_v58 = vsel %vm827_vm2, %v2461_v57, 0 }
 0xa22   :  { %7688 = vpow2.f32 %v1901_v5 }
 0xa24   :  { %v7687_v7 = vpop.eup %7686 }
 0xa25   :  { %v1903_v9 = vsel %vm797_vm1, %v7687_v7, 0.0 }
 0xa26   :  { %1904 = vadd.xlane.f32.xlu0 %v1903_v9 }
 0xa2c   :  { %v7689_v10 = vpop.eup %7688 }
 0xa2d   :  { %v1906_v46 = vsel %vm797_vm1, %v7689_v10, 0.0 }
 0xa2e   :  { %1907 = vadd.xlane.f32.xlu1 %v1906_v46 }
 0xab3   :  { %v1905_v11 = vpop.xlane.xlu0 %1904 }
 0xab4   :  { %7690 = vrcp.f32 %v1905_v11 }
 0xabb   :  { %v1908_v12 = vpop.xlane.xlu1 %1907 }
 0xabc   :  { %7692 = vrcp.f32 %v1908_v12 }
 0xabe   :  { %v7691_v13 = vpop.eup %7690 }
 0xabf   :  { %v1911_v15 = vmul.f32 %v7691_v13, %v7687_v7 }
 0xac1   :  { %v1913_v16 = vpack.c.bf16 %v1911_v15, %v1911_v15 }
 0xac3   :  { %6872 = vmatmul.mubr.msk.bf16.vlgmr.msra.gmra.mrb[52].mxu1 %vm797_vm1, %v1913_v16 }
 0xac4   :  { %6876 = vmatpush3.bf16.msra.mxu1 %v1967_v17  ;;  %6877 = vmatprep.mubr.msk.bf16.mxu1 %vm8244_vm0, %v8243_v0 }
 0xac5   :  { %6901 = vmatprep.subr.bf16.mxu1 %v8243_v0 }
 0xac6   :  { %v7693_v18 = vpop.eup %7692 }
 0xac7   :  { %v1912_v22 = vmul.f32 %v7693_v18, %v7689_v10 }
 0xac9   :  { %v1914_v25 = vpack.c.bf16 %v1912_v22, %v1912_v22 }
 0xacb   :  { %6878 = vmatmul.mubr.msk.bf16.vlgmr.msra.gmra.mrb[56].mxu1 %vm797_vm1, %v1914_v25  ;;  %v2462_v25 = vpack.c.bf16 %v8750_v24, %v8750_v24  ;;  %v7513_v24 = vld [vmem:[#allocation17 + $0x88] sm:$0xff]  }
 0xacc   :  { %6902 = vmatpush3.bf16.msra.mxu1 %v7502_v23  ;;  %6917 = vmatprep.mubr.msk.bf16.mxu1 %vm8244_vm0, %v8243_v0 }
 0xacd   :  { %6903 = vmatprep.subr.bf16.mxu1 %v8243_v0 }
 0xad0   :  { %6904 = vmatpush3.bf16.msra.mxu1 %v7503_v4 }
 0xad1   :  { %6905 = vmatprep.subr.bf16.mxu1 %v8243_v0 }
 0xad4   :  { %6906 = vmatpush3.bf16.msra.mxu1 %v7504_v26 }
 0xad5   :  { %6907 = vmatprep.subr.bf16.mxu1 %v8243_v0 }
 0xad8   :  { %6908 = vmatpush3.bf16.msra.mxu1 %v7505_v27  ;;  %v7510_v27 = vld [vmem:[#allocation17 + $0xc0] sm:$0xff]  }
 0xad9   :  { %6909 = vmatprep.subr.bf16.mxu1 %v8243_v0 }
 0xadc   :  { %6910 = vmatpush3.bf16.msra.mxu1 %v7506_v28  ;;  %v2513_v28 = vsel %vm827_vm2, %v2462_v25, 0  ;;  %v373_v25 = vld [vmem:[#allocation5 + $0x8] sm:$0xff] }
 0xadd   :  { %6911 = vmatprep.subr.bf16.mxu1 %v8243_v0 }
 0xae0   :  { %6912 = vmatpush3.bf16.msra.mxu1 %v7507_v29 }
 0xae1   :  { %6913 = vmatprep.subr.bf16.mxu1 %v8243_v0 }
 0xae4   :  { %6914 = vmatpush3.bf16.msra.mxu1 %v7508_v30 }
 0xae5   :  { %6915 = vmatprep.subr.bf16.mxu1 %v8243_v0 }
 0xae8   :  { %6916 = vmatpush3.bf16.msra.mxu1 %v7509_v47  ;;  %v7511_v47 = vld [vmem:[#allocation17 + $0x80] sm:$0xff]  }
 0xae9   :  { %6941 = vmatprep.subr.bf16.mxu1 %v8243_v0 }
 0xaeb   :  { %6918 = vmatmul.mubr.bf16.vlgmr.msra.gmra.mrb[60].mxu1 %v8563_v19 }
 0xaec   :  { %6943 = vmatprep.mubr.msk.bf16.mxu1 %vm8244_vm0, %v8243_v0 }
 0xb96   :  { %v8791_v51 = vpop.f32.mrb[52].mxu1 }
 0xb97   :  { %v6873_v52 = vpop.f32.mrb[53].mxu1 }
 0xb98   :  { %v1960_v31 = vpop.f32.mrb[54].mxu1 }
 0xb99   :  { %v6874_v32 = vpop.f32.mrb[55].mxu1  ;;  %v7512_v31 = vld [vmem:[#allocation17 + $0xc8] sm:$0xff]  }
 0xb9a   :  { %v7514_v32 = vld [vmem:[#allocation17 + $0xd0] sm:$0xff]  }
 0xb9e   :  { %v8793_v33 = vpop.f32.mrb[56].mxu1 }
 0xb9f   :  { %v6237_v34 = vpack.c.bf16 %v8793_v33, %v8791_v51  ;;  %v6879_v35 = vpop.f32.mrb[57].mxu1 }
 0xba0   :  { %v2006_v36 = vpop.f32.mrb[58].mxu1  ;;  %v7515_v35 = vld [vmem:[#allocation17 + $0x90] sm:$0xff]  }
 0xba1   :  { %v6880_v37 = vpop.f32.mrb[59].mxu1  ;;  %v7516_v36 = vld [vmem:[#allocation17 + $0xd8] sm:$0xff]  }
 0xba2   :  { %v7517_v37 = vld [vmem:[#allocation17 + $0x98] sm:$0xff]  }
 0xbbe   :  { %v2232_v39 = vpop.f32.mrb[60].mxu1 }
 0xbbf   :  { %v2233_v19 = vadd.f32 %v6001_v38, %v2232_v39  ;;  %v6919_v41 = vpop.f32.mrb[61].mxu1  ;;  %v7519_v39 = vld [vmem:[#allocation17 + $0xa0] sm:$0xff]  }
 0xbc0   :  { %v2235_v43 = vpop.f32.mrb[62].mxu1  ;;  %v7522_v41 = vld [vmem:[#allocation17 + $0xf0] sm:$0xff]  }
 0xbc1   :  { %v2355_v44 = vpack.c.bf16 %v2233_v19, %v2233_v19  ;;  %v6920_v48 = vpop.f32.mrb[63].mxu1  ;;  %v2236_v50 = vadd.f32 %v6001_v38, %v2235_v43  ;;  %v7518_v38 = vld [vmem:[#allocation17 + $0xe0] sm:$0xff]   ;;  %v7521_v19 = vld [vmem:[#allocation17 + $0xa8] sm:$0xff]   ;;  %v7523_v43 = vld [vmem:[#allocation17 + $0xb0] sm:$0xff]  }
 0xbc2   :  { %v7525_v48 = vld [vmem:[#allocation17 + $0xb8] sm:$0xff]  }
 0xbc3   :  { %6942 = vmatpush3.bf16.xpose.msra.mxu1 %v2355_v44  ;;  %v2356_v55 = vpack.c.bf16 %v2236_v50, %v2236_v50  ;;  %v7524_v44 = vld [vmem:[#allocation17 + $0xf8] sm:$0xff]  }
 0xbc4   :  { %6947 = vmatprep.subr.bf16.mxu1 %v8243_v0 }
 0xbca   :  { %6944 = vmatmul.mubr.bf16.vlgmr.msra.gmra.mrb[64].mxu1 %v2353_v53 }
 0xbcb   :  { %6948 = vmatpush3.bf16.xpose.msra.mxu1 %v2356_v55  ;;  %6949 = vmatprep.mubr.msk.bf16.mxu1 %vm8244_vm0, %v8243_v0 }
 0xbcc   :  { %6953 = vmatprep.subr.bf16.mxu1 %v8243_v0 }
 0xbd2   :  { %6950 = vmatmul.mubr.bf16.vlgmr.msra.gmra.mrb[68].mxu1 %v2354_v6 }
 0xbd3   :  { %6954 = vmatpush3.bf16.msra.mxu1 %v2467_v58  ;;  %6955 = vmatprep.mubr.msk.bf16.mxu1 %vm8244_vm0, %v8243_v0 }
 0xbd4   :  { %6959 = vmatprep.subr.bf16.mxu1 %v8243_v0 }
 0xc9d   :  { %v2391_v20 = vpop.f32.mrb[64].mxu1 }
 0xc9e   :  { %v2392_v59 = vadd.f32 %v7746_v21, %v2391_v20  ;;  %v6945_v60 = vpop.f32.mrb[65].mxu1  ;;  %v7526_v20 = vld [vmem:[#allocation22] sm:$0xff]  }
 0xc9f   :  { %v2394_v61 = vpop.f32.mrb[66].mxu1 }
 0xca0   :  { %v6946_v62 = vpop.f32.mrb[67].mxu1  ;;  %v2437_v8 = vsel %vm797_vm1, %v2392_v59, -inf }
 0xca1   :  { %2438 = vmax.xlane.f32.xlu0 %v2437_v8 }
 0xca5   :  { %v2431_v63 = vpop.f32.mrb[68].mxu1 }
 0xca6   :  { %v2432_v1 = vadd.f32 %v7746_v21, %v2431_v63  ;;  %v6951_v2 = vpop.f32.mrb[69].mxu1  ;;  %v7527_v21 = vld [vmem:[#allocation22 + $0x8] sm:$0xff]  }
 0xca7   :  { %v2434_v3 = vpop.f32.mrb[70].mxu1 }
 0xca8   :  { %v6952_v5 = vpop.f32.mrb[71].mxu1  ;;  %v2440_v7 = vsel %vm797_vm1, %v2432_v1, -inf  ;;  %v7747_v3 = vld [vmem:[#allocation2] sm:$0xff] }
 0xca9   :  { %2441 = vmax.xlane.f32.xlu1 %v2440_v7  ;;  %v7748_v7 = vld [vmem:[#allocation2 + $0x8] sm:$0xff] }
 0xd2e   :  { %v2439_v9 = vpop.xlane.xlu0 %2438 }
 0xd2f   :  { %v2443_v10 = vsub.f32 %v2392_v59, %v2439_v9  ;;  %v6021_v59 = vld [vmem:[%s9232_s7] ss:$0 sm:$0xff] }
 0xd30   :  { %v2879_v62 = vadd.f32 %v8760_v42, %v6021_v59  ;;  %v2882_v33 = vadd.f32 %v8762_v45, %v6021_v59 }
 0xd31   :  { %v2445_v46 = vmul.f32 1.442695, %v2443_v10  ;;  %v7528_v10 = vld [vmem:[#allocation22 + $0x10] sm:$0xff]  }
 0xd33   :  { %7694 = vpow2.f32 %v2445_v46  ;;  %v7529_v46 = vld [vmem:[#allocation19] sm:$0xff]  }
 0xd34   :  { %6966 = vmatpush3.bf16.msra.mxu0 %v7529_v46  ;;  %v7560_v46 = vld [vmem:[#allocation25 + $0x50] sm:$0xff]  }
 0xd35   :  { %6967 = vmatprep.subr.bf16.mxu0 %v8243_v0 }
 0xd36   :  { %v2442_v11 = vpop.xlane.xlu1 %2441 }
 0xd37   :  { %v2444_v12 = vsub.f32 %v2432_v1, %v2442_v11  ;;  %v7530_v11 = vld [vmem:[#allocation22 + $0x18] sm:$0xff]  }
 0xd39   :  { %v2447_v13 = vmul.f32 1.442695, %v2444_v12  ;;  %v7531_v12 = vld [vmem:[#allocation19 + $0x8] sm:$0xff]  }
 0xd3a   :  { %6968 = vmatpush3.bf16.msra.mxu0 %v7531_v12  ;;  %v7561_v12 = vld [vmem:[#allocation25 + $0x58] sm:$0xff]  }
 0xd3b   :  { %7696 = vpow2.f32 %v2447_v13  ;;  %6969 = vmatprep.subr.bf16.mxu0 %v8243_v0  ;;  %v7532_v13 = vld [vmem:[#allocation22 + $0x20] sm:$0xff]  }
 0xd3d   :  { %v7695_v14 = vpop.eup %7694 }
 0xd3e   :  { %v2449_v15 = vsel %vm797_vm1, %v7695_v14, 0.0 }
 0xd3f   :  { %2450 = vadd.xlane.f32.xlu0 %v2449_v15  ;;  %v7534_v15 = vld [vmem:[#allocation22 + $0x28] sm:$0xff]  }
 0xd45   :  { %v7697_v16 = vpop.eup %7696 }
 0xd46   :  { %v2452_v17 = vsel %vm797_vm1, %v7697_v16, 0.0 }
 0xd47   :  { %2453 = vadd.xlane.f32.xlu1 %v2452_v17  ;;  %v7536_v17 = vld [vmem:[#allocation22 + $0x30] sm:$0xff]  }
 0xdcc   :  { %v2451_v18 = vpop.xlane.xlu0 %2450 }
 0xdcd   :  { %7698 = vrcp.f32 %v2451_v18  ;;  %v7537_v18 = vld [vmem:[#allocation19 + $0x20] sm:$0xff]  }
 0xdd4   :  { %v2454_v22 = vpop.xlane.xlu1 %2453 }
 0xdd5   :  { %7700 = vrcp.f32 %v2454_v22  ;;  %v7538_v22 = vld [vmem:[#allocation22 + $0x38] sm:$0xff]  }
 0xdd7   :  { %v7699_v23 = vpop.eup %7698 }
 0xdd8   :  { %v2457_v4 = vmul.f32 %v7699_v23, %v7695_v14  ;;  %v7533_v14 = vld [vmem:[#allocation19 + $0x10] sm:$0xff]   ;;  %v372_v23 = vld [vmem:[#allocation5] sm:$0xff] }
 0xdd9   :  { %6970 = vmatpush3.bf16.msra.mxu0 %v7533_v14 }
 0xdda   :  { %v2459_v26 = vpack.c.bf16 %v2457_v4, %v2457_v4  ;;  %6971 = vmatprep.subr.bf16.mxu0 %v8243_v0  ;;  %v7539_v4 = vld [vmem:[#allocation19 + $0x28] sm:$0xff]  }
 0xddc   :  { %6956 = vmatmul.mubr.msk.bf16.vlgmr.msra.gmra.mrb[72].mxu1 %vm797_vm1, %v2459_v26  ;;  %v8851_v26 = vpack.c.bf16 %v373_v25, %v372_v23  ;;  %v7563_v25 = vld [vmem:[#allocation25 + $0x68] sm:$0xff]  }
 0xddd   :  { %6960 = vmatpush3.bf16.msra.mxu1 %v2513_v28  ;;  %6961 = vmatprep.mubr.msk.bf16.mxu1 %vm8244_vm0, %v8243_v0  ;;  %v7541_v28 = vld [vmem:[#allocation19 + $0x38] sm:$0xff]  }
 0xdde   :  { %6405 = vmatprep.subr.bf16.mxu1 %v7510_v27  ;;  %v7540_v27 = vld [vmem:[#allocation19 + $0x30] sm:$0xff]  }
 0xddf   :  { %v7701_v29 = vpop.eup %7700 }
 0xde0   :  { %v2458_v30 = vmul.f32 %v7701_v29, %v7697_v16  ;;  %v7535_v16 = vld [vmem:[#allocation19 + $0x18] sm:$0xff]  }
 0xde1   :  { %6972 = vmatpush3.bf16.msra.mxu0 %v7535_v16 }
 0xde2   :  { %v2460_v52 = vpack.c.bf16 %v2458_v30, %v2458_v30  ;;  %6973 = vmatprep.subr.bf16.mxu0 %v8243_v0 }
 0xde4   :  { %6962 = vmatmul.mubr.msk.bf16.vlgmr.msra.gmra.mrb[76].mxu1 %vm797_vm1, %v2460_v52 }
 0xde5   :  { %6406 = vmatpush3.bf16.msra.mxu1 %v7511_v47  ;;  %6974 = vmatpush3.bf16.msra.mxu0 %v7537_v18 }
 0xde6   :  { %6407 = vmatprep.subr.bf16.mxu1 %v7512_v31  ;;  %6975 = vmatprep.subr.bf16.mxu0 %v8243_v0 }
 0xde9   :  { %6408 = vmatpush3.bf16.msra.mxu1 %v7513_v24  ;;  %6976 = vmatpush3.bf16.msra.mxu0 %v7539_v4  ;;  %v7564_v4 = vld [vmem:[#allocation25 + $0x70] sm:$0xff]  }
 0xdea   :  { %6409 = vmatprep.subr.bf16.mxu1 %v7514_v32  ;;  %6977 = vmatprep.subr.bf16.mxu0 %v8243_v0 }
 0xded   :  { %6410 = vmatpush3.bf16.msra.mxu1 %v7515_v35  ;;  %6978 = vmatpush3.bf16.msra.mxu0 %v7540_v27  ;;  %v7565_v27 = vld [vmem:[#allocation25 + $0x78] sm:$0xff]  }
 0xdee   :  { %6411 = vmatprep.subr.bf16.mxu1 %v7516_v36  ;;  %6979 = vmatprep.subr.bf16.mxu0 %v8243_v0 }
 0xdf1   :  { %6412 = vmatpush3.bf16.msra.mxu1 %v7517_v37  ;;  %6980 = vmatpush3.bf16.msra.mxu0 %v7541_v28  ;;  %v7566_v28 = vld [vmem:[#allocation19 + $0x80] sm:$0xff]  }
 0xdf2   :  { %6413 = vmatprep.subr.bf16.mxu1 %v7518_v38  ;;  %7005 = vmatprep.subr.bf16.mxu0 %v8243_v0 }
 0xdf5   :  { %6414 = vmatpush3.bf16.msra.mxu1 %v7519_v39 }
 0xdf6   :  { %6415 = vmatprep.subr.bf16.mxu1 %v7520_v40 }
 0xdf9   :  { %6416 = vmatpush3.bf16.msra.mxu1 %v7521_v19 }
 0xdfa   :  { %6417 = vmatprep.subr.bf16.mxu1 %v7522_v41 }
 0xdfd   :  { %6418 = vmatpush3.bf16.msra.mxu1 %v7523_v43 }
 0xdfe   :  { %6419 = vmatprep.subr.bf16.mxu1 %v7524_v44 }
 0xe01   :  { %6420 = vmatpush3.bf16.msra.mxu1 %v7525_v48 }
 0xe02   :  { %6985 = vmatprep.subr.bf16.mxu1 %v8243_v0 }
 0xeaf   :  { %v2503_v49 = vpop.f32.mrb[72].mxu1 }
 0xeb0   :  { %v6957_v50 = vpop.f32.mrb[73].mxu1 }
 0xeb1   :  { %v2506_v53 = vpop.f32.mrb[74].mxu1 }
 0xeb2   :  { %v6958_v54 = vpop.f32.mrb[75].mxu1 }
 0xeb7   :  { %v2549_v55 = vpop.f32.mrb[76].mxu1 }
 0xeb8   :  { %v6238_v56 = vpack.c.bf16 %v2549_v55, %v2503_v49  ;;  %v6963_v57 = vpop.f32.mrb[77].mxu1  ;;  %v6058_v49 = vld [vmem:[%s9233_s9] ss:$0 sm:$0xff] }
 0xeb9   :  { %v2552_v6 = vpop.f32.mrb[78].mxu1  ;;  %v6059_v57 = vld [vmem:[%s9234_s20] ss:$0 sm:$0xff] }
 0xeba   :  { %v6964_v58 = vpop.f32.mrb[79].mxu1  ;;  %2917 = vmatprep.mubr.bf16.mxu1 %v6238_v56 }
 0xebb   :  { %2918 = vmatmul.mubr.bf16.vlgmr.msra.gmra.mrb[80].mxu1 %v6237_v34 }
 0xebc   :  { %7001 = vmatprep.mubr.msk.bf16.mxu1 %vm8244_vm0, %v8243_v0  ;;  %6986 = vmatpush3.bf16.msra.mxu1 %v7526_v20 }
 0xebd   :  { %6987 = vmatprep.subr.bf16.mxu1 %v8243_v0 }
 0xec0   :  { %6988 = vmatpush3.bf16.msra.mxu1 %v7527_v21  ;;  %v7542_v21 = vld [vmem:[#allocation25] sm:$0xff]  }
 0xec1   :  { %6989 = vmatprep.subr.bf16.mxu1 %v8243_v0 }
 0xec4   :  { %6990 = vmatpush3.bf16.msra.mxu1 %v7528_v10  ;;  %v7559_v10 = vld [vmem:[#allocation25 + $0x48] sm:$0xff]  }
 0xec5   :  { %6991 = vmatprep.subr.bf16.mxu1 %v8243_v0 }
 0xec8   :  { %6992 = vmatpush3.bf16.msra.mxu1 %v7530_v11  ;;  %v6069_v11 = vld [vmem:[#allocation23] ss:$0 sm:$0xff] }
 0xec9   :  { %6993 = vmatprep.subr.bf16.mxu1 %v8243_v0 }
 0xecc   :  { %6994 = vmatpush3.bf16.msra.mxu1 %v7532_v13 }
 0xecd   :  { %6995 = vmatprep.subr.bf16.mxu1 %v8243_v0 }
 0xed0   :  { %6996 = vmatpush3.bf16.msra.mxu1 %v7534_v15 }
 0xed1   :  { %6997 = vmatprep.subr.bf16.mxu1 %v8243_v0 }
 0xed4   :  { %6998 = vmatpush3.bf16.msra.mxu1 %v7536_v17  ;;  %v7562_v17 = vld [vmem:[#allocation25 + $0x60] sm:$0xff]  }
 0xed5   :  { %6999 = vmatprep.subr.bf16.mxu1 %v8243_v0 }
 0xed8   :  { %7000 = vmatpush3.bf16.msra.mxu1 %v7538_v22 }
 0xed9   :  { %7025 = vmatprep.subr.bf16.mxu1 %v8243_v0 }
 0xedb   :  { %7002 = vmatmul.mubr.bf16.vlgmr.msra.gmra.mrb[84].mxu1 %v8851_v26 }
 0xedc   :  { %7027 = vmatprep.mubr.msk.bf16.mxu1 %vm8244_vm0, %v8243_v0 }
 0xf8e   :  { %v6421_v60 = vpop.f32.mrb[80].mxu1 }
 0xf8f   :  { %v6422_v61 = vpop.f32.mrb[81].mxu1 }
 0xf90   :  { %v6423_v8 = vadd.f32 %v6422_v61, %v6421_v60  ;;  %v6424_v63 = vpop.f32.mrb[82].mxu1  ;;  %v7543_v60 = vld [vmem:[#allocation25 + $0x8] sm:$0xff]   ;;  %v7544_v61 = vld [vmem:[#allocation25 + $0x10] sm:$0xff]  }
 0xf91   :  { %v6425_v51 = vpop.f32.mrb[83].mxu1 }
 0xf92   :  { %v2920_v34 = vadd.f32 %v6423_v8, %v2879_v62  ;;  %v6426_v1 = vadd.f32 %v6425_v51, %v6424_v63  ;;  %v7545_v62 = vld [vmem:[#allocation25 + $0x18] sm:$0xff]   ;;  %v7546_v8 = vld [vmem:[#allocation25 + $0x20] sm:$0xff]   ;;  %v7547_v63 = vld [vmem:[#allocation25 + $0x28] sm:$0xff]  }
 0xf93   :  { %v7548_v51 = vld [vmem:[#allocation25 + $0x30] sm:$0xff]  }
 0xf94   :  { %v2923_v2 = vadd.f32 %v6426_v1, %v2882_v33  ;;  %v8831_v5 = vadd.f32 %v7747_v3, %v2920_v34  ;;  %v7549_v33 = vld [vmem:[#allocation25 + $0x38] sm:$0xff]   ;;  %v7551_v1 = vld [vmem:[#allocation19 + $0x48] sm:$0xff]   ;;  %v7553_v3 = vld [vmem:[#allocation19 + $0x58] sm:$0xff]  }
 0xf95   :  { %v7550_v34 = vld [vmem:[#allocation19 + $0x40] sm:$0xff]  }
 0xf96   :  { %2928 = vadd.xlane.f32.xlu0 %v8831_v5  ;;  %v8834_v9 = vadd.f32 %v7748_v7, %v2923_v2  ;;  %v2934_v42 = vmul.f32 %v8831_v5, %v8831_v5  ;;  %v7552_v2 = vld [vmem:[#allocation19 + $0x50] sm:$0xff]   ;;  %v7555_v7 = vld [vmem:[#allocation19 + $0x68] sm:$0xff]  }
 0xf98   :  { %2930 = vadd.xlane.f32.xlu1 %v8834_v9  ;;  %v2935_v45 = vmul.f32 %v8834_v9, %v8834_v9 }
 0xf9a   :  { %2936 = vadd.xlane.f32.xlu0 %v2934_v42  ;;  %v7557_v42 = vld [vmem:[#allocation19 + $0x78] sm:$0xff]  }
 0xf9c   :  { %2938 = vadd.xlane.f32.xlu1 %v2935_v45  ;;  %v7558_v45 = vld [vmem:[#allocation25 + $0x40] sm:$0xff]  }
 0xfae   :  { %v3193_v13 = vpop.f32.mrb[84].mxu1 }
 0xfaf   :  { %v3194_v14 = vadd.f32 %v6069_v11, %v3193_v13  ;;  %v7003_v15 = vpop.f32.mrb[85].mxu1 }
 0xfb0   :  { %v3196_v16 = vpop.f32.mrb[86].mxu1 }
 0xfb1   :  { %v3314_v18 = vpack.c.bf16 %v3194_v14, %v3194_v14  ;;  %v8900_v22 = vadd.f32 %v6069_v11, %v3196_v16  ;;  %v7004_v23 = vpop.f32.mrb[87].mxu1  ;;  %v8959_v11 = vld [vmem:[#allocation26 + $0x1] ss:$0 sm:$0xff] }
 0xfb3   :  { %7026 = vmatpush3.bf16.xpose.msra.mxu1 %v3314_v18 }
 0xfb4   :  { %7031 = vmatprep.subr.bf16.mxu1 %v8243_v0 }
0x1023   :  { %v2929_v29 = vpop.xlane.xlu0 %2928 }
0x1024   :  { %v2932_v30 = vmul.f32 0.03125, %v2929_v29  ;;  %v7567_v29 = vld [vmem:[#allocation19 + $0x88] sm:$0xff]  }
0x1025   :  { %v2931_v47 = vpop.xlane.xlu1 %2930 }
0x1026   :  { %v2933_v52 = vmul.f32 0.03125, %v2931_v47  ;;  %v2942_v24 = vmul.f32 %v2932_v30, %v2932_v30  ;;  %v2948_v44 = vsub.f32 %v8831_v5, %v2932_v30  ;;  %v7554_v5 = vld [vmem:[#allocation19 + $0x60] sm:$0xff]   ;;  %v7568_v30 = vld [vmem:[#allocation19 + $0x90] sm:$0xff]   ;;  %v7569_v47 = vld [vmem:[#allocation19 + $0x98] sm:$0xff]  }
0x1027   :  { %v2937_v31 = vpop.xlane.xlu0 %2936 }
0x1028   :  { %v2940_v32 = vmul.f32 0.03125, %v2937_v31  ;;  %v2943_v36 = vmul.f32 %v2933_v52, %v2933_v52  ;;  %v2949_v50 = vsub.f32 %v8834_v9, %v2933_v52  ;;  %v7556_v9 = vld [vmem:[#allocation19 + $0x70] sm:$0xff]   ;;  %v7570_v52 = vld [vmem:[#allocation19 + $0xa0] sm:$0xff]   ;;  %v7571_v31 = vld [vmem:[#allocation19 + $0xa8] sm:$0xff]  }
0x1029   :  { %v2939_v35 = vpop.xlane.xlu1 %2938 }
0x102a   :  { %v2944_v37 = vsub.f32 %v2940_v32, %v2942_v24  ;;  %v2941_v38 = vmul.f32 0.03125, %v2939_v35  ;;  %v7572_v24 = vld [vmem:[#allocation19 + $0xb0] sm:$0xff]   ;;  %v7573_v32 = vld [vmem:[#allocation19 + $0xb8] sm:$0xff]   ;;  %v7574_v35 = vld [vmem:[#allocation25 + $0x80] sm:$0xff]  }
0x102c   :  { %v2946_v39 = vmax.f32 %v2944_v37, 0.0  ;;  %v2945_v40 = vsub.f32 %v2941_v38, %v2943_v36  ;;  %v7575_v36 = vld [vmem:[#allocation25 + $0x88] sm:$0xff]   ;;  %v7576_v37 = vld [vmem:[#allocation25 + $0x90] sm:$0xff]   ;;  %v7577_v38 = vld [vmem:[#allocation25 + $0x98] sm:$0xff]  }
0x102e   :  { %v2950_v19 = vadd.f32 1e-05, %v2946_v39  ;;  %v2947_v41 = vmax.f32 %v2945_v40, 0.0  ;;  %v7578_v39 = vld [vmem:[#allocation25 + $0xa0] sm:$0xff]   ;;  %v7579_v40 = vld [vmem:[#allocation25 + $0xa8] sm:$0xff]  }
0x1030   :  { %7702 = vrsqrt.f32 %v2950_v19  ;;  %v2951_v43 = vadd.f32 1e-05, %v2947_v41  ;;  %v7580_v19 = vld [vmem:[#allocation25 + $0xb0] sm:$0xff]   ;;  %v7581_v41 = vld [vmem:[#allocation25 + $0xb8] sm:$0xff]  }
0x1032   :  { %7704 = vrsqrt.f32 %v2951_v43  ;;  %v7582_v43 = vld [vmem:[#allocation19 + $0xc0] sm:$0xff]  }
0x103a   :  { %v7703_v48 = vpop.eup %7702 }
0x103b   :  { %v2954_v53 = vmul.f32 %v7703_v48, %v2948_v44  ;;  %v7583_v44 = vld [vmem:[#allocation19 + $0xc8] sm:$0xff]   ;;  %v7584_v48 = vld [vmem:[#allocation19 + $0xd0] sm:$0xff]  }
0x103c   :  { %v7705_v54 = vpop.eup %7704 }
0x103d   :  { %v2955_v55 = vmul.f32 %v7705_v54, %v2949_v50  ;;  %v2963_v56 = vmul.f32 %v6058_v49, %v2954_v53  ;;  %v7586_v50 = vld [vmem:[#allocation19 + $0xe0] sm:$0xff]   ;;  %v7587_v53 = vld [vmem:[#allocation19 + $0xe8] sm:$0xff]   ;;  %v7588_v54 = vld [vmem:[#allocation19 + $0xf0] sm:$0xff]  }
0x103f   :  { %v2964_v6 = vmul.f32 %v6058_v49, %v2955_v55  ;;  %v8864_v58 = vadd.f32 %v6059_v57, %v2963_v56  ;;  %v7585_v49 = vld [vmem:[#allocation19 + $0xd8] sm:$0xff]   ;;  %v6060_v56 = vld [vmem:[#allocation20] ss:$0 sm:$0xff] }
0x1040   :  { %v7589_v55 = vld [vmem:[#allocation19 + $0xf8] sm:$0xff]  }
0x1041   :  { %v8866_v20 = vadd.f32 %v6059_v57, %v2964_v6 }
0x1043   :  { %v8870_v59 = vpack.c.bf16 %v8866_v20, %v8864_v58 }
0x1045   :  { %6982 = vmatmul.mubr.bf16.vlgmr.msra.gmra.mrb[36].mxu0 %v8870_v59 }
0x1046   :  { %7006 = vmatpush3.bf16.msra.mxu0 %v7542_v21  ;;  %7021 = vmatprep.mubr.msk.bf16.mxu0 %vm8244_vm0, %v8243_v0 }
0x1047   :  { %7007 = vmatprep.subr.bf16.mxu0 %v8243_v0 }
0x104a   :  { %7008 = vmatpush3.bf16.msra.mxu0 %v7543_v60 }
0x104b   :  { %7009 = vmatprep.subr.bf16.mxu0 %v8243_v0 }
0x104e   :  { %7010 = vmatpush3.bf16.msra.mxu0 %v7544_v61 }
0x104f   :  { %7011 = vmatprep.subr.bf16.mxu0 %v8243_v0 }
0x1052   :  { %7012 = vmatpush3.bf16.msra.mxu0 %v7545_v62 }
0x1053   :  { %7013 = vmatprep.subr.bf16.mxu0 %v8243_v0 }
0x1056   :  { %7014 = vmatpush3.bf16.msra.mxu0 %v7546_v8  ;;  %v3315_v8 = vpack.c.bf16 %v8900_v22, %v8900_v22 }
0x1057   :  { %7015 = vmatprep.subr.bf16.mxu0 %v8243_v0 }
0x105a   :  { %7016 = vmatpush3.bf16.msra.mxu0 %v7547_v63 }
0x105b   :  { %7017 = vmatprep.subr.bf16.mxu0 %v8243_v0 }
0x105e   :  { %7018 = vmatpush3.bf16.msra.mxu0 %v7548_v51  ;;  %v6078_v51 = vld [vmem:[#allocation26] ss:$0 sm:$0xff] }
0x105f   :  { %7019 = vmatprep.subr.bf16.mxu0 %v8243_v0 }
0x1062   :  { %7020 = vmatpush3.bf16.msra.mxu0 %v7549_v33 }
0x1063   :  { %7049 = vmatprep.subr.bf16.mxu0 %v8243_v0 }
0x1065   :  { %7022 = vmatmul.mubr.bf16.vlgmr.msra.gmra.mrb[40].mxu0 %v8851_v26 }
0x1066   :  { %7050 = vmatpush3.bf16.msra.mxu0 %v7550_v34  ;;  %7065 = vmatprep.mubr.msk.bf16.mxu0 %vm8244_vm0, %v8243_v0 }
0x1067   :  { %7051 = vmatprep.subr.bf16.mxu0 %v8243_v0 }
0x106a   :  { %7052 = vmatpush3.bf16.msra.mxu0 %v7551_v1 }
0x106b   :  { %7053 = vmatprep.subr.bf16.mxu0 %v8243_v0 }
0x106e   :  { %7054 = vmatpush3.bf16.msra.mxu0 %v7552_v2 }
0x106f   :  { %7055 = vmatprep.subr.bf16.mxu0 %v8243_v0 }
0x1072   :  { %7056 = vmatpush3.bf16.msra.mxu0 %v7553_v3 }
0x1073   :  { %7057 = vmatprep.subr.bf16.mxu0 %v8243_v0 }
0x1076   :  { %7058 = vmatpush3.bf16.msra.mxu0 %v7554_v5 }
0x1077   :  { %7059 = vmatprep.subr.bf16.mxu0 %v8243_v0 }
0x107a   :  { %7060 = vmatpush3.bf16.msra.mxu0 %v7555_v7 }
0x107b   :  { %7061 = vmatprep.subr.bf16.mxu0 %v8243_v0 }
0x107e   :  { %7062 = vmatpush3.bf16.msra.mxu0 %v7556_v9 }
0x107f   :  { %7063 = vmatprep.subr.bf16.mxu0 %v8243_v0 }
0x1082   :  { %7064 = vmatpush3.bf16.msra.mxu0 %v7557_v42 }
0x1083   :  { %7089 = vmatprep.subr.bf16.mxu0 %v8243_v0 }
0x1085   :  { %7066 = vmatmul.mubr.bf16.vlgmr.msra.gmra.mrb[44].mxu0 %v8870_v59 }
0x1086   :  { %7090 = vmatpush3.bf16.msra.mxu0 %v7558_v45  ;;  %7105 = vmatprep.mubr.msk.bf16.mxu0 %vm8244_vm0, %v8243_v0 }
0x1087   :  { %7091 = vmatprep.subr.bf16.mxu0 %v8243_v0 }
0x108a   :  { %7092 = vmatpush3.bf16.msra.mxu0 %v7559_v10 }
0x108b   :  { %7093 = vmatprep.subr.bf16.mxu0 %v8243_v0 }
0x108e   :  { %7094 = vmatpush3.bf16.msra.mxu0 %v7560_v46 }
0x108f   :  { %7095 = vmatprep.subr.bf16.mxu0 %v8243_v0 }
0x1092   :  { %7096 = vmatpush3.bf16.msra.mxu0 %v7561_v12 }
0x1093   :  { %7097 = vmatprep.subr.bf16.mxu0 %v8243_v0 }
0x1096   :  { %7098 = vmatpush3.bf16.msra.mxu0 %v7562_v17 }
0x1097   :  { %7099 = vmatprep.subr.bf16.mxu0 %v8243_v0 }
0x109a   :  { %7100 = vmatpush3.bf16.msra.mxu0 %v7563_v25  ;;  %v8970_v25 = vld [vmem:[#allocation26 + $0x2] ss:$0 sm:$0xff] }
0x109b   :  { %7101 = vmatprep.subr.bf16.mxu0 %v8243_v0 }
0x109e   :  { %7102 = vmatpush3.bf16.msra.mxu0 %v7564_v4 }
0x109f   :  { %7103 = vmatprep.subr.bf16.mxu0 %v8243_v0 }
0x10a2   :  { %7104 = vmatpush3.bf16.msra.mxu0 %v7565_v27 }
0x10a3   :  { %7133 = vmatprep.subr.bf16.mxu0 %v8243_v0 }
0x10a5   :  { %7106 = vmatmul.mubr.bf16.vlgmr.msra.gmra.mrb[48].mxu0 %v8851_v26 }
0x10a6   :  { %7134 = vmatpush3.bf16.msra.mxu0 %v7566_v28  ;;  %7149 = vmatprep.mubr.msk.bf16.mxu0 %vm8244_vm0, %v8243_v0 }
0x10a7   :  { %7135 = vmatprep.subr.bf16.mxu0 %v8243_v0 }
0x10aa   :  { %7136 = vmatpush3.bf16.msra.mxu0 %v7567_v29 }
0x10ab   :  { %7137 = vmatprep.subr.bf16.mxu0 %v8243_v0 }
0x10ae   :  { %7138 = vmatpush3.bf16.msra.mxu0 %v7568_v30 }
0x10af   :  { %7139 = vmatprep.subr.bf16.mxu0 %v8243_v0 }
0x10b2   :  { %7140 = vmatpush3.bf16.msra.mxu0 %v7569_v47 }
0x10b3   :  { %7141 = vmatprep.subr.bf16.mxu0 %v8243_v0 }
0x10b6   :  { %7142 = vmatpush3.bf16.msra.mxu0 %v7570_v52 }
0x10b7   :  { %7143 = vmatprep.subr.bf16.mxu0 %v8243_v0 }
0x10ba   :  { %7144 = vmatpush3.bf16.msra.mxu0 %v7571_v31 }
0x10bb   :  { %7145 = vmatprep.subr.bf16.mxu0 %v8243_v0 }
0x10be   :  { %7146 = vmatpush3.bf16.msra.mxu0 %v7572_v24 }
0x10bf   :  { %7147 = vmatprep.subr.bf16.mxu0 %v8243_v0 }
0x10c2   :  { %7148 = vmatpush3.bf16.msra.mxu0 %v7573_v32  ;;  %v8982_v32 = vld [vmem:[%s9235_s10] sm:$0xff] }
0x10c3   :  { %7173 = vmatprep.subr.bf16.mxu0 %v8243_v0 }
0x10c5   :  { %7150 = vmatmul.mubr.bf16.vlgmr.msra.gmra.mrb[52].mxu0 %v8870_v59 }
0x10c6   :  { %7174 = vmatpush3.bf16.msra.mxu0 %v7574_v35  ;;  %7189 = vmatprep.mubr.msk.bf16.mxu0 %vm8244_vm0, %v8243_v0 }
0x10c7   :  { %7175 = vmatprep.subr.bf16.mxu0 %v8243_v0 }
0x10ca   :  { %7176 = vmatpush3.bf16.msra.mxu0 %v7575_v36 }
0x10cb   :  { %7177 = vmatprep.subr.bf16.mxu0 %v8243_v0 }
0x10ce   :  { %7178 = vmatpush3.bf16.msra.mxu0 %v7576_v37 }
0x10cf   :  { %7179 = vmatprep.subr.bf16.mxu0 %v8243_v0 }
0x10d2   :  { %7180 = vmatpush3.bf16.msra.mxu0 %v7577_v38 }
0x10d3   :  { %7181 = vmatprep.subr.bf16.mxu0 %v8243_v0 }
0x10d6   :  { %7182 = vmatpush3.bf16.msra.mxu0 %v7578_v39 }
0x10d7   :  { %7183 = vmatprep.subr.bf16.mxu0 %v8243_v0 }
0x10da   :  { %7184 = vmatpush3.bf16.msra.mxu0 %v7579_v40 }
0x10db   :  { %7185 = vmatprep.subr.bf16.mxu0 %v8243_v0 }
0x10de   :  { %7186 = vmatpush3.bf16.msra.mxu0 %v7580_v19 }
0x10df   :  { %7187 = vmatprep.subr.bf16.mxu0 %v8243_v0 }
0x10e2   :  { %7188 = vmatpush3.bf16.msra.mxu0 %v7581_v41 }
0x10e3   :  { %7217 = vmatprep.subr.bf16.mxu0 %v8243_v0 }
0x10e5   :  { %7190 = vmatmul.mubr.bf16.vlgmr.msra.gmra.mrb[56].mxu0 %v8851_v26 }
0x10e6   :  { %7218 = vmatpush3.bf16.msra.mxu0 %v7582_v43  ;;  %7233 = vmatprep.mubr.msk.bf16.mxu0 %vm8244_vm0, %v8243_v0 }
0x10e7   :  { %7219 = vmatprep.subr.bf16.mxu0 %v8243_v0 }
0x10ea   :  { %7220 = vmatpush3.bf16.msra.mxu0 %v7583_v44 }
0x10eb   :  { %7221 = vmatprep.subr.bf16.mxu0 %v8243_v0 }
0x10ee   :  { %7222 = vmatpush3.bf16.msra.mxu0 %v7584_v48 }
0x10ef   :  { %7223 = vmatprep.subr.bf16.mxu0 %v8243_v0 }
0x10f2   :  { %7224 = vmatpush3.bf16.msra.mxu0 %v7585_v49 }
0x10f3   :  { %7225 = vmatprep.subr.bf16.mxu0 %v8243_v0 }
0x10f6   :  { %7226 = vmatpush3.bf16.msra.mxu0 %v7586_v50 }
0x10f7   :  { %7227 = vmatprep.subr.bf16.mxu0 %v8243_v0 }
0x10fa   :  { %7228 = vmatpush3.bf16.msra.mxu0 %v7587_v53 }
0x10fb   :  { %7229 = vmatprep.subr.bf16.mxu0 %v8243_v0 }
0x10fe   :  { %7230 = vmatpush3.bf16.msra.mxu0 %v7588_v54 }
0x10ff   :  { %7231 = vmatprep.subr.bf16.mxu0 %v8243_v0 }
0x1102   :  { %7232 = vmatpush3.bf16.msra.mxu0 %v7589_v55 }
0x1103   :  { %7257 = vmatprep.subr.bf16.mxu0 %v8243_v0 }
0x1105   :  { %7234 = vmatmul.mubr.bf16.vlgmr.msra.gmra.mrb[60].mxu0 %v8870_v59 }
0x1106   :  { %7273 = vmatprep.mubr.msk.bf16.mxu0 %vm8244_vm0, %v8243_v0 }
0x1118   :  { %v3081_v57 = vpop.f32.mrb[36].mxu0 }
0x1119   :  { %v3082_v6 = vadd.f32 %v6060_v56, %v3081_v57  ;;  %v6983_v21 = vpop.f32.mrb[37].mxu0 }
0x111a   :  { %v3084_v60 = vpop.f32.mrb[38].mxu0 }
0x111b   :  { %v3312_v61 = vpack.c.bf16 %v3082_v6, %v3082_v6  ;;  %v6984_v62 = vpop.f32.mrb[39].mxu0  ;;  %v3085_v63 = vadd.f32 %v6060_v56, %v3084_v60 }
0x111d   :  { %7028 = vmatmul.mubr.bf16.vlgmr.msra.gmra.mrb[88].mxu1 %v3312_v61  ;;  %v3313_v59 = vpack.c.bf16 %v3085_v63, %v3085_v63 }
0x111e   :  { %7032 = vmatpush3.bf16.xpose.msra.mxu1 %v3315_v8  ;;  %7033 = vmatprep.mubr.msk.bf16.mxu1 %vm8244_vm0, %v8243_v0 }
0x111f   :  { %7037 = vmatprep.subr.bf16.mxu1 %v8243_v0 }
0x1125   :  { %7034 = vmatmul.mubr.bf16.vlgmr.msra.gmra.mrb[92].mxu1 %v3313_v59 }
0x1126   :  { %7039 = vmatprep.mubr.msk.bf16.mxu1 %vm8244_vm0, %v8243_v0 }
0x1138   :  { %v3305_v33 = vpop.f32.mrb[40].mxu0 }
0x1139   :  { %v3306_v34 = vadd.f32 %v6078_v51, %v3305_v33  ;;  %v7023_v1 = vpop.f32.mrb[41].mxu0 }
0x113a   :  { %v3308_v2 = vpop.f32.mrb[42].mxu0 }
0x113b   :  { %v3420_v3 = vpack.c.bf16 %v3306_v34, %v3306_v34  ;;  %v8951_v5 = vadd.f32 %v6078_v51, %v3308_v2  ;;  %v7024_v7 = vpop.f32.mrb[43].mxu0 }
0x113d   :  { %v3426_v9 = vsel %vm827_vm2, %v3420_v3, 0  ;;  %v3421_v59 = vpack.c.bf16 %v8951_v5, %v8951_v5  ;;  %v7590_v3 = vld [vmem:[#allocation22 + $0x40] sm:$0xff]   ;;  %v7591_v5 = vld [vmem:[#allocation22 + $0x48] sm:$0xff]  }
0x113e   :  { %7038 = vmatpush3.bf16.msra.mxu1 %v3426_v9  ;;  %v7592_v9 = vld [vmem:[#allocation22 + $0x50] sm:$0xff]  }
0x113f   :  { %7043 = vmatprep.subr.bf16.mxu1 %v8243_v0  ;;  %v3472_v34 = vsel %vm827_vm2, %v3421_v59, 0 }
0x1158   :  { %v8955_v42 = vpop.f32.mrb[44].mxu0 }
0x1159   :  { %v7067_v45 = vpop.f32.mrb[45].mxu0 }
0x115a   :  { %v8957_v10 = vpop.f32.mrb[46].mxu0  ;;  %v7593_v45 = vld [vmem:[#allocation22 + $0x58] sm:$0xff]  }
0x115b   :  { %v7068_v46 = vpop.f32.mrb[47].mxu0 }
0x115c   :  { %v7594_v46 = vld [vmem:[#allocation22 + $0x60] sm:$0xff]  }
0x1178   :  { %v8961_v12 = vpop.f32.mrb[48].mxu0 }
0x1179   :  { %v7107_v13 = vpop.f32.mrb[49].mxu0 }
0x117a   :  { %v3854_v14 = vpop.f32.mrb[50].mxu0  ;;  %v7595_v13 = vld [vmem:[#allocation22 + $0x68] sm:$0xff]  }
0x117b   :  { %v8964_v15 = vadd.f32 %v8959_v11, %v3854_v14  ;;  %v7108_v16 = vpop.f32.mrb[51].mxu0  ;;  %v7596_v14 = vld [vmem:[#allocation22 + $0x70] sm:$0xff]  }
0x117c   :  { %v7597_v16 = vld [vmem:[#allocation22 + $0x78] sm:$0xff]  }
0x1198   :  { %v8966_v17 = vpop.f32.mrb[52].mxu0 }
0x1199   :  { %v7151_v18 = vpop.f32.mrb[53].mxu0 }
0x119a   :  { %v8968_v22 = vpop.f32.mrb[54].mxu0 }
0x119b   :  { %v7152_v23 = vpop.f32.mrb[55].mxu0 }
0x11b8   :  { %v8972_v4 = vpop.f32.mrb[56].mxu0 }
0x11b9   :  { %v7191_v27 = vpop.f32.mrb[57].mxu0 }
0x11ba   :  { %v4400_v28 = vpop.f32.mrb[58].mxu0 }
0x11bb   :  { %v8975_v29 = vadd.f32 %v8970_v25, %v4400_v28  ;;  %v7192_v30 = vpop.f32.mrb[59].mxu0 }
0x11d8   :  { %v8977_v47 = vpop.f32.mrb[60].mxu0 }
0x11d9   :  { %v7235_v52 = vpop.f32.mrb[61].mxu0 }
0x11da   :  { %v8979_v31 = vpop.f32.mrb[62].mxu0 }
0x11db   :  { %v7236_v24 = vpop.f32.mrb[63].mxu0 }
0x11f0   :  { %v3350_v35 = vpop.f32.mrb[88].mxu1 }
0x11f1   :  { %v3351_v36 = vadd.f32 %v3350_v35, %v8982_v32  ;;  %v7029_v37 = vpop.f32.mrb[89].mxu1 }
0x11f2   :  { %v3353_v38 = vpop.f32.mrb[90].mxu1  ;;  %v6098_v37 = vld [vmem:[#allocation23 + $0x1] ss:$0 sm:$0xff] }
0x11f3   :  { %v7030_v39 = vpop.f32.mrb[91].mxu1  ;;  %v3396_v40 = vsel %vm797_vm1, %v3351_v36, -inf }
0x11f4   :  { %3397 = vmax.xlane.f32.xlu0 %v3396_v40 }
0x11f8   :  { %v3390_v19 = vpop.f32.mrb[92].mxu1 }
0x11f9   :  { %v3391_v41 = vadd.f32 %v3390_v19, %v8982_v32  ;;  %v7035_v43 = vpop.f32.mrb[93].mxu1 }
0x11fa   :  { %v3393_v44 = vpop.f32.mrb[94].mxu1 }
0x11fb   :  { %v7036_v48 = vpop.f32.mrb[95].mxu1  ;;  %v3399_v49 = vsel %vm797_vm1, %v3391_v41, -inf }
0x11fc   :  { %3400 = vmax.xlane.f32.xlu1 %v3399_v49 }
0x1281   :  { %v3398_v50 = vpop.xlane.xlu0 %3397 }
0x1282   :  { %v3402_v53 = vsub.f32 %v3351_v36, %v3398_v50 }
0x1284   :  { %v3404_v54 = vmul.f32 1.442695, %v3402_v53  ;;  %v3852_v53 = vadd.f32 %v8959_v11, %v8961_v12 }
0x1286   :  { %7706 = vpow2.f32 %v3404_v54 }
0x1289   :  { %v3401_v55 = vpop.xlane.xlu1 %3400 }
0x128a   :  { %v3403_v56 = vsub.f32 %v3391_v41, %v3401_v55  ;;  %v6089_v41 = vld [vmem:[#allocation20 + $0x1] ss:$0 sm:$0xff] }
0x128b   :  { %v3624_v48 = vadd.f32 %v6089_v41, %v8955_v42  ;;  %v3627_v55 = vadd.f32 %v6089_v41, %v8957_v10  ;;  %v7620_v41 = vld [vmem:[#allocation28 + $0x58] sm:$0xff]  }
0x128c   :  { %v3406_v57 = vmul.f32 1.442695, %v3403_v56  ;;  %v3966_v56 = vpack.c.bf16 %v3852_v53, %v3852_v53 }
0x128d   :  { %v3858_v50 = vpack.c.bf16 %v3624_v48, %v3624_v48  ;;  %v7623_v48 = vld [vmem:[#allocation28 + $0x20] sm:$0xff]  }
0x128e   :  { %7708 = vpow2.f32 %v3406_v57  ;;  %v3859_v57 = vpack.c.bf16 %v3627_v55, %v3627_v55  ;;  %v3972_v42 = vsel %vm827_vm2, %v3966_v56, 0 }
0x1290   :  { %v7707_v6 = vpop.eup %7706 }
0x1291   :  { %v3408_v21 = vsel %vm797_vm1, %v7707_v6, 0.0 }
0x1292   :  { %3409 = vadd.xlane.f32.xlu0 %v3408_v21 }
0x1298   :  { %v7709_v60 = vpop.eup %7708 }
0x1299   :  { %v3411_v61 = vsel %vm797_vm1, %v7709_v60, 0.0 }
0x129a   :  { %3412 = vadd.xlane.f32.xlu1 %v3411_v61 }
0x131f   :  { %v3410_v62 = vpop.xlane.xlu0 %3409 }
0x1320   :  { %7710 = vrcp.f32 %v3410_v62 }
0x1327   :  { %v3413_v8 = vpop.xlane.xlu1 %3412 }
0x1328   :  { %7712 = vrcp.f32 %v3413_v8 }
0x132a   :  { %v7711_v63 = vpop.eup %7710 }
0x132b   :  { %v3416_v51 = vmul.f32 %v7711_v63, %v7707_v6 }
0x132d   :  { %v3418_v33 = vpack.c.bf16 %v3416_v51, %v3416_v51 }
0x132f   :  { %7040 = vmatmul.mubr.msk.bf16.vlgmr.msra.gmra.mrb[96].mxu1 %vm797_vm1, %v3418_v33 }
0x1330   :  { %7044 = vmatpush3.bf16.msra.mxu1 %v3472_v34  ;;  %7045 = vmatprep.mubr.msk.bf16.mxu1 %vm8244_vm0, %v8243_v0 }
0x1331   :  { %7069 = vmatprep.subr.bf16.mxu1 %v8243_v0 }
0x1332   :  { %v7713_v1 = vpop.eup %7712 }
0x1333   :  { %v3417_v2 = vmul.f32 %v7713_v1, %v7709_v60 }
0x1335   :  { %v3419_v7 = vpack.c.bf16 %v3417_v2, %v3417_v2 }
0x1337   :  { %7046 = vmatmul.mubr.msk.bf16.vlgmr.msra.gmra.mrb[100].mxu1 %vm797_vm1, %v3419_v7 }
0x1338   :  { %7070 = vmatpush3.bf16.msra.mxu1 %v7590_v3  ;;  %7085 = vmatprep.mubr.msk.bf16.mxu1 %vm8244_vm0, %v8243_v0 }
0x1339   :  { %7071 = vmatprep.subr.bf16.mxu1 %v8243_v0 }
0x133c   :  { %7072 = vmatpush3.bf16.msra.mxu1 %v7591_v5 }
0x133d   :  { %7073 = vmatprep.subr.bf16.mxu1 %v8243_v0 }
0x1340   :  { %7074 = vmatpush3.bf16.msra.mxu1 %v7592_v9 }
0x1341   :  { %7075 = vmatprep.subr.bf16.mxu1 %v8243_v0 }
0x1344   :  { %7076 = vmatpush3.bf16.msra.mxu1 %v7593_v45 }
0x1345   :  { %7077 = vmatprep.subr.bf16.mxu1 %v8243_v0 }
0x1348   :  { %7078 = vmatpush3.bf16.msra.mxu1 %v7594_v46 }
0x1349   :  { %7079 = vmatprep.subr.bf16.mxu1 %v8243_v0 }
0x134c   :  { %7080 = vmatpush3.bf16.msra.mxu1 %v7595_v13  ;;  %v7606_v13 = vld [vmem:[#allocation25 + $0xc0] sm:$0xff]  }
0x134d   :  { %7081 = vmatprep.subr.bf16.mxu1 %v8243_v0  ;;  %7258 = vmatpush3.bf16.msra.mxu0 %v7606_v13 }
0x134e   :  { %7259 = vmatprep.subr.bf16.mxu0 %v8243_v0 }
0x1350   :  { %7082 = vmatpush3.bf16.msra.mxu1 %v7596_v14  ;;  %v7607_v14 = vld [vmem:[#allocation25 + $0xc8] sm:$0xff]  }
0x1351   :  { %7083 = vmatprep.subr.bf16.mxu1 %v8243_v0  ;;  %7260 = vmatpush3.bf16.msra.mxu0 %v7607_v14 }
0x1352   :  { %7261 = vmatprep.subr.bf16.mxu0 %v8243_v0 }
0x1354   :  { %7084 = vmatpush3.bf16.msra.mxu1 %v7597_v16  ;;  %v7608_v16 = vld [vmem:[#allocation25 + $0xd0] sm:$0xff]  }
0x1355   :  { %7109 = vmatprep.subr.bf16.mxu1 %v8243_v0  ;;  %7262 = vmatpush3.bf16.msra.mxu0 %v7608_v16 }
0x1356   :  { %7263 = vmatprep.subr.bf16.mxu0 %v8243_v0 }
0x1357   :  { %7086 = vmatmul.mubr.bf16.vlgmr.msra.gmra.mrb[104].mxu1 %v8851_v26 }
0x1358   :  { %7111 = vmatprep.mubr.msk.bf16.mxu1 %vm8244_vm0, %v8243_v0 }
0x1402   :  { %v9011_v18 = vpop.f32.mrb[96].mxu1 }
0x1403   :  { %v7041_v23 = vpop.f32.mrb[97].mxu1 }
0x1404   :  { %v3465_v27 = vpop.f32.mrb[98].mxu1  ;;  %v7609_v23 = vld [vmem:[#allocation25 + $0xd8] sm:$0xff]  }
0x1405   :  { %v7042_v28 = vpop.f32.mrb[99].mxu1  ;;  %7264 = vmatpush3.bf16.msra.mxu0 %v7609_v23  ;;  %v7610_v27 = vld [vmem:[#allocation25 + $0xe0] sm:$0xff]  }
0x1406   :  { %7265 = vmatprep.subr.bf16.mxu0 %v8243_v0  ;;  %v7611_v28 = vld [vmem:[#allocation25 + $0xe8] sm:$0xff]  }
0x1409   :  { %7266 = vmatpush3.bf16.msra.mxu0 %v7610_v27 }
0x140a   :  { %v9013_v30 = vpop.f32.mrb[100].mxu1  ;;  %7267 = vmatprep.subr.bf16.mxu0 %v8243_v0 }
0x140b   :  { %v6239_v52 = vpack.c.bf16 %v9013_v30, %v9011_v18  ;;  %v7047_v24 = vpop.f32.mrb[101].mxu1  ;;  %v4398_v18 = vadd.f32 %v8970_v25, %v8972_v4 }
0x140c   :  { %v3511_v35 = vpop.f32.mrb[102].mxu1  ;;  %v7612_v24 = vld [vmem:[#allocation25 + $0xf0] sm:$0xff]  }
0x140d   :  { %v7048_v36 = vpop.f32.mrb[103].mxu1  ;;  %7268 = vmatpush3.bf16.msra.mxu0 %v7611_v28  ;;  %v7613_v35 = vld [vmem:[#allocation25 + $0xf8] sm:$0xff]  }
0x140e   :  { %7269 = vmatprep.subr.bf16.mxu0 %v8243_v0  ;;  %v7614_v36 = vld [vmem:[#allocation28 + $0x40] sm:$0xff]  }
0x1411   :  { %7270 = vmatpush3.bf16.msra.mxu0 %v7612_v24 }
0x1412   :  { %7271 = vmatprep.subr.bf16.mxu0 %v8243_v0 }
0x1415   :  { %7272 = vmatpush3.bf16.msra.mxu0 %v7613_v35 }
0x1416   :  { %6567 = vmatprep.subr.bf16.mxu0 %v7614_v36  ;;  %v6127_v36 = vld [vmem:[#allocation23 + $0x2] ss:$0 sm:$0xff] }
0x1418   :  { %7274 = vmatmul.mubr.bf16.vlgmr.msra.gmra.mrb[64].mxu0 %v8851_v26 }
0x142a   :  { %v3737_v38 = vpop.f32.mrb[104].mxu1 }
0x142b   :  { %v3738_v39 = vadd.f32 %v6098_v37, %v3737_v38  ;;  %v7087_v40 = vpop.f32.mrb[105].mxu1  ;;  %v7616_v38 = vld [vmem:[#allocation28 + $0x48] sm:$0xff]  }
0x142c   :  { %v3740_v19 = vpop.f32.mrb[106].mxu1  ;;  %v7618_v40 = vld [vmem:[#allocation28 + $0x50] sm:$0xff]  }
0x142d   :  { %v3860_v43 = vpack.c.bf16 %v3738_v39, %v3738_v39  ;;  %v7088_v44 = vpop.f32.mrb[107].mxu1  ;;  %v3741_v49 = vadd.f32 %v6098_v37, %v3740_v19  ;;  %v7615_v37 = vld [vmem:[#allocation28] sm:$0xff]   ;;  %v7617_v39 = vld [vmem:[#allocation28 + $0x8] sm:$0xff]   ;;  %v7619_v19 = vld [vmem:[#allocation28 + $0x10] sm:$0xff]  }
0x142e   :  { %6568 = vmatpush3.bf16.msra.mxu0 %v7615_v37  ;;  %v7622_v44 = vld [vmem:[#allocation28 + $0x60] sm:$0xff]  }
0x142f   :  { %7110 = vmatpush3.bf16.xpose.msra.mxu1 %v3860_v43  ;;  %v3861_v54 = vpack.c.bf16 %v3741_v49, %v3741_v49  ;;  %6569 = vmatprep.subr.bf16.mxu0 %v7616_v38  ;;  %v7621_v43 = vld [vmem:[#allocation28 + $0x18] sm:$0xff]  }
0x1430   :  { %7115 = vmatprep.subr.bf16.mxu1 %v8243_v0 }
0x1432   :  { %6570 = vmatpush3.bf16.msra.mxu0 %v7617_v39 }
0x1433   :  { %6571 = vmatprep.subr.bf16.mxu0 %v7618_v40 }
0x1436   :  { %7112 = vmatmul.mubr.bf16.vlgmr.msra.gmra.mrb[108].mxu1 %v3858_v50  ;;  %6572 = vmatpush3.bf16.msra.mxu0 %v7619_v19  ;;  %v6118_v19 = vld [vmem:[#allocation20 + $0x2] ss:$0 sm:$0xff] }
0x1437   :  { %7116 = vmatpush3.bf16.xpose.msra.mxu1 %v3861_v54  ;;  %7117 = vmatprep.mubr.msk.bf16.mxu1 %vm8244_vm0, %v8243_v0  ;;  %v3967_v54 = vpack.c.bf16 %v8964_v15, %v8964_v15  ;;  %v7599_v15 = vld [vmem:[#allocation22 + $0x88] sm:$0xff]  }
0x1438   :  { %7121 = vmatprep.subr.bf16.mxu1 %v8243_v0  ;;  %6573 = vmatprep.subr.bf16.mxu0 %v7620_v41 }
0x143a   :  { %6574 = vmatpush3.bf16.msra.mxu0 %v7621_v43 }
0x143b   :  { %6575 = vmatprep.subr.bf16.mxu0 %v7622_v44  ;;  %v4170_v44 = vadd.f32 %v6118_v19, %v8966_v17 }
0x143e   :  { %7118 = vmatmul.mubr.bf16.vlgmr.msra.gmra.mrb[112].mxu1 %v3859_v57  ;;  %6576 = vmatpush3.bf16.msra.mxu0 %v7623_v48  ;;  %v4018_v57 = vsel %vm827_vm2, %v3967_v54, 0 }
0x143f   :  { %7122 = vmatpush3.bf16.msra.mxu1 %v3972_v42  ;;  %7123 = vmatprep.mubr.msk.bf16.mxu1 %vm8244_vm0, %v8243_v0 }
0x1440   :  { %7127 = vmatprep.subr.bf16.mxu1 %v8243_v0 }
0x1509   :  { %v3896_v11 = vpop.f32.mrb[108].mxu1 }
0x150a   :  { %v3897_v12 = vadd.f32 %v3896_v11, %v8982_v32  ;;  %v7113_v6 = vpop.f32.mrb[109].mxu1 }
0x150b   :  { %v3899_v21 = vpop.f32.mrb[110].mxu1 }
0x150c   :  { %v7114_v60 = vpop.f32.mrb[111].mxu1  ;;  %v3942_v10 = vsel %vm797_vm1, %v3897_v12, -inf  ;;  %v7600_v21 = vld [vmem:[#allocation22 + $0x90] sm:$0xff]  }
0x150d   :  { %3943 = vmax.xlane.f32.xlu0 %v3942_v10  ;;  %v7601_v60 = vld [vmem:[#allocation22 + $0x98] sm:$0xff]   ;;  %v7602_v10 = vld [vmem:[#allocation22 + $0xa0] sm:$0xff]  }
0x1511   :  { %v3936_v61 = vpop.f32.mrb[112].mxu1 }
0x1512   :  { %v3937_v62 = vadd.f32 %v3936_v61, %v8982_v32  ;;  %v7119_v8 = vpop.f32.mrb[113].mxu1  ;;  %v7603_v61 = vld [vmem:[#allocation22 + $0xa8] sm:$0xff]  }
0x1513   :  { %v3939_v63 = vpop.f32.mrb[114].mxu1  ;;  %v7605_v8 = vld [vmem:[#allocation22 + $0xb8] sm:$0xff]  }
0x1514   :  { %v7120_v59 = vpop.f32.mrb[115].mxu1  ;;  %v3945_v51 = vsel %vm797_vm1, %v3937_v62, -inf  ;;  %v7624_v63 = vld [vmem:[#allocation28 + $0x68] sm:$0xff]  }
0x1515   :  { %3946 = vmax.xlane.f32.xlu1 %v3945_v51  ;;  %v7625_v59 = vld [vmem:[#allocation28 + $0x28] sm:$0xff]   ;;  %6577 = vmatprep.subr.bf16.mxu0 %v7624_v63  ;;  %v7626_v51 = vld [vmem:[#allocation28 + $0x70] sm:$0xff]  }
0x1516   :  { %6578 = vmatpush3.bf16.msra.mxu0 %v7625_v59 }
0x1517   :  { %6579 = vmatprep.subr.bf16.mxu0 %v7626_v51 }
0x159a   :  { %v3944_v33 = vpop.xlane.xlu0 %3943 }
0x159b   :  { %v3948_v34 = vsub.f32 %v3897_v12, %v3944_v33  ;;  %v7598_v12 = vld [vmem:[#allocation22 + $0x80] sm:$0xff]   ;;  %v7627_v33 = vld [vmem:[#allocation28 + $0x30] sm:$0xff]  }
0x159c   :  { %6580 = vmatpush3.bf16.msra.mxu0 %v7627_v33 }
0x159d   :  { %v3950_v1 = vmul.f32 1.442695, %v3948_v34  ;;  %v7628_v34 = vld [vmem:[#allocation28 + $0x78] sm:$0xff]  }
0x159e   :  { %6581 = vmatprep.subr.bf16.mxu0 %v7628_v34 }
0x159f   :  { %7714 = vpow2.f32 %v3950_v1  ;;  %v7629_v1 = vld [vmem:[#allocation28 + $0x38] sm:$0xff]  }
0x15a0   :  { %6582 = vmatpush3.bf16.msra.mxu0 %v7629_v1 }
0x15a1   :  { %7301 = vmatprep.subr.bf16.mxu0 %v8243_v0 }
0x15a2   :  { %v3947_v2 = vpop.xlane.xlu1 %3946 }
0x15a3   :  { %v3949_v3 = vsub.f32 %v3937_v62, %v3947_v2  ;;  %v7604_v62 = vld [vmem:[#allocation22 + $0xb0] sm:$0xff]   ;;  %v9065_v2 = vld [vmem:[#allocation26 + $0x3] ss:$0 sm:$0xff] }
0x15a5   :  { %v3952_v7 = vmul.f32 1.442695, %v3949_v3  ;;  %v9067_v3 = vpop.f32.mrb[64].mxu0 }
0x15a7   :  { %7716 = vpow2.f32 %v3952_v7  ;;  %v7275_v7 = vpop.f32.mrb[65].mxu0 }
0x15a9   :  { %v7715_v5 = vpop.eup %7714 }
0x15aa   :  { %v3954_v9 = vsel %vm797_vm1, %v7715_v5, 0.0 }
0x15ab   :  { %3955 = vadd.xlane.f32.xlu0 %v3954_v9 }
0x15b1   :  { %v7717_v45 = vpop.eup %7716 }
0x15b2   :  { %v3957_v46 = vsel %vm797_vm1, %v7717_v45, 0.0 }
0x15b3   :  { %3958 = vadd.xlane.f32.xlu1 %v3957_v46 }
0x1638   :  { %v3956_v49 = vpop.xlane.xlu0 %3955 }
0x1639   :  { %7718 = vrcp.f32 %v3956_v49  ;;  %v4404_v49 = vpack.c.bf16 %v4170_v44, %v4170_v44  ;;  %v7637_v44 = vld [vmem:[#allocation22 + $0xf8] sm:$0xff]  }
0x1640   :  { %v3959_v50 = vpop.xlane.xlu1 %3958 }
0x1641   :  { %7720 = vrcp.f32 %v3959_v50  ;;  %v4512_v50 = vpack.c.bf16 %v4398_v18, %v4398_v18 }
0x1643   :  { %v7719_v53 = vpop.eup %7718  ;;  %v4518_v17 = vsel %vm827_vm2, %v4512_v50, 0 }
0x1644   :  { %v3962_v55 = vmul.f32 %v7719_v53, %v7715_v5  ;;  %v4946_v5 = vpop.f32.mrb[66].mxu0 }
0x1645   :  { %v9070_v9 = vadd.f32 %v9065_v2, %v4946_v5 }
0x1646   :  { %v3964_v56 = vpack.c.bf16 %v3962_v55, %v3962_v55 }
0x1648   :  { %7124 = vmatmul.mubr.msk.bf16.vlgmr.msra.gmra.mrb[116].mxu1 %vm797_vm1, %v3964_v56 }
0x1649   :  { %7128 = vmatpush3.bf16.msra.mxu1 %v4018_v57  ;;  %7129 = vmatprep.mubr.msk.bf16.mxu1 %vm8244_vm0, %v8243_v0 }
0x164a   :  { %7153 = vmatprep.subr.bf16.mxu1 %v8243_v0 }
0x164b   :  { %v7721_v42 = vpop.eup %7720 }
0x164c   :  { %v3963_v11 = vmul.f32 %v7721_v42, %v7717_v45  ;;  %v7276_v45 = vpop.f32.mrb[67].mxu0 }
0x164e   :  { %v3965_v6 = vpack.c.bf16 %v3963_v11, %v3963_v11 }
0x1650   :  { %7130 = vmatmul.mubr.msk.bf16.vlgmr.msra.gmra.mrb[120].mxu1 %vm797_vm1, %v3965_v6 }
0x1651   :  { %7154 = vmatpush3.bf16.msra.mxu1 %v7598_v12  ;;  %7169 = vmatprep.mubr.msk.bf16.mxu1 %vm8244_vm0, %v8243_v0 }
0x1652   :  { %7155 = vmatprep.subr.bf16.mxu1 %v8243_v0 }
0x1655   :  { %7156 = vmatpush3.bf16.msra.mxu1 %v7599_v15 }
0x1656   :  { %7157 = vmatprep.subr.bf16.mxu1 %v8243_v0 }
0x1659   :  { %7158 = vmatpush3.bf16.msra.mxu1 %v7600_v21 }
0x165a   :  { %7159 = vmatprep.subr.bf16.mxu1 %v8243_v0 }
0x165d   :  { %7160 = vmatpush3.bf16.msra.mxu1 %v7601_v60 }
0x165e   :  { %7161 = vmatprep.subr.bf16.mxu1 %v8243_v0 }
0x1661   :  { %7162 = vmatpush3.bf16.msra.mxu1 %v7602_v10 }
0x1662   :  { %7163 = vmatprep.subr.bf16.mxu1 %v8243_v0 }
0x1665   :  { %7164 = vmatpush3.bf16.msra.mxu1 %v7603_v61 }
0x1666   :  { %7165 = vmatprep.subr.bf16.mxu1 %v8243_v0 }
0x1669   :  { %7166 = vmatpush3.bf16.msra.mxu1 %v7604_v62 }
0x166a   :  { %7167 = vmatprep.subr.bf16.mxu1 %v8243_v0 }
0x166d   :  { %7168 = vmatpush3.bf16.msra.mxu1 %v7605_v8 }
0x166e   :  { %7193 = vmatprep.subr.bf16.mxu1 %v8243_v0 }
0x1670   :  { %7170 = vmatmul.mubr.bf16.vlgmr.msra.gmra.mrb[124].mxu1 %v8851_v26 }
0x1671   :  { %7195 = vmatprep.mubr.msk.bf16.mxu1 %vm8244_vm0, %v8243_v0 }
0x171b   :  { %v4008_v46 = vpop.f32.mrb[116].mxu1 }
0x171c   :  { %v7125_v13 = vpop.f32.mrb[117].mxu1 }
0x171d   :  { %v4011_v14 = vpop.f32.mrb[118].mxu1 }
0x171e   :  { %v7126_v16 = vpop.f32.mrb[119].mxu1 }
0x1723   :  { %v4054_v23 = vpop.f32.mrb[120].mxu1 }
0x1724   :  { %v6240_v27 = vpack.c.bf16 %v4054_v23, %v4008_v46  ;;  %v7131_v28 = vpop.f32.mrb[121].mxu1  ;;  %v4513_v23 = vpack.c.bf16 %v8975_v29, %v8975_v29  ;;  %v7631_v29 = vld [vmem:[#allocation22 + $0xc8] sm:$0xff]  }
0x1725   :  { %v4057_v24 = vpop.f32.mrb[122].mxu1 }
0x1726   :  { %v7132_v35 = vpop.f32.mrb[123].mxu1  ;;  %5473 = vmatprep.mubr.bf16.mxu0 %v6240_v27  ;;  %v4564_v24 = vsel %vm827_vm2, %v4513_v23, 0 }
0x1727   :  { %5474 = vmatmul.mubr.bf16.vlgmr.msra.gmra.mrb[68].mxu0 %v6239_v52  ;;  %v4173_v52 = vadd.f32 %v6118_v19, %v8968_v22  ;;  %v7634_v19 = vld [vmem:[#allocation22 + $0xe0] sm:$0xff]  }
0x1728   :  { %7317 = vmatprep.mubr.msk.bf16.mxu0 %vm8244_vm0, %v8243_v0 }
0x1729   :  { %v4405_v53 = vpack.c.bf16 %v4173_v52, %v4173_v52 }
0x1743   :  { %v4283_v37 = vpop.f32.mrb[124].mxu1 }
0x1744   :  { %v4284_v38 = vadd.f32 %v6127_v36, %v4283_v37  ;;  %v7171_v39 = vpop.f32.mrb[125].mxu1  ;;  %v7630_v37 = vld [vmem:[#allocation22 + $0xc0] sm:$0xff]  }
0x1745   :  { %v4286_v40 = vpop.f32.mrb[126].mxu1  ;;  %v7632_v39 = vld [vmem:[#allocation22 + $0xd0] sm:$0xff]  }
0x1746   :  { %v4406_v41 = vpack.c.bf16 %v4284_v38, %v4284_v38  ;;  %v7172_v43 = vpop.f32.mrb[127].mxu1  ;;  %v4287_v48 = vadd.f32 %v6127_v36, %v4286_v40  ;;  %v7633_v40 = vld [vmem:[#allocation22 + $0xd8] sm:$0xff]  }
0x1747   :  { %v7636_v43 = vld [vmem:[#allocation22 + $0xf0] sm:$0xff]  }
0x1748   :  { %7194 = vmatpush3.bf16.xpose.msra.mxu1 %v4406_v41  ;;  %v4407_v30 = vpack.c.bf16 %v4287_v48, %v4287_v48  ;;  %v7635_v41 = vld [vmem:[#allocation22 + $0xe8] sm:$0xff]  }
0x1749   :  { %7199 = vmatprep.subr.bf16.mxu1 %v8243_v0 }
0x174f   :  { %7196 = vmatmul.mubr.bf16.vlgmr.msra.gmra.mrb[128].mxu1 %v4404_v49 }
0x1750   :  { %7200 = vmatpush3.bf16.xpose.msra.mxu1 %v4407_v30  ;;  %7201 = vmatprep.mubr.msk.bf16.mxu1 %vm8244_vm0, %v8243_v0 }
0x1751   :  { %7205 = vmatprep.subr.bf16.mxu1 %v8243_v0 }
0x1757   :  { %7202 = vmatmul.mubr.bf16.vlgmr.msra.gmra.mrb[132].mxu1 %v4405_v53 }
0x1758   :  { %7206 = vmatpush3.bf16.msra.mxu1 %v4518_v17  ;;  %7207 = vmatprep.mubr.msk.bf16.mxu1 %vm8244_vm0, %v8243_v0 }
0x1759   :  { %7211 = vmatprep.subr.bf16.mxu1 %v8243_v0 }
0x17fa   :  { %v6583_v25 = vpop.f32.mrb[68].mxu0 }
0x17fb   :  { %v6584_v4 = vpop.f32.mrb[69].mxu0 }
0x17fc   :  { %v9089_v54 = vadd.f32 %v6584_v4, %v6583_v25  ;;  %v6586_v55 = vpop.f32.mrb[70].mxu0  ;;  %v6156_v4 = vld [vmem:[#allocation23 + $0x3] ss:$0 sm:$0xff] }
0x17fd   :  { %v6587_v56 = vpop.f32.mrb[71].mxu0 }
0x17fe   :  { %v9091_v22 = vadd.f32 %v6587_v56, %v6586_v55 }
0x1822   :  { %v4442_v57 = vpop.f32.mrb[128].mxu1 }
0x1823   :  { %v4443_v42 = vadd.f32 %v4442_v57, %v8982_v32  ;;  %v7197_v11 = vpop.f32.mrb[129].mxu1 }
0x1824   :  { %v4445_v12 = vpop.f32.mrb[130].mxu1 }
0x1825   :  { %v7198_v6 = vpop.f32.mrb[131].mxu1  ;;  %v4488_v15 = vsel %vm797_vm1, %v4443_v42, -inf }
0x1826   :  { %4489 = vmax.xlane.f32.xlu0 %v4488_v15 }
0x182a   :  { %v4482_v21 = vpop.f32.mrb[132].mxu1 }
0x182b   :  { %v4483_v60 = vadd.f32 %v4482_v21, %v8982_v32  ;;  %v7203_v10 = vpop.f32.mrb[133].mxu1 }
0x182c   :  { %v4485_v61 = vpop.f32.mrb[134].mxu1 }
0x182d   :  { %v7204_v62 = vpop.f32.mrb[135].mxu1  ;;  %v4491_v8 = vsel %vm797_vm1, %v4483_v60, -inf }
0x182e   :  { %4492 = vmax.xlane.f32.xlu1 %v4491_v8 }
0x18b3   :  { %v4490_v63 = vpop.xlane.xlu0 %4489 }
0x18b4   :  { %v4494_v59 = vsub.f32 %v4443_v42, %v4490_v63  ;;  %v6147_v42 = vld [vmem:[#allocation20 + $0x3] ss:$0 sm:$0xff] }
0x18b5   :  { %v4716_v6 = vadd.f32 %v6147_v42, %v8977_v47  ;;  %v4719_v61 = vadd.f32 %v6147_v42, %v8979_v31  ;;  %v7650_v42 = vld [vmem:[#allocation28 + $0xf0] sm:$0xff]  }
0x18b6   :  { %v4496_v51 = vmul.f32 1.442695, %v4494_v59 }
0x18b7   :  { %v4950_v21 = vpack.c.bf16 %v4716_v6, %v4716_v6  ;;  %v4951_v8 = vpack.c.bf16 %v4719_v61, %v4719_v61  ;;  %v7653_v6 = vld [vmem:[#allocation28 + $0xb8] sm:$0xff]  }
0x18b8   :  { %7722 = vpow2.f32 %v4496_v51 }
0x18bb   :  { %v4493_v33 = vpop.xlane.xlu1 %4492 }
0x18bc   :  { %v4495_v34 = vsub.f32 %v4483_v60, %v4493_v33  ;;  %v4944_v60 = vadd.f32 %v9065_v2, %v9067_v3 }
0x18be   :  { %v4498_v1 = vmul.f32 1.442695, %v4495_v34  ;;  %v5058_v62 = vpack.c.bf16 %v4944_v60, %v4944_v60 }
0x18c0   :  { %7724 = vpow2.f32 %v4498_v1  ;;  %v5064_v47 = vsel %vm827_vm2, %v5058_v62, 0 }
0x18c2   :  { %v7723_v7 = vpop.eup %7722 }
0x18c3   :  { %v4500_v5 = vsel %vm797_vm1, %v7723_v7, 0.0 }
0x18c4   :  { %4501 = vadd.xlane.f32.xlu0 %v4500_v5 }
0x18ca   :  { %v7725_v45 = vpop.eup %7724 }
0x18cb   :  { %v4503_v46 = vsel %vm797_vm1, %v7725_v45, 0.0 }
0x18cc   :  { %4504 = vadd.xlane.f32.xlu1 %v4503_v46 }
0x1951   :  { %v4502_v13 = vpop.xlane.xlu0 %4501 }
0x1952   :  { %7726 = vrcp.f32 %v4502_v13 }
0x1959   :  { %v4505_v14 = vpop.xlane.xlu1 %4504 }
0x195a   :  { %7728 = vrcp.f32 %v4505_v14 }
0x195c   :  { %v7727_v16 = vpop.eup %7726 }
0x195d   :  { %v4508_v27 = vmul.f32 %v7727_v16, %v7723_v7 }
0x195f   :  { %v4510_v28 = vpack.c.bf16 %v4508_v27, %v4508_v27 }
0x1961   :  { %7208 = vmatmul.mubr.msk.bf16.vlgmr.msra.gmra.mrb[136].mxu1 %vm797_vm1, %v4510_v28 }
0x1962   :  { %7212 = vmatpush3.bf16.msra.mxu1 %v4564_v24  ;;  %7213 = vmatprep.mubr.msk.bf16.mxu1 %vm8244_vm0, %v8243_v0 }
0x1963   :  { %7237 = vmatprep.subr.bf16.mxu1 %v8243_v0 }
0x1964   :  { %v7729_v35 = vpop.eup %7728 }
0x1965   :  { %v4509_v36 = vmul.f32 %v7729_v35, %v7725_v45 }
0x1967   :  { %v4511_v38 = vpack.c.bf16 %v4509_v36, %v4509_v36 }
0x1969   :  { %7214 = vmatmul.mubr.msk.bf16.vlgmr.msra.gmra.mrb[140].mxu1 %vm797_vm1, %v4511_v38 }
0x196a   :  { %7238 = vmatpush3.bf16.msra.mxu1 %v7630_v37  ;;  %7253 = vmatprep.mubr.msk.bf16.mxu1 %vm8244_vm0, %v8243_v0 }
0x196b   :  { %7239 = vmatprep.subr.bf16.mxu1 %v8243_v0 }
0x196e   :  { %7240 = vmatpush3.bf16.msra.mxu1 %v7631_v29  ;;  %v5059_v29 = vpack.c.bf16 %v9070_v9, %v9070_v9  ;;  %v7641_v9 = vld [vmem:[#allocation28 + $0x88] sm:$0xff]  }
0x196f   :  { %7241 = vmatprep.subr.bf16.mxu1 %v8243_v0 }
0x1972   :  { %7242 = vmatpush3.bf16.msra.mxu1 %v7632_v39 }
0x1973   :  { %7243 = vmatprep.subr.bf16.mxu1 %v8243_v0 }
0x1976   :  { %7244 = vmatpush3.bf16.msra.mxu1 %v7633_v40 }
0x1977   :  { %7245 = vmatprep.subr.bf16.mxu1 %v8243_v0 }
0x197a   :  { %7246 = vmatpush3.bf16.msra.mxu1 %v7634_v19  ;;  %v7638_v19 = vld [vmem:[#allocation28 + $0xc0] sm:$0xff]  }
0x197b   :  { %7247 = vmatprep.subr.bf16.mxu1 %v8243_v0 }
0x197e   :  { %7248 = vmatpush3.bf16.msra.mxu1 %v7635_v41  ;;  %v5110_v41 = vsel %vm827_vm2, %v5059_v29, 0 }
0x197f   :  { %7249 = vmatprep.subr.bf16.mxu1 %v8243_v0 }
0x1982   :  { %7250 = vmatpush3.bf16.msra.mxu1 %v7636_v43 }
0x1983   :  { %7251 = vmatprep.subr.bf16.mxu1 %v8243_v0 }
0x1986   :  { %7252 = vmatpush3.bf16.msra.mxu1 %v7637_v44 }
0x1987   :  { %7277 = vmatprep.subr.bf16.mxu1 %v8243_v0 }
0x1989   :  { %7254 = vmatmul.mubr.bf16.vlgmr.msra.gmra.mrb[144].mxu1 %v8851_v26 }
0x198a   :  { %7279 = vmatprep.mubr.msk.bf16.mxu1 %vm8244_vm0, %v8243_v0 }
0x1a34   :  { %v9120_v48 = vpop.f32.mrb[136].mxu1 }
0x1a35   :  { %v7209_v49 = vpop.f32.mrb[137].mxu1 }
0x1a36   :  { %v4557_v18 = vpop.f32.mrb[138].mxu1  ;;  %v7639_v49 = vld [vmem:[#allocation28 + $0x80] sm:$0xff]  }
0x1a37   :  { %v7210_v30 = vpop.f32.mrb[139].mxu1 }
0x1a38   :  { %v7640_v30 = vld [vmem:[#allocation28 + $0xc8] sm:$0xff]  }
0x1a3c   :  { %v9122_v52 = vpop.f32.mrb[140].mxu1 }
0x1a3d   :  { %v6241_v50 = vpack.c.bf16 %v9122_v52, %v9120_v48  ;;  %v7215_v53 = vpop.f32.mrb[141].mxu1 }
0x1a3e   :  { %v4603_v17 = vpop.f32.mrb[142].mxu1  ;;  %v7642_v53 = vld [vmem:[#allocation28 + $0xd0] sm:$0xff]  }
0x1a3f   :  { %v7216_v25 = vpop.f32.mrb[143].mxu1  ;;  %v7643_v17 = vld [vmem:[#allocation28 + $0x90] sm:$0xff]  }
0x1a40   :  { %v7644_v25 = vld [vmem:[#allocation28 + $0xd8] sm:$0xff]  }
0x1a5c   :  { %v4829_v55 = vpop.f32.mrb[144].mxu1 }
0x1a5d   :  { %v4830_v56 = vadd.f32 %v6156_v4, %v4829_v55  ;;  %v7255_v26 = vpop.f32.mrb[145].mxu1  ;;  %v7646_v55 = vld [vmem:[#allocation28 + $0xe0] sm:$0xff]  }
0x1a5e   :  { %v4832_v57 = vpop.f32.mrb[146].mxu1  ;;  %v7648_v26 = vld [vmem:[#allocation28 + $0xe8] sm:$0xff]  }
0x1a5f   :  { %v4952_v11 = vpack.c.bf16 %v4830_v56, %v4830_v56  ;;  %v7256_v12 = vpop.f32.mrb[147].mxu1  ;;  %v4833_v15 = vadd.f32 %v6156_v4, %v4832_v57  ;;  %v7645_v4 = vld [vmem:[#allocation28 + $0x98] sm:$0xff]   ;;  %v7647_v56 = vld [vmem:[#allocation28 + $0xa0] sm:$0xff]   ;;  %v7649_v57 = vld [vmem:[#allocation28 + $0xa8] sm:$0xff]  }
0x1a60   :  { %v7652_v12 = vld [vmem:[#allocation28 + $0xf8] sm:$0xff]  }
0x1a61   :  { %7278 = vmatpush3.bf16.xpose.msra.mxu1 %v4952_v11  ;;  %v4953_v10 = vpack.c.bf16 %v4833_v15, %v4833_v15  ;;  %v7651_v11 = vld [vmem:[#allocation28 + $0xb0] sm:$0xff]  }
0x1a62   :  { %7283 = vmatprep.subr.bf16.mxu1 %v8243_v0 }
0x1a68   :  { %7280 = vmatmul.mubr.bf16.vlgmr.msra.gmra.mrb[148].mxu1 %v4950_v21 }
0x1a69   :  { %7284 = vmatpush3.bf16.xpose.msra.mxu1 %v4953_v10  ;;  %7285 = vmatprep.mubr.msk.bf16.mxu1 %vm8244_vm0, %v8243_v0 }
0x1a6a   :  { %7289 = vmatprep.subr.bf16.mxu1 %v8243_v0 }
0x1a70   :  { %7286 = vmatmul.mubr.bf16.vlgmr.msra.gmra.mrb[152].mxu1 %v4951_v8 }
0x1a71   :  { %7290 = vmatpush3.bf16.msra.mxu1 %v5064_v47  ;;  %7291 = vmatprep.mubr.msk.bf16.mxu1 %vm8244_vm0, %v8243_v0 }
0x1a72   :  { %7295 = vmatprep.subr.bf16.mxu1 %v8243_v0 }
0x1b3b   :  { %v4988_v2 = vpop.f32.mrb[148].mxu1 }
0x1b3c   :  { %v4989_v3 = vadd.f32 %v4988_v2, %v8982_v32  ;;  %v7281_v63 = vpop.f32.mrb[149].mxu1 }
0x1b3d   :  { %v4991_v59 = vpop.f32.mrb[150].mxu1 }
0x1b3e   :  { %v7282_v51 = vpop.f32.mrb[151].mxu1  ;;  %v5034_v31 = vsel %vm797_vm1, %v4989_v3, -inf }
0x1b3f   :  { %5035 = vmax.xlane.f32.xlu0 %v5034_v31 }
0x1b43   :  { %v5028_v33 = vpop.f32.mrb[152].mxu1 }
0x1b44   :  { %v5029_v34 = vadd.f32 %v5028_v33, %v8982_v32  ;;  %v7287_v1 = vpop.f32.mrb[153].mxu1 }
0x1b45   :  { %v5031_v7 = vpop.f32.mrb[154].mxu1 }
0x1b46   :  { %v7288_v5 = vpop.f32.mrb[155].mxu1  ;;  %v5037_v45 = vsel %vm797_vm1, %v5029_v34, -inf }
0x1b47   :  { %5038 = vmax.xlane.f32.xlu1 %v5037_v45  ;;  %v7655_v45 = vld [vmem:[%s9237_s11 + $0x8] sm:$0xff]  }
0x1bcc   :  { %v5036_v46 = vpop.xlane.xlu0 %5035 }
0x1bcd   :  { %v5040_v13 = vsub.f32 %v4989_v3, %v5036_v46  ;;  %v6176_v3 = vld [vmem:[%s9236_s4] ss:$0 sm:$0xff]  ;;  %v7657_v46 = vld [vmem:[%s9237_s11 + $0x18] sm:$0xff]  }
0x1bce   :  { %v5476_v51 = vadd.f32 %v9089_v54, %v6176_v3  ;;  %v5479_v1 = vadd.f32 %v9091_v22, %v6176_v3 }
0x1bcf   :  { %v5042_v14 = vmul.f32 1.442695, %v5040_v13  ;;  %v7658_v13 = vld [vmem:[%s9237_s11 + $0x20] sm:$0xff]  }
0x1bd1   :  { %7730 = vpow2.f32 %v5042_v14  ;;  %v7659_v14 = vld [vmem:[%s9237_s11 + $0x28] sm:$0xff]  }
0x1bd4   :  { %v5039_v16 = vpop.xlane.xlu1 %5038 }
0x1bd5   :  { %v5041_v23 = vsub.f32 %v5029_v34, %v5039_v16  ;;  %v7660_v16 = vld [vmem:[%s9237_s11 + $0x30] sm:$0xff]  }
0x1bd7   :  { %v5044_v27 = vmul.f32 1.442695, %v5041_v23  ;;  %v7661_v23 = vld [vmem:[%s9237_s11 + $0x38] sm:$0xff]  }
0x1bd9   :  { %7732 = vpow2.f32 %v5044_v27  ;;  %v7662_v27 = vld [vmem:[#allocation29] sm:$0xff]  }
0x1bdb   :  { %v7731_v28 = vpop.eup %7730 }
0x1bdc   :  { %v5046_v24 = vsel %vm797_vm1, %v7731_v28, 0.0 }
0x1bdd   :  { %5047 = vadd.xlane.f32.xlu0 %v5046_v24  ;;  %v7664_v24 = vld [vmem:[#allocation29 + $0x10] sm:$0xff]  }
0x1be3   :  { %v7733_v35 = vpop.eup %7732 }
0x1be4   :  { %v5049_v32 = vsel %vm797_vm1, %v7733_v35, 0.0 }
0x1be5   :  { %5050 = vadd.xlane.f32.xlu1 %v5049_v32  ;;  %v7666_v32 = vld [vmem:[#allocation29 + $0x20] sm:$0xff]  }
0x1c6a   :  { %v5048_v36 = vpop.xlane.xlu0 %5047 }
0x1c6b   :  { %7734 = vrcp.f32 %v5048_v36  ;;  %v7667_v36 = vld [vmem:[#allocation29 + $0x28] sm:$0xff]  }
0x1c72   :  { %v5051_v37 = vpop.xlane.xlu1 %5050 }
0x1c73   :  { %7736 = vrcp.f32 %v5051_v37 }
0x1c75   :  { %v7735_v38 = vpop.eup %7734 }
0x1c76   :  { %v5054_v39 = vmul.f32 %v7735_v38, %v7731_v28  ;;  %v7663_v28 = vld [vmem:[#allocation29 + $0x8] sm:$0xff]  }
0x1c78   :  { %v5056_v40 = vpack.c.bf16 %v5054_v39, %v5054_v39 }
0x1c7a   :  { %7292 = vmatmul.mubr.msk.bf16.vlgmr.msra.gmra.mrb[156].mxu1 %vm797_vm1, %v5056_v40 }
0x1c7b   :  { %7296 = vmatpush3.bf16.msra.mxu1 %v5110_v41  ;;  %7297 = vmatprep.mubr.msk.bf16.mxu1 %vm8244_vm0, %v8243_v0 }
0x1c7c   :  { %6589 = vmatprep.subr.bf16.mxu1 %v7638_v19 }
0x1c7d   :  { %v7737_v43 = vpop.eup %7736 }
0x1c7e   :  { %v5055_v44 = vmul.f32 %v7737_v43, %v7733_v35  ;;  %v7665_v35 = vld [vmem:[#allocation29 + $0x18] sm:$0xff]  }
0x1c80   :  { %v5057_v18 = vpack.c.bf16 %v5055_v44, %v5055_v44 }
0x1c82   :  { %7298 = vmatmul.mubr.msk.bf16.vlgmr.msra.gmra.mrb[160].mxu1 %vm797_vm1, %v5057_v18 }
0x1c83   :  { %6590 = vmatpush3.bf16.msra.mxu1 %v7639_v49 }
0x1c84   :  { %6591 = vmatprep.subr.bf16.mxu1 %v7640_v30 }
0x1c87   :  { %6592 = vmatpush3.bf16.msra.mxu1 %v7641_v9 }
0x1c88   :  { %6593 = vmatprep.subr.bf16.mxu1 %v7642_v53 }
0x1c8b   :  { %6594 = vmatpush3.bf16.msra.mxu1 %v7643_v17 }
0x1c8c   :  { %6595 = vmatprep.subr.bf16.mxu1 %v7644_v25 }
0x1c8f   :  { %6596 = vmatpush3.bf16.msra.mxu1 %v7645_v4 }
0x1c90   :  { %6597 = vmatprep.subr.bf16.mxu1 %v7646_v55 }
0x1c93   :  { %6598 = vmatpush3.bf16.msra.mxu1 %v7647_v56  ;;  %v6213_v56 = vld [vmem:[%s9238_s15] ss:$0 sm:$0xff] }
0x1c94   :  { %6599 = vmatprep.subr.bf16.mxu1 %v7648_v26 }
0x1c97   :  { %6600 = vmatpush3.bf16.msra.mxu1 %v7649_v57 }
0x1c98   :  { %6601 = vmatprep.subr.bf16.mxu1 %v7650_v42 }
0x1c9b   :  { %6602 = vmatpush3.bf16.msra.mxu1 %v7651_v11 }
0x1c9c   :  { %6603 = vmatprep.subr.bf16.mxu1 %v7652_v12 }
0x1c9f   :  { %6604 = vmatpush3.bf16.msra.mxu1 %v7653_v6  ;;  %v6214_v6 = vld [vmem:[%s8389_s24] ss:$0 sm:$0xff]  ;;  %s8245_s24 = smov [#allocation31]  }
0x1ca0   :  { %7321 = vmatprep.subr.bf16.mxu1 %v8243_v0  ;;  %s5854_s19 = sshll.u32 %s8245_s24, 4  ;;  %s5855_s19 = int_to_ptr.vmem [resolvable:$true] %s5854_s19 }
0x1ca1   :  { %s8145_s16 = scalar_lea.vmem %s5855_s19, 256  ;;  %p8150_p5 = scmp.lt.s32.totalorder %s5855_s19, %s5855_s19 }
0x1ca2   :  { %p8146_p4 = scmp.ne.s32.totalorder %s5855_s19, %s8145_s16  ;;  %p8151_p6 = scmp.lt.s32.totalorder %s8145_s16, %s8145_s16 }
0x1ca4   :  { %p8152_p7 = por %p8151_p6, %p8150_p5 }
0x1ca6   :  { %p8153_p8 = pnand %p8152_p7, %p8146_p4 }
0x1d4d   :  { %v5100_v15 = vpop.f32.mrb[156].mxu1 }
0x1d4e   :  { %v7293_v21 = vpop.f32.mrb[157].mxu1 }
0x1d4f   :  { %v5103_v60 = vpop.f32.mrb[158].mxu1 }
0x1d50   :  { %v7294_v10 = vpop.f32.mrb[159].mxu1 }
0x1d55   :  { %v5146_v61 = vpop.f32.mrb[160].mxu1 }
0x1d56   :  { %v6242_v62 = vpack.c.bf16 %v5146_v61, %v5100_v15  ;;  %v7299_v8 = vpop.f32.mrb[161].mxu1  ;;  %v7668_v61 = vld [vmem:[#allocation29 + $0x30] sm:$0xff]  }
0x1d57   :  { %v5149_v47 = vpop.f32.mrb[162].mxu1  ;;  %v6215_v8 = vld [vmem:[%s9239_s14] ss:$0 sm:$0xff] }
0x1d58   :  { %v7300_v2 = vpop.f32.mrb[163].mxu1  ;;  %5514 = vmatprep.mubr.bf16.mxu1 %v6242_v62  ;;  %v7669_v62 = vld [vmem:[#allocation29 + $0x38] sm:$0xff]  }
0x1d59   :  { %5515 = vmatmul.mubr.bf16.vlgmr.msra.gmra.mrb[164].mxu1 %v6241_v50 }
0x1d5a   :  { %7337 = vmatprep.mubr.msk.bf16.mxu1 %vm8244_vm0, %v8243_v0  ;;  %7322 = vmatpush3.bf16.msra.mxu1 %v7662_v27 }
0x1d5b   :  { %7323 = vmatprep.subr.bf16.mxu1 %v8243_v0 }
0x1d5e   :  { %7324 = vmatpush3.bf16.msra.mxu1 %v7663_v28 }
0x1d5f   :  { %7325 = vmatprep.subr.bf16.mxu1 %v8243_v0 }
0x1d62   :  { %7326 = vmatpush3.bf16.msra.mxu1 %v7664_v24 }
0x1d63   :  { %7327 = vmatprep.subr.bf16.mxu1 %v8243_v0 }
0x1d66   :  { %7328 = vmatpush3.bf16.msra.mxu1 %v7665_v35 }
0x1d67   :  { %7329 = vmatprep.subr.bf16.mxu1 %v8243_v0 }
0x1d6a   :  { %7330 = vmatpush3.bf16.msra.mxu1 %v7666_v32 }
0x1d6b   :  { %7331 = vmatprep.subr.bf16.mxu1 %v8243_v0 }
0x1d6e   :  { %7332 = vmatpush3.bf16.msra.mxu1 %v7667_v36 }
0x1d6f   :  { %7333 = vmatprep.subr.bf16.mxu1 %v8243_v0 }
0x1d72   :  { %7334 = vmatpush3.bf16.msra.mxu1 %v7668_v61 }
0x1d73   :  { %7335 = vmatprep.subr.bf16.mxu1 %v8243_v0 }
0x1d76   :  { %7336 = vmatpush3.bf16.msra.mxu1 %v7669_v62 }
0x1e2c   :  { %v6605_v63 = vpop.f32.mrb[164].mxu1 }
0x1e2d   :  { %v6606_v59 = vpop.f32.mrb[165].mxu1 }
0x1e2e   :  { %v6607_v31 = vadd.f32 %v6606_v59, %v6605_v63  ;;  %v6608_v33 = vpop.f32.mrb[166].mxu1 }
0x1e2f   :  { %v6609_v34 = vpop.f32.mrb[167].mxu1 }
0x1e30   :  { %v5517_v7 = vadd.f32 %v6607_v31, %v5476_v51  ;;  %v6610_v5 = vadd.f32 %v6609_v34, %v6608_v33 }
0x1e32   :  { %v5520_v48 = vadd.f32 %v6610_v5, %v5479_v1  ;;  %v9161_v52 = vadd.f32 %v5517_v7, %v8864_v58  ;;  %v7654_v58 = vld [vmem:[%s9237_s11] sm:$0xff]  }
0x1e33   :  { %7302 = vmatpush3.bf16.msra.mxu0 %v7654_v58  ;;  %v6224_v1 = vld [vmem:[%s9240_s0] ss:$0 sm:$0xff] }
0x1e34   :  { %5525 = vadd.xlane.f32.xlu0 %v9161_v52  ;;  %v9165_v50 = vadd.f32 %v5520_v48, %v8866_v20  ;;  %v5531_v54 = vmul.f32 %v9161_v52, %v9161_v52  ;;  %7303 = vmatprep.subr.bf16.mxu0 %v8243_v0  ;;  %v7656_v20 = vld [vmem:[%s9237_s11 + $0x10] sm:$0xff]  }
0x1e36   :  { %5527 = vadd.xlane.f32.xlu1 %v9165_v50  ;;  %v5532_v22 = vmul.f32 %v9165_v50, %v9165_v50 }
0x1e37   :  { %7304 = vmatpush3.bf16.msra.mxu0 %v7655_v45 }
0x1e38   :  { %5533 = vadd.xlane.f32.xlu0 %v5531_v54  ;;  %7305 = vmatprep.subr.bf16.mxu0 %v8243_v0 }
0x1e3a   :  { %5535 = vadd.xlane.f32.xlu1 %v5532_v22 }
0x1e3b   :  { %7306 = vmatpush3.bf16.msra.mxu0 %v7656_v20 }
0x1e3c   :  { %7307 = vmatprep.subr.bf16.mxu0 %v8243_v0 }
0x1e3f   :  { %7308 = vmatpush3.bf16.msra.mxu0 %v7657_v46 }
0x1e40   :  { %7309 = vmatprep.subr.bf16.mxu0 %v8243_v0 }
0x1e43   :  { %7310 = vmatpush3.bf16.msra.mxu0 %v7658_v13 }
0x1e44   :  { %7311 = vmatprep.subr.bf16.mxu0 %v8243_v0 }
0x1e47   :  { %7312 = vmatpush3.bf16.msra.mxu0 %v7659_v14 }
0x1e48   :  { %7313 = vmatprep.subr.bf16.mxu0 %v8243_v0 }
0x1e4b   :  { %7314 = vmatpush3.bf16.msra.mxu0 %v7660_v16 }
0x1e4c   :  { %7315 = vmatprep.subr.bf16.mxu0 %v8243_v0 }
0x1e4f   :  { %7316 = vmatpush3.bf16.msra.mxu0 %v7661_v23 }
0x1ec1   :  { %v5526_v37 = vpop.xlane.xlu0 %5525 }
0x1ec2   :  { %v5529_v38 = vmul.f32 0.03125, %v5526_v37 }
0x1ec3   :  { %v5528_v29 = vpop.xlane.xlu1 %5527 }
0x1ec4   :  { %v5530_v39 = vmul.f32 0.03125, %v5528_v29  ;;  %v5539_v19 = vmul.f32 %v5529_v38, %v5529_v38  ;;  %v5545_v4 = vsub.f32 %v9161_v52, %v5529_v38 }
0x1ec5   :  { %v5534_v40 = vpop.xlane.xlu0 %5533 }
0x1ec6   :  { %v5537_v41 = vmul.f32 0.03125, %v5534_v40  ;;  %v5540_v44 = vmul.f32 %v5530_v39, %v5530_v39  ;;  %v5546_v26 = vsub.f32 %v9165_v50, %v5530_v39 }
0x1ec7   :  { %v5536_v43 = vpop.xlane.xlu1 %5535 }
0x1ec8   :  { %v5541_v49 = vsub.f32 %v5537_v41, %v5539_v19  ;;  %v5538_v18 = vmul.f32 0.03125, %v5536_v43  ;;  %v6233_v41 = vld [vmem:[%s8394_s27] ss:$0 sm:$0xff] }
0x1eca   :  { %v5543_v30 = vmax.f32 %v5541_v49, 0.0  ;;  %v5542_v9 = vsub.f32 %v5538_v18, %v5540_v44  ;;  %v6234_v18 = vld [vmem:[%s8399_s12] ss:$0 sm:$0xff] }
0x1ecc   :  { %v5547_v53 = vadd.f32 1e-05, %v5543_v30  ;;  %v5544_v17 = vmax.f32 %v5542_v9, 0.0 }
0x1ece   :  { %7738 = vrsqrt.f32 %v5547_v53  ;;  %v5548_v25 = vadd.f32 1e-05, %v5544_v17 }
0x1ed0   :  { %7740 = vrsqrt.f32 %v5548_v25 }
0x1ed8   :  { %v7739_v55 = vpop.eup %7738 }
0x1ed9   :  { %v5551_v57 = vmul.f32 %v7739_v55, %v5545_v4 }
0x1eda   :  { %v7741_v42 = vpop.eup %7740 }
0x1edb   :  { %v5552_v11 = vmul.f32 %v7741_v42, %v5546_v26  ;;  %v5560_v12 = vmul.f32 %v6213_v56, %v5551_v57 }
0x1edd   :  { %v5561_v15 = vmul.f32 %v6213_v56, %v5552_v11  ;;  %v5569_v21 = vadd.f32 %v6214_v6, %v5560_v12 }
0x1edf   :  { %v5570_v60 = vadd.f32 %v6214_v6, %v5561_v15 }
0x1ee1   :  { %v5571_v10 = vpack.c.bf16 %v5570_v60, %v5569_v21 }
0x1ee3   :  { %7318 = vmatmul.mubr.bf16.vlgmr.msra.gmra.mrb[72].mxu0 %v5571_v10 }
0x1fb6   :  { %v5677_v47 = vpop.f32.mrb[72].mxu0 }
0x1fb7   :  { %v5678_v2 = vadd.f32 %v6215_v8, %v5677_v47  ;;  %v7319_v3 = vpop.f32.mrb[73].mxu0 }
0x1fb8   :  { %v5680_v63 = vpop.f32.mrb[74].mxu0 }
0x1fb9   :  { %v5681_v59 = vadd.f32 %v6215_v8, %v5680_v63  ;;  %v7320_v51 = vpop.f32.mrb[75].mxu0  ;;  %v5684_v31 = vmax.f32 %v5678_v2, 0.0 }
0x1fbb   :  { %v5685_v33 = vmax.f32 %v5681_v59, 0.0 }
0x1fbd   :  { %v5686_v34 = vpack.c.bf16 %v5685_v33, %v5684_v31 }
0x1fbf   :  { %7338 = vmatmul.mubr.bf16.vlgmr.msra.gmra.mrb[168].mxu1 %v5686_v34 }
0x2092   :  { %v5792_v7 = vpop.f32.mrb[168].mxu1 }
0x2093   :  { %v5793_v5 = vadd.f32 %v6224_v1, %v5792_v7  ;;  %v7339_v48 = vpop.f32.mrb[169].mxu1 }
0x2094   :  { %v5795_v52 = vpop.f32.mrb[170].mxu1 }
0x2095   :  { %v5799_v50 = vadd.f32 %v5793_v5, %v5569_v21  ;;  %v5796_v0 = vadd.f32 %v6224_v1, %v5795_v52  ;;  %v7340_v54 = vpop.f32.mrb[171].mxu1 }
0x2097   :  { %v5800_v22 = vadd.f32 %v5796_v0, %v5570_v60  ;;  %5801 = vadd.xlane.f32.xlu0 %v5799_v50  ;;  %v5807_v58 = vmul.f32 %v5799_v50, %v5799_v50 }
0x2099   :  { %5803 = vadd.xlane.f32.xlu1 %v5800_v22  ;;  %v5808_v45 = vmul.f32 %v5800_v22, %v5800_v22 }
0x209b   :  { %5809 = vadd.xlane.f32.xlu0 %v5807_v58 }
0x209d   :  { %5811 = vadd.xlane.f32.xlu1 %v5808_v45 }
0x2124   :  { %v5802_v20 = vpop.xlane.xlu0 %5801 }
0x2125   :  { %v5805_v46 = vmul.f32 0.03125, %v5802_v20 }
0x2126   :  { %v5804_v13 = vpop.xlane.xlu1 %5803 }
0x2127   :  { %v5806_v14 = vmul.f32 0.03125, %v5804_v13  ;;  %v5815_v23 = vmul.f32 %v5805_v46, %v5805_v46  ;;  %v5821_v40 = vsub.f32 %v5799_v50, %v5805_v46 }
0x2128   :  { %v5810_v16 = vpop.xlane.xlu0 %5809 }
0x2129   :  { %v5813_v27 = vmul.f32 0.03125, %v5810_v16  ;;  %v5816_v24 = vmul.f32 %v5806_v14, %v5806_v14  ;;  %v5822_v43 = vsub.f32 %v5800_v22, %v5806_v14 }
0x212a   :  { %v5812_v28 = vpop.xlane.xlu1 %5811 }
0x212b   :  { %v5817_v35 = vsub.f32 %v5813_v27, %v5815_v23  ;;  %v5814_v32 = vmul.f32 0.03125, %v5812_v28 }
0x212d   :  { %v5819_v36 = vmax.f32 %v5817_v35, 0.0  ;;  %v5818_v37 = vsub.f32 %v5814_v32, %v5816_v24 }
0x212f   :  { %v5823_v38 = vadd.f32 1e-05, %v5819_v36  ;;  %v5820_v29 = vmax.f32 %v5818_v37, 0.0 }
0x2131   :  { %7742 = vrsqrt.f32 %v5823_v38  ;;  %v5824_v39 = vadd.f32 1e-05, %v5820_v29 }
0x2133   :  { %7744 = vrsqrt.f32 %v5824_v39 }
0x213b   :  { %v7743_v19 = vpop.eup %7742 }
0x213c   :  { %v5827_v44 = vmul.f32 %v7743_v19, %v5821_v40 }
0x213d   :  { %v7745_v49 = vpop.eup %7744 }
0x213e   :  { %v5828_v30 = vmul.f32 %v7745_v49, %v5822_v43  ;;  %v5836_v9 = vmul.f32 %v6233_v41, %v5827_v44 }
0x2140   :  { %v5837_v53 = vmul.f32 %v6233_v41, %v5828_v30  ;;  %v5845_v17 = vadd.f32 %v6234_v18, %v5836_v9 }
0x2142   :  { %v5846_v25 = vadd.f32 %v6234_v18, %v5837_v53  ;;  %5847 = vst [vmem:[#allocation31] sm:$0xff] %v5845_v17 }
0x2144   :  { %5848 = vst [vmem:[#allocation31 + $0x8] sm:$0xff] %v5846_v25 }
0x2145   :  { %8156 = shalt.err (!%p8153_p8)
}
0x2146   :  { %s8157_s12 = scalar_lea.hbm %s8404_s17, 256 }
0x2147   :  { %p8158_p9 = scmp.ne.s32.totalorder %s8404_s17, %s8157_s12  ;;  %p8161_p10 = scmp.lt.u32.totalorder %s8157_s12, %s8404_s17 }
0x2149   :  { %p8163_p11 = pnand %p8161_p10, %p8158_p9 }
0x214b   :  { %8166 = shalt.err (!%p8163_p11)
}
0x214c   :  { %5860 = dma.vmem_to_hbm [thread:$0]  %s5855_s19, 256, %s8404_s17, [#allocation4], %s8221_s26, %s8221_s26, %s8222_s28  }
0x214d   :  { %8187 = dma.done.wait [#allocation4], 256  }
0x214e   :  { %8188 = vsyncadd [#allocation4], 4294967040 }
0x214f   :  { %5864 = vsyncpa [#allocation3], 1 }
0x2150   :  { %5865 = vsyncpa [#allocation6], 1 }
0x2151   :  { %5866 = vsyncpa [#allocation9], 1 }
0x2152   :  { %5867 = vsyncpa [#allocation12], 1 }
0x2153   :  { %5868 = vsyncpa [#allocation15], 1 }
0x2154   :  { %5869 = vsyncpa [#allocation18], 1 }
0x2155   :  { %5870 = vsyncpa [#allocation21], 1 }
0x2156   :  { %5871 = vsyncpa [#allocation24], 1 }
0x2157   :  { %5872 = vsyncpa [#allocation27], 1 }
0x2158   :  { %5873 = vsyncpa [#allocation30], 1 }
0x2159   :  { %5874 = vsyncpa [#allocation4], 1 }

</bundles_post_ra>
